<compile_context>
chip_gen: v6e
topology: v6e:2x2x1
jax: 0.10.0
libtpu: 0.0.40
codegen_flags: <defaults>
</compile_context>

<pallas_src>
import functools

import jax
import jax.numpy as jnp
from jax.experimental import pallas as pl
from jax.experimental.pallas import tpu as pltpu


def _conv3x3_fused_k(in_buf, slab, w_ref, b_ref, left_edge, right_edge, *, H, W):
    """Same-padded 3x3 conv + bias + ReLU with the K dimension fused over kx.

    in_buf : VMEM ref ((H+2)*W, Cin) f32, flattened row-major with one zero image
             row of padding at the top and bottom.
    slab   : VMEM ref ((H+2)*W, 3*Cin) bf16 scratch; columns [t*Cin:(t+1)*Cin]
             hold horizontal tap t (t=0: dx=-1, t=1: dx=0, t=2: dx=+1).
    w_ref  : (3, 3*Cin, Cout) bf16 weights, ky-major, K ordered (kx, cin).
    b_ref  : (1, Cout) f32 bias.
    Returns (H*W, Cout) f32 post-ReLU activations.
    """
    HW = H * W
    n_pad = in_buf.shape[0]
    cin = in_buf.shape[1]

    x0 = in_buf[...]                                               # (Npad, Cin) f32
    zero = jnp.zeros((), x0.dtype)
    # Horizontal taps via sublane rolls (XLU) + column-boundary masks.
    # pltpu.roll needs non-negative shifts: roll by (Npad-1) == roll by -1.
    x_m1 = jnp.where(left_edge, zero, pltpu.roll(x0, shift=1, axis=0))          # dx = -1
    x_p1 = jnp.where(right_edge, zero, pltpu.roll(x0, shift=n_pad - 1, axis=0))  # dx = +1

    # Stage the im2col slab in VMEM (bf16 MXU inputs), K ordered (kx, cin).
    slab[:, 0:cin] = x_m1.astype(jnp.bfloat16)
    slab[:, cin:2 * cin] = x0.astype(jnp.bfloat16)
    slab[:, 2 * cin:3 * cin] = x_p1.astype(jnp.bfloat16)

    # Vertical taps = aligned sublane slices of the slab; 3 matmuls, K = 3*Cin.
    acc = jnp.dot(slab[0:HW, :], w_ref[0],
                  preferred_element_type=jnp.float32) + b_ref[...]
    acc = acc + jnp.dot(slab[W:W + HW, :], w_ref[1],
                        preferred_element_type=jnp.float32)
    acc = acc + jnp.dot(slab[2 * W:2 * W + HW, :], w_ref[2],
                        preferred_element_type=jnp.float32)
    return jnp.maximum(acc, 0.0)


def _lanenet_kernel(x_ref, w1_ref, b1_ref, w2_ref, b2_ref, w3_ref, b3_ref,
                    w4_ref, b4_ref, w5_ref, b5_ref, w6_ref, b6_ref,
                    o_ref, buf32, buf64, buf128, slab96, slab192, slab384,
                    *, H, W):
    HW = H * W
    n_pad = (H + 2) * W

    # Zero only the 2*W zero-padding border rows; interior rows are fully
    # overwritten every image (cheap + safe under megacore grid sharding).
    for buf, c in ((buf32, 32), (buf64, 64), (buf128, 128)):
        zrow = jnp.zeros((W, c), jnp.float32)
        buf[0:W, :] = zrow
        buf[W + HW:n_pad, :] = zrow

    # Column-boundary masks, hoisted: built once, reused by all four 3x3 layers.
    col = jax.lax.broadcasted_iota(jnp.int32, (n_pad, 1), 0) % W
    left_edge = col == 0
    right_edge = col == (W - 1)

    # ---- layer 1: 3x3 conv, Cin=3, via a single (HW, 27) @ (27, 32) matmul
    # (im2col of the tiny 3-channel input is built once in the wrapper).
    a1 = jnp.dot(x_ref[0], w1_ref[...], preferred_element_type=jnp.float32)
    buf32[W:W + HW, :] = jnp.maximum(a1 + b1_ref[...], 0.0)

    # ---- layers 2-5: 3x3 convs, activations stay in VMEM (ping-pong buffers).
    a2 = _conv3x3_fused_k(buf32, slab96, w2_ref, b2_ref,
                          left_edge, right_edge, H=H, W=W)    # 32 -> 64
    buf64[W:W + HW, :] = a2
    a3 = _conv3x3_fused_k(buf64, slab192, w3_ref, b3_ref,
                          left_edge, right_edge, H=H, W=W)    # 64 -> 128
    buf128[W:W + HW, :] = a3
    a4 = _conv3x3_fused_k(buf128, slab384, w4_ref, b4_ref,
                          left_edge, right_edge, H=H, W=W)    # 128 -> 64
    buf64[W:W + HW, :] = a4
    a5 = _conv3x3_fused_k(buf64, slab192, w5_ref, b5_ref,
                          left_edge, right_edge, H=H, W=W)    # 64 -> 32, (HW, 32) f32

    # ---- layer 6: fused 1x1 conv (32 -> 1) + sigmoid, emitted lane-dense (1, HW).
    a5_t = jnp.transpose(a5)                                  # (32, HW)  XLU transpose
    z = jnp.sum(a5_t * w6_ref[...], axis=0, keepdims=True)    # (1, HW)   32->1 reduce
    z = jax.nn.sigmoid(z + b6_ref[...])
    o_ref[0] = z.astype(o_ref.dtype)                          # dense (1, HW) store


def _full_spec(shape):
    """BlockSpec covering a whole (grid-invariant) array."""
    return pl.BlockSpec(shape, lambda n: (0,) * len(shape))


def lanenet_forward(x_nchw, params):
    """Full LaneNet forward. Input NCHW, output (N, 1, H, W), matching PyTorch."""
    x = jnp.transpose(x_nchw, (0, 2, 3, 1)).astype(jnp.float32)   # NCHW -> NHWC
    N, H, W, Cin = x.shape
    assert Cin == 3 and H % 8 == 0 and W % 8 == 0 and (H * W) % 128 == 0
    HW, n_pad = H * W, (H + 2) * W

    # Layer-1 im2col built once in the wrapper (tiny 3-channel input) -> (N, HW, 27) bf16.
    # TODO(synk): move this im2col into the kernel for production resolutions.
    xp = jnp.pad(x, ((0, 0), (1, 1), (1, 1), (0, 0)))
    patches = [xp[:, ky:ky + H, kx:kx + W, :] for ky in range(3) for kx in range(3)]
    x_col = jnp.concatenate(patches, axis=-1).reshape(N, HW, 27).astype(jnp.bfloat16)

    (w1, b1), (w2, b2), (w3, b3), (w4, b4), (w5, b5), (w6, b6) = params
    w1r = w1.reshape(27, 32).astype(jnp.bfloat16)                 # (ky,kx,cin)-major rows

    def prep(w):   # (3,3,Cin,Cout) HWIO -> (3, 3*Cin, Cout) bf16, ky-major, K=(kx,cin)
        return w.reshape(3, 3 * w.shape[2], w.shape[3]).astype(jnp.bfloat16)

    w2r, w3r, w4r, w5r = prep(w2), prep(w3), prep(w4), prep(w5)
    w6r = w6.reshape(32, 1).astype(jnp.float32)
    b1r, b2r, b3r, b4r, b5r = (b.reshape(1, -1).astype(jnp.float32)
                               for b in (b1, b2, b3, b4, b5))
    b6r = b6.reshape(1, 1).astype(jnp.float32)

    inputs = (x_col, w1r, b1r, w2r, b2r, w3r, b3r, w4r, b4r, w5r, b5r, w6r, b6r)

    flops = 2 * N * HW * (27 * 32 + 9 * (32 * 64 + 64 * 128 + 128 * 64 + 64 * 32) + 32)
    bytes_accessed = sum(a.size * a.dtype.itemsize for a in inputs) + N * HW * 4

    kernel = functools.partial(_lanenet_kernel, H=H, W=W)
    out = pl.pallas_call(
        kernel,
        out_shape=jax.ShapeDtypeStruct((N, 1, HW), jnp.float32),
        grid_spec=pltpu.PrefetchScalarGridSpec(
            num_scalar_prefetch=0,
            grid=(N,),
            in_specs=[pl.BlockSpec((1, HW, 27), lambda n: (n, 0, 0))]
                     + [_full_spec(a.shape) for a in inputs[1:]],
            out_specs=pl.BlockSpec((1, 1, HW), lambda n: (n, 0, 0)),
            scratch_shapes=[
                # Padded f32 activation buffers (borders carry the zero padding).
                pltpu.VMEM((n_pad, 32), jnp.float32),
                pltpu.VMEM((n_pad, 64), jnp.float32),
                pltpu.VMEM((n_pad, 128), jnp.float32),
                # bf16 im2col slabs (K = 3*Cin) for layers 2, 3/5, and 4.
                pltpu.VMEM((n_pad, 3 * 32), jnp.bfloat16),
                pltpu.VMEM((n_pad, 3 * 64), jnp.bfloat16),
                pltpu.VMEM((n_pad, 3 * 128), jnp.bfloat16),
            ],
        ),
        compiler_params=pltpu.CompilerParams(
            dimension_semantics=("parallel",),   # N>=2 keeps both v7x TCs busy
        ),
        cost_estimate=pl.CostEstimate(
            flops=flops, transcendentals=N * HW, bytes_accessed=bytes_accessed),
    )(*inputs)

    return out.reshape(N, 1, H, W)


def init_params(key):
    """Deterministic synthetic parameters matching LaneNet layer shapes (HWIO, f32)."""
    shapes = [
        (3, 3, 3, 32),
        (3, 3, 32, 64),
        (3, 3, 64, 128),
        (3, 3, 128, 64),
        (3, 3, 64, 32),
        (1, 1, 32, 1),
    ]
    params = []
    for i, shp in enumerate(shapes):
        kw_key, kb_key = jax.random.split(jax.random.fold_in(key, i))
        fan_in = shp[0] * shp[1] * shp[2]
        scale = 1.0 / jnp.sqrt(jnp.float32(fan_in))
        w = scale * jax.random.normal(kw_key, shp, dtype=jnp.float32)
        b = 0.01 * jax.random.normal(kb_key, (shp[3],), dtype=jnp.float32)
        params.append((w, b))
    return params


def _reference_forward(x_nchw, params):
    """Pure-JAX reference with the same bf16 MXU-input quantization as the kernel."""
    def q(v):
        return v.astype(jnp.bfloat16).astype(jnp.float32)

    x = jnp.transpose(x_nchw, (0, 2, 3, 1))
    n_layers = len(params)
    for i, (w, b) in enumerate(params):
        last = (i == n_layers - 1)
        xin, win = (x, w) if last else (q(x), q(w))   # layer 6 runs in f32 in the kernel
        y = jax.lax.conv_general_dilated(
            xin, win, window_strides=(1, 1), padding="SAME",
            dimension_numbers=("NHWC", "HWIO", "NHWC"),
            precision=jax.lax.Precision.HIGHEST,
        ) + b
        x = jax.nn.sigmoid(y) if last else jnp.maximum(y, 0.0)
    return jnp.transpose(x, (0, 3, 1, 2))


if __name__ == "__main__":
    key = jax.random.PRNGKey(0)
    x_key, p_key = jax.random.split(key)

    # Small deterministic input consistent with LaneNet: NCHW, 3 input channels.
    x = jax.random.normal(x_key, (2, 3, 16, 16), dtype=jnp.float32)
    params = init_params(p_key)

    fwd = jax.jit(lanenet_forward)
    out = jax.block_until_ready(fwd(x, params))

    assert out.shape == (2, 1, 16, 16), out.shape
    assert out.dtype == jnp.float32

    ref = jax.block_until_ready(_reference_forward(x, params))
    max_err = float(jnp.max(jnp.abs(out - ref)))
    assert jnp.allclose(out, ref, rtol=2e-3, atol=2e-3), max_err

    print("KERNEL_OK")
</pallas_src>

<mosaic_0001>
module attributes {stable_mosaic.version = 11 : i64} {
  func.func @_lanenet_kernel(%arg0: i32, %arg1: memref<1x256x27xbf16, #tpu.memory_space<vmem>>, %arg2: memref<27x32xbf16, #tpu.memory_space<vmem>>, %arg3: memref<1x32xf32, #tpu.memory_space<vmem>>, %arg4: memref<3x96x64xbf16, #tpu.memory_space<vmem>>, %arg5: memref<1x64xf32, #tpu.memory_space<vmem>>, %arg6: memref<3x192x128xbf16, #tpu.memory_space<vmem>>, %arg7: memref<1x128xf32, #tpu.memory_space<vmem>>, %arg8: memref<3x384x64xbf16, #tpu.memory_space<vmem>>, %arg9: memref<1x64xf32, #tpu.memory_space<vmem>>, %arg10: memref<3x192x32xbf16, #tpu.memory_space<vmem>>, %arg11: memref<1x32xf32, #tpu.memory_space<vmem>>, %arg12: memref<32x1xf32, #tpu.memory_space<vmem>>, %arg13: memref<1x1xf32, #tpu.memory_space<vmem>>, %arg14: memref<1x1x256xf32, #tpu.memory_space<vmem>>, %arg15: memref<288x32xf32, #tpu.memory_space<vmem>>, %arg16: memref<288x64xf32, #tpu.memory_space<vmem>>, %arg17: memref<288x128xf32, #tpu.memory_space<vmem>>, %arg18: memref<288x96xbf16, #tpu.memory_space<vmem>>, %arg19: memref<288x192xbf16, #tpu.memory_space<vmem>>, %arg20: memref<288x384xbf16, #tpu.memory_space<vmem>>) attributes {dimension_semantics = [#tpu.dimension_semantics<parallel>], iteration_bounds = array<i64: 2>, scalar_prefetch = 0 : i64, scratch_operands = 6 : i64, tpu.core_type = #tpu.core_type<tc>, window_params = [{transform_indices = @transform_0, window_bounds = array<i64: 1, 256, 27>}, {pipeline_mode = #tpu.pipeline_mode<synchronous>, transform_indices = @transform_1, window_bounds = array<i64: 27, 32>}, {pipeline_mode = #tpu.pipeline_mode<synchronous>, transform_indices = @transform_2, window_bounds = array<i64: 1, 32>}, {pipeline_mode = #tpu.pipeline_mode<synchronous>, transform_indices = @transform_3, window_bounds = array<i64: 3, 96, 64>}, {pipeline_mode = #tpu.pipeline_mode<synchronous>, transform_indices = @transform_4, window_bounds = array<i64: 1, 64>}, {pipeline_mode = #tpu.pipeline_mode<synchronous>, transform_indices = @transform_5, window_bounds = array<i64: 3, 192, 128>}, {pipeline_mode = #tpu.pipeline_mode<synchronous>, transform_indices = @transform_6, window_bounds = array<i64: 1, 128>}, {pipeline_mode = #tpu.pipeline_mode<synchronous>, transform_indices = @transform_7, window_bounds = array<i64: 3, 384, 64>}, {pipeline_mode = #tpu.pipeline_mode<synchronous>, transform_indices = @transform_8, window_bounds = array<i64: 1, 64>}, {pipeline_mode = #tpu.pipeline_mode<synchronous>, transform_indices = @transform_9, window_bounds = array<i64: 3, 192, 32>}, {pipeline_mode = #tpu.pipeline_mode<synchronous>, transform_indices = @transform_10, window_bounds = array<i64: 1, 32>}, {pipeline_mode = #tpu.pipeline_mode<synchronous>, transform_indices = @transform_11, window_bounds = array<i64: 32, 1>}, {pipeline_mode = #tpu.pipeline_mode<synchronous>, transform_indices = @transform_12, window_bounds = array<i64: 1, 1>}, {transform_indices = @transform_13, window_bounds = array<i64: 1, 1, 256>}]} {
    %cst = arith.constant 0.000000e+00 : f32
    %0 = vector.broadcast %cst : f32 to vector<16x32xf32>
    %c0 = arith.constant 0 : index
    %c0_0 = arith.constant 0 : index
    %1 = vector.load %arg15[%c0, %c0_0] : memref<288x32xf32, #tpu.memory_space<vmem>>, vector<16x32xf32>
    tpu.vector_store %arg15[%c0, %c0_0], %0 {strides = array<i32>} : memref<288x32xf32, #tpu.memory_space<vmem>>, vector<16x32xf32>,
    %c272 = arith.constant 272 : index
    %c0_1 = arith.constant 0 : index
    %2 = vector.load %arg15[%c272, %c0_1] : memref<288x32xf32, #tpu.memory_space<vmem>>, vector<16x32xf32>
    tpu.vector_store %arg15[%c272, %c0_1], %0 {strides = array<i32>} : memref<288x32xf32, #tpu.memory_space<vmem>>, vector<16x32xf32>,
    %cst_2 = arith.constant 0.000000e+00 : f32
    %3 = vector.broadcast %cst_2 : f32 to vector<16x64xf32>
    %c0_3 = arith.constant 0 : index
    %c0_4 = arith.constant 0 : index
    %4 = vector.load %arg16[%c0_3, %c0_4] : memref<288x64xf32, #tpu.memory_space<vmem>>, vector<16x64xf32>
    tpu.vector_store %arg16[%c0_3, %c0_4], %3 {strides = array<i32>} : memref<288x64xf32, #tpu.memory_space<vmem>>, vector<16x64xf32>,
    %c272_5 = arith.constant 272 : index
    %c0_6 = arith.constant 0 : index
    %5 = vector.load %arg16[%c272_5, %c0_6] : memref<288x64xf32, #tpu.memory_space<vmem>>, vector<16x64xf32>
    tpu.vector_store %arg16[%c272_5, %c0_6], %3 {strides = array<i32>} : memref<288x64xf32, #tpu.memory_space<vmem>>, vector<16x64xf32>,
    %cst_7 = arith.constant 0.000000e+00 : f32
    %6 = vector.broadcast %cst_7 : f32 to vector<16x128xf32>
    %c0_8 = arith.constant 0 : index
    %c0_9 = arith.constant 0 : index
    %7 = vector.load %arg17[%c0_8, %c0_9] : memref<288x128xf32, #tpu.memory_space<vmem>>, vector<16x128xf32>
    tpu.vector_store %arg17[%c0_8, %c0_9], %6 {strides = array<i32>} : memref<288x128xf32, #tpu.memory_space<vmem>>, vector<16x128xf32>,
    %c272_10 = arith.constant 272 : index
    %c0_11 = arith.constant 0 : index
    %8 = vector.load %arg17[%c272_10, %c0_11] : memref<288x128xf32, #tpu.memory_space<vmem>>, vector<16x128xf32>
    tpu.vector_store %arg17[%c272_10, %c0_11], %6 {strides = array<i32>} : memref<288x128xf32, #tpu.memory_space<vmem>>, vector<16x128xf32>,
    %9 = tpu.iota {dimensions = array<i32: 0>} : vector<288x1xi32>
    %c16_i32 = arith.constant 16 : i32
    %c0_i32 = arith.constant 0 : i32
    %10 = arith.cmpi eq, %c16_i32, %c0_i32 : i32
    %c1_i32 = arith.constant 1 : i32
    %11 = arith.select %10, %c1_i32, %c16_i32 : i32
    %12 = vector.broadcast %11 : i32 to vector<288x1xi32>
    %13 = arith.remsi %9, %12 : vector<288x1xi32>
    %c0_i32_12 = arith.constant 0 : i32
    %14 = vector.broadcast %c0_i32_12 : i32 to vector<288x1xi32>
    %15 = arith.cmpi ne, %13, %14 : vector<288x1xi32>
    %c0_i32_13 = arith.constant 0 : i32
    %16 = vector.broadcast %c0_i32_13 : i32 to vector<288x1xi32>
    %17 = arith.cmpi slt, %13, %16 : vector<288x1xi32>
    %c0_i32_14 = arith.constant 0 : i32
    %18 = arith.cmpi slt, %11, %c0_i32_14 : i32
    %19 = vector.broadcast %18 : i1 to vector<288x1xi1>
    %20 = vector.broadcast %19 : vector<288x1xi1> to vector<288x1xi1>
    %21 = arith.xori %17, %20 : vector<288x1xi1>
    %22 = arith.andi %21, %15 : vector<288x1xi1>
    %23 = vector.broadcast %11 : i32 to vector<288x1xi32>
    %24 = arith.addi %13, %23 : vector<288x1xi32>
    %25 = arith.select %22, %24, %13 : vector<288x1xi1>, vector<288x1xi32>
    %c0_i32_15 = arith.constant 0 : i32
    %26 = vector.broadcast %c0_i32_15 : i32 to vector<288x1xi32>
    %27 = arith.cmpi eq, %25, %26 : vector<288x1xi32>
    %c15_i32 = arith.constant 15 : i32
    %28 = vector.broadcast %c15_i32 : i32 to vector<288x1xi32>
    %29 = arith.cmpi eq, %25, %28 : vector<288x1xi32>
    %c0_16 = arith.constant 0 : index
    %c0_17 = arith.constant 0 : index
    %c0_18 = arith.constant 0 : index
    %30 = vector.load %arg1[%c0_16, %c0_17, %c0_18] : memref<1x256x27xbf16, #tpu.memory_space<vmem>>, vector<1x256x27xbf16>
    %31 = vector.shape_cast %30 : vector<1x256x27xbf16> to vector<256x27xbf16>
    %c0_19 = arith.constant 0 : index
    %c0_20 = arith.constant 0 : index
    %32 = vector.load %arg2[%c0_19, %c0_20] : memref<27x32xbf16, #tpu.memory_space<vmem>>, vector<27x32xbf16>
    %cst_21 = arith.constant dense<0.000000e+00> : vector<256x32xf32>
    %33 = tpu.matmul %31, %32, %cst_21 {dimension_numbers = #tpu.dot_dimension_numbers<[1], [0], [0], [1], [0, 0, 1, 1], [], []>} : vector<256x27xbf16>, vector<27x32xbf16>, vector<256x32xf32> -> vector<256x32xf32>
    %c0_22 = arith.constant 0 : index
    %c0_23 = arith.constant 0 : index
    %34 = vector.load %arg3[%c0_22, %c0_23] : memref<1x32xf32, #tpu.memory_space<vmem>>, vector<1x32xf32>
    %35 = vector.broadcast %34 : vector<1x32xf32> to vector<256x32xf32>
    %36 = arith.addf %33, %35 : vector<256x32xf32>
    %cst_24 = arith.constant 0.000000e+00 : f32
    %37 = vector.broadcast %cst_24 : f32 to vector<256x32xf32>
    %38 = arith.maximumf %36, %37 : vector<256x32xf32>
    %c16 = arith.constant 16 : index
    %c0_25 = arith.constant 0 : index
    %39 = vector.load %arg15[%c16, %c0_25] : memref<288x32xf32, #tpu.memory_space<vmem>>, vector<256x32xf32>
    tpu.vector_store %arg15[%c16, %c0_25], %38 {strides = array<i32>} : memref<288x32xf32, #tpu.memory_space<vmem>>, vector<256x32xf32>,
    %c0_26 = arith.constant 0 : index
    %c0_27 = arith.constant 0 : index
    %40 = vector.load %arg15[%c0_26, %c0_27] : memref<288x32xf32, #tpu.memory_space<vmem>>, vector<288x32xf32>
    %c1_i32_28 = arith.constant 1 : i32
    %41 = tpu.dynamic_rotate %40 by %c1_i32_28 dim 0 : vector<288x32xf32>, i32 -> vector<288x32xf32>
    %cst_29 = arith.constant 0.000000e+00 : f32
    %42 = vector.shape_cast %27 : vector<288x1xi1> to vector<288x1xi1>
    %43 = vector.broadcast %42 : vector<288x1xi1> to vector<288x32xi1>
    %44 = vector.broadcast %cst_29 : f32 to vector<288x32xf32>
    %45 = arith.select %43, %44, %41 : vector<288x32xi1>, vector<288x32xf32>
    %c287_i32 = arith.constant 287 : i32
    %46 = tpu.dynamic_rotate %40 by %c287_i32 dim 0 : vector<288x32xf32>, i32 -> vector<288x32xf32>
    %cst_30 = arith.constant 0.000000e+00 : f32
    %47 = vector.shape_cast %29 : vector<288x1xi1> to vector<288x1xi1>
    %48 = vector.broadcast %47 : vector<288x1xi1> to vector<288x32xi1>
    %49 = vector.broadcast %cst_30 : f32 to vector<288x32xf32>
    %50 = arith.select %48, %49, %46 : vector<288x32xi1>, vector<288x32xf32>
    %51 = arith.truncf %45 : vector<288x32xf32> to vector<288x32xbf16>
    %c0_31 = arith.constant 0 : index
    %c0_32 = arith.constant 0 : index
    %52 = vector.load %arg18[%c0_31, %c0_32] : memref<288x96xbf16, #tpu.memory_space<vmem>>, vector<288x32xbf16>
    tpu.vector_store %arg18[%c0_31, %c0_32], %51 {strides = array<i32>} : memref<288x96xbf16, #tpu.memory_space<vmem>>, vector<288x32xbf16>,
    %53 = arith.truncf %40 : vector<288x32xf32> to vector<288x32xbf16>
    %c0_33 = arith.constant 0 : index
    %c32 = arith.constant 32 : index
    %54 = vector.load %arg18[%c0_33, %c32] : memref<288x96xbf16, #tpu.memory_space<vmem>>, vector<288x32xbf16>
    tpu.vector_store %arg18[%c0_33, %c32], %53 {strides = array<i32>} : memref<288x96xbf16, #tpu.memory_space<vmem>>, vector<288x32xbf16>,
    %55 = arith.truncf %50 : vector<288x32xf32> to vector<288x32xbf16>
    %c0_34 = arith.constant 0 : index
    %c64 = arith.constant 64 : index
    %56 = vector.load %arg18[%c0_34, %c64] : memref<288x96xbf16, #tpu.memory_space<vmem>>, vector<288x32xbf16>
    tpu.vector_store %arg18[%c0_34, %c64], %55 {strides = array<i32>} : memref<288x96xbf16, #tpu.memory_space<vmem>>, vector<288x32xbf16>,
    %c0_35 = arith.constant 0 : index
    %c0_36 = arith.constant 0 : index
    %57 = vector.load %arg18[%c0_35, %c0_36] : memref<288x96xbf16, #tpu.memory_space<vmem>>, vector<256x96xbf16>
    %c0_37 = arith.constant 0 : index
    %c0_38 = arith.constant 0 : index
    %c0_39 = arith.constant 0 : index
    %58 = vector.load %arg4[%c0_37, %c0_38, %c0_39] : memref<3x96x64xbf16, #tpu.memory_space<vmem>>, vector<1x96x64xbf16>
    %59 = vector.shape_cast %58 : vector<1x96x64xbf16> to vector<96x64xbf16>
    %cst_40 = arith.constant dense<0.000000e+00> : vector<256x64xf32>
    %60 = tpu.matmul %57, %59, %cst_40 {dimension_numbers = #tpu.dot_dimension_numbers<[1], [0], [0], [1], [0, 0, 1, 1], [], []>} : vector<256x96xbf16>, vector<96x64xbf16>, vector<256x64xf32> -> vector<256x64xf32>
    %c0_41 = arith.constant 0 : index
    %c0_42 = arith.constant 0 : index
    %61 = vector.load %arg5[%c0_41, %c0_42] : memref<1x64xf32, #tpu.memory_space<vmem>>, vector<1x64xf32>
    %62 = vector.broadcast %61 : vector<1x64xf32> to vector<256x64xf32>
    %63 = arith.addf %60, %62 : vector<256x64xf32>
    %c16_43 = arith.constant 16 : index
    %c0_44 = arith.constant 0 : index
    %64 = vector.load %arg18[%c16_43, %c0_44] : memref<288x96xbf16, #tpu.memory_space<vmem>>, vector<256x96xbf16>
    %c1 = arith.constant 1 : index
    %c0_45 = arith.constant 0 : index
    %c0_46 = arith.constant 0 : index
    %65 = vector.load %arg4[%c1, %c0_45, %c0_46] : memref<3x96x64xbf16, #tpu.memory_space<vmem>>, vector<1x96x64xbf16>
    %66 = vector.shape_cast %65 : vector<1x96x64xbf16> to vector<96x64xbf16>
    %cst_47 = arith.constant dense<0.000000e+00> : vector<256x64xf32>
    %67 = tpu.matmul %64, %66, %cst_47 {dimension_numbers = #tpu.dot_dimension_numbers<[1], [0], [0], [1], [0, 0, 1, 1], [], []>} : vector<256x96xbf16>, vector<96x64xbf16>, vector<256x64xf32> -> vector<256x64xf32>
    %68 = arith.addf %63, %67 : vector<256x64xf32>
    %c32_48 = arith.constant 32 : index
    %c0_49 = arith.constant 0 : index
    %69 = vector.load %arg18[%c32_48, %c0_49] : memref<288x96xbf16, #tpu.memory_space<vmem>>, vector<256x96xbf16>
    %c2 = arith.constant 2 : index
    %c0_50 = arith.constant 0 : index
    %c0_51 = arith.constant 0 : index
    %70 = vector.load %arg4[%c2, %c0_50, %c0_51] : memref<3x96x64xbf16, #tpu.memory_space<vmem>>, vector<1x96x64xbf16>
    %71 = vector.shape_cast %70 : vector<1x96x64xbf16> to vector<96x64xbf16>
    %cst_52 = arith.constant dense<0.000000e+00> : vector<256x64xf32>
    %72 = tpu.matmul %69, %71, %cst_52 {dimension_numbers = #tpu.dot_dimension_numbers<[1], [0], [0], [1], [0, 0, 1, 1], [], []>} : vector<256x96xbf16>, vector<96x64xbf16>, vector<256x64xf32> -> vector<256x64xf32>
    %73 = arith.addf %68, %72 : vector<256x64xf32>
    %cst_53 = arith.constant 0.000000e+00 : f32
    %74 = vector.broadcast %cst_53 : f32 to vector<256x64xf32>
    %75 = arith.maximumf %73, %74 : vector<256x64xf32>
    %c16_54 = arith.constant 16 : index
    %c0_55 = arith.constant 0 : index
    %76 = vector.load %arg16[%c16_54, %c0_55] : memref<288x64xf32, #tpu.memory_space<vmem>>, vector<256x64xf32>
    tpu.vector_store %arg16[%c16_54, %c0_55], %75 {strides = array<i32>} : memref<288x64xf32, #tpu.memory_space<vmem>>, vector<256x64xf32>,
    %c0_56 = arith.constant 0 : index
    %c0_57 = arith.constant 0 : index
    %77 = vector.load %arg16[%c0_56, %c0_57] : memref<288x64xf32, #tpu.memory_space<vmem>>, vector<288x64xf32>
    %c1_i32_58 = arith.constant 1 : i32
    %78 = tpu.dynamic_rotate %77 by %c1_i32_58 dim 0 : vector<288x64xf32>, i32 -> vector<288x64xf32>
    %cst_59 = arith.constant 0.000000e+00 : f32
    %79 = vector.shape_cast %27 : vector<288x1xi1> to vector<288x1xi1>
    %80 = vector.broadcast %79 : vector<288x1xi1> to vector<288x64xi1>
    %81 = vector.broadcast %cst_59 : f32 to vector<288x64xf32>
    %82 = arith.select %80, %81, %78 : vector<288x64xi1>, vector<288x64xf32>
    %c287_i32_60 = arith.constant 287 : i32
    %83 = tpu.dynamic_rotate %77 by %c287_i32_60 dim 0 : vector<288x64xf32>, i32 -> vector<288x64xf32>
    %cst_61 = arith.constant 0.000000e+00 : f32
    %84 = vector.shape_cast %29 : vector<288x1xi1> to vector<288x1xi1>
    %85 = vector.broadcast %84 : vector<288x1xi1> to vector<288x64xi1>
    %86 = vector.broadcast %cst_61 : f32 to vector<288x64xf32>
    %87 = arith.select %85, %86, %83 : vector<288x64xi1>, vector<288x64xf32>
    %88 = arith.truncf %82 : vector<288x64xf32> to vector<288x64xbf16>
    %c0_62 = arith.constant 0 : index
    %c0_63 = arith.constant 0 : index
    %89 = vector.load %arg19[%c0_62, %c0_63] : memref<288x192xbf16, #tpu.memory_space<vmem>>, vector<288x64xbf16>
    tpu.vector_store %arg19[%c0_62, %c0_63], %88 {strides = array<i32>} : memref<288x192xbf16, #tpu.memory_space<vmem>>, vector<288x64xbf16>,
    %90 = arith.truncf %77 : vector<288x64xf32> to vector<288x64xbf16>
    %c0_64 = arith.constant 0 : index
    %c64_65 = arith.constant 64 : index
    %91 = vector.load %arg19[%c0_64, %c64_65] : memref<288x192xbf16, #tpu.memory_space<vmem>>, vector<288x64xbf16>
    tpu.vector_store %arg19[%c0_64, %c64_65], %90 {strides = array<i32>} : memref<288x192xbf16, #tpu.memory_space<vmem>>, vector<288x64xbf16>,
    %92 = arith.truncf %87 : vector<288x64xf32> to vector<288x64xbf16>
    %c0_66 = arith.constant 0 : index
    %c128 = arith.constant 128 : index
    %93 = vector.load %arg19[%c0_66, %c128] : memref<288x192xbf16, #tpu.memory_space<vmem>>, vector<288x64xbf16>
    tpu.vector_store %arg19[%c0_66, %c128], %92 {strides = array<i32>} : memref<288x192xbf16, #tpu.memory_space<vmem>>, vector<288x64xbf16>,
    %c0_67 = arith.constant 0 : index
    %c0_68 = arith.constant 0 : index
    %94 = vector.load %arg19[%c0_67, %c0_68] : memref<288x192xbf16, #tpu.memory_space<vmem>>, vector<256x192xbf16>
    %c0_69 = arith.constant 0 : index
    %c0_70 = arith.constant 0 : index
    %c0_71 = arith.constant 0 : index
    %95 = vector.load %arg6[%c0_69, %c0_70, %c0_71] : memref<3x192x128xbf16, #tpu.memory_space<vmem>>, vector<1x192x128xbf16>
    %96 = vector.shape_cast %95 : vector<1x192x128xbf16> to vector<192x128xbf16>
    %cst_72 = arith.constant dense<0.000000e+00> : vector<256x128xf32>
    %97 = tpu.matmul %94, %96, %cst_72 {dimension_numbers = #tpu.dot_dimension_numbers<[1], [0], [0], [1], [0, 0, 1, 1], [], []>} : vector<256x192xbf16>, vector<192x128xbf16>, vector<256x128xf32> -> vector<256x128xf32>
    %c0_73 = arith.constant 0 : index
    %c0_74 = arith.constant 0 : index
    %98 = vector.load %arg7[%c0_73, %c0_74] : memref<1x128xf32, #tpu.memory_space<vmem>>, vector<1x128xf32>
    %99 = vector.broadcast %98 : vector<1x128xf32> to vector<256x128xf32>
    %100 = arith.addf %97, %99 : vector<256x128xf32>
    %c16_75 = arith.constant 16 : index
    %c0_76 = arith.constant 0 : index
    %101 = vector.load %arg19[%c16_75, %c0_76] : memref<288x192xbf16, #tpu.memory_space<vmem>>, vector<256x192xbf16>
    %c1_77 = arith.constant 1 : index
    %c0_78 = arith.constant 0 : index
    %c0_79 = arith.constant 0 : index
    %102 = vector.load %arg6[%c1_77, %c0_78, %c0_79] : memref<3x192x128xbf16, #tpu.memory_space<vmem>>, vector<1x192x128xbf16>
    %103 = vector.shape_cast %102 : vector<1x192x128xbf16> to vector<192x128xbf16>
    %cst_80 = arith.constant dense<0.000000e+00> : vector<256x128xf32>
    %104 = tpu.matmul %101, %103, %cst_80 {dimension_numbers = #tpu.dot_dimension_numbers<[1], [0], [0], [1], [0, 0, 1, 1], [], []>} : vector<256x192xbf16>, vector<192x128xbf16>, vector<256x128xf32> -> vector<256x128xf32>
    %105 = arith.addf %100, %104 : vector<256x128xf32>
    %c32_81 = arith.constant 32 : index
    %c0_82 = arith.constant 0 : index
    %106 = vector.load %arg19[%c32_81, %c0_82] : memref<288x192xbf16, #tpu.memory_space<vmem>>, vector<256x192xbf16>
    %c2_83 = arith.constant 2 : index
    %c0_84 = arith.constant 0 : index
    %c0_85 = arith.constant 0 : index
    %107 = vector.load %arg6[%c2_83, %c0_84, %c0_85] : memref<3x192x128xbf16, #tpu.memory_space<vmem>>, vector<1x192x128xbf16>
    %108 = vector.shape_cast %107 : vector<1x192x128xbf16> to vector<192x128xbf16>
    %cst_86 = arith.constant dense<0.000000e+00> : vector<256x128xf32>
    %109 = tpu.matmul %106, %108, %cst_86 {dimension_numbers = #tpu.dot_dimension_numbers<[1], [0], [0], [1], [0, 0, 1, 1], [], []>} : vector<256x192xbf16>, vector<192x128xbf16>, vector<256x128xf32> -> vector<256x128xf32>
    %110 = arith.addf %105, %109 : vector<256x128xf32>
    %cst_87 = arith.constant 0.000000e+00 : f32
    %111 = vector.broadcast %cst_87 : f32 to vector<256x128xf32>
    %112 = arith.maximumf %110, %111 : vector<256x128xf32>
    %c16_88 = arith.constant 16 : index
    %c0_89 = arith.constant 0 : index
    %113 = vector.load %arg17[%c16_88, %c0_89] : memref<288x128xf32, #tpu.memory_space<vmem>>, vector<256x128xf32>
    tpu.vector_store %arg17[%c16_88, %c0_89], %112 {strides = array<i32>} : memref<288x128xf32, #tpu.memory_space<vmem>>, vector<256x128xf32>,
    %c0_90 = arith.constant 0 : index
    %c0_91 = arith.constant 0 : index
    %114 = vector.load %arg17[%c0_90, %c0_91] : memref<288x128xf32, #tpu.memory_space<vmem>>, vector<288x128xf32>
    %c1_i32_92 = arith.constant 1 : i32
    %115 = tpu.dynamic_rotate %114 by %c1_i32_92 dim 0 : vector<288x128xf32>, i32 -> vector<288x128xf32>
    %cst_93 = arith.constant 0.000000e+00 : f32
    %116 = vector.shape_cast %27 : vector<288x1xi1> to vector<288x1xi1>
    %117 = vector.broadcast %116 : vector<288x1xi1> to vector<288x128xi1>
    %118 = vector.broadcast %cst_93 : f32 to vector<288x128xf32>
    %119 = arith.select %117, %118, %115 : vector<288x128xi1>, vector<288x128xf32>
    %c287_i32_94 = arith.constant 287 : i32
    %120 = tpu.dynamic_rotate %114 by %c287_i32_94 dim 0 : vector<288x128xf32>, i32 -> vector<288x128xf32>
    %cst_95 = arith.constant 0.000000e+00 : f32
    %121 = vector.shape_cast %29 : vector<288x1xi1> to vector<288x1xi1>
    %122 = vector.broadcast %121 : vector<288x1xi1> to vector<288x128xi1>
    %123 = vector.broadcast %cst_95 : f32 to vector<288x128xf32>
    %124 = arith.select %122, %123, %120 : vector<288x128xi1>, vector<288x128xf32>
    %125 = arith.truncf %119 : vector<288x128xf32> to vector<288x128xbf16>
    %c0_96 = arith.constant 0 : index
    %c0_97 = arith.constant 0 : index
    %126 = vector.load %arg20[%c0_96, %c0_97] : memref<288x384xbf16, #tpu.memory_space<vmem>>, vector<288x128xbf16>
    tpu.vector_store %arg20[%c0_96, %c0_97], %125 {strides = array<i32>} : memref<288x384xbf16, #tpu.memory_space<vmem>>, vector<288x128xbf16>,
    %127 = arith.truncf %114 : vector<288x128xf32> to vector<288x128xbf16>
    %c0_98 = arith.constant 0 : index
    %c128_99 = arith.constant 128 : index
    %128 = vector.load %arg20[%c0_98, %c128_99] : memref<288x384xbf16, #tpu.memory_space<vmem>>, vector<288x128xbf16>
    tpu.vector_store %arg20[%c0_98, %c128_99], %127 {strides = array<i32>} : memref<288x384xbf16, #tpu.memory_space<vmem>>, vector<288x128xbf16>,
    %129 = arith.truncf %124 : vector<288x128xf32> to vector<288x128xbf16>
    %c0_100 = arith.constant 0 : index
    %c256 = arith.constant 256 : index
    %130 = vector.load %arg20[%c0_100, %c256] : memref<288x384xbf16, #tpu.memory_space<vmem>>, vector<288x128xbf16>
    tpu.vector_store %arg20[%c0_100, %c256], %129 {strides = array<i32>} : memref<288x384xbf16, #tpu.memory_space<vmem>>, vector<288x128xbf16>,
    %c0_101 = arith.constant 0 : index
    %c0_102 = arith.constant 0 : index
    %131 = vector.load %arg20[%c0_101, %c0_102] : memref<288x384xbf16, #tpu.memory_space<vmem>>, vector<256x384xbf16>
    %c0_103 = arith.constant 0 : index
    %c0_104 = arith.constant 0 : index
    %c0_105 = arith.constant 0 : index
    %132 = vector.load %arg8[%c0_103, %c0_104, %c0_105] : memref<3x384x64xbf16, #tpu.memory_space<vmem>>, vector<1x384x64xbf16>
    %133 = vector.shape_cast %132 : vector<1x384x64xbf16> to vector<384x64xbf16>
    %cst_106 = arith.constant dense<0.000000e+00> : vector<256x64xf32>
    %134 = tpu.matmul %131, %133, %cst_106 {dimension_numbers = #tpu.dot_dimension_numbers<[1], [0], [0], [1], [0, 0, 1, 1], [], []>} : vector<256x384xbf16>, vector<384x64xbf16>, vector<256x64xf32> -> vector<256x64xf32>
    %c0_107 = arith.constant 0 : index
    %c0_108 = arith.constant 0 : index
    %135 = vector.load %arg9[%c0_107, %c0_108] : memref<1x64xf32, #tpu.memory_space<vmem>>, vector<1x64xf32>
    %136 = vector.broadcast %135 : vector<1x64xf32> to vector<256x64xf32>
    %137 = arith.addf %134, %136 : vector<256x64xf32>
    %c16_109 = arith.constant 16 : index
    %c0_110 = arith.constant 0 : index
    %138 = vector.load %arg20[%c16_109, %c0_110] : memref<288x384xbf16, #tpu.memory_space<vmem>>, vector<256x384xbf16>
    %c1_111 = arith.constant 1 : index
    %c0_112 = arith.constant 0 : index
    %c0_113 = arith.constant 0 : index
    %139 = vector.load %arg8[%c1_111, %c0_112, %c0_113] : memref<3x384x64xbf16, #tpu.memory_space<vmem>>, vector<1x384x64xbf16>
    %140 = vector.shape_cast %139 : vector<1x384x64xbf16> to vector<384x64xbf16>
    %cst_114 = arith.constant dense<0.000000e+00> : vector<256x64xf32>
    %141 = tpu.matmul %138, %140, %cst_114 {dimension_numbers = #tpu.dot_dimension_numbers<[1], [0], [0], [1], [0, 0, 1, 1], [], []>} : vector<256x384xbf16>, vector<384x64xbf16>, vector<256x64xf32> -> vector<256x64xf32>
    %142 = arith.addf %137, %141 : vector<256x64xf32>
    %c32_115 = arith.constant 32 : index
    %c0_116 = arith.constant 0 : index
    %143 = vector.load %arg20[%c32_115, %c0_116] : memref<288x384xbf16, #tpu.memory_space<vmem>>, vector<256x384xbf16>
    %c2_117 = arith.constant 2 : index
    %c0_118 = arith.constant 0 : index
    %c0_119 = arith.constant 0 : index
    %144 = vector.load %arg8[%c2_117, %c0_118, %c0_119] : memref<3x384x64xbf16, #tpu.memory_space<vmem>>, vector<1x384x64xbf16>
    %145 = vector.shape_cast %144 : vector<1x384x64xbf16> to vector<384x64xbf16>
    %cst_120 = arith.constant dense<0.000000e+00> : vector<256x64xf32>
    %146 = tpu.matmul %143, %145, %cst_120 {dimension_numbers = #tpu.dot_dimension_numbers<[1], [0], [0], [1], [0, 0, 1, 1], [], []>} : vector<256x384xbf16>, vector<384x64xbf16>, vector<256x64xf32> -> vector<256x64xf32>
    %147 = arith.addf %142, %146 : vector<256x64xf32>
    %cst_121 = arith.constant 0.000000e+00 : f32
    %148 = vector.broadcast %cst_121 : f32 to vector<256x64xf32>
    %149 = arith.maximumf %147, %148 : vector<256x64xf32>
    %c16_122 = arith.constant 16 : index
    %c0_123 = arith.constant 0 : index
    %150 = vector.load %arg16[%c16_122, %c0_123] : memref<288x64xf32, #tpu.memory_space<vmem>>, vector<256x64xf32>
    tpu.vector_store %arg16[%c16_122, %c0_123], %149 {strides = array<i32>} : memref<288x64xf32, #tpu.memory_space<vmem>>, vector<256x64xf32>,
    %c0_124 = arith.constant 0 : index
    %c0_125 = arith.constant 0 : index
    %151 = vector.load %arg16[%c0_124, %c0_125] : memref<288x64xf32, #tpu.memory_space<vmem>>, vector<288x64xf32>
    %c1_i32_126 = arith.constant 1 : i32
    %152 = tpu.dynamic_rotate %151 by %c1_i32_126 dim 0 : vector<288x64xf32>, i32 -> vector<288x64xf32>
    %cst_127 = arith.constant 0.000000e+00 : f32
    %153 = vector.shape_cast %27 : vector<288x1xi1> to vector<288x1xi1>
    %154 = vector.broadcast %153 : vector<288x1xi1> to vector<288x64xi1>
    %155 = vector.broadcast %cst_127 : f32 to vector<288x64xf32>
    %156 = arith.select %154, %155, %152 : vector<288x64xi1>, vector<288x64xf32>
    %c287_i32_128 = arith.constant 287 : i32
    %157 = tpu.dynamic_rotate %151 by %c287_i32_128 dim 0 : vector<288x64xf32>, i32 -> vector<288x64xf32>
    %cst_129 = arith.constant 0.000000e+00 : f32
    %158 = vector.shape_cast %29 : vector<288x1xi1> to vector<288x1xi1>
    %159 = vector.broadcast %158 : vector<288x1xi1> to vector<288x64xi1>
    %160 = vector.broadcast %cst_129 : f32 to vector<288x64xf32>
    %161 = arith.select %159, %160, %157 : vector<288x64xi1>, vector<288x64xf32>
    %162 = arith.truncf %156 : vector<288x64xf32> to vector<288x64xbf16>
    %c0_130 = arith.constant 0 : index
    %c0_131 = arith.constant 0 : index
    %163 = vector.load %arg19[%c0_130, %c0_131] : memref<288x192xbf16, #tpu.memory_space<vmem>>, vector<288x64xbf16>
    tpu.vector_store %arg19[%c0_130, %c0_131], %162 {strides = array<i32>} : memref<288x192xbf16, #tpu.memory_space<vmem>>, vector<288x64xbf16>,
    %164 = arith.truncf %151 : vector<288x64xf32> to vector<288x64xbf16>
    %c0_132 = arith.constant 0 : index
    %c64_133 = arith.constant 64 : index
    %165 = vector.load %arg19[%c0_132, %c64_133] : memref<288x192xbf16, #tpu.memory_space<vmem>>, vector<288x64xbf16>
    tpu.vector_store %arg19[%c0_132, %c64_133], %164 {strides = array<i32>} : memref<288x192xbf16, #tpu.memory_space<vmem>>, vector<288x64xbf16>,
    %166 = arith.truncf %161 : vector<288x64xf32> to vector<288x64xbf16>
    %c0_134 = arith.constant 0 : index
    %c128_135 = arith.constant 128 : index
    %167 = vector.load %arg19[%c0_134, %c128_135] : memref<288x192xbf16, #tpu.memory_space<vmem>>, vector<288x64xbf16>
    tpu.vector_store %arg19[%c0_134, %c128_135], %166 {strides = array<i32>} : memref<288x192xbf16, #tpu.memory_space<vmem>>, vector<288x64xbf16>,
    %c0_136 = arith.constant 0 : index
    %c0_137 = arith.constant 0 : index
    %168 = vector.load %arg19[%c0_136, %c0_137] : memref<288x192xbf16, #tpu.memory_space<vmem>>, vector<256x192xbf16>
    %c0_138 = arith.constant 0 : index
    %c0_139 = arith.constant 0 : index
    %c0_140 = arith.constant 0 : index
    %169 = vector.load %arg10[%c0_138, %c0_139, %c0_140] : memref<3x192x32xbf16, #tpu.memory_space<vmem>>, vector<1x192x32xbf16>
    %170 = vector.shape_cast %169 : vector<1x192x32xbf16> to vector<192x32xbf16>
    %cst_141 = arith.constant dense<0.000000e+00> : vector<256x32xf32>
    %171 = tpu.matmul %168, %170, %cst_141 {dimension_numbers = #tpu.dot_dimension_numbers<[1], [0], [0], [1], [0, 0, 1, 1], [], []>} : vector<256x192xbf16>, vector<192x32xbf16>, vector<256x32xf32> -> vector<256x32xf32>
    %c0_142 = arith.constant 0 : index
    %c0_143 = arith.constant 0 : index
    %172 = vector.load %arg11[%c0_142, %c0_143] : memref<1x32xf32, #tpu.memory_space<vmem>>, vector<1x32xf32>
    %173 = vector.broadcast %172 : vector<1x32xf32> to vector<256x32xf32>
    %174 = arith.addf %171, %173 : vector<256x32xf32>
    %c16_144 = arith.constant 16 : index
    %c0_145 = arith.constant 0 : index
    %175 = vector.load %arg19[%c16_144, %c0_145] : memref<288x192xbf16, #tpu.memory_space<vmem>>, vector<256x192xbf16>
    %c1_146 = arith.constant 1 : index
    %c0_147 = arith.constant 0 : index
    %c0_148 = arith.constant 0 : index
    %176 = vector.load %arg10[%c1_146, %c0_147, %c0_148] : memref<3x192x32xbf16, #tpu.memory_space<vmem>>, vector<1x192x32xbf16>
    %177 = vector.shape_cast %176 : vector<1x192x32xbf16> to vector<192x32xbf16>
    %cst_149 = arith.constant dense<0.000000e+00> : vector<256x32xf32>
    %178 = tpu.matmul %175, %177, %cst_149 {dimension_numbers = #tpu.dot_dimension_numbers<[1], [0], [0], [1], [0, 0, 1, 1], [], []>} : vector<256x192xbf16>, vector<192x32xbf16>, vector<256x32xf32> -> vector<256x32xf32>
    %179 = arith.addf %174, %178 : vector<256x32xf32>
    %c32_150 = arith.constant 32 : index
    %c0_151 = arith.constant 0 : index
    %180 = vector.load %arg19[%c32_150, %c0_151] : memref<288x192xbf16, #tpu.memory_space<vmem>>, vector<256x192xbf16>
    %c2_152 = arith.constant 2 : index
    %c0_153 = arith.constant 0 : index
    %c0_154 = arith.constant 0 : index
    %181 = vector.load %arg10[%c2_152, %c0_153, %c0_154] : memref<3x192x32xbf16, #tpu.memory_space<vmem>>, vector<1x192x32xbf16>
    %182 = vector.shape_cast %181 : vector<1x192x32xbf16> to vector<192x32xbf16>
    %cst_155 = arith.constant dense<0.000000e+00> : vector<256x32xf32>
    %183 = tpu.matmul %180, %182, %cst_155 {dimension_numbers = #tpu.dot_dimension_numbers<[1], [0], [0], [1], [0, 0, 1, 1], [], []>} : vector<256x192xbf16>, vector<192x32xbf16>, vector<256x32xf32> -> vector<256x32xf32>
    %184 = arith.addf %179, %183 : vector<256x32xf32>
    %cst_156 = arith.constant 0.000000e+00 : f32
    %185 = vector.broadcast %cst_156 : f32 to vector<256x32xf32>
    %186 = arith.maximumf %184, %185 : vector<256x32xf32>
    %187 = tpu.transpose %186, [1, 0] : vector<256x32xf32> -> vector<32x256xf32>
    %c0_157 = arith.constant 0 : index
    %c0_158 = arith.constant 0 : index
    %188 = vector.load %arg12[%c0_157, %c0_158] : memref<32x1xf32, #tpu.memory_space<vmem>>, vector<32x1xf32>
    %189 = vector.broadcast %188 : vector<32x1xf32> to vector<32x256xf32>
    %190 = arith.mulf %187, %189 : vector<32x256xf32>
    %cst_159 = arith.constant dense<0.000000e+00> : vector<256xf32>
    %191 = vector.multi_reduction <add>, %190, %cst_159 [0] : vector<32x256xf32> to vector<256xf32>
    %192 = vector.shape_cast %191 : vector<256xf32> to vector<1x256xf32>
    %c0_160 = arith.constant 0 : index
    %c0_161 = arith.constant 0 : index
    %193 = vector.load %arg13[%c0_160, %c0_161] : memref<1x1xf32, #tpu.memory_space<vmem>>, vector<1x1xf32>
    %194 = vector.broadcast %193 : vector<1x1xf32> to vector<1x256xf32>
    %195 = arith.addf %192, %194 : vector<1x256xf32>
    %196 = arith.negf %195 : vector<1x256xf32>
    %197 = math.exp %196 : vector<1x256xf32>
    %cst_162 = arith.constant 1.000000e+00 : f32
    %198 = vector.broadcast %cst_162 : f32 to vector<1x256xf32>
    %199 = arith.addf %198, %197 : vector<1x256xf32>
    %200 = arith.divf %198, %199 : vector<1x256xf32>
    %c0_163 = arith.constant 0 : index
    %c0_164 = arith.constant 0 : index
    %c0_165 = arith.constant 0 : index
    %201 = vector.load %arg14[%c0_163, %c0_164, %c0_165] : memref<1x1x256xf32, #tpu.memory_space<vmem>>, vector<1x1x256xf32>
    %202 = vector.shape_cast %201 : vector<1x1x256xf32> to vector<1x256xf32>
    %203 = vector.shape_cast %200 : vector<1x256xf32> to vector<1x1x256xf32>
    tpu.vector_store %arg14[%c0_163, %c0_164, %c0_165], %203 {strides = array<i32>} : memref<1x1x256xf32, #tpu.memory_space<vmem>>, vector<1x1x256xf32>,
    return
  }
  func.func @transform_0(%arg0: i32) -> (i32, i32, i32) {
    %c0_i32 = arith.constant 0 : i32
    %c0_i32_0 = arith.constant 0 : i32
    %c0_i32_1 = arith.constant 0 : i32
    return %arg0, %c0_i32, %c0_i32_0 : i32, i32, i32
  }
  func.func @transform_1(%arg0: i32) -> (i32, i32) {
    %c0_i32 = arith.constant 0 : i32
    %c0_i32_0 = arith.constant 0 : i32
    %c0_i32_1 = arith.constant 0 : i32
    return %c0_i32, %c0_i32_0 : i32, i32
  }
  func.func @transform_2(%arg0: i32) -> (i32, i32) {
    %c0_i32 = arith.constant 0 : i32
    %c0_i32_0 = arith.constant 0 : i32
    %c0_i32_1 = arith.constant 0 : i32
    return %c0_i32, %c0_i32_0 : i32, i32
  }
  func.func @transform_3(%arg0: i32) -> (i32, i32, i32) {
    %c0_i32 = arith.constant 0 : i32
    %c0_i32_0 = arith.constant 0 : i32
    %c0_i32_1 = arith.constant 0 : i32
    %c0_i32_2 = arith.constant 0 : i32
    return %c0_i32, %c0_i32_0, %c0_i32_1 : i32, i32, i32
  }
  func.func @transform_4(%arg0: i32) -> (i32, i32) {
    %c0_i32 = arith.constant 0 : i32
    %c0_i32_0 = arith.constant 0 : i32
    %c0_i32_1 = arith.constant 0 : i32
    return %c0_i32, %c0_i32_0 : i32, i32
  }
  func.func @transform_5(%arg0: i32) -> (i32, i32, i32) {
    %c0_i32 = arith.constant 0 : i32
    %c0_i32_0 = arith.constant 0 : i32
    %c0_i32_1 = arith.constant 0 : i32
    %c0_i32_2 = arith.constant 0 : i32
    return %c0_i32, %c0_i32_0, %c0_i32_1 : i32, i32, i32
  }
  func.func @transform_6(%arg0: i32) -> (i32, i32) {
    %c0_i32 = arith.constant 0 : i32
    %c0_i32_0 = arith.constant 0 : i32
    %c0_i32_1 = arith.constant 0 : i32
    return %c0_i32, %c0_i32_0 : i32, i32
  }
  func.func @transform_7(%arg0: i32) -> (i32, i32, i32) {
    %c0_i32 = arith.constant 0 : i32
    %c0_i32_0 = arith.constant 0 : i32
    %c0_i32_1 = arith.constant 0 : i32
    %c0_i32_2 = arith.constant 0 : i32
    return %c0_i32, %c0_i32_0, %c0_i32_1 : i32, i32, i32
  }
  func.func @transform_8(%arg0: i32) -> (i32, i32) {
    %c0_i32 = arith.constant 0 : i32
    %c0_i32_0 = arith.constant 0 : i32
    %c0_i32_1 = arith.constant 0 : i32
    return %c0_i32, %c0_i32_0 : i32, i32
  }
  func.func @transform_9(%arg0: i32) -> (i32, i32, i32) {
    %c0_i32 = arith.constant 0 : i32
    %c0_i32_0 = arith.constant 0 : i32
    %c0_i32_1 = arith.constant 0 : i32
    %c0_i32_2 = arith.constant 0 : i32
    return %c0_i32, %c0_i32_0, %c0_i32_1 : i32, i32, i32
  }
  func.func @transform_10(%arg0: i32) -> (i32, i32) {
    %c0_i32 = arith.constant 0 : i32
    %c0_i32_0 = arith.constant 0 : i32
    %c0_i32_1 = arith.constant 0 : i32
    return %c0_i32, %c0_i32_0 : i32, i32
  }
  func.func @transform_11(%arg0: i32) -> (i32, i32) {
    %c0_i32 = arith.constant 0 : i32
    %c0_i32_0 = arith.constant 0 : i32
    %c0_i32_1 = arith.constant 0 : i32
    return %c0_i32, %c0_i32_0 : i32, i32
  }
  func.func @transform_12(%arg0: i32) -> (i32, i32) {
    %c0_i32 = arith.constant 0 : i32
    %c0_i32_0 = arith.constant 0 : i32
    %c0_i32_1 = arith.constant 0 : i32
    return %c0_i32, %c0_i32_0 : i32, i32
  }
  func.func @transform_13(%arg0: i32) -> (i32, i32, i32) {
    %c0_i32 = arith.constant 0 : i32
    %c0_i32_0 = arith.constant 0 : i32
    %c0_i32_1 = arith.constant 0 : i32
    return %arg0, %c0_i32, %c0_i32_0 : i32, i32, i32
  }
}

</mosaic_0001>

<bundles_post_ra>
// kernel: lanenet_forward.1
= control target key start
LH: loop header
LB: loop body
LE: loop exit
PB: predicated region body
PF: predicated region fallthrough
CT: control target
= control target key end

     0   :  { %s15470_s27 = smov 0   ;;  %s20281_s0 = inlined_call_operand.vmem [shape: bf16[2,256,27], index: 0, kind: input, shape index: {}]   ;;  %s20282_s1 = inlined_call_operand.vmem [shape: bf16[27,32], index: 1, kind: input, shape index: {}]   ;;  %s20283_s2 = inlined_call_operand.vmem [shape: f32[1,32], index: 2, kind: input, shape index: {}]   ;;  %s20284_s3 = inlined_call_operand.vmem [shape: bf16[3,96,64], index: 3, kind: input, shape index: {}]   ;;  %s20285_s4 = inlined_call_operand.vmem [shape: f32[1,64], index: 4, kind: input, shape index: {}]   ;;  %s20286_s5 = inlined_call_operand.vmem [shape: bf16[3,192,128], index: 5, kind: input, shape index: {}]   ;;  %s20287_s6 = inlined_call_operand.vmem [shape: f32[1,128], index: 6, kind: input, shape index: {}]   ;;  %s20288_s7 = inlined_call_operand.vmem [shape: bf16[3,384,64], index: 7, kind: input, shape index: {}]   ;;  %s20289_s8 = inlined_call_operand.vmem [shape: f32[1,64], index: 8, kind: input, shape index: {}]   ;;  %s20290_s9 = inlined_call_operand.vmem [shape: bf16[3,192,32], index: 9, kind: input, shape index: {}]   ;;  %s20291_s10 = inlined_call_operand.vmem [shape: f32[1,32], index: 10, kind: input, shape index: {}]   ;;  %s20292_s11 = inlined_call_operand.vmem [shape: f32[32,1], index: 11, kind: input, shape index: {}]   ;;  %s20293_s12 = inlined_call_operand.<no memory space> [shape: f32[1,1], index: 12, kind: input, shape index: {}]   ;;  %s20294_s13 = inlined_call_operand.vmem [shape: f32[2,1,256], index: 13, kind: output, shape index: {}]  }
   0x1   :  { %v18_v0 = vstv %s20293_s12 }
   0x2   :  { %19 = vst [vmem:[#allocation8] sm:$0x1] %v18_v0 }
   0x3 LB: > { %s12245_s28 = sadd.s32 4294967295, %s15388_s27   ;;  %p12249_p0 = scmp.ge.s32.totalorder %s15388_s27, 1  ;;  %s15388_s27 = sphi %s15470_s27, %s25_s27  }
   0x4   : > { %p389_p1 = scmp.lt.s32.totalorder %s15388_s27, 3 }
   0x6   : > { %p390_p2 = pnand %p12249_p0, %p389_p1 }
   0x8   : > { %393 = sbr.rel (%p390_p2) target bundleno = 2375 (0x947), region = 72 }
   0xd   : > { %v14900_v1 = vld [vmem:[%s20282_s1 + $0x8] sm:$0x3f]   ;;  %vm1180_vm0 = vcmask 1044480   ;;  %vm1181_vm1 = vcmask 1045504   ;;  %v15390_v2 = vmov 65535   ;;  %p432_p3 = scmp.lt.s32.totalorder %s12245_s28, 1  ;;  %v20295_v26 = vlaneseq }
   0xe   : > { %v1182_v3 = vsel %vm1180_vm0, 4294967295, %v15390_v2  ;;  %v14901_v6 = vld [vmem:[%s20282_s1] sm:$0xff]   ;;  %vm1131_vm2 = vcmask 220160   ;;  %vm442_vm3 = vcmask 261120   ;;  %v20298_v23 = vmov 0.0   ;;  %s15392_s19 = smov 32  }
   0xf   : > { %v1183_v4 = vsel %vm1181_vm1, %v1182_v3, 0  ;;  %s21460_s28 = smov (!%p432_p3, %s12245_s28), 1  ;;  %443 = vst.msk [vmem:[#allocation2] sm:$0xff] %vm442_vm3, %v20298_v23  ;;  %444 = vst.msk [vmem:[#allocation2 + $0x8] sm:$0xff] %vm442_vm3, %v20298_v23  ;;  %v15542_v29 = vshrl.u32 %v20295_v26, 7  ;;  %s15393_s20 = smov 64  }
  0x10   : > { %v1185_v5 = vand.u32 %v14900_v1, %v1183_v4  ;;  %s13634_s15 = sshll.u32 %s21460_s28, 7  ;;  %445 = vst.msk [vmem:[#allocation2 + $0x110] sm:$0xff] %vm442_vm3, %v20298_v23  ;;  %446 = vst.msk [vmem:[#allocation2 + $0x118] sm:$0xff] %vm442_vm3, %v20298_v23  ;;  %v15560_v37 = vrot.slane %v20298_v23, 7  ;;  %vm20303_vm7 = vcmask 257024   ;;  %vm20302_vm8 = vcmask 519424  }
  0x11   : > { %s15490_s18 = scalar_lea.vmem %s20281_s0, %s13634_s15  ;;  %20485 = vst [vmem:[#allocation9_spill] sm:$0xff] %v15542_v29  ;;  %vm20309_vm4 = vcmp.lt.s32.totalorder %v15542_v29, 7  ;;  %v497_v35 = vand.u32 15, %v15542_v29  ;;  %vm20305_vm6 = vcmp.lt.s32.totalorder %v15542_v29, 1  ;;  %vm20300_vm9 = vcmask 781824   ;;  %v14918_v61 = vld [vmem:[%s20284_s3 + $0x28] sm:$0xff]  }
  0x12   : > { %14559 = vmatprep.subr.bf16.mxu0 %v1185_v5  ;;  %v14902_v7 = vld [vmem:[%s15490_s18] sm:$0xff]   ;;  %v14903_v8 = vld [vmem:[%s15490_s18 + $0x8] sm:$0xff]   ;;  %v14904_v9 = vld [vmem:[%s15490_s18 + $0x10] sm:$0xff]   ;;  %20486 = vst [vmem:[#allocation10_spill] sm:$0xff] %v15560_v37  ;;  %v13852_v41 = vpack.c.bf16 %v15560_v37, %v15560_v37  ;;  %14871 = vmatprep.subr.bf16.mxu1 %v14918_v61  ;;  %v15917_v23 = vadd.s32 160, %v15542_v29  ;;  %s12252_s22 = sshll.u32 %s21460_s28, 1 }
  0x13   : > { %14560 = vmatpush3.bf16.msra.mxu0 %v1185_v5  ;;  %14563 = vmatprep.mubr.msk.bf16.mxu0 %vm1131_vm2, %v14902_v7  ;;  %v14905_v10 = vld [vmem:[%s15490_s18 + $0x18] sm:$0xff]   ;;  %v14906_v11 = vld [vmem:[%s15490_s18 + $0x20] sm:$0xff]   ;;  %v14907_v12 = vld [vmem:[%s15490_s18 + $0x28] sm:$0xff]   ;;  %vm15564_vm5 = vcmp.eq.s32.totalorder %v497_v35, 0  ;;  %s440_s25 = scalar_lea.vmem %s20294_s13, %s12252_s22 }
  0x14   : > { %14561 = vmatprep.subr.bf16.mxu0 %v14901_v6  ;;  %v14908_v13 = vld [vmem:[%s15490_s18 + $0x30] sm:$0xff]   ;;  %v14909_v14 = vld [vmem:[%s15490_s18 + $0x38] sm:$0xff]   ;;  %v14910_v15 = vld [vmem:[%s15490_s18 + $0x40] sm:$0xff]   ;;  %v6296_v42 = vsel %vm15564_vm5, 0.0, %v15560_v37  ;;  %6585 = vst [vmem:[#allocation7 + $0xc] sm:$0xf] %v13852_v41  ;;  %14877 = vmatpush3.bf16.msra.mxu1 %v14918_v61 }
  0x15   : > { %v14911_v16 = vld [vmem:[%s15490_s18 + $0x48] sm:$0xff]   ;;  %v14912_v17 = vld [vmem:[%s15490_s18 + $0x50] sm:$0xff]   ;;  %v14913_v18 = vld [vmem:[%s15490_s18 + $0x58] sm:$0xff]   ;;  %v13851_v45 = vpack.c.bf16 %v6296_v42, %v6296_v42  ;;  %6619 = vst [vmem:[#allocation7 + $0x1a4] sm:$0xf] %v13852_v41 }
  0x16   : > { %v14914_v19 = vld [vmem:[%s15490_s18 + $0x60] sm:$0xff]   ;;  %v14915_v20 = vld [vmem:[%s15490_s18 + $0x68] sm:$0xff]   ;;  %v14916_v21 = vld [vmem:[%s15490_s18 + $0x70] sm:$0xff]  }
  0x17   : > { %14562 = vmatpush3.bf16.msra.mxu0 %v14901_v6  ;;  %v14917_v22 = vld [vmem:[%s15490_s18 + $0x78] sm:$0xff]   ;;  %v15532_v24 = vld [vmem:[#allocation2] sm:$0xff]  ;;  %v15537_v27 = vld [vmem:[#allocation2 + $0x8] sm:$0xff]  ;;  %6584 = vst [vmem:[#allocation7] sm:$0xf] %v13851_v45  ;;  %v459_v45 = vadd.s32 16, %v15542_v29 }
  0x18   : > { %v13671_v25 = vpack.c.bf16 %v15532_v24, %v15532_v24  ;;  %v13672_v28 = vpack.c.bf16 %v15537_v27, %v15537_v27  ;;  %v20297_v30 = vrot.slane %v15532_v24, 1  ;;  %v1630_v31 = vrot.slane %v15537_v27, 1  ;;  %v15557_v36 = vld [vmem:[#allocation2 + $0x118] sm:$0xff]  ;;  %v15591_v52 = vld [vmem:[%s20283_s2] ss:$0 sm:$0xff]  ;;  %14595 = vmatprep.subr.bf16.mxu0 %v14918_v61  ;;  %v14921_v41 = vld [vmem:[%s20284_s3 + $0x10] sm:$0xff]  }
  0x19   : > { %v1448_v34 = vrot.slane %v15532_v24, 7  ;;  %v20296_v38 = vrot.slane %v15557_v36, 7  ;;  %v1449_v39 = vrot.slane %v15537_v27, 7  ;;  %v14919_v4 = vld [vmem:[%s20284_s3 + $0x20] sm:$0xff]  }
  0x1a   : > { %14564 = vmatmul.mubr.msk.bf16.vlgmr.msra.gmra.mxu0 %vm1131_vm2, %v14903_v8  ;;  %2099 = vrot.lane.b32.xlu0 %v13671_v25, %s15392_s19  ;;  %v1700_v32 = vsel %vm20309_vm4, %v20297_v30, %v1630_v31 }
  0x1b   : > { %14567 = vmatprep.mubr.msk.bf16.mxu0 %vm1131_vm2, %v14904_v9  ;;  %v13707_v33 = vpack.c.bf16 %v1700_v32, %v1700_v32  ;;  %v1520_v44 = vsel %vm20305_vm6, %v20296_v38, %v1448_v34  ;;  %v1519_v47 = vsel %vm20305_vm6, %v1448_v34, %v1449_v39  ;;  %14596 = vmatpush3.bf16.msra.mxu0 %v14918_v61 }
  0x1c   : > { %v1593_v46 = vsel %vm15564_vm5, 0.0, %v1520_v44  ;;  %v13636_v49 = vpack.c.bf16 %v1519_v47, %v1519_v47  ;;  %14597 = vmatprep.subr.bf16.mxu0 %v14919_v4  ;;  %14872 = vmatprep.subr.bf16.mxu1 %v14919_v4  ;;  %v461_v44 = vadd.s32 32, %v15542_v29 }
  0x1d   : > { %v13635_v48 = vpack.c.bf16 %v1593_v46, %v1593_v46  ;;  %14878 = vmatpush3.bf16.msra.mxu1 %v14919_v4 }
  0x1e   : > { %2101 = vrot.lane.b32.xlu0 %v13672_v28, %s15392_s19  ;;  %1956 = vst.msk [vmem:[#allocation5 + $0x4] sm:$0xf] %vm20303_vm7, %v13636_v49  ;;  %v460_v28 = vadd.s32 24, %v15542_v29 }
  0x1f   : > { %1955 = vst.msk [vmem:[#allocation5] sm:$0xf] %vm20303_vm7, %v13635_v48  ;;  %14598 = vmatpush3.bf16.msra.mxu0 %v14919_v4 }
  0x22   : > { %14568 = vmatmul.mubr.msk.bf16.gmra.mxu0 %vm1131_vm2, %v14905_v10  ;;  %2352 = vrot.lane.b32.xlu0 %v13707_v33, %s15393_s20  ;;  %v458_v10 = vadd.s32 8, %v15542_v29 }
  0x23   : > { %14571 = vmatprep.mubr.msk.bf16.mxu0 %vm1131_vm2, %v14906_v11 }
  0x24   : > { %v504_v25 = vand.u32 15, %v458_v10 }
  0x26   : > { %vm15656_vm10 = vcmp.eq.s32.totalorder %v504_v25, 15 }
  0x2a   : > { %14572 = vmatmul.mubr.msk.bf16.gmra.mxu0 %vm1131_vm2, %v14907_v12 }
  0x2b   : > { %14575 = vmatprep.mubr.msk.bf16.mxu0 %vm1131_vm2, %v14908_v13 }
  0x32   : > { %14576 = vmatmul.mubr.msk.bf16.gmra.mxu0 %vm1131_vm2, %v14909_v14  ;;  %v14920_v14 = vld [vmem:[%s20284_s3 + $0x18] sm:$0xff]  }
  0x33   : > { %14579 = vmatprep.mubr.msk.bf16.mxu0 %vm1131_vm2, %v14910_v15  ;;  %14599 = vmatprep.subr.bf16.mxu0 %v14920_v14 }
  0x34   : > { %14600 = vmatpush3.bf16.msra.mxu0 %v14920_v14  ;;  %14873 = vmatprep.subr.bf16.mxu1 %v14920_v14 }
  0x35   : > { %14879 = vmatpush3.bf16.msra.mxu1 %v14920_v14  ;;  %14601 = vmatprep.subr.bf16.mxu0 %v14921_v41  ;;  %v14923_v14 = vld [vmem:[%s20284_s3] sm:$0xff]  }
  0x36   : > { %14874 = vmatprep.subr.bf16.mxu1 %v14921_v41 }
  0x38   : > { %14602 = vmatpush3.bf16.msra.mxu0 %v14921_v41 }
  0x39   : > { %14880 = vmatpush3.bf16.msra.mxu1 %v14921_v41 }
  0x3a   : > { %14580 = vmatmul.mubr.msk.bf16.gmra.mxu0 %vm1131_vm2, %v14911_v16 }
  0x3b   : > { %14583 = vmatprep.mubr.msk.bf16.mxu0 %vm1131_vm2, %v14912_v17 }
  0x42   : > { %14584 = vmatmul.mubr.msk.bf16.gmra.mxu0 %vm1131_vm2, %v14913_v18 }
  0x43   : > { %14587 = vmatprep.mubr.msk.bf16.mxu0 %vm1131_vm2, %v14914_v19 }
  0x4a   : > { %14588 = vmatmul.mubr.msk.bf16.gmra.mxu0 %vm1131_vm2, %v14915_v20 }
  0x4b   : > { %14591 = vmatprep.mubr.msk.bf16.mxu0 %vm1131_vm2, %v14916_v21 }
  0x52   : > { %14592 = vmatmul.mubr.msk.bf16.gmra.mxu0 %vm1131_vm2, %v14917_v22 }
  0x8c   : > { %v2100_v43 = vpop.permute.xlu0 %2099 }
  0x8d   : > { %2208 = vst.msk [vmem:[#allocation5] sm:$0xf] %vm20302_vm8, %v2100_v43 }
  0x90   : > { %v2102_v50 = vpop.permute.xlu0 %2101 }
  0x91   : > { %2209 = vst.msk [vmem:[#allocation5 + $0x4] sm:$0xf] %vm20302_vm8, %v2102_v50 }
  0x94   : > { %v2353_v51 = vpop.permute.xlu0 %2352 }
  0x95   : > { %2461 = vst.msk [vmem:[#allocation5] sm:$0xf] %vm20300_vm9, %v2353_v51 }
  0xda   : > { %v14565_v53 = vpop.f32.mrf.mxu0 }
  0xdb   : > { %v1230_v54 = vadd.f32 %v14565_v53, %v15591_v52 }
  0xdc   : > { %v1221_v55 = vpop.f32.mrf.mxu0 }
  0xdd   : > { %v1350_v56 = vmax.f32 %v1230_v54, 0.0  ;;  %v1222_v57 = vadd.f32 %v15591_v52, %v1221_v55  ;;  %v518_v54 = vand.u32 15, %v460_v28 }
  0xde   : > { %v14566_v58 = vpop.f32.mrf.mxu0 }
  0xdf   : > { %1382 = vst.msk [vmem:[#allocation2 + $0x20] sm:$0xff] %vm442_vm3, %v1350_v56  ;;  %v1348_v59 = vmax.f32 %v1222_v57, 0.0  ;;  %v1233_v60 = vadd.f32 %v14566_v58, %v15591_v52  ;;  %v20489_v57 = vmov 0  ;;  %vm15678_vm11 = vcmp.eq.s32.totalorder %v518_v54, 15 }
  0xe0   : > { %v1224_v62 = vpop.f32.mrf.mxu0  ;;  %v20490_v57 = vsel %vm15656_vm10, 4294967295, %v20489_v57 }
  0xe1   : > { %1380 = vst.msk [vmem:[#allocation2 + $0x10] sm:$0xff] %vm442_vm3, %v1348_v59  ;;  %v1351_v63 = vmax.f32 %v1233_v60, 0.0  ;;  %v1225_v0 = vadd.f32 %v15591_v52, %v1224_v62  ;;  %20491 = vst [vmem:[#allocation11_spill] sm:$0xff] %v20490_v57  ;;  %v14922_v59 = vld [vmem:[%s20284_s3 + $0x8] sm:$0xff]  }
  0xe2   : > { %v14569_v1 = vpop.f32.mrf.mxu0  ;;  %14603 = vmatprep.subr.bf16.mxu0 %v14922_v59  ;;  %14875 = vmatprep.subr.bf16.mxu1 %v14922_v59 }
  0xe3   : > { %1383 = vst.msk [vmem:[#allocation2 + $0x28] sm:$0xff] %vm442_vm3, %v1351_v63  ;;  %v1349_v2 = vmax.f32 %v1225_v0, 0.0  ;;  %v1246_v3 = vadd.f32 %v14569_v1, %v15591_v52  ;;  %v525_v63 = vand.u32 15, %v461_v44  ;;  %v511_v0 = vand.u32 15, %v459_v45  ;;  %14604 = vmatpush3.bf16.msra.mxu0 %v14922_v59  ;;  %14881 = vmatpush3.bf16.msra.mxu1 %v14922_v59 }
  0xe4   : > { %v1237_v5 = vpop.f32.mrf.mxu0  ;;  %14605 = vmatprep.subr.bf16.mxu0 %v14923_v14  ;;  %14876 = vmatprep.subr.bf16.mxu1 %v14923_v14 }
  0xe5   : > { %1381 = vst.msk [vmem:[#allocation2 + $0x18] sm:$0xff] %vm442_vm3, %v1349_v2  ;;  %v1354_v6 = vmax.f32 %v1246_v3, 0.0  ;;  %v1238_v7 = vadd.f32 %v15591_v52, %v1237_v5  ;;  %vm15698_vm12 = vcmp.eq.s32.totalorder %v525_v63, 0  ;;  %vm15702_vm13 = vcmp.eq.s32.totalorder %v511_v0, 0 }
  0xe6   : > { %v14570_v8 = vpop.f32.mrf.mxu0  ;;  %v15610_v9 = vld [vmem:[#allocation2 + $0x20] sm:$0xff] }
  0xe7   : > { %1386 = vst.msk [vmem:[#allocation2 + $0x40] sm:$0xff] %vm442_vm3, %v1354_v6  ;;  %v1352_v11 = vmax.f32 %v1238_v7, 0.0  ;;  %v1249_v12 = vadd.f32 %v14570_v8, %v15591_v52  ;;  %v13675_v13 = vpack.c.bf16 %v15610_v9, %v15610_v9  ;;  %v1633_v20 = vrot.slane %v15610_v9, 1  ;;  %14606 = vmatpush3.bf16.msra.mxu0 %v14923_v14  ;;  %14882 = vmatpush3.bf16.msra.mxu1 %v14923_v14 }
  0xe8   : > { %v1240_v15 = vpop.f32.mrf.mxu0  ;;  %v15620_v16 = vld [vmem:[#allocation2 + $0x10] sm:$0xff]  ;;  %v20492_v6 = vmov 0  ;;  %v462_v7 = vadd.s32 40, %v15542_v29  ;;  %v15767_v14 = vadd.s32 88, %v15542_v29 }
  0xe9   : > { %1384 = vst.msk [vmem:[#allocation2 + $0x30] sm:$0xff] %vm442_vm3, %v1352_v11  ;;  %v1355_v17 = vmax.f32 %v1249_v12, 0.0  ;;  %v1241_v18 = vadd.f32 %v15591_v52, %v1240_v15  ;;  %2107 = vrot.lane.b32.xlu0 %v13675_v13, %s15392_s19  ;;  %v13673_v19 = vpack.c.bf16 %v15620_v16, %v15620_v16  ;;  %v1631_v34 = vrot.slane %v15620_v16, 1 }
  0xea   : > { %v14573_v21 = vpop.f32.mrf.mxu0  ;;  %v15628_v22 = vld [vmem:[#allocation2 + $0x28] sm:$0xff]  ;;  %v1450_v1 = vrot.slane %v15620_v16, 7  ;;  %v20493_v6 = vsel %vm15678_vm11, 4294967295, %v20492_v6  ;;  %v1452_v15 = vrot.slane %v15610_v9, 7 }
  0xeb   : > { %1387 = vst.msk [vmem:[#allocation2 + $0x48] sm:$0xff] %vm442_vm3, %v1355_v17  ;;  %v1353_v32 = vmax.f32 %v1241_v18, 0.0  ;;  %v1262_v33 = vadd.f32 %v14573_v21, %v15591_v52  ;;  %2103 = vrot.lane.b32.xlu1 %v13673_v19, %s15392_s19  ;;  %v1634_v35 = vrot.slane %v15628_v22, 1  ;;  %v13676_v48 = vpack.c.bf16 %v15628_v22, %v15628_v22  ;;  %20494 = vst [vmem:[#allocation12_spill] sm:$0xff] %v20493_v6 }
  0xec   : > { %v1253_v42 = vpop.f32.mrf.mxu0  ;;  %v15639_v43 = vld [vmem:[#allocation2 + $0x18] sm:$0xff]  ;;  %v1699_v58 = vsel %vm20309_vm4, %v1630_v31, %v1631_v34  ;;  %v20495_v19 = vmov 0 }
  0xed   : > { %1385 = vst.msk [vmem:[#allocation2 + $0x38] sm:$0xff] %vm442_vm3, %v1353_v32  ;;  %v1358_v46 = vmax.f32 %v1262_v33, 0.0  ;;  %v1254_v47 = vadd.f32 %v15591_v52, %v1253_v42  ;;  %v1696_v49 = vsel %vm20309_vm4, %v1633_v20, %v1634_v35  ;;  %v1632_v56 = vrot.slane %v15639_v43, 1 }
  0xee   : > { %v13711_v50 = vpack.c.bf16 %v1696_v49, %v1696_v49  ;;  %v15651_v51 = vld [vmem:[#allocation2 + $0x40] sm:$0xff]  ;;  %v14574_v53 = vpop.f32.mrf.mxu0  ;;  %v13674_v31 = vpack.c.bf16 %v15639_v43, %v15639_v43  ;;  %v1775_v4 = vsel %vm15656_vm10, 0.0, %v1699_v58  ;;  %v1451_v17 = vrot.slane %v15639_v43, 7 }
  0xef   : > { %1390 = vst.msk [vmem:[#allocation2 + $0x60] sm:$0xff] %vm442_vm3, %v1358_v46  ;;  %v1356_v55 = vmax.f32 %v1254_v47, 0.0  ;;  %2109 = vrot.lane.b32.xlu1 %v13676_v48, %s15392_s19  ;;  %v13679_v60 = vpack.c.bf16 %v15651_v51, %v15651_v51  ;;  %v1265_v61 = vadd.f32 %v14574_v53, %v15591_v52  ;;  %v1698_v10 = vsel %vm20309_vm4, %v1631_v34, %v1632_v56 }
  0xf0   : > { %2360 = vrot.lane.b32.xlu0 %v13711_v50, %s15393_s20  ;;  %v1256_v62 = vpop.f32.mrf.mxu0  ;;  %v1697_v12 = vsel %vm20309_vm4, %v1632_v56, %v1633_v20  ;;  %v20496_v19 = vsel %vm15698_vm12, 4294967295, %v20495_v19  ;;  %v20498_v20 = vmov 0  ;;  %v13708_v21 = vpack.c.bf16 %v1775_v4, %v1775_v4  ;;  %v15720_v45 = vld [vmem:[#allocation2 + $0x30] sm:$0xff] }
  0xf1   : > { %1388 = vst.msk [vmem:[#allocation2 + $0x50] sm:$0xff] %vm442_vm3, %v1356_v55  ;;  %v1257_v2 = vadd.f32 %v15591_v52, %v1256_v62  ;;  %v1359_v3 = vmax.f32 %v1265_v61, 0.0  ;;  %20497 = vst [vmem:[#allocation13_spill] sm:$0xff] %v20496_v19  ;;  %v20499_v20 = vsel %vm15702_vm13, 4294967295, %v20498_v20  ;;  %v1518_v32 = vsel %vm20305_vm6, %v1449_v39, %v1450_v1 }
  0xf2   : > { %v14577_v5 = vpop.f32.mrf.mxu0  ;;  %v15689_v13 = vld [vmem:[#allocation2 + $0x48] sm:$0xff]  ;;  %20500 = vst [vmem:[#allocation14_spill] sm:$0xff] %v20499_v20  ;;  %v1637_v33 = vrot.slane %v15651_v51, 1  ;;  %v13709_v34 = vpack.c.bf16 %v1698_v10, %v1698_v10  ;;  %v1777_v41 = vsel %vm15678_vm11, 0.0, %v1697_v12  ;;  %v532_v39 = vand.u32 15, %v462_v7 }
  0xf3   : > { %2105 = vrot.lane.b32.xlu1 %v13674_v31, %s15392_s19  ;;  %v1357_v8 = vmax.f32 %v1257_v2, 0.0  ;;  %v1278_v11 = vadd.f32 %v14577_v5, %v15591_v52  ;;  %1391 = vst.msk [vmem:[#allocation2 + $0x68] sm:$0xff] %vm442_vm3, %v1359_v3  ;;  %v1638_v42 = vrot.slane %v15689_v13, 1  ;;  %v464_v46 = vadd.s32 56, %v15542_v29 }
  0xf4   : > { %2115 = vrot.lane.b32.xlu0 %v13679_v60, %s15392_s19  ;;  %v1269_v18 = vpop.f32.mrf.mxu0  ;;  %v15724_v47 = vadd.s32 72, %v15542_v29  ;;  %v13677_v48 = vpack.c.bf16 %v15720_v45, %v15720_v45  ;;  %v1516_v53 = vsel %vm20305_vm6, %v1451_v17, %v1452_v15  ;;  %v1595_v54 = vsel %vm15702_vm13, 0.0, %v1518_v32  ;;  %v15748_v62 = vld [vmem:[#allocation2 + $0x38] sm:$0xff] }
  0xf5   : > { %1389 = vst.msk [vmem:[#allocation2 + $0x58] sm:$0xff] %vm442_vm3, %v1357_v8  ;;  %v1362_v25 = vmax.f32 %v1278_v11, 0.0  ;;  %v1270_v28 = vadd.f32 %v15591_v52, %v1269_v18  ;;  %v13710_v55 = vpack.c.bf16 %v1777_v41, %v1777_v41  ;;  %v1635_v58 = vrot.slane %v15720_v45, 1 }
  0xf6   : > { %v14578_v44 = vpop.f32.mrf.mxu0  ;;  %v1692_v59 = vsel %vm20309_vm4, %v1637_v33, %v1638_v42  ;;  %v1597_v31 = vsel %vm15698_vm12, 0.0, %v1516_v53  ;;  %v13637_v2 = vpack.c.bf16 %v1595_v54, %v1595_v54  ;;  %vm15755_vm14 = vcmp.eq.s32.totalorder %v532_v39, 15  ;;  %v15762_v10 = vld [vmem:[#allocation2 + $0x60] sm:$0xff] }
  0xf7   : > { %2354 = vrot.lane.b32.xlu1 %v13708_v21, %s15393_s20  ;;  %1394 = vst.msk [vmem:[#allocation2 + $0x80] sm:$0xff] %vm442_vm3, %v1362_v25  ;;  %v1360_v27 = vmax.f32 %v1270_v28, 0.0  ;;  %v1281_v49 = vadd.f32 %v14578_v44, %v15591_v52  ;;  %v20501_v3 = vmov 0  ;;  %v546_v4 = vand.u32 15, %v464_v46 }
  0xf8   : > { %2356 = vrot.lane.b32.xlu0 %v13709_v34, %s15393_s20  ;;  %v1272_v50 = vpop.f32.mrf.mxu0  ;;  %v20502_v3 = vsel %vm15755_vm14, 4294967295, %v20501_v3  ;;  %v560_v7 = vand.u32 15, %v15724_v47  ;;  %v13680_v8 = vpack.c.bf16 %v15689_v13, %v15689_v13  ;;  %1957 = vst.msk [vmem:[#allocation5 + $0x8] sm:$0xf] %vm20303_vm7, %v13637_v2  ;;  %v13715_v18 = vpack.c.bf16 %v1692_v59, %v1692_v59 }
  0xf9   : > { %1392 = vst.msk [vmem:[#allocation2 + $0x70] sm:$0xff] %vm442_vm3, %v1360_v27  ;;  %v1273_v56 = vadd.f32 %v15591_v52, %v1272_v50  ;;  %v1363_v60 = vmax.f32 %v1281_v49, 0.0  ;;  %20503 = vst [vmem:[#allocation15_spill] sm:$0xff] %v20502_v3  ;;  %v1636_v21 = vrot.slane %v15748_v62, 1  ;;  %v15772_v28 = vadd.s32 104, %v15542_v29 }
  0xfa   : > { %v14581_v61 = vpop.f32.mrf.mxu0  ;;  %v13639_v32 = vpack.c.bf16 %v1597_v31, %v1597_v31  ;;  %v20301_v34 = vrot.slane %v15628_v22, 7  ;;  %v1695_v41 = vsel %vm20309_vm4, %v1634_v35, %v1635_v58  ;;  %v15782_v27 = vadd.s32 48, %v15542_v29  ;;  %v15822_v2 = vld [vmem:[#allocation2 + $0x68] sm:$0xff] }
  0xfb   : > { %2358 = vrot.lane.b32.xlu1 %v13710_v55, %s15393_s20  ;;  %v1361_v63 = vmax.f32 %v1273_v56, 0.0  ;;  %v1294_v0 = vadd.f32 %v14581_v61, %v15591_v52  ;;  %1395 = vst.msk [vmem:[#allocation2 + $0x88] sm:$0xff] %vm442_vm3, %v1363_v60  ;;  %v13683_v39 = vpack.c.bf16 %v15762_v10, %v15762_v10  ;;  %v15793_v35 = vadd.s32 64, %v15542_v29 }
  0xfc   : > { %2111 = vrot.lane.b32.xlu0 %v13677_v48, %s15392_s19  ;;  %v1285_v5 = vpop.f32.mrf.mxu0  ;;  %v15789_v48 = vadd.s32 120, %v15542_v29  ;;  %1959 = vst.msk [vmem:[#allocation5 + $0x10] sm:$0xf] %vm20303_vm7, %v13639_v32  ;;  %v13678_v49 = vpack.c.bf16 %v15748_v62, %v15748_v62  ;;  %vm15797_vm15 = vcmp.eq.s32.totalorder %v546_v4, 15  ;;  %v20504_v50 = vmov 0 }
  0xfd   : > { %1393 = vst.msk [vmem:[#allocation2 + $0x78] sm:$0xff] %vm442_vm3, %v1361_v63  ;;  %v1366_v11 = vmax.f32 %v1294_v0, 0.0  ;;  %v1286_v12 = vadd.f32 %v15591_v52, %v1285_v5  ;;  %v20505_v50 = vsel %vm15797_vm15, 4294967295, %v20504_v50  ;;  %v574_v54 = vand.u32 15, %v15767_v14 }
  0xfe   : > { %v14582_v25 = vpop.f32.mrf.mxu0  ;;  %20506 = vst [vmem:[#allocation16_spill] sm:$0xff] %v20505_v50  ;;  %v1779_v55 = vsel %vm15755_vm14, 0.0, %v1695_v41  ;;  %v1694_v56 = vsel %vm20309_vm4, %v1635_v58, %v1636_v21  ;;  %v588_v61 = vand.u32 15, %v15772_v28  ;;  %v1693_v63 = vsel %vm20309_vm4, %v1636_v21, %v1637_v33 }
  0xff   : > { %2117 = vrot.lane.b32.xlu1 %v13680_v8, %s15392_s19  ;;  %1398 = vst.msk [vmem:[#allocation2 + $0xa0] sm:$0xff] %vm442_vm3, %v1366_v11  ;;  %v1364_v44 = vmax.f32 %v1286_v12, 0.0  ;;  %v1297_v46 = vadd.f32 %v14582_v25, %v15591_v52  ;;  %v1515_v58 = vsel %vm20305_vm6, %v1452_v15, %v20301_v34  ;;  %v602_v5 = vand.u32 15, %v15789_v48 }
 0x100   : > { %2368 = vrot.lane.b32.xlu0 %v13715_v18, %s15393_s20  ;;  %v1288_v47 = vpop.f32.mrf.mxu0  ;;  %v15827_v33 = vadd.s32 136, %v15542_v29  ;;  %v553_v8 = vand.u32 15, %v15793_v35  ;;  %v539_v11 = vand.u32 15, %v15782_v27  ;;  %v13712_v9 = vpack.c.bf16 %v1779_v55, %v1779_v55 }
 0x101   : > { %1396 = vst.msk [vmem:[#allocation2 + $0x90] sm:$0xff] %vm442_vm3, %v1364_v44  ;;  %v1289_v53 = vadd.f32 %v15591_v52, %v1288_v47  ;;  %v1367_v59 = vmax.f32 %v1297_v46, 0.0  ;;  %v15834_v14 = vadd.s32 80, %v15542_v29  ;;  %v13713_v18 = vpack.c.bf16 %v1694_v56, %v1694_v56 }
 0x102   : > { %v14585_v60 = vpop.f32.mrf.mxu0  ;;  %v1781_v21 = vsel %vm15797_vm15, 0.0, %v1693_v63  ;;  %v15839_v32 = vadd.s32 152, %v15542_v29  ;;  %v13640_v41 = vpack.c.bf16 %v1515_v58, %v1515_v58  ;;  %v1641_v44 = vrot.slane %v15762_v10, 1 }
 0x103   : > { %2113 = vrot.lane.b32.xlu1 %v13678_v49, %s15392_s19  ;;  %v1365_v0 = vmax.f32 %v1289_v53, 0.0  ;;  %v1310_v31 = vadd.f32 %v14585_v60, %v15591_v52  ;;  %1399 = vst.msk [vmem:[#allocation2 + $0xa8] sm:$0xff] %vm442_vm3, %v1367_v59  ;;  %v1642_v46 = vrot.slane %v15822_v2, 1  ;;  %vm15846_vm0 = vcmp.eq.s32.totalorder %v560_v7, 15 }
 0x104   : > { %2123 = vrot.lane.b32.xlu0 %v13683_v39, %s15392_s19  ;;  %v1301_v4 = vpop.f32.mrf.mxu0  ;;  %v15843_v39 = vld [vmem:[#allocation2 + $0x50] sm:$0xff]  ;;  %v20507_v47 = vmov 0  ;;  %v15852_v49 = vadd.s32 168, %v15542_v29  ;;  %1960 = vst.msk [vmem:[#allocation5 + $0x14] sm:$0xf] %vm20303_vm7, %v13640_v41  ;;  %v15860_v7 = vadd.s32 96, %v15542_v29  ;;  %v13714_v60 = vpack.c.bf16 %v1781_v21, %v1781_v21 }
 0x105   : > { %1397 = vst.msk [vmem:[#allocation2 + $0x98] sm:$0xff] %vm442_vm3, %v1365_v0  ;;  %v1370_v15 = vmax.f32 %v1310_v31, 0.0  ;;  %v1302_v12 = vadd.f32 %v15591_v52, %v1301_v4  ;;  %v20508_v47 = vsel %vm15846_vm0, 4294967295, %v20507_v47  ;;  %v13681_v53 = vpack.c.bf16 %v15843_v39, %v15843_v39 }
 0x106   : > { %v14586_v25 = vpop.f32.mrf.mxu0  ;;  %20509 = vst [vmem:[#allocation17_spill] sm:$0xff] %v20508_v47  ;;  %v15863_v59 = vadd.s32 112, %v15542_v29  ;;  %v616_v0 = vand.u32 15, %v15827_v33  ;;  %v1639_v58 = vrot.slane %v15843_v39, 1  ;;  %vm15881_vm1 = vcmp.eq.s32.totalorder %v574_v54, 15 }
 0x107   : > { %2362 = vrot.lane.b32.xlu1 %v13712_v9, %s15393_s20  ;;  %1402 = vst.msk [vmem:[#allocation2 + $0xc0] sm:$0xff] %vm442_vm3, %v1370_v15  ;;  %v1368_v35 = vmax.f32 %v1302_v12, 0.0  ;;  %v1313_v55 = vadd.f32 %v14586_v25, %v15591_v52  ;;  %v15872_v12 = vadd.s32 128, %v15542_v29  ;;  %v20510_v21 = vmov 0  ;;  %v15976_v15 = vld [vmem:[#allocation2 + $0x78] sm:$0xff] }
 0x108   : > { %2364 = vrot.lane.b32.xlu0 %v13713_v18, %s15393_s20  ;;  %v1304_v56 = vpop.f32.mrf.mxu0  ;;  %v1688_v18 = vsel %vm20309_vm4, %v1641_v44, %v1642_v46  ;;  %v20511_v21 = vsel %vm15881_vm1, 4294967295, %v20510_v21  ;;  %v13684_v16 = vpack.c.bf16 %v15822_v2, %v15822_v2  ;;  %vm15908_vm2 = vcmp.eq.s32.totalorder %v553_v8, 0 }
 0x109   : > { %1400 = vst.msk [vmem:[#allocation2 + $0xb0] sm:$0xff] %vm442_vm3, %v1368_v35  ;;  %v1305_v63 = vadd.f32 %v15591_v52, %v1304_v56  ;;  %v1371_v4 = vmax.f32 %v1313_v55, 0.0  ;;  %20512 = vst [vmem:[#allocation18_spill] sm:$0xff] %v20511_v21  ;;  %v1517_v35 = vsel %vm20305_vm6, %v1450_v1, %v1451_v17  ;;  %v15893_v55 = vld [vmem:[#allocation2 + $0x58] sm:$0xff]  ;;  %v15904_v1 = vld [vmem:[#allocation2 + $0x80] sm:$0xff]  ;;  %v13719_v26 = vpack.c.bf16 %v1688_v18, %v1688_v18 }
 0x10a   : > { %v14589_v9 = vpop.f32.mrf.mxu0  ;;  %v13638_v30 = vpack.c.bf16 %v1517_v35, %v1517_v35  ;;  %v1691_v8 = vsel %vm20309_vm4, %v1638_v42, %v1639_v58  ;;  %v15927_v18 = vadd.s32 176, %v15542_v29  ;;  %v13687_v35 = vpack.c.bf16 %v15904_v1, %v15904_v1 }
 0x10b   : > { %2366 = vrot.lane.b32.xlu1 %v13714_v60, %s15393_s20  ;;  %v1369_v25 = vmax.f32 %v1305_v63, 0.0  ;;  %v1326_v41 = vadd.f32 %v14589_v9, %v15591_v52  ;;  %1403 = vst.msk [vmem:[#allocation2 + $0xc8] sm:$0xff] %vm442_vm3, %v1371_v4  ;;  %v15898_v60 = vadd.s32 184, %v15542_v29  ;;  %v20513_v4 = vmov 0 }
 0x10c   : > { %2119 = vrot.lane.b32.xlu0 %v13681_v53, %s15392_s19  ;;  %v1317_v54 = vpop.f32.mrf.mxu0  ;;  %v20514_v4 = vsel %vm15908_vm2, 4294967295, %v20513_v4  ;;  %v15913_v9 = vadd.s32 144, %v15542_v29  ;;  %1958 = vst.msk [vmem:[#allocation5 + $0xc] sm:$0xf] %vm20303_vm7, %v13638_v30  ;;  %v15935_v43 = vadd.s32 192, %v15542_v29  ;;  %v15938_v42 = vadd.s32 208, %v15542_v29 }
 0x10d   : > { %1401 = vst.msk [vmem:[#allocation2 + $0xb8] sm:$0xff] %vm442_vm3, %v1369_v25  ;;  %v1374_v17 = vmax.f32 %v1326_v41, 0.0  ;;  %v1318_v53 = vadd.f32 %v15591_v52, %v1317_v54  ;;  %20515 = vst [vmem:[#allocation19_spill] sm:$0xff] %v20514_v4  ;;  %v1640_v25 = vrot.slane %v15893_v55, 1  ;;  %v1783_v30 = vsel %vm15846_vm0, 0.0, %v1691_v8 }
 0x10e   : > { %v14590_v38 = vpop.f32.mrf.mxu0  ;;  %vm15950_vm9 = vcmp.eq.s32.totalorder %v588_v61, 15  ;;  %v20516_v56 = vmov 0  ;;  %v15963_v61 = vld [vmem:[#allocation2 + $0x70] sm:$0xff]  ;;  %vm15967_vm8 = vcmp.eq.s32.totalorder %v602_v5, 15  ;;  %v20519_v8 = vmov 0 }
 0x10f   : > { %2125 = vrot.lane.b32.xlu1 %v13684_v16, %s15392_s19  ;;  %1406 = vst.msk [vmem:[#allocation2 + $0xe0] sm:$0xff] %vm442_vm3, %v1374_v17  ;;  %v1372_v41 = vmax.f32 %v1318_v53, 0.0  ;;  %v1329_v54 = vadd.f32 %v14590_v38, %v15591_v52  ;;  %v20306_v17 = vrot.slane %v15651_v51, 7  ;;  %v20304_v53 = vrot.slane %v15748_v62, 7 }
 0x110   : > { %2376 = vrot.lane.b32.xlu0 %v13719_v26, %s15393_s20  ;;  %v1320_v16 = vpop.f32.mrf.mxu0  ;;  %v13682_v26 = vpack.c.bf16 %v15893_v55, %v15893_v55  ;;  %v20517_v56 = vsel %vm15950_vm9, 4294967295, %v20516_v56  ;;  %v1689_v28 = vsel %vm20309_vm4, %v1640_v25, %v1641_v44  ;;  %v20520_v8 = vsel %vm15967_vm8, 4294967295, %v20519_v8 }
 0x111   : > { %1404 = vst.msk [vmem:[#allocation2 + $0xd0] sm:$0xff] %vm442_vm3, %v1372_v41  ;;  %v1321_v38 = vadd.f32 %v15591_v52, %v1320_v16  ;;  %20518 = vst [vmem:[#allocation20_spill] sm:$0xff] %v20517_v56  ;;  %v1375_v31 = vmax.f32 %v1329_v54, 0.0  ;;  %v1690_v41 = vsel %vm20309_vm4, %v1639_v58, %v1640_v25  ;;  %v15974_v58 = vld [vmem:[#allocation2 + $0x88] sm:$0xff]  ;;  %vm15981_vm7 = vcmp.eq.s32.totalorder %v539_v11, 0  ;;  %v16020_v11 = vld [vmem:[#allocation2 + $0x90] sm:$0xff] }
 0x112   : > { %v14593_v63 = vpop.f32.mrf.mxu0  ;;  %20521 = vst [vmem:[#allocation21_spill] sm:$0xff] %v20520_v8  ;;  %v20522_v48 = vmov 0  ;;  %v1512_v27 = vsel %vm20305_vm6, %v20304_v53, %v20306_v17  ;;  %vm16011_vm6 = vcmp.eq.s32.totalorder %v616_v0, 15  ;;  %v20528_v53 = vand.u32 15, %v15839_v32 }
 0x113   : > { %2121 = vrot.lane.b32.xlu1 %v13682_v26, %s15392_s19  ;;  %v1373_v54 = vmax.f32 %v1321_v38, 0.0  ;;  %v1342_v16 = vadd.f32 %v14593_v63, %v15591_v52  ;;  %1407 = vst.msk [vmem:[#allocation2 + $0xe8] sm:$0xff] %vm442_vm3, %v1375_v31  ;;  %v20523_v48 = vsel %vm15981_vm7, 4294967295, %v20522_v48  ;;  %v13717_v31 = vpack.c.bf16 %v1690_v41, %v1690_v41  ;;  %v16043_v26 = vld [vmem:[#allocation2 + $0x98] sm:$0xff] }
 0x114   : > { %2131 = vrot.lane.b32.xlu0 %v13687_v35, %s15392_s19  ;;  %v1333_v44 = vpop.f32.mrf.mxu0  ;;  %20524 = vst [vmem:[#allocation22_spill] sm:$0xff] %v20523_v48  ;;  %v13716_v35 = vpack.c.bf16 %v1783_v30, %v1783_v30  ;;  %v1785_v63 = vsel %vm15881_vm1, 0.0, %v1689_v28  ;;  %v1643_v30 = vrot.slane %v15963_v61, 1  ;;  %v13685_v41 = vpack.c.bf16 %v15963_v61, %v15963_v61 }
 0x115   : > { %1405 = vst.msk [vmem:[#allocation2 + $0xd8] sm:$0xff] %vm442_vm3, %v1373_v54  ;;  %v1378_v38 = vmax.f32 %v1342_v16, 0.0  ;;  %v1334_v34 = vadd.f32 %v15591_v52, %v1333_v44  ;;  %v1645_v54 = vrot.slane %v15904_v1, 1  ;;  %v1646_v16 = vrot.slane %v15974_v58, 1 }
 0x116   : > { %v14594_v25 = vpop.f32.mrf.mxu0  ;;  %v1644_v44 = vrot.slane %v15976_v15, 1  ;;  %v20525_v28 = vmov 0  ;;  %v13688_v32 = vpack.c.bf16 %v15974_v58, %v15974_v58  ;;  %vm20535_vm1 = vcmp.lt.s32.totalorder %v15542_v29, 7 }
 0x117   : > { %2370 = vrot.lane.b32.xlu1 %v13716_v35, %s15393_s20  ;;  %1410 = vst.msk [vmem:[#allocation2 + $0x100] sm:$0xff] %vm442_vm3, %v1378_v38  ;;  %v1376_v5 = vmax.f32 %v1334_v34, 0.0  ;;  %v20526_v28 = vsel %vm16011_vm6, 4294967295, %v20525_v28  ;;  %v1345_v35 = vadd.f32 %v14594_v25, %v15591_v52  ;;  %v1601_v38 = vsel %vm15908_vm2, 0.0, %v1512_v27  ;;  %v16030_v27 = vld [vmem:[#allocation2 + $0xa8] sm:$0xff] }
 0x118   : > { %2372 = vrot.lane.b32.xlu0 %v13717_v31, %s15393_s20  ;;  %20527 = vst [vmem:[#allocation23_spill] sm:$0xff] %v20526_v28  ;;  %v1336_v17 = vpop.f32.mrf.mxu0  ;;  %v13718_v31 = vpack.c.bf16 %v1785_v63, %v1785_v63  ;;  %v1687_v25 = vsel %vm20309_vm4, %v1642_v46, %v1643_v30  ;;  %vm16034_vm2 = vcmp.eq.s32.totalorder %v20528_v53, 15  ;;  %v20529_v63 = vmov 0  ;;  %v16049_v53 = vld [vmem:[#allocation2 + $0xa0] sm:$0xff] }
 0x119   : > { %1408 = vst.msk [vmem:[#allocation2 + $0xf0] sm:$0xff] %vm442_vm3, %v1376_v5  ;;  %v1337_v33 = vadd.f32 %v15591_v52, %v1336_v17  ;;  %v20530_v63 = vsel %vm16034_vm2, 4294967295, %v20529_v63  ;;  %v1379_v5 = vmax.f32 %v1345_v35, 0.0  ;;  %v1684_v52 = vsel %vm20309_vm4, %v1645_v54, %v1646_v16 }
 0x11a   : > { %20531 = vst [vmem:[#allocation24_spill] sm:$0xff] %v20530_v63  ;;  %v1685_v17 = vsel %vm20309_vm4, %v1644_v44, %v1645_v54  ;;  %v13643_v34 = vpack.c.bf16 %v1601_v38, %v1601_v38  ;;  %v1647_v35 = vrot.slane %v16020_v11, 1  ;;  %v20533_v54 = vrot.slane %v15628_v22, 7 }
 0x11b   : > { %2374 = vrot.lane.b32.xlu1 %v13718_v31, %s15393_s20  ;;  %v1377_v46 = vmax.f32 %v1337_v33, 0.0  ;;  %1411 = vst.msk [vmem:[#allocation2 + $0x108] sm:$0xff] %vm442_vm3, %v1379_v5  ;;  %v20532_v31 = vrot.slane %v15720_v45, 7  ;;  %vm20534_vm4 = vcmp.lt.s32.totalorder %v15542_v29, 1  ;;  %v1649_v33 = vrot.slane %v16049_v53, 1 }
 0x11c   : > { %2127 = vrot.lane.b32.xlu0 %v13685_v41, %s15392_s19  ;;  %v1787_v41 = vsel %vm15950_vm9, 0.0, %v1687_v25  ;;  %v16064_v0 = vsel %vm20535_vm1, %v1643_v30, %v1644_v44  ;;  %v20322_v37 = vrot.slane %v16030_v27, 1  ;;  %vm20536_vm12 = vcmask 257024  }
 0x11d   : > { %v1514_v38 = vsel %vm20534_vm4, %v20533_v54, %v20532_v31  ;;  %1409 = vst.msk [vmem:[#allocation2 + $0xf8] sm:$0xff] %vm442_vm3, %v1377_v46  ;;  %v20537_v22 = vand.u32 15, %v15860_v7  ;;  %v20538_v5 = vmov 0  ;;  %v13723_v54 = vpack.c.bf16 %v1684_v52, %v1684_v52  ;;  %vm20545_vm4 = vmmov %vm20535_vm1 }
 0x11e   : > { %1963 = vst.msk [vmem:[#allocation5 + $0x20] sm:$0xf] %vm20536_vm12, %v13643_v34  ;;  %v16078_v25 = vsel %vm15967_vm8, 0.0, %v1685_v17  ;;  %v1648_v30 = vrot.slane %v16043_v26, 1  ;;  %v20541_v44 = vand.u32 15, %v15834_v14  ;;  %v20542_v46 = vmov 0  ;;  %vm20554_vm8 = vmmov %vm20535_vm1 }
 0x11f   : > { %vm16071_vm0 = vcmp.eq.s32.totalorder %v20537_v22, 0  ;;  %2133 = vrot.lane.b32.xlu1 %v13688_v32, %s15392_s19  ;;  %v13686_v34 = vpack.c.bf16 %v15976_v15, %v15976_v15  ;;  %v1599_v17 = vsel %vm15981_vm7, 0.0, %v1514_v38  ;;  %v13691_v14 = vpack.c.bf16 %v16049_v53, %v16049_v53 }
 0x120   : > { %v20539_v5 = vsel %vm16071_vm0, 4294967295, %v20538_v5  ;;  %vm16083_vm3 = vcmp.eq.s32.totalorder %v20541_v44, 0  ;;  %2384 = vrot.lane.b32.xlu0 %v13723_v54, %s15393_s20  ;;  %v13720_v22 = vpack.c.bf16 %v1787_v41, %v1787_v41  ;;  %v13721_v44 = vpack.c.bf16 %v16064_v0, %v16064_v0 }
 0x121   : > { %20540 = vst [vmem:[#allocation25_spill] sm:$0xff] %v20539_v5  ;;  %v20543_v46 = vsel %vm16083_vm3, 4294967295, %v20542_v46  ;;  %v1683_v32 = vsel %vm20545_vm4, %v1646_v16, %v1647_v35  ;;  %v20546_v31 = vand.u32 15, %v15872_v12  ;;  %v20547_v7 = vmov 0 }
 0x122   : > { %20544 = vst [vmem:[#allocation26_spill] sm:$0xff] %v20543_v46  ;;  %v13722_v38 = vpack.c.bf16 %v16078_v25, %v16078_v25  ;;  %v16116_v0 = vsel %vm20535_vm1, %v1649_v33, %v20322_v37  ;;  %v20550_v12 = vand.u32 15, %v15863_v59  ;;  %v20551_v16 = vmov 0 }
 0x123   : > { %vm16103_vm12 = vcmp.eq.s32.totalorder %v20546_v31, 0  ;;  %v1681_v25 = vsel %vm20554_vm8, %v1648_v30, %v1649_v33  ;;  %v13641_v54 = vpack.c.bf16 %v1599_v17, %v1599_v17  ;;  %v20555_v52 = vrot.slane %v15689_v13, 7  ;;  %2129 = vrot.lane.b32.xlu1 %v13686_v34, %s15392_s19 }
 0x124   : > { %v20548_v7 = vsel %vm16103_vm12, 4294967295, %v20547_v7  ;;  %vm16120_vm4 = vcmp.eq.s32.totalorder %v20550_v12, 0  ;;  %v20556_v41 = vrot.slane %v15651_v51, 7  ;;  %vm20557_vm7 = vcmp.lt.s32.totalorder %v15542_v29, 1  ;;  %v16136_v12 = vld [vmem:[#allocation2 + $0xc0] sm:$0xff]  ;;  %2139 = vrot.lane.b32.xlu0 %v13691_v14, %s15392_s19 }
 0x125   : > { %20549 = vst [vmem:[#allocation27_spill] sm:$0xff] %v20548_v7  ;;  %v20552_v16 = vsel %vm16120_vm4, 4294967295, %v20551_v16  ;;  %v16140_v31 = vsel %vm16011_vm6, 0.0, %v1683_v32  ;;  %v20558_v17 = vrot.slane %v15748_v62, 7  ;;  %v20559_v4 = vrot.slane %v15720_v45, 7  ;;  %vm20560_vm8 = vmmov %vm20557_vm7 }
 0x126   : > { %20553 = vst [vmem:[#allocation28_spill] sm:$0xff] %v20552_v16  ;;  %v1511_v37 = vsel %vm20557_vm7, %v20556_v41, %v20555_v52  ;;  %v20561_v52 = vand.u32 15, %v15917_v23  ;;  %v20562_v34 = vmov 0  ;;  %v20565_v41 = vand.u32 15, %v15913_v9 }
 0x127   : > { %v13644_v33 = vpack.c.bf16 %v1511_v37, %v1511_v37  ;;  %v1513_v51 = vsel %vm20560_vm8, %v20559_v4, %v20558_v17  ;;  %v20566_v59 = vmov 0  ;;  %v1467_v45 = vrot.slane %v16043_v26, 7  ;;  %v16170_v4 = vld [vmem:[#allocation2 + $0xb0] sm:$0xff]  ;;  %v16179_v17 = vld [vmem:[#allocation2 + $0xc8] sm:$0xff]  ;;  %2378 = vrot.lane.b32.xlu1 %v13720_v22, %s15393_s20 }
 0x128   : > { %vm16150_vm7 = vcmp.eq.s32.totalorder %v20561_v52, 0  ;;  %vm16156_vm1 = vcmp.eq.s32.totalorder %v20565_v41, 0  ;;  %vm20569_vm8 = vcmp.lt.s32.totalorder %v15542_v29, 7  ;;  %vm20570_vm6 = vcmask 257024   ;;  %2380 = vrot.lane.b32.xlu0 %v13721_v44, %s15393_s20 }
 0x129   : > { %v20563_v34 = vsel %vm16150_vm7, 4294967295, %v20562_v34  ;;  %v20567_v59 = vsel %vm16156_vm1, 4294967295, %v20566_v59  ;;  %v16168_v62 = vsel %vm20569_vm8, %v1647_v35, %v1648_v30  ;;  %1961 = vst.msk [vmem:[#allocation5 + $0x18] sm:$0xf] %vm20570_vm6, %v13641_v54  ;;  %v16177_v32 = vsel %vm16034_vm2, 0.0, %v1681_v25  ;;  %vm20571_vm9 = vmmov %vm20570_vm6  ;;  %v16186_v54 = vld [vmem:[#allocation2 + $0xb8] sm:$0xff] }
 0x12a   : > { %20564 = vst [vmem:[#allocation29_spill] sm:$0xff] %v20563_v34  ;;  %20568 = vst [vmem:[#allocation30_spill] sm:$0xff] %v20567_v59  ;;  %v13642_v52 = vpack.c.bf16 %v1513_v51, %v1513_v51  ;;  %v20572_v41 = vrot.slane %v15762_v10, 7  ;;  %v20573_v23 = vrot.slane %v15893_v55, 7  ;;  %vm20574_vm6 = vcmp.lt.s32.totalorder %v15542_v29, 1 }
 0x12b   : > { %1964 = vst.msk [vmem:[#allocation5 + $0x24] sm:$0xf] %vm20571_vm9, %v13644_v33  ;;  %v20575_v9 = vrot.slane %v15843_v39, 7  ;;  %v20576_v33 = vrot.slane %v15689_v13, 7  ;;  %vm20577_vm9 = vmmov %vm20574_vm6  ;;  %v20578_v35 = vand.u32 15, %v15935_v43  ;;  %v20579_v30 = vmov 0  ;;  %2382 = vrot.lane.b32.xlu1 %v13722_v38, %s15393_s20 }
 0x12c   : > { %v1508_v25 = vsel %vm20574_vm6, %v20573_v23, %v20572_v41  ;;  %vm20582_vm6 = vcmask 257024   ;;  %v16217_v43 = vld [vmem:[%s20284_s3 + $0x58] sm:$0xff]   ;;  %v20583_v41 = vand.u32 15, %v15927_v18  ;;  %v20587_v22 = vrot.slane %v15822_v2, 7 }
 0x12d   : > { %v1510_v51 = vsel %vm20577_vm9, %v20576_v33, %v20575_v9  ;;  %vm16202_vm8 = vcmp.eq.s32.totalorder %v20578_v35, 0  ;;  %1962 = vst.msk [vmem:[#allocation5 + $0x1c] sm:$0xf] %vm20582_vm6, %v13642_v52  ;;  %v20339_v35 = vrot.slane %v16179_v17, 1  ;;  %v1605_v33 = vsel %vm16071_vm0, 0.0, %v1508_v25  ;;  %14639 = vmatprep.subr.bf16.mxu0 %v16217_v43 }
 0x12e   : > { %v20580_v30 = vsel %vm16202_vm8, 4294967295, %v20579_v30  ;;  %vm16228_vm9 = vcmp.eq.s32.totalorder %v20583_v41, 0  ;;  %v20584_v52 = vmov 0  ;;  %v13647_v37 = vpack.c.bf16 %v1605_v33, %v1605_v33 }
 0x12f   : > { %20581 = vst [vmem:[#allocation31_spill] sm:$0xff] %v20580_v30  ;;  %v20585_v52 = vsel %vm16228_vm9, 4294967295, %v20584_v52  ;;  %v1603_v44 = vsel %vm16083_vm3, 0.0, %v1510_v51  ;;  %v20588_v9 = vrot.slane %v15762_v10, 7  ;;  %vm20589_vm6 = vcmp.lt.s32.totalorder %v15542_v29, 1 }
 0x130   : > { %20586 = vst [vmem:[#allocation32_spill] sm:$0xff] %v20585_v52  ;;  %v13645_v18 = vpack.c.bf16 %v1603_v44, %v1603_v44  ;;  %v20590_v41 = vrot.slane %v15893_v55, 7  ;;  %v20591_v14 = vrot.slane %v15843_v39, 7  ;;  %vm20592_vm0 = vmmov %vm20589_vm6  ;;  %v20593_v51 = vrot.slane %v15904_v1, 7 }
 0x131   : > { %v1507_v23 = vsel %vm20589_vm6, %v20588_v9, %v20587_v22  ;;  %v20594_v13 = vrot.slane %v15976_v15, 7  ;;  %vm20595_vm3 = vmmov %vm20592_vm0  ;;  %vm20596_vm6 = vcmask 257024   ;;  %v20597_v39 = vrot.slane %v15963_v61, 7 }
 0x132   : > { %v13648_v25 = vpack.c.bf16 %v1507_v23, %v1507_v23  ;;  %v1509_v33 = vsel %vm20592_vm0, %v20591_v14, %v20590_v41  ;;  %1967 = vst.msk [vmem:[#allocation5 + $0x30] sm:$0xf] %vm20596_vm6, %v13647_v37  ;;  %v20598_v23 = vrot.slane %v15822_v2, 7  ;;  %v20599_v9 = vrot.slane %v15974_v58, 7  ;;  %1965 = vst.msk [vmem:[#allocation5 + $0x28] sm:$0xf] %vm20596_vm6, %v13645_v18 }
 0x133   : > { %v1504_v10 = vsel %vm20595_vm3, %v20594_v13, %v20593_v51  ;;  %v13646_v22 = vpack.c.bf16 %v1509_v33, %v1509_v33  ;;  %v20600_v44 = vmov %v20593_v51  ;;  %vm20601_vm3 = vmmov %vm20592_vm0  ;;  %v20602_v37 = vpack.c.bf16 %v16020_v11, %v16020_v11 }
 0x134   : > { %v1609_v55 = vsel %vm16103_vm12, 0.0, %v1504_v10  ;;  %v1506_v14 = vsel %vm20592_vm0, %v20598_v23, %v20597_v39  ;;  %v1503_v38 = vsel %vm20601_vm3, %v20600_v44, %v20599_v9  ;;  %vm20603_vm12 = vmmov %vm20596_vm6  ;;  %v20604_v33 = vrot.slane %v15976_v15, 7 }
 0x135   : > { %2135 = vrot.lane.b32.xlu0 %v20602_v37, %s15392_s19  ;;  %1968 = vst.msk [vmem:[#allocation5 + $0x34] sm:$0xf] %vm20603_vm12, %v13648_v25  ;;  %v13651_v2 = vpack.c.bf16 %v1609_v55, %v1609_v55  ;;  %v1607_v13 = vsel %vm16120_vm4, 0.0, %v1506_v14  ;;  %v13652_v41 = vpack.c.bf16 %v1503_v38, %v1503_v38  ;;  %v20605_v1 = vmov %v20597_v39  ;;  %vm20611_vm12 = vmmov %vm20592_vm0 }
 0x136   : > { %v1505_v51 = vsel %vm20592_vm0, %v20605_v1, %v20604_v33  ;;  %v20606_v10 = vand.u32 15, %v15938_v42  ;;  %v20607_v39 = vmov 0  ;;  %1966 = vst.msk [vmem:[#allocation5 + $0x2c] sm:$0xf] %vm20596_vm6, %v13646_v22  ;;  %v13649_v18 = vpack.c.bf16 %v1607_v13, %v1607_v13  ;;  %vm20614_vm4 = vmmov %vm20596_vm6  ;;  %v16331_v33 = vld [vmem:[#allocation2 + $0xd0] sm:$0xff] }
 0x137   : > { %v13650_v25 = vpack.c.bf16 %v1505_v51, %v1505_v51  ;;  %v20610_v55 = vrot.slane %v16049_v53, 7  ;;  %v20612_v61 = vrot.slane %v16020_v11, 7  ;;  %v20613_v23 = vmov %v20599_v9  ;;  %1971 = vst.msk [vmem:[#allocation5 + $0x40] sm:$0xf] %vm20596_vm6, %v13651_v2  ;;  %v16333_v53 = vld [vmem:[#allocation2 + $0xd8] sm:$0xff] }
 0x138   : > { %vm16286_vm3 = vcmp.eq.s32.totalorder %v20606_v10, 0  ;;  %1972 = vst.msk [vmem:[#allocation5 + $0x44] sm:$0xf] %vm20614_vm4, %v13652_v41  ;;  %v20615_v44 = vrot.slane %v16030_v27, 7  ;;  %v20618_v37 = vpack.c.bf16 %v16030_v27, %v16030_v27  ;;  %v20619_v2 = vrot.slane %v16136_v12, 1  ;;  %v16329_v41 = vld [vmem:[#allocation2 + $0xe0] sm:$0xff] }
 0x139   : > { %v20608_v39 = vsel %vm16286_vm3, 4294967295, %v20607_v39  ;;  %v1500_v15 = vsel %vm20611_vm12, %v1467_v45, %v20610_v55  ;;  %v1502_v42 = vsel %vm20592_vm0, %v20613_v23, %v20612_v61  ;;  %v20616_v58 = vmov %v20610_v55  ;;  %vm20617_vm12 = vmmov %vm20592_vm0  ;;  %v16342_v61 = vld [vmem:[#allocation2 + $0xe8] sm:$0xff] }
 0x13a   : > { %20609 = vst [vmem:[#allocation33_spill] sm:$0xff] %v20608_v39  ;;  %v1613_v22 = vsel %vm16150_vm7, 0.0, %v1500_v15  ;;  %v1611_v9 = vsel %vm16156_vm1, 0.0, %v1502_v42  ;;  %v1499_v38 = vsel %vm20617_vm12, %v20616_v58, %v20615_v44  ;;  %2141 = vrot.lane.b32.xlu1 %v20618_v37, %s15392_s19  ;;  %vm20620_vm4 = vcmp.lt.s32.totalorder %v15542_v29, 7  ;;  %vm20621_vm0 = vmmov %vm20596_vm6 }
 0x13b   : > { %v16327_v13 = vsel %vm20620_vm4, %v20619_v2, %v20339_v35  ;;  %1969 = vst.msk [vmem:[#allocation5 + $0x38] sm:$0xf] %vm20621_vm0, %v13649_v18  ;;  %vm20622_vm6 = vmmov %vm20621_vm0  ;;  %v13655_v1 = vpack.c.bf16 %v1613_v22, %v1613_v22  ;;  %v13653_v51 = vpack.c.bf16 %v1611_v9, %v1611_v9  ;;  %v13656_v10 = vpack.c.bf16 %v1499_v38, %v1499_v38 }
 0x13c   : > { %1970 = vst.msk [vmem:[#allocation5 + $0x3c] sm:$0xf] %vm20622_vm6, %v13650_v25  ;;  %v20623_v55 = vpack.c.bf16 %v16116_v0, %v16116_v0  ;;  %v1476_v15 = vrot.slane %v16329_v41, 7  ;;  %v20624_v23 = vrot.slane %v16020_v11, 7  ;;  %v20625_v25 = vrot.slane %v16136_v12, 7  ;;  %vm20627_vm4 = vmmov %vm20617_vm12 }
 0x13d   : > { %v20626_v42 = vrot.slane %v16186_v54, 7  ;;  %v492_v0 = vadd.s32 280, %v15542_v29  ;;  %1975 = vst.msk [vmem:[#allocation5 + $0x50] sm:$0xf] %vm20621_vm0, %v13655_v1  ;;  %vm20628_vm6 = vmmov %vm20621_vm0  ;;  %v20632_v58 = vrot.slane %v16170_v4, 7  ;;  %v20633_v38 = vrot.slane %v16030_v27, 7 }
 0x13e   : > { %2392 = vrot.lane.b32.xlu0 %v20623_v55, %s15393_s20  ;;  %v1501_v18 = vsel %vm20617_vm12, %v20624_v23, %v1467_v45  ;;  %1973 = vst.msk [vmem:[#allocation5 + $0x48] sm:$0xf] %vm20628_vm6, %v13653_v51  ;;  %vm20629_vm7 = vmmov %vm20621_vm0  ;;  %v20630_v45 = vmov 0.0   ;;  %v1474_v2 = vrot.slane %v16331_v33, 7  ;;  %v1475_v1 = vrot.slane %v16333_v53, 7  ;;  %v16373_v51 = vld [vmem:[#allocation2 + $0xf0] sm:$0xff] }
 0x13f   : > { %v1496_v22 = vsel %vm20627_vm4, %v20626_v42, %v20625_v25  ;;  %1976 = vst.msk [vmem:[#allocation5 + $0x54] sm:$0xf] %vm20629_vm7, %v13656_v10  ;;  %v13654_v9 = vpack.c.bf16 %v1501_v18, %v1501_v18  ;;  %v16363_v44 = vrot.slane %v20630_v45, 1  ;;  %vm20634_vm12 = vmmov %vm20627_vm4  ;;  %v742_v55 = vand.u32 15, %v492_v0  ;;  %v16380_v25 = vld [vmem:[#allocation2 + $0x100] sm:$0xff] }
 0x140   : > { %v1617_v11 = vsel %vm16202_vm8, 0.0, %v1496_v22  ;;  %v1498_v37 = vsel %vm20634_vm12, %v20633_v38, %v20632_v58  ;;  %v20635_v23 = vpack.c.bf16 %v16043_v26, %v16043_v26  ;;  %v1477_v18 = vrot.slane %v16342_v61, 7  ;;  %vm20636_vm7 = vmmov %vm20621_vm0 }
 0x141   : > { %20631 = vst [vmem:[#allocation34_spill] sm:$0xff] %v16363_v44  ;;  %v13659_v10 = vpack.c.bf16 %v1617_v11, %v1617_v11  ;;  %1974 = vst.msk [vmem:[#allocation5 + $0x4c] sm:$0xf] %vm20636_vm7, %v13654_v9  ;;  %v13923_v42 = vpack.c.bf16 %v16363_v44, %v16363_v44  ;;  %v1615_v22 = vsel %vm16228_vm9, 0.0, %v1498_v37  ;;  %v20637_v11 = vrot.slane %v16179_v17, 7 }
 0x142   : > { %2137 = vrot.lane.b32.xlu1 %v20635_v23, %s15392_s19  ;;  %v20638_v0 = vrot.slane %v16136_v12, 7  ;;  %v20639_v58 = vpack.c.bf16 %v16136_v12, %v16136_v12  ;;  %vm16398_vm6 = vcmp.eq.s32.totalorder %v742_v55, 15  ;;  %v13657_v38 = vpack.c.bf16 %v1615_v22, %v1615_v22  ;;  %vm20644_vm12 = vmmov %vm20627_vm4  ;;  %v16413_v22 = vld [vmem:[#allocation2 + $0xf8] sm:$0xff] }
 0x143   : > { %1979 = vst.msk [vmem:[#allocation5 + $0x60] sm:$0xf] %vm20621_vm0, %v13659_v10  ;;  %v20642_v23 = vrot.slane %v16186_v54, 7  ;;  %v20643_v35 = vrot.slane %v16170_v4, 7  ;;  %6944 = vst [vmem:[#allocation7 + $0x8] sm:$0xf] %v13923_v42 }
 0x144   : > { %v1495_v26 = vsel %vm20627_vm4, %v20638_v0, %v20637_v11  ;;  %2147 = vrot.lane.b32.xlu0 %v20639_v58, %s15392_s19  ;;  %v1478_v0 = vrot.slane %v16373_v51, 7  ;;  %v6439_v58 = vsel %vm16398_vm6, 0.0, %v16363_v44  ;;  %6978 = vst [vmem:[#allocation7 + $0x1a0] sm:$0xf] %v13923_v42  ;;  %v485_v55 = vadd.s32 224, %v15542_v29  ;;  %vm20645_vm7 = vmmov %vm20621_vm0 }
 0x145   : > { %v13660_v37 = vpack.c.bf16 %v1495_v26, %v1495_v26  ;;  %v1497_v11 = vsel %vm20644_vm12, %v20643_v35, %v20642_v23  ;;  %v1480_v26 = vrot.slane %v16380_v25, 7  ;;  %v13958_v14 = vpack.c.bf16 %v6439_v58, %v6439_v58  ;;  %1977 = vst.msk [vmem:[#allocation5 + $0x58] sm:$0xf] %vm20645_vm7, %v13657_v38  ;;  %vm20646_vm4 = vmmov %vm20621_vm0  ;;  %v16434_v38 = vld [vmem:[#allocation2 + $0x108] sm:$0xff] }
 0x146   : > { %v13658_v10 = vpack.c.bf16 %v1497_v11, %v1497_v11  ;;  %vm20647_vm0 = vmmov %vm20644_vm12  ;;  %v20648_v23 = vrot.slane %v16179_v17, 7  ;;  %v20650_v11 = vpack.c.bf16 %v16140_v31, %v16140_v31  ;;  %v20651_v44 = vand.u32 15, %v15852_v49 }
 0x147   : > { %1980 = vst.msk [vmem:[#allocation5 + $0x64] sm:$0xf] %vm20646_vm4, %v13660_v37  ;;  %v1492_v35 = vsel %vm20647_vm0, %v1475_v1, %v1476_v15  ;;  %vm20649_vm12 = vmmov %vm20647_vm0  ;;  %v20652_v58 = vmov 0  ;;  %v16436_v37 = vld [vmem:[#allocation2 + $0x110] sm:$0xff]  ;;  %v693_v30 = vand.u32 15, %v485_v55  ;;  %v1493_v49 = vsel %vm20647_vm0, %v1474_v2, %v1475_v1 }
 0x148   : > { %v1494_v42 = vsel %vm20649_vm12, %v20648_v23, %v1474_v2  ;;  %2386 = vrot.lane.b32.xlu1 %v20650_v11, %s15393_s20  ;;  %vm16430_vm8 = vcmp.eq.s32.totalorder %v20651_v44, 15  ;;  %vm20655_vm7 = vmmov %vm20646_vm4  ;;  %v20657_v44 = vpack.c.bf16 %v16168_v62, %v16168_v62  ;;  %6979 = vst [vmem:[#allocation7 + $0x1ac] sm:$0xf] %v13958_v14  ;;  %v13662_v34 = vpack.c.bf16 %v1493_v49, %v1493_v49 }
 0x149   : > { %v20653_v58 = vsel %vm16430_vm8, 4294967295, %v20652_v58  ;;  %1978 = vst.msk [vmem:[#allocation5 + $0x5c] sm:$0xf] %vm20655_vm7, %v13658_v10  ;;  %v1619_v23 = vsel %vm16286_vm3, 0.0, %v1494_v42  ;;  %vm20656_vm4 = vmmov %vm20647_vm0  ;;  %v487_v10 = vadd.s32 240, %v15542_v29  ;;  %vm16450_vm12 = vcmp.eq.s32.totalorder %v693_v30, 0 }
 0x14a   : > { %20654 = vst [vmem:[#allocation35_spill] sm:$0xff] %v20653_v58  ;;  %v1491_v31 = vsel %vm20656_vm4, %v1476_v15, %v1477_v18  ;;  %2388 = vrot.lane.b32.xlu0 %v20657_v44, %s15393_s20  ;;  %v13661_v11 = vpack.c.bf16 %v1619_v23, %v1619_v23  ;;  %v20658_v55 = vmov 0  ;;  %vm20661_vm7 = vmmov %vm20647_vm0  ;;  %v1479_v2 = vrot.slane %v16413_v22, 7 }
 0x14b   : > { %v13664_v52 = vpack.c.bf16 %v1491_v31, %v1491_v31  ;;  %v20659_v55 = vsel %vm16450_vm12, 4294967295, %v20658_v55  ;;  %v1490_v15 = vsel %vm20661_vm7, %v1477_v18, %v1478_v0  ;;  %v489_v1 = vadd.s32 256, %v15542_v29 }
 0x14c   : > { %20660 = vst [vmem:[#allocation36_spill] sm:$0xff] %v20659_v55  ;;  %v1621_v62 = vsel %vm16450_vm12, 0.0, %v1492_v35  ;;  %vm20662_vm4 = vcmask 257024   ;;  %v707_v30 = vand.u32 15, %v487_v10  ;;  %v1481_v14 = vrot.slane %v16434_v38, 7  ;;  %v15000_v55 = vld [vmem:[%s20286_s5 + $0x78] sm:$0xff]  }
 0x14d   : > { %1981 = vst.msk [vmem:[#allocation5 + $0x68] sm:$0xf] %vm20662_vm4, %v13661_v11  ;;  %vm20663_vm0 = vmmov %vm20662_vm4  ;;  %v1482_v42 = vrot.slane %v16436_v37, 7  ;;  %v20665_v18 = vpack.c.bf16 %v16177_v32, %v16177_v32  ;;  %v13663_v23 = vpack.c.bf16 %v1621_v62, %v1621_v62  ;;  %v1489_v35 = vsel %vm20661_vm7, %v1478_v0, %v1479_v2 }
 0x14e   : > { %1984 = vst.msk [vmem:[#allocation5 + $0x74] sm:$0xf] %vm20663_vm0, %v13664_v52  ;;  %vm20664_vm3 = vmmov %vm20663_vm0  ;;  %v721_v31 = vand.u32 15, %v489_v1  ;;  %v20668_v49 = vmov 0  ;;  %v13666_v44 = vpack.c.bf16 %v1489_v35, %v1489_v35  ;;  %v491_v11 = vadd.s32 272, %v15542_v29 }
 0x14f   : > { %1982 = vst.msk [vmem:[#allocation5 + $0x6c] sm:$0xf] %vm20664_vm3, %v13662_v34  ;;  %2390 = vrot.lane.b32.xlu1 %v20665_v18, %s15393_s20  ;;  %vm20666_vm4 = vmmov %vm20661_vm7  ;;  %v20667_v34 = vpack.c.bf16 %v16170_v4, %v16170_v4  ;;  %vm16477_vm3 = vcmp.eq.s32.totalorder %v707_v30, 0  ;;  %v13731_v0 = vpack.c.bf16 %v16327_v13, %v16327_v13  ;;  %vm20672_vm7 = vcmask 257024  }
 0x150   : > { %v1488_v52 = vsel %vm20666_vm4, %v1479_v2, %v1480_v26  ;;  %v20669_v49 = vsel %vm16477_vm3, 4294967295, %v20668_v49  ;;  %vm20671_vm0 = vmmov %vm20666_vm4  ;;  %1983 = vst.msk [vmem:[#allocation5 + $0x70] sm:$0xf] %vm20672_vm7, %v13663_v23  ;;  %v1623_v10 = vsel %vm16477_vm3, 0.0, %v1490_v15  ;;  %vm16489_vm4 = vcmp.eq.s32.totalorder %v721_v31, 0 }
 0x151   : > { %2143 = vrot.lane.b32.xlu0 %v20667_v34, %s15392_s19  ;;  %20670 = vst [vmem:[#allocation37_spill] sm:$0xff] %v20669_v49  ;;  %v1487_v32 = vsel %vm20671_vm0, %v1480_v26, %v1481_v14  ;;  %v20673_v2 = vmov 0  ;;  %v13665_v62 = vpack.c.bf16 %v1623_v10, %v1623_v10  ;;  %vm20676_vm12 = vmmov %vm20672_vm7  ;;  %v1625_v26 = vsel %vm16489_vm4, 0.0, %v1488_v52 }
 0x152   : > { %v20674_v2 = vsel %vm16489_vm4, 4294967295, %v20673_v2  ;;  %v13668_v1 = vpack.c.bf16 %v1487_v32, %v1487_v32  ;;  %1986 = vst.msk [vmem:[#allocation5 + $0x7c] sm:$0xf] %vm20676_vm12, %v13666_v44  ;;  %v735_v30 = vand.u32 15, %v491_v11  ;;  %v1486_v13 = vsel %vm20671_vm0, %v1481_v14, %v1482_v42  ;;  %vm20681_vm0 = vmmov %vm20672_vm7 }
 0x153   : > { %20675 = vst [vmem:[#allocation38_spill] sm:$0xff] %v20674_v2  ;;  %v20677_v15 = vpack.c.bf16 %v16179_v17, %v16179_v17  ;;  %v1652_v18 = vrot.slane %v16186_v54, 1  ;;  %v20678_v23 = vrot.slane %v16170_v4, 1  ;;  %v20679_v35 = vrot.slane %v16030_v27, 1  ;;  %1985 = vst.msk [vmem:[#allocation5 + $0x78] sm:$0xf] %vm20681_vm0, %v13665_v62 }
 0x154   : > { %vm20680_vm12 = vcmp.lt.s32.totalorder %v15542_v29, 7  ;;  %v658_v52 = vand.u32 15, %v15898_v60  ;;  %v13667_v34 = vpack.c.bf16 %v1625_v26, %v1625_v26  ;;  %1988 = vst.msk [vmem:[#allocation5 + $0x84] sm:$0xf] %vm20672_vm7, %v13668_v1  ;;  %v13699_v14 = vpack.c.bf16 %v16329_v41, %v16329_v41 }
 0x155   : > { %2149 = vrot.lane.b32.xlu1 %v20677_v15, %s15392_s19  ;;  %v1679_v31 = vsel %vm20680_vm12, %v20679_v35, %v20678_v23  ;;  %2400 = vrot.lane.b32.xlu0 %v13731_v0, %s15393_s20  ;;  %vm16517_vm4 = vcmp.eq.s32.totalorder %v735_v30, 0  ;;  %v20682_v44 = vmov 0  ;;  %v13694_v27 = vpack.c.bf16 %v16186_v54, %v16186_v54  ;;  %vm20685_vm12 = vmmov %vm20681_vm0 }
 0x156   : > { %v20683_v44 = vsel %vm16517_vm4, 4294967295, %v20682_v44  ;;  %1987 = vst.msk [vmem:[#allocation5 + $0x80] sm:$0xf] %vm20685_vm12, %v13667_v34  ;;  %v1627_v60 = vsel %vm16517_vm4, 0.0, %v1486_v13  ;;  %v1795_v32 = vsel %vm16430_vm8, 0.0, %v1679_v31  ;;  %v20686_v0 = vmov %v20678_v23 }
 0x157   : > { %20684 = vst [vmem:[#allocation39_spill] sm:$0xff] %v20683_v44  ;;  %v13669_v11 = vpack.c.bf16 %v1627_v60, %v1627_v60  ;;  %vm20687_vm7 = vcmp.lt.s32.totalorder %v15542_v29, 7  ;;  %vm16533_vm0 = vcmp.eq.s32.totalorder %v658_v52, 15  ;;  %v20688_v1 = vmov 0  ;;  %v14999_v44 = vld [vmem:[%s20286_s5 + $0x80] sm:$0xff]  }
 0x158   : > { %v1678_v10 = vsel %vm20687_vm7, %v20686_v0, %v1652_v18  ;;  %v20689_v1 = vsel %vm16533_vm0, 4294967295, %v20688_v1  ;;  %v20691_v54 = vrot.slane %v16136_v12, 1  ;;  %vm20692_vm12 = vmmov %vm20687_vm7  ;;  %vm20693_vm4 = vcmask 257024  }
 0x159   : > { %2145 = vrot.lane.b32.xlu1 %v13694_v27, %s15392_s19  ;;  %20690 = vst [vmem:[#allocation40_spill] sm:$0xff] %v20689_v1  ;;  %2155 = vrot.lane.b32.xlu0 %v13699_v14, %s15392_s19  ;;  %1989 = vst.msk [vmem:[#allocation5 + $0x88] sm:$0xf] %vm20693_vm4, %v13669_v11  ;;  %v13728_v26 = vpack.c.bf16 %v1795_v32, %v1795_v32  ;;  %v13729_v30 = vpack.c.bf16 %v1678_v10, %v1678_v10  ;;  %v482_v13 = vadd.s32 200, %v15542_v29  ;;  %vm20707_vm9 = vcmask 519424  }
 0x15a   : > { %v1677_v62 = vsel %vm20692_vm12, %v1652_v18, %v20691_v54  ;;  %v1657_v15 = vrot.slane %v16329_v41, 1  ;;  %v1658_v12 = vrot.slane %v16342_v61, 1  ;;  %v13697_v18 = vpack.c.bf16 %v16331_v33, %v16331_v33  ;;  %vm20694_vm4 = vmmov %vm20687_vm7 }
 0x15b   : > { %v1797_v4 = vsel %vm16533_vm0, 0.0, %v1677_v62  ;;  %v672_v35 = vand.u32 15, %v482_v13  ;;  %v1655_v31 = vrot.slane %v16331_v33, 1  ;;  %v1656_v41 = vrot.slane %v16333_v53, 1  ;;  %vm20695_vm7 = vmmov %vm20694_vm4 }
 0x15c   : > { %v13730_v23 = vpack.c.bf16 %v1797_v4, %v1797_v4  ;;  %v1672_v52 = vsel %vm20694_vm4, %v1657_v15, %v1658_v12  ;;  %v484_v34 = vadd.s32 216, %v15542_v29  ;;  %v13700_v14 = vpack.c.bf16 %v16342_v61, %v16342_v61  ;;  %vm20703_vm3 = vmmov %vm20694_vm4 }
 0x15d   : > { %2394 = vrot.lane.b32.xlu1 %v13728_v26, %s15393_s20  ;;  %2396 = vrot.lane.b32.xlu0 %v13729_v30, %s15393_s20  ;;  %v13735_v27 = vpack.c.bf16 %v1672_v52, %v1672_v52  ;;  %v1674_v60 = vsel %vm20695_vm7, %v1655_v31, %v1656_v41  ;;  %vm16564_vm12 = vcmp.eq.s32.totalorder %v672_v35, 15  ;;  %v20696_v33 = vmov 0  ;;  %vm20708_vm1 = vmmov %vm20707_vm9 }
 0x15e   : > { %v20697_v33 = vsel %vm16564_vm12, 4294967295, %v20696_v33  ;;  %v20699_v32 = vrot.slane %v16179_v17, 1  ;;  %v686_v0 = vand.u32 15, %v484_v34  ;;  %v13698_v61 = vpack.c.bf16 %v16333_v53, %v16333_v53  ;;  %v16590_v53 = vld [vmem:[%s20284_s3 + $0x88] sm:$0xff]   ;;  %v2108_v34 = vpop.permute.xlu0 %2107 }
 0x15f   : > { %20698 = vst [vmem:[#allocation41_spill] sm:$0xff] %v20697_v33  ;;  %v1660_v10 = vrot.slane %v16413_v22, 1  ;;  %v13733_v54 = vpack.c.bf16 %v1674_v60, %v1674_v60  ;;  %v486_v26 = vadd.s32 232, %v15542_v29  ;;  %v1659_v17 = vrot.slane %v16373_v51, 1  ;;  %14683 = vmatprep.subr.bf16.mxu1 %v16590_v53  ;;  %2212 = vst.msk [vmem:[#allocation5 + $0x10] sm:$0xf] %vm20707_vm9, %v2108_v34 }
 0x160   : > { %v1675_v11 = vsel %vm20694_vm4, %v20699_v32, %v1655_v31  ;;  %vm16581_vm7 = vcmp.eq.s32.totalorder %v686_v0, 15  ;;  %v20700_v30 = vmov 0  ;;  %v1673_v4 = vsel %vm20694_vm4, %v1656_v41, %v1657_v15  ;;  %vm20709_vm9 = vmmov %vm20703_vm3  ;;  %v15003_v33 = vld [vmem:[%s20286_s5 + $0x60] sm:$0xff]  }
 0x161   : > { %2398 = vrot.lane.b32.xlu1 %v13730_v23, %s15393_s20  ;;  %2151 = vrot.lane.b32.xlu0 %v13697_v18, %s15392_s19  ;;  %v1799_v62 = vsel %vm16564_vm12, 0.0, %v1675_v11  ;;  %v20701_v30 = vsel %vm16581_vm7, 4294967295, %v20700_v30  ;;  %v13701_v13 = vpack.c.bf16 %v16373_v51, %v16373_v51  ;;  %v1670_v23 = vsel %vm20703_vm3, %v1659_v17, %v1660_v10  ;;  %v2104_v11 = vpop.permute.xlu1 %2103 }
 0x162   : > { %20702 = vst [vmem:[#allocation42_spill] sm:$0xff] %v20701_v30  ;;  %v13732_v18 = vpack.c.bf16 %v1799_v62, %v1799_v62  ;;  %v1801_v35 = vsel %vm16581_vm7, 0.0, %v1673_v4  ;;  %v700_v15 = vand.u32 15, %v486_v26  ;;  %v488_v31 = vadd.s32 248, %v15542_v29  ;;  %2210 = vst.msk [vmem:[#allocation5 + $0x8] sm:$0xf] %vm20708_vm1, %v2104_v11 }
 0x163   : > { %v13737_v52 = vpack.c.bf16 %v1670_v23, %v1670_v23  ;;  %v13734_v41 = vpack.c.bf16 %v1801_v35, %v1801_v35  ;;  %v20704_v51 = vmov 0  ;;  %v1662_v60 = vrot.slane %v16434_v38, 1  ;;  %vm20713_vm7 = vmmov %vm20709_vm9  ;;  %v15371_v4 = vld [vmem:[#allocation2 + $0x118] sm:$0xff] }
 0x164   : > { %vm16603_vm4 = vcmp.eq.s32.totalorder %v700_v15, 15  ;;  %v714_v32 = vand.u32 15, %v488_v31  ;;  %v13702_v0 = vpack.c.bf16 %v16413_v22, %v16413_v22  ;;  %v20710_v26 = vmov 0 }
 0x165   : > { %2157 = vrot.lane.b32.xlu1 %v13700_v14, %s15392_s19  ;;  %2408 = vrot.lane.b32.xlu0 %v13735_v27, %s15393_s20  ;;  %v20705_v51 = vsel %vm16603_vm4, 4294967295, %v20704_v51  ;;  %v1661_v14 = vrot.slane %v16380_v25, 1  ;;  %v1671_v27 = vsel %vm20703_vm3, %v1658_v12, %v1659_v17  ;;  %v490_v12 = vadd.s32 264, %v15542_v29 }
 0x166   : > { %20706 = vst [vmem:[#allocation43_spill] sm:$0xff] %v20705_v51  ;;  %vm16625_vm3 = vcmp.eq.s32.totalorder %v714_v32, 15  ;;  %v1663_v31 = vrot.slane %v16436_v37, 1  ;;  %v15002_v51 = vld [vmem:[%s20286_s5 + $0x68] sm:$0xff]  }
 0x167   : > { %v1668_v62 = vsel %vm20709_vm9, %v1661_v14, %v1662_v60  ;;  %v20711_v26 = vsel %vm16625_vm3, 4294967295, %v20710_v26  ;;  %v1669_v22 = vsel %vm20713_vm7, %v1660_v10, %v1661_v14  ;;  %v728_v15 = vand.u32 15, %v490_v12 }
 0x168   : > { %20712 = vst [vmem:[#allocation44_spill] sm:$0xff] %v20711_v26  ;;  %v13739_v23 = vpack.c.bf16 %v1668_v62, %v1668_v62  ;;  %v1805_v35 = vsel %vm16625_vm3, 0.0, %v1669_v22  ;;  %vm20714_vm9 = vcmask 781824   ;;  %v13705_v10 = vpack.c.bf16 %v16436_v37, %v16436_v37  ;;  %v15001_v26 = vld [vmem:[%s20286_s5 + $0x70] sm:$0xff]  }
 0x169   : > { %2153 = vrot.lane.b32.xlu1 %v13698_v61, %s15392_s19  ;;  %2404 = vrot.lane.b32.xlu0 %v13733_v54, %s15393_s20  ;;  %v13703_v61 = vpack.c.bf16 %v16380_v25, %v16380_v25  ;;  %v1803_v54 = vsel %vm16603_vm4, 0.0, %v1671_v27  ;;  %v2110_v25 = vpop.permute.xlu1 %2109  ;;  %vm16644_vm3 = vcmp.eq.s32.totalorder %v728_v15, 15  ;;  %v20715_v27 = vmov 0  ;;  %vm20719_vm4 = vmmov %vm20708_vm1 }
 0x16a   : > { %v13736_v17 = vpack.c.bf16 %v1803_v54, %v1803_v54  ;;  %2213 = vst.msk [vmem:[#allocation5 + $0x14] sm:$0xf] %vm20708_vm1, %v2110_v25  ;;  %v20716_v27 = vsel %vm16644_vm3, 4294967295, %v20715_v27  ;;  %v20722_v22 = vrot.slane %v15532_v24, 1 }
 0x16b   : > { %20717 = vst [vmem:[#allocation45_spill] sm:$0xff] %v20716_v27 }
 0x16d   : > { %2402 = vrot.lane.b32.xlu1 %v13732_v18, %s15393_s20  ;;  %2159 = vrot.lane.b32.xlu0 %v13701_v13, %s15392_s19  ;;  %v1664_v13 = vrot.slane %v15371_v4, 1  ;;  %v2361_v18 = vpop.permute.xlu0 %2360 }
 0x16e   : > { %2465 = vst.msk [vmem:[#allocation5 + $0x10] sm:$0xf] %vm20714_vm9, %v2361_v18  ;;  %vm20718_vm9 = vmmov %vm20713_vm7 }
 0x16f   : > { %v1666_v34 = vsel %vm20713_vm7, %v1663_v31, %v1664_v13  ;;  %v1667_v32 = vsel %vm20718_vm9, %v1662_v60, %v1663_v31  ;;  %vm20720_vm7 = vcmask 781824  }
 0x170   : > { %v13741_v11 = vpack.c.bf16 %v1666_v34, %v1666_v34  ;;  %v1807_v54 = vsel %vm16644_vm3, 0.0, %v1667_v32  ;;  %vm20725_vm3 = vcmask 519424   ;;  %v14936_v32 = vld [vmem:[%s20284_s3 + $0x40] sm:$0xff]  }
 0x171   : > { %2406 = vrot.lane.b32.xlu1 %v13734_v41, %s15393_s20  ;;  %2412 = vrot.lane.b32.xlu0 %v13737_v52, %s15393_s20  ;;  %v2106_v52 = vpop.permute.xlu1 %2105  ;;  %v13738_v41 = vpack.c.bf16 %v1805_v35, %v1805_v35  ;;  %v2116_v14 = vpop.permute.xlu0 %2115  ;;  %v13740_v62 = vpack.c.bf16 %v1807_v54, %v1807_v54 }
 0x172   : > { %2211 = vst.msk [vmem:[#allocation5 + $0xc] sm:$0xf] %vm20708_vm1, %v2106_v52  ;;  %vm20721_vm1 = vmmov %vm20720_vm7 }
 0x173   : > { %2216 = vst.msk [vmem:[#allocation5 + $0x20] sm:$0xf] %vm20719_vm4, %v2116_v14  ;;  %vm20723_vm4 = vmmov %vm20718_vm9 }
 0x174   : > { %v1701_v25 = vsel %vm20723_vm4, %v1664_v13, %v20722_v22  ;;  %vm20724_vm9 = vmmov %vm20721_vm1 }
 0x175   : > { %2161 = vrot.lane.b32.xlu1 %v13702_v0, %s15392_s19  ;;  %2163 = vrot.lane.b32.xlu0 %v13703_v61, %s15392_s19  ;;  %v2355_v0 = vpop.permute.xlu1 %2354  ;;  %v13704_v61 = vpack.c.bf16 %v16434_v38, %v16434_v38  ;;  %v2357_v12 = vpop.permute.xlu0 %2356  ;;  %v1809_v18 = vsel %vm16398_vm6, 0.0, %v1701_v25  ;;  %vm20727_vm12 = vmmov %vm20724_vm9 }
 0x176   : > { %2462 = vst.msk [vmem:[#allocation5 + $0x4] sm:$0xf] %vm20720_vm7, %v2355_v0  ;;  %vm2664_vm7 = vcmask 785408   ;;  %v13742_v13 = vpack.c.bf16 %v1809_v18, %v1809_v18 }
 0x177   : > { %2463 = vst.msk [vmem:[#allocation5 + $0x8] sm:$0xf] %vm20721_vm1, %v2357_v12  ;;  %vm20726_vm1 = vmmov %vm20725_vm3  ;;  %v14940_v12 = vld [vmem:[%s20284_s3 + $0x30] sm:$0xff]  }
 0x178   : > { %vm20729_vm4 = vmmov %vm20726_vm1 }
 0x179   : > { %2410 = vrot.lane.b32.xlu1 %v13736_v17, %s15393_s20  ;;  %2416 = vrot.lane.b32.xlu0 %v13739_v23, %s15393_s20  ;;  %v2359_v60 = vpop.permute.xlu1 %2358  ;;  %v2112_v38 = vpop.permute.xlu0 %2111  ;;  %v13706_v17 = vpack.c.bf16 %v15371_v4, %v15371_v4  ;;  %v14933_v4 = vld [vmem:[%s20284_s3 + $0x50] sm:$0xff]  }
 0x17a   : > { %2464 = vst.msk [vmem:[#allocation5 + $0xc] sm:$0xf] %vm20724_vm9, %v2359_v60 }
 0x17b   : > { %2214 = vst.msk [vmem:[#allocation5 + $0x18] sm:$0xf] %vm20725_vm3, %v2112_v38  ;;  %vm20728_vm3 = vmmov %vm20726_vm1 }
 0x17d   : > { %2414 = vrot.lane.b32.xlu1 %v13738_v41, %s15393_s20  ;;  %2167 = vrot.lane.b32.xlu0 %v13705_v10, %s15392_s19  ;;  %v2118_v23 = vpop.permute.xlu1 %2117  ;;  %v14924_v35 = vld [vmem:[#allocation5] sm:$0xff]   ;;  %v2369_v24 = vpop.permute.xlu0 %2368  ;;  %v14934_v41 = vld [vmem:[%s20284_s3 + $0x48] sm:$0xff]  }
 0x17e   : > { %2217 = vst.msk [vmem:[#allocation5 + $0x24] sm:$0xf] %vm20726_vm1, %v2118_v23  ;;  %14607 = vmatprep.mubr.msk.bf16.mxu0 %vm2664_vm7, %v14924_v35  ;;  %vm20731_vm1 = vmmov %vm20724_vm9 }
 0x17f   : > { %2469 = vst.msk [vmem:[#allocation5 + $0x20] sm:$0xf] %vm20727_vm12, %v2369_v24  ;;  %vm20730_vm12 = vmmov %vm20724_vm9 }
 0x181   : > { %2165 = vrot.lane.b32.xlu1 %v13704_v61, %s15392_s19  ;;  %2420 = vrot.lane.b32.xlu0 %v13741_v11, %s15393_s20  ;;  %v2114_v15 = vpop.permute.xlu1 %2113  ;;  %v14925_v31 = vld [vmem:[#allocation5 + $0x8] sm:$0xff]   ;;  %v2124_v10 = vpop.permute.xlu0 %2123  ;;  %v14938_v11 = vld [vmem:[%s20284_s3 + $0x38] sm:$0xff]  }
 0x182   : > { %2215 = vst.msk [vmem:[#allocation5 + $0x1c] sm:$0xf] %vm20728_vm3, %v2114_v15  ;;  %14608 = vmatmul.mubr.msk.bf16.vlgmr.msra.gmra.mxu0 %vm2664_vm7, %v14925_v31 }
 0x183   : > { %2220 = vst.msk [vmem:[#allocation5 + $0x30] sm:$0xf] %vm20729_vm4, %v2124_v10  ;;  %14640 = vmatpush3.bf16.msra.mxu0 %v16217_v43  ;;  %vm20732_vm4 = vmmov %vm20728_vm3 }
 0x184   : > { %14641 = vmatprep.subr.bf16.mxu0 %v14933_v4 }
 0x185   : > { %2418 = vrot.lane.b32.xlu1 %v13740_v62, %s15393_s20  ;;  %v2363_v52 = vpop.permute.xlu1 %2362  ;;  %v2365_v34 = vpop.permute.xlu0 %2364 }
 0x186   : > { %2466 = vst.msk [vmem:[#allocation5 + $0x14] sm:$0xf] %vm20730_vm12, %v2363_v52  ;;  %vm20733_vm12 = vmmov %vm20731_vm1 }
 0x187   : > { %2467 = vst.msk [vmem:[#allocation5 + $0x18] sm:$0xf] %vm20724_vm9, %v2365_v34  ;;  %14642 = vmatpush3.bf16.msra.mxu0 %v14933_v4  ;;  %vm20734_vm9 = vmmov %vm20728_vm3 }
 0x188   : > { %14643 = vmatprep.subr.bf16.mxu0 %v14934_v41 }
 0x189   : > { %2169 = vrot.lane.b32.xlu1 %v13706_v17, %s15392_s19  ;;  %v2367_v14 = vpop.permute.xlu1 %2366  ;;  %v2120_v43 = vpop.permute.xlu0 %2119 }
 0x18a   : > { %2468 = vst.msk [vmem:[#allocation5 + $0x1c] sm:$0xf] %vm20731_vm1, %v2367_v14  ;;  %vm20735_vm1 = vmmov %vm20728_vm3 }
 0x18b   : > { %2218 = vst.msk [vmem:[#allocation5 + $0x28] sm:$0xf] %vm20728_vm3, %v2120_v43  ;;  %14644 = vmatpush3.bf16.msra.mxu0 %v14934_v41  ;;  %vm20736_vm3 = vmmov %vm20733_vm12 }
 0x18c   : > { %14645 = vmatprep.subr.bf16.mxu0 %v14936_v32  ;;  %vm20739_vm0 = vmmov %vm20735_vm1 }
 0x18d   : > { %2422 = vrot.lane.b32.xlu1 %v13742_v13, %s15393_s20  ;;  %v2126_v0 = vpop.permute.xlu1 %2125  ;;  %v14926_v61 = vld [vmem:[#allocation5 + $0x10] sm:$0xff]   ;;  %v2377_v54 = vpop.permute.xlu0 %2376  ;;  %v20742_v13 = vrot.slane %v15557_v36, 7  ;;  %vm20748_vm8 = vmmov %vm20739_vm0 }
 0x18e   : > { %2221 = vst.msk [vmem:[#allocation5 + $0x34] sm:$0xf] %vm20732_vm4, %v2126_v0  ;;  %14611 = vmatprep.mubr.msk.bf16.mxu0 %vm2664_vm7, %v14926_v61  ;;  %vm20737_vm4 = vmmov %vm20736_vm3 }
 0x18f   : > { %2473 = vst.msk [vmem:[#allocation5 + $0x30] sm:$0xf] %vm20733_vm12, %v2377_v54  ;;  %14646 = vmatpush3.bf16.msra.mxu0 %v14936_v32  ;;  %vm20738_vm12 = vmmov %vm20736_vm3 }
 0x190   : > { %14647 = vmatprep.subr.bf16.mxu0 %v14938_v11 }
 0x191   : > { %v2122_v60 = vpop.permute.xlu1 %2121  ;;  %v14927_v62 = vld [vmem:[#allocation5 + $0x18] sm:$0xff]   ;;  %v2132_v22 = vpop.permute.xlu0 %2131 }
 0x192   : > { %2219 = vst.msk [vmem:[#allocation5 + $0x2c] sm:$0xf] %vm20734_vm9, %v2122_v60  ;;  %14612 = vmatmul.mubr.msk.bf16.gmra.mxu0 %vm2664_vm7, %v14927_v62  ;;  %vm20740_vm9 = vmmov %vm20739_vm0 }
 0x193   : > { %2224 = vst.msk [vmem:[#allocation5 + $0x40] sm:$0xf] %vm20735_vm1, %v2132_v22  ;;  %14648 = vmatpush3.bf16.msra.mxu0 %v14938_v11  ;;  %vm20741_vm1 = vmmov %vm20736_vm3 }
 0x194   : > { %14649 = vmatprep.subr.bf16.mxu0 %v14940_v12 }
 0x195   : > { %v2371_v25 = vpop.permute.xlu1 %2370  ;;  %v2373_v38 = vpop.permute.xlu0 %2372 }
 0x196   : > { %2470 = vst.msk [vmem:[#allocation5 + $0x24] sm:$0xf] %vm20736_vm3, %v2371_v25  ;;  %vm20743_vm3 = vcmp.lt.s32.totalorder %v15542_v29, 1 }
 0x197   : > { %2471 = vst.msk [vmem:[#allocation5 + $0x28] sm:$0xf] %vm20737_vm4, %v2373_v38  ;;  %14650 = vmatpush3.bf16.msra.mxu0 %v14940_v12  ;;  %v1485_v4 = vsel %vm20743_vm3, %v1482_v42, %v20742_v13  ;;  %vm20744_vm4 = vcmask 257024   ;;  %vm20747_vm3 = vmmov %vm20741_vm1 }
 0x198   : > { %v13670_v15 = vpack.c.bf16 %v1485_v4, %v1485_v4  ;;  %v14941_v4 = vld [vmem:[#allocation5 + $0x10] sm:$0xff]  }
 0x199   : > { %v2375_v17 = vpop.permute.xlu1 %2374  ;;  %v2128_v18 = vpop.permute.xlu0 %2127 }
 0x19a   : > { %2472 = vst.msk [vmem:[#allocation5 + $0x2c] sm:$0xf] %vm20738_vm12, %v2375_v17  ;;  %vm20745_vm12 = vmmov %vm20739_vm0 }
 0x19b   : > { %2222 = vst.msk [vmem:[#allocation5 + $0x38] sm:$0xf] %vm20739_vm0, %v2128_v18 }
 0x19c   : > { %1990 = vst.msk [vmem:[#allocation5 + $0x8c] sm:$0xf] %vm20744_vm4, %v13670_v15  ;;  %vm20749_vm4 = vmmov %vm20741_vm1 }
 0x19d   : > { %v2134_v23 = vpop.permute.xlu1 %2133  ;;  %v14928_v35 = vld [vmem:[#allocation5 + $0x20] sm:$0xff]   ;;  %v2385_v24 = vpop.permute.xlu0 %2384 }
 0x19e   : > { %2225 = vst.msk [vmem:[#allocation5 + $0x44] sm:$0xf] %vm20740_vm9, %v2134_v23  ;;  %14615 = vmatprep.mubr.msk.bf16.mxu0 %vm2664_vm7, %v14928_v35  ;;  %vm20746_vm9 = vmmov %vm20741_vm1  ;;  %v14939_v23 = vld [vmem:[#allocation5 + $0x8] sm:$0xff]  }
 0x19f   : > { %2477 = vst.msk [vmem:[#allocation5 + $0x40] sm:$0xf] %vm20741_vm1, %v2385_v24 }
 0x1a1   : > { %v2130_v31 = vpop.permute.xlu1 %2129  ;;  %v14929_v10 = vld [vmem:[#allocation5 + $0x28] sm:$0xff]   ;;  %v2140_v52 = vpop.permute.xlu0 %2139 }
 0x1a2   : > { %2223 = vst.msk [vmem:[#allocation5 + $0x3c] sm:$0xf] %vm20739_vm0, %v2130_v31  ;;  %14616 = vmatmul.mubr.msk.bf16.gmra.mxu0 %vm2664_vm7, %v14929_v10  ;;  %v14942_v31 = vld [vmem:[#allocation5 + $0x18] sm:$0xff]  }
 0x1a3   : > { %2228 = vst.msk [vmem:[#allocation5 + $0x50] sm:$0xf] %vm20745_vm12, %v2140_v52  ;;  %vm20750_vm12 = vmmov %vm20739_vm0 }
 0x1a5   : > { %v2379_v41 = vpop.permute.xlu1 %2378  ;;  %v2381_v36 = vpop.permute.xlu0 %2380 }
 0x1a6   : > { %2474 = vst.msk [vmem:[#allocation5 + $0x34] sm:$0xf] %vm20746_vm9, %v2379_v41  ;;  %vm20751_vm9 = vmmov %vm20739_vm0 }
 0x1a7   : > { %2475 = vst.msk [vmem:[#allocation5 + $0x38] sm:$0xf] %vm20741_vm1, %v2381_v36  ;;  %v14945_v36 = vld [vmem:[#allocation5 + $0x20] sm:$0xff]  }
 0x1a9   : > { %v2383_v37 = vpop.permute.xlu1 %2382  ;;  %v2136_v42 = vpop.permute.xlu0 %2135 }
 0x1aa   : > { %2476 = vst.msk [vmem:[#allocation5 + $0x3c] sm:$0xf] %vm20747_vm3, %v2383_v37  ;;  %vm20753_vm3 = vmmov %vm20741_vm1  ;;  %v14951_v37 = vld [vmem:[%s20284_s3 + $0x80] sm:$0xff]  }
 0x1ab   : > { %2226 = vst.msk [vmem:[#allocation5 + $0x48] sm:$0xf] %vm20748_vm8, %v2136_v42  ;;  %vm20752_vm8 = vmmov %vm20741_vm1 }
 0x1ad   : > { %v2142_v34 = vpop.permute.xlu1 %2141  ;;  %v14930_v14 = vld [vmem:[#allocation5 + $0x30] sm:$0xff]  }
 0x1ae   : > { %2229 = vst.msk [vmem:[#allocation5 + $0x54] sm:$0xf] %vm20739_vm0, %v2142_v34  ;;  %14619 = vmatprep.mubr.msk.bf16.mxu0 %vm2664_vm7, %v14930_v14 }
 0x1b0   : > { %v2393_v32 = vpop.permute.xlu0 %2392 }
 0x1b1   : > { %2481 = vst.msk [vmem:[#allocation5 + $0x50] sm:$0xf] %vm20749_vm4, %v2393_v32  ;;  %v14931_v11 = vld [vmem:[#allocation5 + $0x38] sm:$0xff]   ;;  %vm20754_vm4 = vmmov %vm20739_vm0  ;;  %v14946_v32 = vld [vmem:[#allocation5 + $0x28] sm:$0xff]  }
 0x1b2   : > { %14620 = vmatmul.mubr.msk.bf16.gmra.mxu0 %vm2664_vm7, %v14931_v11  ;;  %v14955_v11 = vld [vmem:[%s20284_s3 + $0x78] sm:$0xff]  }
 0x1b4   : > { %v2138_v43 = vpop.permute.xlu1 %2137 }
 0x1b5   : > { %2227 = vst.msk [vmem:[#allocation5 + $0x4c] sm:$0xf] %vm20750_vm12, %v2138_v43  ;;  %vm20755_vm12 = vmmov %vm20741_vm1 }
 0x1b6   : > { %v2148_v0 = vpop.permute.xlu0 %2147 }
 0x1b7   : > { %2232 = vst.msk [vmem:[#allocation5 + $0x60] sm:$0xf] %vm20751_vm9, %v2148_v0  ;;  %vm20756_vm9 = vmmov %vm20739_vm0 }
 0x1ba   : > { %v2387_v61 = vpop.permute.xlu1 %2386 }
 0x1bb   : > { %2478 = vst.msk [vmem:[#allocation5 + $0x44] sm:$0xf] %vm20752_vm8, %v2387_v61  ;;  %vm20757_vm8 = vmmov %vm20739_vm0 }
 0x1bc   : > { %v2389_v54 = vpop.permute.xlu0 %2388 }
 0x1bd   : > { %2479 = vst.msk [vmem:[#allocation5 + $0x48] sm:$0xf] %vm20741_vm1, %v2389_v54  ;;  %v14947_v54 = vld [vmem:[#allocation5 + $0x30] sm:$0xff]  }
 0x1c1   : > { %v2391_v12 = vpop.permute.xlu1 %2390 }
 0x1c2   : > { %2480 = vst.msk [vmem:[#allocation5 + $0x4c] sm:$0xf] %vm20753_vm3, %v2391_v12  ;;  %v14935_v22 = vld [vmem:[#allocation5 + $0x40] sm:$0xff]   ;;  %vm20758_vm3 = vmmov %vm20741_vm1  ;;  %v14948_v12 = vld [vmem:[#allocation5 + $0x38] sm:$0xff]  }
 0x1c3   : > { %v2144_v60 = vpop.permute.xlu0 %2143  ;;  %14623 = vmatprep.mubr.msk.bf16.mxu0 %vm2664_vm7, %v14935_v22 }
 0x1c4   : > { %2230 = vst.msk [vmem:[#allocation5 + $0x58] sm:$0xf] %vm20739_vm0, %v2144_v60  ;;  %vm20759_vm0 = vmmov %vm20741_vm1 }
 0x1c7   : > { %v2150_v62 = vpop.permute.xlu1 %2149  ;;  %v2401_v25 = vpop.permute.xlu0 %2400 }
 0x1c8   : > { %2233 = vst.msk [vmem:[#allocation5 + $0x64] sm:$0xf] %vm20754_vm4, %v2150_v62  ;;  %v14960_v62 = vld [vmem:[%s20284_s3 + $0x68] sm:$0xff]  }
 0x1c9   : > { %2485 = vst.msk [vmem:[#allocation5 + $0x60] sm:$0xf] %vm20755_vm12, %v2401_v25  ;;  %v14937_v17 = vld [vmem:[#allocation5 + $0x48] sm:$0xff]   ;;  %vm20760_vm12 = vmmov %vm20754_vm4 }
 0x1ca   : > { %14624 = vmatmul.mubr.msk.bf16.gmra.mxu0 %vm2664_vm7, %v14937_v17  ;;  %v14963_v17 = vld [vmem:[%s20284_s3 + $0x60] sm:$0xff]  }
 0x1cb   : > { %v2146_v38 = vpop.permute.xlu1 %2145  ;;  %v2156_v18 = vpop.permute.xlu0 %2155  ;;  %14651 = vmatprep.mubr.msk.bf16.mxu0 %vm2664_vm7, %v14939_v23 }
 0x1cc   : > { %2231 = vst.msk [vmem:[#allocation5 + $0x5c] sm:$0xf] %vm20756_vm9, %v2146_v38  ;;  %vm20761_vm9 = vmmov %vm20759_vm0  ;;  %v14953_v38 = vld [vmem:[#allocation5 + $0x40] sm:$0xff]  }
 0x1cd   : > { %2236 = vst.msk [vmem:[#allocation5 + $0x70] sm:$0xf] %vm20757_vm8, %v2156_v18  ;;  %vm20762_vm8 = vmmov %vm20754_vm4  ;;  %v14954_v18 = vld [vmem:[#allocation5 + $0x48] sm:$0xff]  }
 0x1cf   : > { %v2395_v35 = vpop.permute.xlu1 %2394  ;;  %v2397_v24 = vpop.permute.xlu0 %2396 }
 0x1d0   : > { %2482 = vst.msk [vmem:[#allocation5 + $0x54] sm:$0xf] %vm20741_vm1, %v2395_v35  ;;  %vm20763_vm1 = vmmov %vm20759_vm0 }
 0x1d1   : > { %2483 = vst.msk [vmem:[#allocation5 + $0x58] sm:$0xf] %vm20758_vm3, %v2397_v24  ;;  %vm20764_vm3 = vmmov %vm20759_vm0 }
 0x1d2   : > { %14652 = vmatmul.mubr.msk.bf16.vlgmr.msra.gmra.mxu0 %vm2664_vm7, %v14941_v4 }
 0x1d3   : > { %v2399_v13 = vpop.permute.xlu1 %2398  ;;  %v2152_v15 = vpop.permute.xlu0 %2151  ;;  %14655 = vmatprep.mubr.msk.bf16.mxu0 %vm2664_vm7, %v14942_v31 }
 0x1d4   : > { %2484 = vst.msk [vmem:[#allocation5 + $0x5c] sm:$0xf] %vm20759_vm0, %v2399_v13  ;;  %vm20765_vm0 = vmmov %vm20754_vm4 }
 0x1d5   : > { %2234 = vst.msk [vmem:[#allocation5 + $0x68] sm:$0xf] %vm20754_vm4, %v2152_v15  ;;  %vm20455_vm4 = vcmask 523264  }
 0x1d6   : > { %449 = vst.msk [vmem:[#allocation3 + $0x8] sm:$0xff] %vm20455_vm4, %v20630_v45  ;;  %448 = vst.msk [vmem:[#allocation3] sm:$0xff] %vm20455_vm4, %v20630_v45 }
 0x1d7   : > { %v2158_v10 = vpop.permute.xlu1 %2157  ;;  %v14943_v52 = vld [vmem:[#allocation5 + $0x50] sm:$0xff]   ;;  %v2409_v41 = vpop.permute.xlu0 %2408  ;;  %450 = vst.msk [vmem:[#allocation3 + $0x110] sm:$0xff] %vm20455_vm4, %v20630_v45  ;;  %451 = vst.msk [vmem:[#allocation3 + $0x118] sm:$0xff] %vm20455_vm4, %v20630_v45 }
 0x1d8   : > { %2237 = vst.msk [vmem:[#allocation5 + $0x74] sm:$0xf] %vm20760_vm12, %v2158_v10  ;;  %14627 = vmatprep.mubr.msk.bf16.mxu1 %vm2664_vm7, %v14943_v52  ;;  %vm20766_vm12 = vmmov %vm20763_vm1 }
 0x1d9   : > { %2489 = vst.msk [vmem:[#allocation5 + $0x70] sm:$0xf] %vm20761_vm9, %v2409_v41  ;;  %vm20767_vm9 = vmmov %vm20763_vm1 }
 0x1da   : > { %14656 = vmatmul.mubr.msk.bf16.gmra.mxu0 %vm2664_vm7, %v14945_v36 }
 0x1db   : > { %v2154_v42 = vpop.permute.xlu1 %2153  ;;  %v14944_v34 = vld [vmem:[#allocation5 + $0x58] sm:$0xff]   ;;  %v2405_v14 = vpop.permute.xlu0 %2404  ;;  %14659 = vmatprep.mubr.msk.bf16.mxu0 %vm2664_vm7, %v14946_v32 }
 0x1dc   : > { %2235 = vst.msk [vmem:[#allocation5 + $0x6c] sm:$0xf] %vm20762_vm8, %v2154_v42  ;;  %14628 = vmatmul.mubr.msk.bf16.vlgmr.msra.gmra.mxu1 %vm2664_vm7, %v14944_v34  ;;  %vm20768_vm8 = vmmov %vm20765_vm0 }
 0x1dd   : > { %2487 = vst.msk [vmem:[#allocation5 + $0x68] sm:$0xf] %vm20763_vm1, %v2405_v14  ;;  %14684 = vmatpush3.bf16.msra.mxu1 %v16590_v53  ;;  %v14956_v53 = vld [vmem:[%s20284_s3 + $0x70] sm:$0xff]   ;;  %vm20769_vm1 = vmmov %vm20765_vm0  ;;  %v16789_v23 = vld [vmem:[#allocation3 + $0x8] sm:$0xff] }
 0x1de   : > { %14685 = vmatprep.subr.bf16.mxu1 %v14951_v37  ;;  %v16791_v35 = vld [vmem:[#allocation3] sm:$0xff]  ;;  %v13780_v4 = vpack.c.bf16 %v16789_v23, %v16789_v23  ;;  %v16797_v31 = vrot.slane %v16789_v23, 1  ;;  %v16799_v10 = vld [vmem:[#allocation3 + $0x110] sm:$0xff]  ;;  %v16807_v41 = vld [vmem:[#allocation3 + $0x118] sm:$0xff] }
 0x1df   : > { %v2403_v43 = vpop.permute.xlu1 %2402  ;;  %v2160_v0 = vpop.permute.xlu0 %2159  ;;  %v13779_v52 = vpack.c.bf16 %v16791_v35, %v16791_v35  ;;  %v3886_v36 = vrot.slane %v16791_v35, 1  ;;  %v20378_v42 = vrot.slane %v16799_v10, 1  ;;  %v16813_v34 = vrot.slane %v16807_v41, 1 }
 0x1e0   : > { %2486 = vst.msk [vmem:[#allocation5 + $0x64] sm:$0xf] %vm20764_vm3, %v2403_v43  ;;  %20770 = vst [vmem:[#allocation46_spill] sm:$0xff] %v16797_v31  ;;  %4285 = vrot.lane.b32.xlu1 %v13780_v4, %s15393_s20 }
 0x1e1   : > { %2238 = vst.msk [vmem:[#allocation5 + $0x78] sm:$0xf] %vm20765_vm0, %v2160_v0  ;;  %14686 = vmatpush3.bf16.msra.mxu1 %v14951_v37  ;;  %vm20771_vm0 = vmmov %vm20764_vm3  ;;  %4283 = vrot.lane.b32.xlu0 %v13779_v52, %s15393_s20 }
 0x1e2   : > { %14687 = vmatprep.subr.bf16.mxu1 %v14955_v11  ;;  %14660 = vmatmul.mubr.msk.bf16.gmra.mxu0 %vm2664_vm7, %v14947_v54  ;;  %20772 = vst [vmem:[#allocation47_spill] sm:$0xff] %v16813_v34 }
 0x1e3   : > { %v2407_v61 = vpop.permute.xlu1 %2406  ;;  %v2413_v60 = vpop.permute.xlu0 %2412  ;;  %14663 = vmatprep.mubr.msk.bf16.mxu0 %vm2664_vm7, %v14948_v12 }
 0x1e4   : > { %2488 = vst.msk [vmem:[#allocation5 + $0x6c] sm:$0xf] %vm20766_vm12, %v2407_v61  ;;  %vm20773_vm12 = vmmov %vm20771_vm0  ;;  %v14958_v61 = vld [vmem:[#allocation5 + $0x50] sm:$0xff]  }
 0x1e5   : > { %2491 = vst.msk [vmem:[#allocation5 + $0x78] sm:$0xf] %vm20767_vm9, %v2413_v60  ;;  %14688 = vmatpush3.bf16.msra.mxu1 %v14955_v11  ;;  %vm20774_vm9 = vcmp.lt.s32.totalorder %v15542_v29, 7 }
 0x1e6   : > { %14689 = vmatprep.subr.bf16.mxu1 %v14956_v53  ;;  %v3956_v32 = vsel %vm20774_vm9, %v3886_v36, %v16797_v31 }
 0x1e7   : > { %v2162_v22 = vpop.permute.xlu1 %2161  ;;  %v14950_v25 = vld [vmem:[#allocation5 + $0x60] sm:$0xff]   ;;  %v2164_v45 = vpop.permute.xlu0 %2163  ;;  %v16829_v0 = vpack.c.bf16 %v3956_v32, %v3956_v32 }
 0x1e8   : > { %2239 = vst.msk [vmem:[#allocation5 + $0x7c] sm:$0xf] %vm20768_vm8, %v2162_v22  ;;  %14631 = vmatprep.mubr.msk.bf16.mxu1 %vm2664_vm7, %v14950_v25  ;;  %vm20454_vm8 = vcmask 519168   ;;  %v14959_v22 = vld [vmem:[#allocation5 + $0x58] sm:$0xff]  }
 0x1e9   : > { %2240 = vst.msk [vmem:[#allocation5 + $0x80] sm:$0xf] %vm20769_vm1, %v2164_v45  ;;  %14690 = vmatpush3.bf16.msra.mxu1 %v14956_v53 }
 0x1ea   : > { %14691 = vmatprep.subr.bf16.mxu1 %v14960_v62  ;;  %14664 = vmatmul.mubr.msk.bf16.gmra.mxu0 %vm2664_vm7, %v14953_v38  ;;  %4572 = vst.msk [vmem:[#allocation6 + $0x4] sm:$0xf] %vm20454_vm8, %v16829_v0  ;;  %v14962_v38 = vld [vmem:[#allocation5 + $0x10] sm:$0xff]  }
 0x1eb   : > { %v2411_v24 = vpop.permute.xlu1 %2410  ;;  %v14952_v13 = vld [vmem:[#allocation5 + $0x68] sm:$0xff]   ;;  %v2417_v15 = vpop.permute.xlu0 %2416  ;;  %14667 = vmatprep.mubr.msk.bf16.mxu0 %vm2664_vm7, %v14954_v18 }
 0x1ec   : > { %2490 = vst.msk [vmem:[#allocation5 + $0x74] sm:$0xf] %vm20764_vm3, %v2411_v24  ;;  %14632 = vmatmul.mubr.msk.bf16.gmra.mxu1 %vm2664_vm7, %v14952_v13  ;;  %vm20775_vm3 = vmmov %vm20774_vm9  ;;  %vm20779_vm9 = vcmask 781824   ;;  %v14965_v24 = vld [vmem:[#allocation5 + $0x68] sm:$0xff]   ;;  %v14966_v13 = vld [vmem:[#allocation5 + $0x18] sm:$0xff]  }
 0x1ed   : > { %2493 = vst.msk [vmem:[#allocation5 + $0x80] sm:$0xf] %vm20771_vm0, %v2417_v15  ;;  %14692 = vmatpush3.bf16.msra.mxu1 %v14960_v62  ;;  %v3922_v43 = vsel %vm20775_vm3, %v20378_v42, %v16813_v34  ;;  %vm20776_vm0 = vmmov %vm20775_vm3  ;;  %v14967_v15 = vld [vmem:[#allocation5 + $0x20] sm:$0xff]  }
 0x1ee   : > { %14693 = vmatprep.subr.bf16.mxu1 %v14963_v17  ;;  %v3957_v11 = vsel %vm20776_vm0, %v16813_v34, %v3886_v36  ;;  %v13849_v12 = vpack.c.bf16 %v3922_v43, %v3922_v43  ;;  %v14973_v43 = vld [vmem:[#allocation5 + $0x38] sm:$0xff]   ;;  %vm20453_vm0 = vcmask 1043968   ;;  %v14998_v34 = vld [vmem:[%s20286_s5 + $0x88] sm:$0xff]  }
 0x1ef   : > { %v2415_v37 = vpop.permute.xlu1 %2414  ;;  %v2168_v14 = vpop.permute.xlu0 %2167  ;;  %v3993_v54 = vsel %vm16398_vm6, 0.0, %v3957_v11  ;;  %vm20780_vm6 = vmmov %vm20779_vm9  ;;  %v14974_v11 = vld [vmem:[#allocation5 + $0x40] sm:$0xff]  }
 0x1f0   : > { %2492 = vst.msk [vmem:[#allocation5 + $0x7c] sm:$0xf] %vm20773_vm12, %v2415_v37  ;;  %v16833_v62 = vpack.c.bf16 %v3993_v54, %v3993_v54  ;;  %vm20778_vm12 = vmmov %vm20769_vm1  ;;  %v14970_v37 = vld [vmem:[#allocation5 + $0x28] sm:$0xff]   ;;  %v14976_v54 = vld [vmem:[#allocation5 + $0x50] sm:$0xff]  }
 0x1f1   : > { %2242 = vst.msk [vmem:[#allocation5 + $0x88] sm:$0xf] %vm20769_vm1, %v2168_v14  ;;  %14694 = vmatpush3.bf16.msra.mxu1 %v14963_v17  ;;  %v14964_v17 = vld [vmem:[#allocation5 + $0x60] sm:$0xff]   ;;  %vm20781_vm3 = vmmov %vm20780_vm6  ;;  %v14971_v14 = vld [vmem:[#allocation5 + $0x30] sm:$0xff]  }
 0x1f2   : > { %20777 = vst [vmem:[#allocation48_spill] sm:$0xff] %v16833_v62  ;;  %4606 = vst.msk [vmem:[#allocation6 + $0x114] sm:$0xf] %vm20454_vm8, %v13849_v12  ;;  %14668 = vmatmul.mubr.msk.bf16.gmra.mxu0 %vm2664_vm7, %v14958_v61  ;;  %v14975_v61 = vld [vmem:[#allocation5 + $0x48] sm:$0xff]   ;;  %v14977_v12 = vld [vmem:[#allocation5 + $0x58] sm:$0xff]  }
 0x1f3   : > { %v2166_v53 = vpop.permute.xlu1 %2165  ;;  %v14957_v60 = vld [vmem:[#allocation5 + $0x70] sm:$0xff]   ;;  %v2421_v25 = vpop.permute.xlu0 %2420  ;;  %4607 = vst.msk [vmem:[#allocation6 + $0x11c] sm:$0xf] %vm20454_vm8, %v16833_v62  ;;  %14671 = vmatprep.mubr.msk.bf16.mxu0 %vm2664_vm7, %v14959_v22 }
 0x1f4   : > { %2241 = vst.msk [vmem:[#allocation5 + $0x84] sm:$0xf] %vm20778_vm12, %v2166_v53  ;;  %14635 = vmatprep.mubr.msk.bf16.mxu1 %vm2664_vm7, %v14957_v60  ;;  %v14968_v52 = vld [vmem:[#allocation5 + $0x70] sm:$0xff]   ;;  %v14978_v53 = vld [vmem:[#allocation5 + $0x60] sm:$0xff]   ;;  %v14979_v60 = vld [vmem:[#allocation5 + $0x68] sm:$0xff]  }
 0x1f5   : > { %2495 = vst.msk [vmem:[#allocation5 + $0x88] sm:$0xf] %vm20779_vm9, %v2421_v25  ;;  %v14980_v22 = vld [vmem:[#allocation5 + $0x70] sm:$0xff]  }
 0x1f7   : > { %v2419_v9 = vpop.permute.xlu1 %2418  ;;  %v14961_v45 = vld [vmem:[#allocation5 + $0x78] sm:$0xff]  }
 0x1f8   : > { %2494 = vst.msk [vmem:[#allocation5 + $0x84] sm:$0xf] %vm20780_vm6, %v2419_v9  ;;  %14636 = vmatmul.mubr.msk.bf16.gmra.mxu1 %vm2664_vm7, %v14961_v45  ;;  %v14969_v36 = vld [vmem:[#allocation5 + $0x78] sm:$0xff]  }
 0x1f9   : > { %14695 = vmatprep.mubr.msk.bf16.mxu1 %vm2664_vm7, %v14962_v38  ;;  %v14981_v25 = vld [vmem:[#allocation5 + $0x78] sm:$0xff]   ;;  %v20427_v38 = vmov 0  }
 0x1fa   : > { %14672 = vmatmul.mubr.msk.bf16.gmra.mxu0 %vm2664_vm7, %v14964_v17  ;;  %v14984_v45 = vld [vmem:[%s20286_s5 + $0x38] sm:$0xff]   ;;  %4935 = vmatprep.subr.bf16.mxu0 %v20427_v38 }
 0x1fb   : > { %v2170_v18 = vpop.permute.xlu1 %2169  ;;  %14675 = vmatprep.mubr.msk.bf16.mxu0 %vm2664_vm7, %v14965_v24  ;;  %5417 = vmatprep.subr.bf16.mxu1 %v20427_v38  ;;  %v14986_v24 = vld [vmem:[%s20286_s5 + $0x28] sm:$0xff]  }
 0x1fc   : > { %2243 = vst.msk [vmem:[#allocation5 + $0x8c] sm:$0xf] %vm20769_vm1, %v2170_v18  ;;  %4936 = vmatpush1.bf16.msra.mxu0 %v14984_v45  ;;  %14898 = vset.pattern.permute.xlu0 %v20427_v38  ;;  %v14985_v18 = vld [vmem:[%s20286_s5 + $0x30] sm:$0xff]  }
 0x1fd   : > { %4937 = vmatprep.subr.bf16.mxu0 %v20427_v38  ;;  %14899 = vset.pattern.permute.xlu1 %v20427_v38 }
 0x1ff   : > { %v2423_v4 = vpop.permute.xlu1 %2422  ;;  %v14972_v32 = vld [vmem:[#allocation5 + $0x80] sm:$0xff]  }
 0x200   : > { %2496 = vst.msk [vmem:[#allocation5 + $0x8c] sm:$0xf] %vm20781_vm3, %v2423_v4  ;;  %14696 = vmatmul.mubr.msk.bf16.vlgmr.msra.gmra.mxu1 %vm2664_vm7, %v14966_v13  ;;  %v14982_v9 = vld [vmem:[#allocation5 + $0x80] sm:$0xff]   ;;  %4938 = vmatpush1.bf16.msra.mxu0 %v14985_v18  ;;  %v14988_v4 = vld [vmem:[%s20286_s5 + $0x18] sm:$0xff]  }
 0x201   : > { %14699 = vmatprep.mubr.msk.bf16.mxu1 %vm2664_vm7, %v14967_v15  ;;  %4939 = vmatprep.subr.bf16.mxu0 %v20427_v38  ;;  %v14987_v13 = vld [vmem:[%s20286_s5 + $0x20] sm:$0xff]   ;;  %v14989_v15 = vld [vmem:[%s20286_s5 + $0x10] sm:$0xff]  }
 0x202   : > { %14676 = vmatmul.mubr.msk.bf16.gmra.mxu0 %vm2664_vm7, %v14968_v52  ;;  %v14990_v52 = vld [vmem:[%s20286_s5 + $0x8] sm:$0xff]   ;;  %v14995_v18 = vld [vmem:[%s20286_s5 + $0x40] sm:$0xff]  }
 0x203   : > { %14679 = vmatprep.mubr.msk.bf16.mxu0 %vm2664_vm7, %v14969_v36  ;;  %v14991_v36 = vld [vmem:[%s20286_s5] sm:$0xff]  }
 0x204   : > { %4940 = vmatpush1.bf16.msra.mxu0 %v14986_v24 }
 0x205   : > { %4941 = vmatprep.subr.bf16.mxu0 %v20427_v38 }
 0x207   : > { %v14983_v17 = vld [vmem:[#allocation5 + $0x88] sm:$0xff]  }
 0x208   : > { %14700 = vmatmul.mubr.msk.bf16.gmra.mxu1 %vm2664_vm7, %v14970_v37  ;;  %4942 = vmatpush1.bf16.msra.mxu0 %v14987_v13  ;;  %v16906_v37 = vrot.slane %v16789_v23, 7 }
 0x209   : > { %14703 = vmatprep.mubr.msk.bf16.mxu1 %vm2664_vm7, %v14971_v14  ;;  %4943 = vmatprep.subr.bf16.mxu0 %v20427_v38  ;;  %v3778_v14 = vrot.slane %v16791_v35, 7 }
 0x20a   : > { %14680 = vmatmul.mubr.msk.bf16.gmra.mxu0 %vm2664_vm7, %v14972_v32  ;;  %20782 = vst [vmem:[#allocation49_spill] sm:$0xff] %v16906_v37 }
 0x20c   : > { %4944 = vmatpush1.bf16.msra.mxu0 %v14988_v4 }
 0x20d   : > { %4945 = vmatprep.subr.bf16.mxu0 %v20427_v38 }
 0x210   : > { %14704 = vmatmul.mubr.msk.bf16.gmra.mxu1 %vm2664_vm7, %v14973_v43  ;;  %4946 = vmatpush1.bf16.msra.mxu0 %v14989_v15  ;;  %v14992_v43 = vld [vmem:[%s20286_s5 + $0x58] sm:$0xff]  }
 0x211   : > { %14707 = vmatprep.mubr.msk.bf16.mxu1 %vm2664_vm7, %v14974_v11  ;;  %4947 = vmatprep.subr.bf16.mxu0 %v20427_v38 }
 0x214   : > { %4948 = vmatpush1.bf16.msra.mxu0 %v14990_v52 }
 0x215   : > { %4949 = vmatprep.subr.bf16.mxu0 %v20427_v38 }
 0x218   : > { %14708 = vmatmul.mubr.msk.bf16.gmra.mxu1 %vm2664_vm7, %v14975_v61  ;;  %4950 = vmatpush1.bf16.msra.mxu0 %v14991_v36 }
 0x219   : > { %14711 = vmatprep.mubr.msk.bf16.mxu1 %vm2664_vm7, %v14976_v54  ;;  %4959 = vmatprep.subr.bf16.mxu0 %v20427_v38  ;;  %v16928_v54 = vrot.slane %v16807_v41, 7 }
 0x21b   : > { %20785 = vst [vmem:[#allocation51_spill] sm:$0xff] %v16928_v54 }
 0x21c   : > { %4960 = vmatpush2.bf16.msra.mxu0 %v14992_v43 }
 0x21d   : > { %4961 = vmatprep.subr.bf16.mxu0 %v20427_v38 }
 0x220   : > { %14712 = vmatmul.mubr.msk.bf16.gmra.mxu1 %vm2664_vm7, %v14977_v12  ;;  %v14993_v12 = vld [vmem:[%s20286_s5 + $0x50] sm:$0xff]  }
 0x221   : > { %14715 = vmatprep.mubr.msk.bf16.mxu1 %vm2664_vm7, %v14978_v53  ;;  %4962 = vmatpush2.bf16.msra.mxu0 %v14993_v12 }
 0x222   : > { %4963 = vmatprep.subr.bf16.mxu0 %v20427_v38 }
 0x228   : > { %14716 = vmatmul.mubr.msk.bf16.gmra.mxu1 %vm2664_vm7, %v14979_v60 }
 0x229   : > { %14719 = vmatprep.mubr.msk.bf16.mxu1 %vm2664_vm7, %v14980_v22 }
 0x230   : > { %14720 = vmatmul.mubr.msk.bf16.gmra.mxu1 %vm2664_vm7, %v14981_v25  ;;  %v14994_v25 = vld [vmem:[%s20286_s5 + $0x48] sm:$0xff]  }
 0x231   : > { %14723 = vmatprep.mubr.msk.bf16.mxu1 %vm2664_vm7, %v14982_v9  ;;  %4964 = vmatpush2.bf16.msra.mxu0 %v14994_v25 }
 0x232   : > { %4965 = vmatprep.subr.bf16.mxu0 %v20427_v38 }
 0x235   : > { %4966 = vmatpush2.bf16.msra.mxu0 %v14995_v18  ;;  %v14997_v18 = vld [vmem:[%s20286_s5 + $0x90] sm:$0xff]  }
 0x236   : > { %5931 = vmatprep.subr.bf16.mxu0 %v20427_v38 }
 0x238   : > { %14724 = vmatmul.mubr.msk.bf16.gmra.mxu1 %vm2664_vm7, %v14983_v17  ;;  %vm20783_vm7 = vcmp.lt.s32.totalorder %v15542_v29, 1 }
 0x239   : > { %v3848_v11 = vsel %vm20783_vm7, %v3778_v14, %v16906_v37  ;;  %vm20786_vm12 = vmmov %vm20783_vm7 }
 0x23a   : > { %v16920_v23 = vpack.c.bf16 %v3848_v11, %v3848_v11  ;;  %v3849_v22 = vsel %vm20786_vm12, %v16928_v54, %v3778_v14  ;;  %vm20801_vm9 = vmmov %vm20783_vm7 }
 0x23b   : > { %v3850_v41 = vsel %vm15564_vm5, 0.0, %v3849_v22  ;;  %vm20809_vm12 = vmmov %vm20801_vm9 }
 0x23c   : > { %20784 = vst [vmem:[#allocation50_spill] sm:$0xff] %v16920_v23  ;;  %4140 = vst.msk [vmem:[#allocation6 + $0x8] sm:$0xf] %vm20454_vm8, %v16920_v23  ;;  %v13743_v45 = vpack.c.bf16 %v3850_v41, %v3850_v41 }
 0x23e   : > { %4139 = vst.msk [vmem:[#allocation6] sm:$0xf] %vm20454_vm8, %v13743_v45 }
 0x242   : > { %v16909_v32 = vpop.f32.mrf.mxu0 }
 0x244   : > { %v16918_v61 = vpop.f32.mrf.mxu0 }
 0x246   : > { %v16925_v35 = vpop.f32.mrf.mxu0 }
 0x248   : > { %v16933_v53 = vpop.f32.mrf.mxu0 }
 0x252   : > { %v4286_v60 = vpop.permute.xlu1 %4285  ;;  %v16945_v9 = vpop.f32.mrf.mxu0 }
 0x253   : > { %4393 = vst.msk [vmem:[#allocation6 + $0x8] sm:$0xf] %vm20453_vm0, %v4286_v60  ;;  %v4284_v17 = vpop.permute.xlu0 %4283 }
 0x254   : > { %4392 = vst.msk [vmem:[#allocation6] sm:$0xf] %vm20453_vm0, %v4284_v17  ;;  %v16953_v24 = vpop.f32.mrf.mxu0 }
 0x256   : > { %v16956_v40 = vpop.f32.mrf.mxu0 }
 0x258   : > { %v16963_v4 = vpop.f32.mrf.mxu0 }
 0x25b   : > { %v16958_v13 = vld [vmem:[#allocation6] sm:$0xff] }
 0x25c   : > { %20787 = vst [vmem:[#allocation52_spill] sm:$0xff] %v16958_v13  ;;  %10015 = vst.msk [vmem:[#allocation6] sm:$0xf] %vm20454_vm8, %v13743_v45  ;;  %v14996_v45 = vld [vmem:[%s20286_s5 + $0x98] sm:$0xff]  }
 0x25d   : > { %10447 = vst.msk [vmem:[#allocation6 + $0x4] sm:$0xf] %vm20454_vm8, %v16829_v0  ;;  %5418 = vmatpush1.bf16.msra.mxu1 %v14996_v45 }
 0x25e   : > { %5419 = vmatprep.subr.bf16.mxu1 %v20427_v38 }
 0x261   : > { %5420 = vmatpush1.bf16.msra.mxu1 %v14997_v18 }
 0x262   : > { %v16965_v15 = vpop.f32.mrf.mxu0  ;;  %5421 = vmatprep.subr.bf16.mxu1 %v20427_v38 }
 0x264   : > { %v16967_v52 = vpop.f32.mrf.mxu0 }
 0x265   : > { %5422 = vmatpush1.bf16.msra.mxu1 %v14998_v34 }
 0x266   : > { %v16969_v36 = vpop.f32.mrf.mxu0  ;;  %5423 = vmatprep.subr.bf16.mxu1 %v20427_v38 }
 0x268   : > { %v16971_v14 = vpop.f32.mrf.mxu0 }
 0x269   : > { %5424 = vmatpush1.bf16.msra.mxu1 %v14999_v44 }
 0x26a   : > { %5425 = vmatprep.subr.bf16.mxu1 %v20427_v38 }
 0x26d   : > { %5426 = vmatpush1.bf16.msra.mxu1 %v15000_v55 }
 0x26e   : > { %5427 = vmatprep.subr.bf16.mxu1 %v20427_v38 }
 0x271   : > { %5428 = vmatpush1.bf16.msra.mxu1 %v15001_v26 }
 0x272   : > { %v16973_v43 = vpop.f32.mrf.mxu0  ;;  %5429 = vmatprep.subr.bf16.mxu1 %v20427_v38 }
 0x274   : > { %v16975_v11 = vpop.f32.mrf.mxu0 }
 0x275   : > { %5430 = vmatpush1.bf16.msra.mxu1 %v15002_v51 }
 0x276   : > { %v16977_v12 = vpop.f32.mrf.mxu0  ;;  %5431 = vmatprep.subr.bf16.mxu1 %v20427_v38 }
 0x278   : > { %v16979_v60 = vpop.f32.mrf.mxu0 }
 0x279   : > { %5432 = vmatpush1.bf16.msra.mxu1 %v15003_v33  ;;  %v17080_v33 = vld [vmem:[%s20285_s4] ss:$0 sm:$0xff] }
 0x27a   : > { %5441 = vmatprep.subr.bf16.mxu1 %v20427_v38  ;;  %v2756_v19 = vadd.f32 %v16909_v32, %v17080_v33  ;;  %v2748_v47 = vadd.f32 %v17080_v33, %v16918_v61  ;;  %v2759_v13 = vadd.f32 %v16925_v35, %v17080_v33  ;;  %v2751_v50 = vadd.f32 %v17080_v33, %v16933_v53 }
 0x27b   : > { %v2772_v6 = vadd.f32 %v16945_v9, %v17080_v33  ;;  %v2764_v20 = vadd.f32 %v17080_v33, %v16953_v24  ;;  %v2775_v32 = vadd.f32 %v16956_v40, %v17080_v33  ;;  %v2767_v61 = vadd.f32 %v17080_v33, %v16963_v4 }
 0x27c   : > { %v2788_v35 = vadd.f32 %v16965_v15, %v17080_v33  ;;  %v2780_v53 = vadd.f32 %v17080_v33, %v16967_v52  ;;  %v2791_v57 = vadd.f32 %v16969_v36, %v17080_v33  ;;  %v2783_v9 = vadd.f32 %v17080_v33, %v16971_v14 }
 0x27d   : > { %v2804_v40 = vadd.f32 %v16973_v43, %v17080_v33  ;;  %v2796_v4 = vadd.f32 %v17080_v33, %v16975_v11  ;;  %v2807_v15 = vadd.f32 %v16977_v12, %v17080_v33  ;;  %v2799_v36 = vadd.f32 %v17080_v33, %v16979_v60 }
 0x28a   : > { %v16981_v22 = vpop.f32.mrf.mxu0 }
 0x28b   : > { %v2820_v14 = vadd.f32 %v16981_v22, %v17080_v33 }
 0x28c   : > { %v16983_v0 = vpop.f32.mrf.mxu0 }
 0x28d   : > { %v2812_v29 = vadd.f32 %v17080_v33, %v16983_v0 }
 0x28e   : > { %v16985_v25 = vpop.f32.mrf.mxu0 }
 0x28f   : > { %v2823_v43 = vadd.f32 %v16985_v25, %v17080_v33 }
 0x290   : > { %v16987_v41 = vpop.f32.mrf.mxu0 }
 0x291   : > { %v2815_v12 = vadd.f32 %v17080_v33, %v16987_v41 }
 0x292   : > { %v16992_v17 = vpop.f32.mrf.mxu0 }
 0x293   : > { %v3246_v52 = vadd.f32 %v16992_v17, %v2756_v19 }
 0x294   : > { %v16998_v42 = vpop.f32.mrf.mxu0 }
 0x295   : > { %v3244_v19 = vadd.f32 %v16998_v42, %v2748_v47 }
 0x296   : > { %v17000_v62 = vpop.f32.mrf.mxu0 }
 0x297   : > { %v3247_v17 = vadd.f32 %v17000_v62, %v2759_v13 }
 0x298   : > { %v17006_v54 = vpop.f32.mrf.mxu0 }
 0x29a   : > { %v17008_v45 = vpop.f32.mrf.mxu0 }
 0x29b   : > { %v3250_v0 = vadd.f32 %v17008_v45, %v2772_v6 }
 0x29c   : > { %v17014_v2 = vpop.f32.mrf.mxu1  ;;  %v17016_v18 = vpop.f32.mrf.mxu0 }
 0x29d   : > { %v2836_v22 = vadd.f32 %v17014_v2, %v17080_v33 }
 0x29e   : > { %v17018_v49 = vpop.f32.mrf.mxu0  ;;  %v17024_v34 = vpop.f32.mrf.mxu1 }
 0x29f   : > { %v2828_v25 = vadd.f32 %v17080_v33, %v17024_v34  ;;  %v3251_v13 = vadd.f32 %v17018_v49, %v2775_v32 }
 0x2a0   : > { %v17026_v39 = vpop.f32.mrf.mxu0  ;;  %v17034_v44 = vpop.f32.mrf.mxu1 }
 0x2a1   : > { %v2839_v47 = vadd.f32 %v17034_v44, %v17080_v33  ;;  %v17152_v2 = vadd.f32 %v17026_v39, %v2767_v61 }
 0x2a2   : > { %v17028_v59 = vpop.f32.mrf.mxu0  ;;  %v17044_v55 = vpop.f32.mrf.mxu1 }
 0x2a3   : > { %v17155_v6 = vadd.f32 %v17028_v59, %v2788_v35 }
 0x2a4   : > { %v17036_v7 = vpop.f32.mrf.mxu0 }
 0x2a5   : > { %v17161_v45 = vadd.f32 %v17036_v7, %v2780_v53 }
 0x2a6   : > { %v17038_v27 = vpop.f32.mrf.mxu0 }
 0x2a7   : > { %v17164_v49 = vadd.f32 %v17038_v27, %v2791_v57 }
 0x2a8   : > { %v17046_v16 = vpop.f32.mrf.mxu0 }
 0x2aa   : > { %v17050_v30 = vpop.f32.mrf.mxu0 }
 0x2ab   : > { %v17173_v34 = vadd.f32 %v17050_v30, %v2804_v40 }
 0x2ac   : > { %v17048_v5 = vpop.f32.mrf.mxu1  ;;  %v17058_v46 = vpop.f32.mrf.mxu0 }
 0x2ad   : > { %v2852_v59 = vadd.f32 %v17048_v5, %v17080_v33  ;;  %v17178_v57 = vadd.f32 %v17058_v46, %v2796_v4  ;;  %v20792_v5 = vmov 0  }
 0x2ae   : > { %v17056_v26 = vpop.f32.mrf.mxu1  ;;  %v17060_v1 = vpop.f32.mrf.mxu0 }
 0x2af   : > { %v2844_v7 = vadd.f32 %v17080_v33, %v17056_v26  ;;  %v17185_v30 = vadd.f32 %v17060_v1, %v2807_v15  ;;  %v15005_v1 = vld [vmem:[%s20286_s5 + $0xb0] sm:$0xff]  }
 0x2b0   : > { %v17063_v58 = vpop.f32.mrf.mxu1  ;;  %v17065_v63 = vpop.f32.mrf.mxu0 }
 0x2b1   : > { %v2855_v27 = vadd.f32 %v17063_v58, %v17080_v33  ;;  %v17190_v61 = vadd.f32 %v17065_v63, %v2799_v36 }
 0x2b2   : > { %v17067_v51 = vpop.f32.mrf.mxu0  ;;  %v17069_v28 = vpop.f32.mrf.mxu1 }
 0x2b3   : > { %v2847_v26 = vadd.f32 %v17080_v33, %v17069_v28  ;;  %v17193_v46 = vadd.f32 %v17067_v51, %v2820_v14  ;;  %v20903_v28 = vld [vmem:[#allocation27_spill] sm:$0xff] }
 0x2b4   : > { %v17071_v8 = vpop.f32.mrf.mxu0 }
 0x2b5   : > { %v17196_v53 = vadd.f32 %v17071_v8, %v2812_v29 }
 0x2b6   : > { %v17075_v56 = vpop.f32.mrf.mxu0 }
 0x2b7   : > { %v17206_v51 = vadd.f32 %v17075_v56, %v2823_v43 }
 0x2b8   : > { %v17073_v48 = vpop.f32.mrf.mxu1  ;;  %v17084_v21 = vpop.f32.mrf.mxu0 }
 0x2b9   : > { %v2868_v63 = vadd.f32 %v17073_v48, %v17080_v33  ;;  %v17211_v8 = vadd.f32 %v17084_v21, %v2815_v12 }
 0x2ba   : > { %v17082_v38 = vpop.f32.mrf.mxu1  ;;  %v17096_v3 = vpop.f32.mrf.mxu0 }
 0x2bb   : > { %20788 = vst [vmem:[#allocation53_spill] sm:$0xff] %v17096_v3  ;;  %v3248_v3 = vadd.f32 %v17016_v18, %v2764_v20  ;;  %v15004_v20 = vld [vmem:[%s20286_s5 + $0xb8] sm:$0xff]   ;;  %v17168_v18 = vadd.f32 %v17046_v16, %v2783_v9  ;;  %v2860_v29 = vadd.f32 %v17080_v33, %v17082_v38 }
 0x2bc   : > { %v17094_v23 = vpop.f32.mrf.mxu1  ;;  %v17116_v24 = vpop.f32.mrf.mxu0  ;;  %5442 = vmatpush2.bf16.msra.mxu1 %v15004_v20 }
 0x2bd   : > { %20790 = vst [vmem:[#allocation55_spill] sm:$0xff] %v17116_v24  ;;  %v3245_v24 = vadd.f32 %v17006_v54, %v2751_v50  ;;  %v2831_v50 = vadd.f32 %v17080_v33, %v17044_v55  ;;  %5443 = vmatprep.subr.bf16.mxu1 %v20792_v5  ;;  %v2871_v15 = vadd.f32 %v17094_v23, %v17080_v33 }
 0x2be   : > { %v17114_v37 = vpop.f32.mrf.mxu1  ;;  %v17133_v31 = vpop.f32.mrf.mxu0 }
 0x2bf   : > { %20789 = vst [vmem:[#allocation54_spill] sm:$0xff] %v17114_v37  ;;  %20791 = vst [vmem:[#allocation56_spill] sm:$0xff] %v17133_v31 }
 0x2c0   : > { %v14697_v11 = vpop.f32.mrf.mxu1  ;;  %v3200_v31 = vpop.f32.mrf.mxu0  ;;  %5444 = vmatpush2.bf16.msra.mxu1 %v15005_v1  ;;  %v20798_v1 = vld [vmem:[#allocation9_spill] sm:$0xff] }
 0x2c1   : > { %v3648_v60 = vadd.f32 %v14697_v11, %v3246_v52  ;;  %5445 = vmatprep.subr.bf16.mxu1 %v20792_v5  ;;  %vm20799_vm5 = vcmp.lt.s32.totalorder %v20798_v1, 7 }
 0x2c2   : > { %v3519_v37 = vpop.f32.mrf.mxu1  ;;  %v14677_v54 = vpop.f32.mrf.mxu0  ;;  %v20793_v52 = vld [vmem:[#allocation53_spill] sm:$0xff]  ;;  %vm20803_vm6 = vmmov %vm20799_vm5 }
 0x2c3   : > { %v3680_v42 = vmax.f32 %v3648_v60, 0.0  ;;  %v3646_v62 = vadd.f32 %v3519_v37, %v3244_v19  ;;  %v17216_v36 = vadd.f32 %v20793_v52, %v2836_v22  ;;  %v17227_v19 = vadd.f32 %v3200_v31, %v2831_v50  ;;  %vm20804_vm1 = vmmov %vm20799_vm5 }
 0x2c4   : > { %v14698_v41 = vpop.f32.mrf.mxu1  ;;  %v3213_v44 = vpop.f32.mrf.mxu0  ;;  %v20795_v38 = vld [vmem:[#allocation55_spill] sm:$0xff]  ;;  %v17232_v22 = vadd.f32 %v14677_v54, %v2852_v59  ;;  %vm20805_vm3 = vmmov %vm20804_vm1 }
 0x2c5   : > { %3712 = vst.msk [vmem:[#allocation3 + $0x20] sm:$0xff] %vm20455_vm4, %v3680_v42  ;;  %v3678_v37 = vmax.f32 %v3646_v62, 0.0  ;;  %v3649_v39 = vadd.f32 %v14698_v41, %v3247_v17  ;;  %v17222_v11 = vadd.f32 %v20795_v38, %v2828_v25  ;;  %v15007_v25 = vld [vmem:[%s20286_s5 + $0xa8] sm:$0xff]   ;;  %vm20808_vm7 = vmmov %vm20804_vm1 }
 0x2c6   : > { %v3522_v55 = vpop.f32.mrf.mxu1  ;;  %v14678_v35 = vpop.f32.mrf.mxu0  ;;  %v20794_v56 = vld [vmem:[#allocation54_spill] sm:$0xff]  ;;  %v20796_v21 = vld [vmem:[#allocation56_spill] sm:$0xff]  ;;  %5446 = vmatpush2.bf16.msra.mxu1 %v15007_v25 }
 0x2c7   : > { %3710 = vst.msk [vmem:[#allocation3 + $0x10] sm:$0xff] %vm20455_vm4, %v3678_v37  ;;  %v3681_v16 = vmax.f32 %v3649_v39, 0.0  ;;  %v3647_v32 = vadd.f32 %v3522_v55, %v3245_v24  ;;  %v2863_v43 = vadd.f32 %v17080_v33, %v20794_v56  ;;  %v17225_v12 = vadd.f32 %v20796_v21, %v2839_v47  ;;  %5447 = vmatprep.subr.bf16.mxu1 %v20792_v5 }
 0x2c8   : > { %v14701_v58 = vpop.f32.mrf.mxu1  ;;  %v3216_v40 = vpop.f32.mrf.mxu0  ;;  %v17240_v31 = vadd.f32 %v14678_v35, %v2855_v27 }
 0x2c9   : > { %3713 = vst.msk [vmem:[#allocation3 + $0x28] sm:$0xff] %vm20455_vm4, %v3681_v16  ;;  %v3679_v9 = vmax.f32 %v3647_v32, 0.0  ;;  %v3652_v24 = vadd.f32 %v14701_v58, %v3250_v0  ;;  %v17242_v47 = vadd.f32 %v3216_v40, %v2847_v26 }
 0x2ca   : > { %v3535_v4 = vpop.f32.mrf.mxu1  ;;  %v14681_v23 = vpop.f32.mrf.mxu0 }
 0x2cb   : > { %3711 = vst.msk [vmem:[#allocation3 + $0x18] sm:$0xff] %vm20455_vm4, %v3679_v9  ;;  %v3684_v48 = vmax.f32 %v3652_v24, 0.0  ;;  %v3650_v14 = vadd.f32 %v3535_v4, %v3248_v3  ;;  %v17234_v3 = vadd.f32 %v3213_v44, %v2844_v7  ;;  %v17244_v42 = vadd.f32 %v14681_v23, %v2868_v63  ;;  %v15008_v9 = vld [vmem:[%s20286_s5 + $0xa0] sm:$0xff]   ;;  %v20797_v24 = vld [vmem:[#allocation46_spill] sm:$0xff] }
 0x2cc   : > { %v14702_v17 = vpop.f32.mrf.mxu1  ;;  %v17229_v60 = vld [vmem:[#allocation3 + $0x20] sm:$0xff]  ;;  %v3229_v62 = vpop.f32.mrf.mxu0  ;;  %5448 = vmatpush2.bf16.msra.mxu1 %v15008_v9 }
 0x2cd   : > { %3716 = vst.msk [vmem:[#allocation3 + $0x40] sm:$0xff] %vm20455_vm4, %v3684_v48  ;;  %v3682_v33 = vmax.f32 %v3650_v14, 0.0  ;;  %v3653_v0 = vadd.f32 %v14702_v17, %v3251_v13  ;;  %v3890_v41 = vrot.slane %v17229_v60, 1  ;;  %v13783_v39 = vpack.c.bf16 %v17229_v60, %v17229_v60 }
 0x2ce   : > { %v3538_v50 = vpop.f32.mrf.mxu1  ;;  %v17246_v54 = vld [vmem:[#allocation3 + $0x10] sm:$0xff]  ;;  %v17255_v59 = vadd.f32 %v3229_v62, %v2860_v29  ;;  %v14682_v7 = vpop.f32.mrf.mxu0  ;;  %v3782_v32 = vrot.slane %v17229_v60, 7 }
 0x2cf   : > { %3714 = vst.msk [vmem:[#allocation3 + $0x30] sm:$0xff] %vm20455_vm4, %v3682_v33  ;;  %v3685_v20 = vmax.f32 %v3653_v0, 0.0  ;;  %v3651_v13 = vadd.f32 %v3538_v50, %v17152_v2  ;;  %v13781_v37 = vpack.c.bf16 %v17246_v54, %v17246_v54  ;;  %v3888_v55 = vrot.slane %v17246_v54, 1  ;;  %v15013_v60 = vld [vmem:[%s20286_s5 + $0xf0] sm:$0xff]  }
 0x2d0   : > { %v14705_v44 = vpop.f32.mrf.mxu1  ;;  %v17258_v27 = vld [vmem:[#allocation3 + $0x28] sm:$0xff]  ;;  %v3780_v16 = vrot.slane %v17246_v54, 7  ;;  %v17264_v26 = vadd.f32 %v14682_v7, %v2871_v15  ;;  %v3232_v29 = vpop.f32.mrf.mxu0 }
 0x2d1   : > { %3717 = vst.msk [vmem:[#allocation3 + $0x48] sm:$0xff] %vm20455_vm4, %v3685_v20  ;;  %v3683_v2 = vmax.f32 %v3651_v13, 0.0  ;;  %v3656_v35 = vadd.f32 %v14705_v44, %v17155_v6  ;;  %4287 = vrot.lane.b32.xlu0 %v13781_v37, %s15393_s20  ;;  %v3891_v58 = vrot.slane %v17258_v27, 1  ;;  %v3955_v63 = vsel %vm20799_vm5, %v20797_v24, %v3888_v55  ;;  %v20800_v6 = vld [vmem:[#allocation49_spill] sm:$0xff]  ;;  %vm20811_vm5 = vmmov %vm20804_vm1 }
 0x2d2   : > { %v3551_v40 = vpop.f32.mrf.mxu1  ;;  %v17275_v4 = vld [vmem:[#allocation3 + $0x18] sm:$0xff]  ;;  %v13784_v15 = vpack.c.bf16 %v17258_v27, %v17258_v27  ;;  %v3847_v52 = vsel %vm20801_vm9, %v20800_v6, %v3780_v16  ;;  %v3783_v48 = vrot.slane %v17258_v27, 7  ;;  %v3959_v38 = vsel %vm15656_vm10, 0.0, %v3955_v63 }
 0x2d3   : > { %3715 = vst.msk [vmem:[#allocation3 + $0x38] sm:$0xff] %vm20455_vm4, %v3683_v2  ;;  %v3688_v14 = vmax.f32 %v3656_v35, 0.0  ;;  %v17288_v21 = vadd.f32 %v3232_v29, %v2863_v43  ;;  %v3654_v23 = vadd.f32 %v3551_v40, %v17161_v45  ;;  %v13816_v17 = vpack.c.bf16 %v3959_v38, %v3959_v38 }
 0x2d4   : > { %v14706_v33 = vpop.f32.mrf.mxu1  ;;  %v13782_v0 = vpack.c.bf16 %v17275_v4, %v17275_v4  ;;  %v3889_v25 = vrot.slane %v17275_v4, 1  ;;  %v3952_v62 = vsel %vm20803_vm6, %v3890_v41, %v3891_v58  ;;  %v17296_v50 = vld [vmem:[#allocation3 + $0x40] sm:$0xff]  ;;  %v3852_v35 = vsel %vm15702_vm13, 0.0, %v3847_v52  ;;  %vm20812_vm6 = vmmov %vm20804_vm1 }
 0x2d5   : > { %3720 = vst.msk [vmem:[#allocation3 + $0x60] sm:$0xff] %vm20455_vm4, %v3688_v14  ;;  %v3686_v20 = vmax.f32 %v3654_v23, 0.0  ;;  %v3657_v43 = vadd.f32 %v14706_v33, %v17164_v49  ;;  %4291 = vrot.lane.b32.xlu0 %v13783_v39, %s15393_s20  ;;  %v13819_v45 = vpack.c.bf16 %v3952_v62, %v3952_v62  ;;  %v3894_v13 = vrot.slane %v17296_v50, 1 }
 0x2d6   : > { %4573 = vst.msk [vmem:[#allocation6 + $0xc] sm:$0xf] %vm20454_vm8, %v13816_v17  ;;  %4289 = vrot.lane.b32.xlu1 %v13782_v0, %s15393_s20  ;;  %v3954_v37 = vsel %vm20804_vm1, %v3888_v55, %v3889_v25  ;;  %v3953_v7 = vsel %vm20805_vm3, %v3889_v25, %v3890_v41  ;;  %v3554_v44 = vpop.f32.mrf.mxu1  ;;  %v17308_v2 = vld [vmem:[#allocation3 + $0x30] sm:$0xff]  ;;  %v13787_v49 = vpack.c.bf16 %v17296_v50, %v17296_v50  ;;  %vm20816_vm3 = vmmov %vm20804_vm1 }
 0x2d7   : > { %3718 = vst.msk [vmem:[#allocation3 + $0x50] sm:$0xff] %vm20455_vm4, %v3686_v20  ;;  %v3689_v9 = vmax.f32 %v3657_v43, 0.0  ;;  %v13817_v63 = vpack.c.bf16 %v3954_v37, %v3954_v37  ;;  %v3961_v40 = vsel %vm15678_vm11, 0.0, %v3953_v7  ;;  %v3655_v55 = vadd.f32 %v3554_v44, %v17168_v18 }
 0x2d8   : > { %4576 = vst.msk [vmem:[#allocation6 + $0x24] sm:$0xf] %vm20454_vm8, %v13819_v45  ;;  %v13818_v41 = vpack.c.bf16 %v3961_v40, %v3961_v40  ;;  %v14709_v14 = vpop.f32.mrf.mxu1  ;;  %v3892_v38 = vrot.slane %v17308_v2, 1  ;;  %v13785_v23 = vpack.c.bf16 %v17308_v2, %v17308_v2  ;;  %v17322_v17 = vld [vmem:[#allocation3 + $0x48] sm:$0xff]  ;;  %v13745_v52 = vpack.c.bf16 %v3852_v35, %v3852_v35 }
 0x2d9   : > { %3721 = vst.msk [vmem:[#allocation3 + $0x68] sm:$0xff] %vm20455_vm4, %v3689_v9  ;;  %v3687_v33 = vmax.f32 %v3655_v55, 0.0  ;;  %v3660_v0 = vadd.f32 %v14709_v14, %v17173_v34  ;;  %v3895_v18 = vrot.slane %v17322_v17, 1  ;;  %v13788_v25 = vpack.c.bf16 %v17322_v17, %v17322_v17 }
 0x2da   : > { %4574 = vst.msk [vmem:[#allocation6 + $0x14] sm:$0xf] %vm20454_vm8, %v13817_v63  ;;  %4575 = vst.msk [vmem:[#allocation6 + $0x1c] sm:$0xf] %vm20454_vm8, %v13818_v41  ;;  %4293 = vrot.lane.b32.xlu1 %v13784_v15, %s15393_s20  ;;  %v3951_v62 = vsel %vm20808_vm7, %v3891_v58, %v3892_v38  ;;  %4295 = vrot.lane.b32.xlu0 %v13785_v23, %s15393_s20  ;;  %v3567_v20 = vpop.f32.mrf.mxu1  ;;  %v17335_v43 = vld [vmem:[#allocation3 + $0x38] sm:$0xff]  ;;  %v3781_v34 = vrot.slane %v17275_v4, 7  ;;  %v17345_v45 = vsel %vm20809_vm12, %v3782_v32, %v3783_v48 }
 0x2db   : > { %4141 = vst.msk [vmem:[#allocation6 + $0x10] sm:$0xf] %vm20454_vm8, %v13745_v52  ;;  %v3784_v15 = vrot.slane %v17308_v2, 7  ;;  %v3692_v58 = vmax.f32 %v3660_v0, 0.0  ;;  %v3963_v7 = vsel %vm15755_vm14, 0.0, %v3951_v62  ;;  %v3658_v44 = vadd.f32 %v3567_v20, %v17178_v57  ;;  %v20813_v0 = vld [vmem:[#allocation50_spill] sm:$0xff]  ;;  %vm20817_vm7 = vmmov %vm20801_vm9 }
 0x2dc   : > { %3719 = vst.msk [vmem:[#allocation3 + $0x58] sm:$0xff] %vm20455_vm4, %v3687_v33  ;;  %v3893_v4 = vrot.slane %v17335_v43, 1  ;;  %v13820_v35 = vpack.c.bf16 %v3963_v7, %v3963_v7  ;;  %v14710_v9 = vpop.f32.mrf.mxu1  ;;  %v13786_v63 = vpack.c.bf16 %v17335_v43, %v17335_v43  ;;  %v3948_v40 = vsel %vm20811_vm5, %v3894_v13, %v3895_v18  ;;  %v17369_v33 = vld [vmem:[#allocation3 + $0x60] sm:$0xff]  ;;  %vm20820_vm5 = vmmov %vm20804_vm1 }
 0x2dd   : > { %v3846_v55 = vsel %vm20801_vm9, %v3780_v16, %v3781_v34  ;;  %v4609_v41 = vld [vmem:[#allocation6 + $0x8] sm:$0xff]  ;;  %3724 = vst.msk [vmem:[#allocation3 + $0x80] sm:$0xff] %vm20455_vm4, %v3692_v58  ;;  %v3690_v57 = vmax.f32 %v3658_v44, 0.0  ;;  %v3661_v14 = vadd.f32 %v14710_v9, %v17185_v30 }
 0x2de   : > { %v3950_v23 = vsel %vm20812_vm6, %v3892_v38, %v3893_v4  ;;  %v3949_v52 = vsel %vm20804_vm1, %v3893_v4, %v3894_v13  ;;  %10016 = vst.msk [vmem:[#allocation6 + $0x8] sm:$0xf] %vm20454_vm8, %v20813_v0  ;;  %4577 = vst.msk [vmem:[#allocation6 + $0x2c] sm:$0xf] %vm20454_vm8, %v13820_v35  ;;  %4297 = vrot.lane.b32.xlu1 %v13786_v63, %s15393_s20  ;;  %4299 = vrot.lane.b32.xlu0 %v13787_v49, %s15393_s20  ;;  %v3570_v30 = vpop.f32.mrf.mxu1  ;;  %v20815_v38 = vld [vmem:[#allocation52_spill] sm:$0xff]  ;;  %v17380_v58 = vld [vmem:[#allocation3 + $0x50] sm:$0xff] }
 0x2df   : > { %v13821_v54 = vpack.c.bf16 %v3950_v23, %v3950_v23  ;;  %v3965_v62 = vsel %vm15797_vm15, 0.0, %v3949_v52  ;;  %v12645_v20 = vcombine.high %v20815_v38, %v4609_v41  ;;  %v12644_v13 = vcombine.low %v20815_v38, %v4609_v41  ;;  %3722 = vst.msk [vmem:[#allocation3 + $0x70] sm:$0xff] %vm20455_vm4, %v3690_v57  ;;  %v15006_v9 = vld [vmem:[%s20286_s5 + $0xf8] sm:$0xff]   ;;  %vm20823_vm6 = vmmov %vm20804_vm1 }
 0x2e0   : > { %v3693_v7 = vmax.f32 %v3661_v14, 0.0  ;;  %v13822_v44 = vpack.c.bf16 %v3965_v62, %v3965_v62  ;;  %v3659_v4 = vadd.f32 %v3570_v30, %v17190_v61  ;;  %v13823_v35 = vpack.c.bf16 %v3948_v40, %v3948_v40  ;;  %v14713_v49 = vpop.f32.mrf.mxu1  ;;  %v17395_v40 = vld [vmem:[#allocation3 + $0x68] sm:$0xff] }
 0x2e1   : > { %4578 = vst.msk [vmem:[#allocation6 + $0x34] sm:$0xf] %vm20454_vm8, %v13821_v54  ;;  %12688 = vmatprep.mubr.msk.bf16.mxu0 %vm20455_vm4, %v12645_v20  ;;  %v3896_v63 = vrot.slane %v17380_v58, 1  ;;  %v13789_v41 = vpack.c.bf16 %v17380_v58, %v17380_v58  ;;  %v3898_v57 = vrot.slane %v17369_v33, 1  ;;  %v13791_v61 = vpack.c.bf16 %v17369_v33, %v17369_v33 }
 0x2e2   : > { %3725 = vst.msk [vmem:[#allocation3 + $0x88] sm:$0xff] %vm20455_vm4, %v3693_v7  ;;  %v3691_v14 = vmax.f32 %v3659_v4, 0.0  ;;  %v3664_v23 = vadd.f32 %v14713_v49, %v17193_v46  ;;  %4968 = vmatmul.mubr.bf16.vlgmr.msra.gmra.mxu0 %v12644_v13  ;;  %v3899_v52 = vrot.slane %v17395_v40, 1  ;;  %v13792_v0 = vpack.c.bf16 %v17395_v40, %v17395_v40  ;;  %4301 = vrot.lane.b32.xlu1 %v13788_v25, %s15393_s20  ;;  %v3583_v62 = vpop.f32.mrf.mxu1  ;;  %v20818_v13 = vld [vmem:[#allocation17_spill] sm:$0xff] }
 0x2e3   : > { %4579 = vst.msk [vmem:[#allocation6 + $0x3c] sm:$0xf] %vm20454_vm8, %v13822_v44  ;;  %4580 = vst.msk [vmem:[#allocation6 + $0x44] sm:$0xf] %vm20454_vm8, %v13823_v35  ;;  %v3947_v54 = vsel %vm20816_vm3, %v3895_v18, %v3896_v63  ;;  %4303 = vrot.lane.b32.xlu0 %v13789_v41, %s15393_s20  ;;  %v17410_v30 = vld [vmem:[#allocation3 + $0x58] sm:$0xff]  ;;  %v13746_v46 = vpack.c.bf16 %v3846_v55, %v3846_v55  ;;  %v3845_v38 = vsel %vm20817_vm7, %v3781_v34, %v3782_v32 }
 0x2e4   : > { %v3785_v20 = vrot.slane %v17335_v43, 7  ;;  %3723 = vst.msk [vmem:[#allocation3 + $0x78] sm:$0xff] %vm20455_vm4, %v3691_v14  ;;  %v3696_v25 = vmax.f32 %v3664_v23, 0.0  ;;  %vm20819_vm12 = vnez %v20818_v13  ;;  %v3662_v18 = vadd.f32 %v3583_v62, %v17196_v53  ;;  %5932 = vmatpush1.bf16.msra.mxu0 %v15006_v9  ;;  %v14714_v4 = vpop.f32.mrf.mxu1  ;;  %v17429_v35 = vld [vmem:[#allocation3 + $0x80] sm:$0xff]  ;;  %v20824_v62 = vld [vmem:[#allocation18_spill] sm:$0xff]  ;;  %vm20826_vm7 = vmmov %vm20804_vm1 }
 0x2e5   : > { %v3967_v7 = vsel %vm20819_vm12, 0.0, %v3947_v54  ;;  %v3897_v44 = vrot.slane %v17410_v30, 1  ;;  %v13790_v32 = vpack.c.bf16 %v17410_v30, %v17410_v30  ;;  %v3944_v34 = vsel %vm20820_vm5, %v3898_v57, %v3899_v52  ;;  %4142 = vst.msk [vmem:[#allocation6 + $0x18] sm:$0xf] %vm20454_vm8, %v13746_v46  ;;  %v20821_v53 = vld [vmem:[#allocation13_spill] sm:$0xff]  ;;  %5933 = vmatprep.subr.bf16.mxu0 %v20792_v5 }
 0x2e6   : > { %v13824_v55 = vpack.c.bf16 %v3967_v7, %v3967_v7  ;;  %vm20822_vm9 = vnez %v20821_v53  ;;  %3728 = vst.msk [vmem:[#allocation3 + $0xa0] sm:$0xff] %vm20455_vm4, %v3696_v25  ;;  %v3694_v9 = vmax.f32 %v3662_v18, 0.0  ;;  %v3665_v41 = vadd.f32 %v14714_v4, %v17206_v51  ;;  %v17446_v7 = vld [vmem:[#allocation3 + $0x70] sm:$0xff] }
 0x2e7   : > { %v3854_v49 = vsel %vm20822_vm9, 0.0, %v3845_v38  ;;  %v3946_v14 = vsel %vm20823_vm6, %v3896_v63, %v3897_v44  ;;  %v3945_v23 = vsel %vm20804_vm1, %v3897_v44, %v3898_v57  ;;  %4305 = vrot.lane.b32.xlu1 %v13790_v32, %s15393_s20  ;;  %vm20825_vm3 = vnez %v20824_v62  ;;  %4307 = vrot.lane.b32.xlu0 %v13791_v61, %s15393_s20  ;;  %v3586_v38 = vpop.f32.mrf.mxu1 }
 0x2e8   : > { %4581 = vst.msk [vmem:[#allocation6 + $0x4c] sm:$0xf] %vm20454_vm8, %v13824_v55  ;;  %v13825_v54 = vpack.c.bf16 %v3946_v14, %v3946_v14  ;;  %v3969_v46 = vsel %vm20825_vm3, 0.0, %v3945_v23  ;;  %v13827_v25 = vpack.c.bf16 %v3944_v34, %v3944_v34  ;;  %v3902_v51 = vrot.slane %v17429_v35, 1  ;;  %5934 = vmatpush1.bf16.msra.mxu0 %v15013_v60  ;;  %v15016_v55 = vld [vmem:[%s20286_s5 + $0xe8] sm:$0xff]  }
 0x2e9   : > { %3726 = vst.msk [vmem:[#allocation3 + $0x90] sm:$0xff] %vm20455_vm4, %v3694_v9  ;;  %v3697_v63 = vmax.f32 %v3665_v41, 0.0  ;;  %v13826_v57 = vpack.c.bf16 %v3969_v46, %v3969_v46  ;;  %v3663_v18 = vadd.f32 %v3586_v38, %v17211_v8  ;;  %v3900_v44 = vrot.slane %v17446_v7, 1  ;;  %v14717_v61 = vpop.f32.mrf.mxu1  ;;  %v17461_v34 = vld [vmem:[#allocation3 + $0x88] sm:$0xff]  ;;  %5935 = vmatprep.subr.bf16.mxu0 %v20792_v5 }
 0x2ea   : > { %4582 = vst.msk [vmem:[#allocation6 + $0x54] sm:$0xf] %vm20454_vm8, %v13825_v54  ;;  %4584 = vst.msk [vmem:[#allocation6 + $0x64] sm:$0xf] %vm20454_vm8, %v13827_v25  ;;  %v13793_v4 = vpack.c.bf16 %v17446_v7, %v17446_v7  ;;  %v13795_v32 = vpack.c.bf16 %v17429_v35, %v17429_v35  ;;  %v13747_v8 = vpack.c.bf16 %v3854_v49, %v3854_v49  ;;  %v3903_v23 = vrot.slane %v17461_v34, 1  ;;  %v20827_v49 = vld [vmem:[#allocation20_spill] sm:$0xff] }
 0x2eb   : > { %v13748_v60 = vpack.c.bf16 %v17345_v45, %v17345_v45  ;;  %3729 = vst.msk [vmem:[#allocation3 + $0xa8] sm:$0xff] %vm20455_vm4, %v3697_v63  ;;  %v3695_v9 = vmax.f32 %v3663_v18, 0.0  ;;  %v3668_v41 = vadd.f32 %v14717_v61, %v17216_v36  ;;  %v3943_v14 = vsel %vm20826_vm7, %v3899_v52, %v3900_v44  ;;  %4309 = vrot.lane.b32.xlu1 %v13792_v0, %s15393_s20  ;;  %v3599_v45 = vpop.f32.mrf.mxu1  ;;  %v17476_v46 = vld [vmem:[#allocation3 + $0x78] sm:$0xff]  ;;  %v20831_v61 = vld [vmem:[#allocation22_spill] sm:$0xff] }
 0x2ec   : > { %4583 = vst.msk [vmem:[#allocation6 + $0x5c] sm:$0xf] %vm20454_vm8, %v13826_v57  ;;  %vm20828_vm5 = vnez %v20827_v49  ;;  %4311 = vrot.lane.b32.xlu0 %v13793_v4, %s15393_s20  ;;  %v13796_v38 = vpack.c.bf16 %v17461_v34, %v17461_v34  ;;  %4143 = vst.msk [vmem:[#allocation6 + $0x20] sm:$0xf] %vm20454_vm8, %v13747_v8  ;;  %vm20829_vm6 = vcmp.lt.s32.totalorder %v20798_v1, 1  ;;  %v3666_v63 = vadd.f32 %v3599_v45, %v17222_v11 }
 0x2ed   : > { %v3971_v54 = vsel %vm20828_vm5, 0.0, %v3943_v14  ;;  %4144 = vst.msk [vmem:[#allocation6 + $0x28] sm:$0xf] %vm20454_vm8, %v13748_v60  ;;  %v3843_v36 = vsel %vm20829_vm6, %v3783_v48, %v3784_v15  ;;  %vm20830_vm1 = vmmov %vm20829_vm6  ;;  %v3700_v0 = vmax.f32 %v3668_v41, 0.0  ;;  %v3901_v57 = vrot.slane %v17476_v46, 1  ;;  %5936 = vmatpush1.bf16.msra.mxu0 %v15016_v55  ;;  %v14718_v27 = vpop.f32.mrf.mxu1  ;;  %v17501_v2 = vld [vmem:[#allocation3 + $0xa0] sm:$0xff] }
 0x2ee   : > { %v3842_v52 = vsel %vm20830_vm1, %v3784_v15, %v3785_v20  ;;  %3727 = vst.msk [vmem:[#allocation3 + $0x98] sm:$0xff] %vm20455_vm4, %v3695_v9  ;;  %v13828_v25 = vpack.c.bf16 %v3971_v54, %v3971_v54  ;;  %v13794_v48 = vpack.c.bf16 %v17476_v46, %v17476_v46  ;;  %v3940_v18 = vsel %vm20826_vm7, %v3902_v51, %v3903_v23  ;;  %vm20833_vm1 = vmmov %vm20826_vm7  ;;  %v15019_v9 = vld [vmem:[%s20286_s5 + $0xe0] sm:$0xff]  }
 0x2ef   : > { %vm20832_vm6 = vnez %v20831_v61  ;;  %v13750_v4 = vpack.c.bf16 %v3842_v52, %v3842_v52  ;;  %5937 = vmatprep.subr.bf16.mxu0 %v20792_v5  ;;  %3732 = vst.msk [vmem:[#allocation3 + $0xc0] sm:$0xff] %vm20455_vm4, %v3700_v0  ;;  %v3698_v11 = vmax.f32 %v3666_v63, 0.0  ;;  %v3669_v55 = vadd.f32 %v14718_v27, %v17225_v12  ;;  %vm20834_vm7 = vmmov %vm20833_vm1  ;;  %v20835_v14 = vld [vmem:[#allocation21_spill] sm:$0xff]  ;;  %v3602_v45 = vpop.f32.mrf.mxu1 }
 0x2f0   : > { %v3856_v15 = vsel %vm20832_vm6, 0.0, %v3843_v36  ;;  %4585 = vst.msk [vmem:[#allocation6 + $0x6c] sm:$0xf] %vm20454_vm8, %v13828_v25  ;;  %v3942_v8 = vsel %vm20833_vm1, %v3900_v44, %v3901_v57  ;;  %v3941_v60 = vsel %vm20834_vm7, %v3901_v57, %v3902_v51  ;;  %4313 = vrot.lane.b32.xlu1 %v13794_v48, %s15393_s20  ;;  %vm20836_vm0 = vnez %v20835_v14  ;;  %4315 = vrot.lane.b32.xlu0 %v13795_v32, %s15393_s20  ;;  %v17520_v36 = vld [vmem:[#allocation3 + $0x90] sm:$0xff] }
 0x2f1   : > { %v13829_v41 = vpack.c.bf16 %v3942_v8, %v3942_v8  ;;  %v3973_v54 = vsel %vm20836_vm0, 0.0, %v3941_v60  ;;  %v13831_v12 = vpack.c.bf16 %v3940_v18, %v3940_v18  ;;  %v3906_v44 = vrot.slane %v17501_v2, 1  ;;  %4146 = vst.msk [vmem:[#allocation6 + $0x38] sm:$0xf] %vm20454_vm8, %v13750_v4  ;;  %5938 = vmatpush1.bf16.msra.mxu0 %v15019_v9  ;;  %v14721_v32 = vpop.f32.mrf.mxu1  ;;  %v20837_v8 = vld [vmem:[#allocation23_spill] sm:$0xff] }
 0x2f2   : > { %3730 = vst.msk [vmem:[#allocation3 + $0xb0] sm:$0xff] %vm20455_vm4, %v3698_v11  ;;  %v3701_v51 = vmax.f32 %v3669_v55, 0.0  ;;  %v13830_v52 = vpack.c.bf16 %v3973_v54, %v3973_v54  ;;  %v3667_v0 = vadd.f32 %v3602_v45, %v17227_v19  ;;  %v3904_v25 = vrot.slane %v17520_v36, 1  ;;  %v17533_v27 = vld [vmem:[#allocation3 + $0xa8] sm:$0xff]  ;;  %5939 = vmatprep.subr.bf16.mxu0 %v20792_v5 }
 0x2f3   : > { %4586 = vst.msk [vmem:[#allocation6 + $0x74] sm:$0xf] %vm20454_vm8, %v13829_v41  ;;  %4588 = vst.msk [vmem:[#allocation6 + $0x84] sm:$0xf] %vm20454_vm8, %v13831_v12  ;;  %v13797_v63 = vpack.c.bf16 %v17520_v36, %v17520_v36  ;;  %v13799_v57 = vpack.c.bf16 %v17501_v2, %v17501_v2  ;;  %v13749_v48 = vpack.c.bf16 %v3856_v15, %v3856_v15  ;;  %v3786_v18 = vrot.slane %v17296_v50, 7  ;;  %v3615_v50 = vpop.f32.mrf.mxu1 }
 0x2f4   : > { %3733 = vst.msk [vmem:[#allocation3 + $0xc8] sm:$0xff] %vm20455_vm4, %v3701_v51  ;;  %v3699_v19 = vmax.f32 %v3667_v0, 0.0  ;;  %v3672_v4 = vadd.f32 %v14721_v32, %v17232_v22  ;;  %v3939_v11 = vsel %vm20833_vm1, %v3903_v23, %v3904_v25  ;;  %v3907_v55 = vrot.slane %v17533_v27, 1  ;;  %4317 = vrot.lane.b32.xlu1 %v13796_v38, %s15393_s20 }
 0x2f5   : > { %4587 = vst.msk [vmem:[#allocation6 + $0x7c] sm:$0xf] %vm20454_vm8, %v13830_v52  ;;  %vm20838_vm7 = vnez %v20837_v8  ;;  %4319 = vrot.lane.b32.xlu0 %v13797_v63, %s15393_s20  ;;  %v17547_v60 = vld [vmem:[#allocation3 + $0x98] sm:$0xff]  ;;  %v13800_v9 = vpack.c.bf16 %v17533_v27, %v17533_v27  ;;  %4145 = vst.msk [vmem:[#allocation6 + $0x30] sm:$0xf] %vm20454_vm8, %v13749_v48  ;;  %vm20839_vm1 = vcmp.lt.s32.totalorder %v20798_v1, 1  ;;  %v3670_v54 = vadd.f32 %v3615_v50, %v17234_v3  ;;  %v14722_v12 = vpop.f32.mrf.mxu1 }
 0x2f6   : > { %v3975_v15 = vsel %vm20838_vm7, 0.0, %v3939_v11  ;;  %v3841_v22 = vsel %vm20839_vm1, %v3785_v20, %v3786_v18  ;;  %v3787_v23 = vrot.slane %v17322_v17, 7  ;;  %3731 = vst.msk [vmem:[#allocation3 + $0xb8] sm:$0xff] %vm20455_vm4, %v3699_v19  ;;  %v3704_v38 = vmax.f32 %v3672_v4, 0.0  ;;  %v17564_v52 = vld [vmem:[#allocation3 + $0xc0] sm:$0xff]  ;;  %v20841_v20 = vld [vmem:[#allocation19_spill] sm:$0xff] }
 0x2f7   : > { %v13832_v41 = vpack.c.bf16 %v3975_v15, %v3975_v15  ;;  %v3905_v45 = vrot.slane %v17547_v60, 1  ;;  %v13798_v51 = vpack.c.bf16 %v17547_v60, %v17547_v60  ;;  %vm20840_vm8 = vcmp.lt.s32.totalorder %v20798_v1, 7  ;;  %v15024_v4 = vld [vmem:[%s20286_s5 + $0xd8] sm:$0xff]   ;;  %v3618_v50 = vpop.f32.mrf.mxu1 }
 0x2f8   : > { %v3936_v43 = vsel %vm20840_vm8, %v3906_v44, %v3907_v55  ;;  %vm20842_vm1 = vnez %v20841_v20  ;;  %vm20843_vm4 = vcmp.lt.s32.totalorder %v20798_v1, 1  ;;  %vm20844_vm7 = vcmask 523264   ;;  %vm20846_vm5 = vmmov %vm20840_vm8  ;;  %5940 = vmatpush1.bf16.msra.mxu0 %v15024_v4  ;;  %v20854_v4 = vld [vmem:[#allocation35_spill] sm:$0xff] }
 0x2f9   : > { %v3858_v0 = vsel %vm20842_vm1, 0.0, %v3841_v22  ;;  %v3840_v32 = vsel %vm20843_vm4, %v3786_v18, %v3787_v23  ;;  %3736 = vst.msk [vmem:[#allocation3 + $0xe0] sm:$0xff] %vm20844_vm7, %v3704_v38  ;;  %vm20845_vm0 = vcmask 519168   ;;  %v3702_v3 = vmax.f32 %v3670_v54, 0.0  ;;  %vm20847_vm8 = vmmov %vm20846_vm5  ;;  %4321 = vrot.lane.b32.xlu1 %v13798_v51, %s15393_s20  ;;  %v20848_v18 = vld [vmem:[#allocation24_spill] sm:$0xff]  ;;  %4323 = vrot.lane.b32.xlu0 %v13799_v57, %s15393_s20  ;;  %v17586_v22 = vld [vmem:[#allocation3 + $0xb0] sm:$0xff] }
 0x2fa   : > { %4589 = vst.msk [vmem:[#allocation6 + $0x8c] sm:$0xf] %vm20845_vm0, %v13832_v41  ;;  %v3673_v63 = vadd.f32 %v14722_v12, %v17240_v31  ;;  %v3938_v48 = vsel %vm20846_vm5, %v3904_v25, %v3905_v45  ;;  %v3937_v19 = vsel %vm20847_vm8, %v3905_v45, %v3906_v44  ;;  %v13835_v31 = vpack.c.bf16 %v3936_v43, %v3936_v43  ;;  %vm20849_vm4 = vmmov %vm20844_vm7  ;;  %v14725_v45 = vpop.f32.mrf.mxu1 }
 0x2fb   : > { %v13833_v11 = vpack.c.bf16 %v3938_v48, %v3938_v48  ;;  %v3977_v15 = vsel %vm16034_vm2, 0.0, %v3937_v19  ;;  %v3910_v25 = vrot.slane %v17564_v52, 1  ;;  %3734 = vst.msk [vmem:[#allocation3 + $0xd0] sm:$0xff] %vm20849_vm4, %v3702_v3  ;;  %v3671_v41 = vadd.f32 %v3618_v50, %v17242_v47  ;;  %vm20850_vm5 = vmmov %vm20845_vm0  ;;  %v17598_v51 = vld [vmem:[#allocation3 + $0xc8] sm:$0xff]  ;;  %5941 = vmatprep.subr.bf16.mxu0 %v20792_v5 }
 0x2fc   : > { %v3705_v44 = vmax.f32 %v3673_v63, 0.0  ;;  %v13834_v38 = vpack.c.bf16 %v3977_v15, %v3977_v15  ;;  %v3908_v54 = vrot.slane %v17586_v22, 1  ;;  %4592 = vst.msk [vmem:[#allocation6 + $0xa4] sm:$0xf] %vm20850_vm5, %v13835_v31  ;;  %v13801_v57 = vpack.c.bf16 %v17586_v22, %v17586_v22  ;;  %vm20851_vm7 = vmmov %vm20849_vm4 }
 0x2fd   : > { %4590 = vst.msk [vmem:[#allocation6 + $0x94] sm:$0xf] %vm20845_vm0, %v13833_v11  ;;  %v13803_v12 = vpack.c.bf16 %v17564_v52, %v17564_v52  ;;  %v13751_v43 = vpack.c.bf16 %v3858_v0, %v3858_v0  ;;  %v13752_v3 = vpack.c.bf16 %v3840_v32, %v3840_v32  ;;  %vm20852_vm8 = vmmov %vm20845_vm0  ;;  %v3703_v47 = vmax.f32 %v3671_v41, 0.0  ;;  %4325 = vrot.lane.b32.xlu1 %v13800_v9, %s15393_s20  ;;  %v3631_v32 = vpop.f32.mrf.mxu1  ;;  %v17611_v11 = vld [vmem:[#allocation3 + $0xb8] sm:$0xff] }
 0x2fe   : > { %3737 = vst.msk [vmem:[#allocation3 + $0xe8] sm:$0xff] %vm20851_vm7, %v3705_v44  ;;  %v3676_v63 = vadd.f32 %v14725_v45, %v17244_v42  ;;  %vm20853_vm4 = vcmp.lt.s32.totalorder %v20798_v1, 7  ;;  %v3911_v19 = vrot.slane %v17598_v51, 1  ;;  %vm20855_vm0 = vnez %v20854_v4  ;;  %4327 = vrot.lane.b32.xlu0 %v13801_v57, %s15393_s20  ;;  %vm20856_vm7 = vmmov %vm20850_vm5 }
 0x2ff   : > { %4591 = vst.msk [vmem:[#allocation6 + $0x9c] sm:$0xf] %vm20852_vm8, %v13834_v38  ;;  %v3935_v48 = vsel %vm20853_vm4, %v3907_v55, %v3908_v54  ;;  %v13804_v15 = vpack.c.bf16 %v17598_v51, %v17598_v51  ;;  %v3788_v42 = vrot.slane %v17380_v58, 7  ;;  %v3789_v55 = vrot.slane %v17410_v30, 7  ;;  %v14726_v38 = vpop.f32.mrf.mxu1  ;;  %vm20861_vm2 = vmmov %vm20853_vm4 }
 0x300   : > { %v3979_v0 = vsel %vm20855_vm0, 0.0, %v3935_v48  ;;  %4147 = vst.msk [vmem:[#allocation6 + $0x40] sm:$0xf] %vm20850_vm5, %v13751_v43  ;;  %vm20857_vm8 = vcmask 523264   ;;  %v3708_v9 = vmax.f32 %v3676_v63, 0.0  ;;  %v3674_v31 = vadd.f32 %v3631_v32, %v17255_v59  ;;  %v17626_v57 = vld [vmem:[#allocation3 + $0xe0] sm:$0xff] }
 0x301   : > { %4148 = vst.msk [vmem:[#allocation6 + $0x48] sm:$0xf] %vm20856_vm7, %v13752_v3  ;;  %v13836_v50 = vpack.c.bf16 %v3979_v0, %v3979_v0  ;;  %v3909_v44 = vrot.slane %v17611_v11, 1  ;;  %v13802_v41 = vpack.c.bf16 %v17611_v11, %v17611_v11  ;;  %v3932_v45 = vsel %vm20853_vm4, %v3910_v25, %v3911_v19  ;;  %v3634_v0 = vpop.f32.mrf.mxu1 }
 0x302   : > { %3735 = vst.msk [vmem:[#allocation3 + $0xd8] sm:$0xff] %vm20857_vm8, %v3703_v47  ;;  %vm20858_vm5 = vcmp.lt.s32.totalorder %v20798_v1, 1  ;;  %3740 = vst.msk [vmem:[#allocation3 + $0x100] sm:$0xff] %vm20857_vm8, %v3708_v9  ;;  %vm20860_vm0 = vcmask 519168   ;;  %v3706_v43 = vmax.f32 %v3674_v31, 0.0  ;;  %v3677_v3 = vadd.f32 %v14726_v38, %v17264_v26  ;;  %4331 = vrot.lane.b32.xlu0 %v13803_v12, %s15393_s20  ;;  %v20867_v38 = vld [vmem:[#allocation26_spill] sm:$0xff] }
 0x303   : > { %v3839_v58 = vsel %vm20858_vm5, %v3787_v23, %v3788_v42  ;;  %vm20859_vm7 = vmmov %vm20858_vm5  ;;  %4593 = vst.msk [vmem:[#allocation6 + $0xac] sm:$0xf] %vm20860_vm0, %v13836_v50  ;;  %v3934_v47 = vsel %vm20853_vm4, %v3908_v54, %v3909_v44  ;;  %v3933_v17 = vsel %vm20861_vm2, %v3909_v44, %v3910_v25  ;;  %4329 = vrot.lane.b32.xlu1 %v13802_v41, %s15393_s20  ;;  %v20862_v23 = vld [vmem:[#allocation40_spill] sm:$0xff]  ;;  %v3914_v26 = vrot.slane %v17626_v57, 1 }
 0x304   : > { %v3838_v59 = vsel %vm20859_vm7, %v3788_v42, %v3789_v55  ;;  %v13837_v63 = vpack.c.bf16 %v3934_v47, %v3934_v47  ;;  %vm20863_vm5 = vnez %v20862_v23  ;;  %v13839_v32 = vpack.c.bf16 %v3932_v45, %v3932_v45  ;;  %v17647_v42 = vld [vmem:[#allocation3 + $0xd0] sm:$0xff]  ;;  %vm20864_vm0 = vmmov %vm20857_vm8 }
 0x305   : > { %v3981_v48 = vsel %vm20863_vm5, 0.0, %v3933_v17  ;;  %3738 = vst.msk [vmem:[#allocation3 + $0xf0] sm:$0xff] %vm20864_vm0, %v3706_v43  ;;  %v3709_v54 = vmax.f32 %v3677_v3, 0.0  ;;  %v3675_v25 = vadd.f32 %v3634_v0, %v17288_v21  ;;  %v3912_v50 = vrot.slane %v17647_v42, 1  ;;  %v17659_v44 = vld [vmem:[#allocation3 + $0xe8] sm:$0xff]  ;;  %vm20869_vm4 = vmmov %vm20864_vm0  ;;  %v15027_v17 = vld [vmem:[%s20286_s5 + $0xd0] sm:$0xff]  }
 0x306   : > { %v13838_v9 = vpack.c.bf16 %v3981_v48, %v3981_v48  ;;  %vm20865_vm2 = vcmask 519168   ;;  %v13805_v12 = vpack.c.bf16 %v17647_v42, %v17647_v42  ;;  %v13807_v31 = vpack.c.bf16 %v17626_v57, %v17626_v57  ;;  %5942 = vmatpush1.bf16.msra.mxu0 %v15027_v17  ;;  %v20880_v17 = vld [vmem:[#allocation42_spill] sm:$0xff] }
 0x307   : > { %4594 = vst.msk [vmem:[#allocation6 + $0xb4] sm:$0xf] %vm20865_vm2, %v13837_v63  ;;  %vm20866_vm7 = vmmov %vm20865_vm2  ;;  %vm20868_vm8 = vnez %v20867_v38  ;;  %v13754_v45 = vpack.c.bf16 %v3838_v59, %v3838_v59  ;;  %v3707_v21 = vmax.f32 %v3675_v25, 0.0  ;;  %v3915_v3 = vrot.slane %v17659_v44, 1  ;;  %4333 = vrot.lane.b32.xlu1 %v13804_v15, %s15393_s20  ;;  %5943 = vmatprep.subr.bf16.mxu0 %v20792_v5 }
 0x308   : > { %4596 = vst.msk [vmem:[#allocation6 + $0xc4] sm:$0xf] %vm20866_vm7, %v13839_v32  ;;  %v3860_v41 = vsel %vm20868_vm8, 0.0, %v3839_v58  ;;  %vm20870_vm0 = vmmov %vm20865_vm2  ;;  %vm20871_vm2 = vcmp.lt.s32.totalorder %v20798_v1, 7  ;;  %v13808_v47 = vpack.c.bf16 %v17659_v44, %v17659_v44  ;;  %v20872_v58 = vld [vmem:[#allocation41_spill] sm:$0xff]  ;;  %4335 = vrot.lane.b32.xlu0 %v13805_v12, %s15393_s20  ;;  %v3791_v0 = vrot.slane %v17395_v40, 7 }
 0x309   : > { %3741 = vst.msk [vmem:[#allocation3 + $0x108] sm:$0xff] %vm20869_vm4, %v3709_v54  ;;  %v3931_v43 = vsel %vm20871_vm2, %v3911_v19, %v3912_v50  ;;  %vm20873_vm7 = vnez %v20872_v58  ;;  %v17677_v63 = vld [vmem:[#allocation3 + $0xd8] sm:$0xff]  ;;  %v13753_v48 = vpack.c.bf16 %v3860_v41, %v3860_v41  ;;  %vm20874_vm4 = vmmov %vm20870_vm0  ;;  %v3790_v19 = vrot.slane %v17369_v33, 7  ;;  %v17688_v12 = vld [vmem:[#allocation3 + $0x100] sm:$0xff] }
 0x30a   : > { %4595 = vst.msk [vmem:[#allocation6 + $0xbc] sm:$0xf] %vm20870_vm0, %v13838_v9  ;;  %v3983_v59 = vsel %vm20873_vm7, 0.0, %v3931_v43  ;;  %vm20875_vm0 = vcmask 523264   ;;  %v3913_v54 = vrot.slane %v17677_v63, 1  ;;  %v13806_v15 = vpack.c.bf16 %v17677_v63, %v17677_v63  ;;  %vm20878_vm5 = vmmov %vm20874_vm4 }
 0x30b   : > { %4150 = vst.msk [vmem:[#allocation6 + $0x58] sm:$0xf] %vm20874_vm4, %v13754_v45  ;;  %v13840_v32 = vpack.c.bf16 %v3983_v59, %v3983_v59  ;;  %v3928_v9 = vsel %vm20871_vm2, %v3914_v26, %v3915_v3  ;;  %4149 = vst.msk [vmem:[#allocation6 + $0x50] sm:$0xf] %vm20874_vm4, %v13753_v48  ;;  %vm20876_vm7 = vcmp.lt.s32.totalorder %v20798_v1, 1  ;;  %v3792_v41 = vrot.slane %v17446_v7, 7 }
 0x30c   : > { %3739 = vst.msk [vmem:[#allocation3 + $0xf8] sm:$0xff] %vm20875_vm0, %v3707_v21  ;;  %v13843_v25 = vpack.c.bf16 %v3928_v9, %v3928_v9  ;;  %v3837_v33 = vsel %vm20876_vm7, %v3789_v55, %v3790_v19  ;;  %vm20877_vm0 = vmmov %vm20876_vm7  ;;  %v3930_v45 = vsel %vm20871_vm2, %v3912_v50, %v3913_v54  ;;  %v3918_v30 = vrot.slane %v17688_v12, 1  ;;  %4337 = vrot.lane.b32.xlu1 %v13806_v15, %s15393_s20  ;;  %v17712_v59 = vld [vmem:[#allocation3 + $0xf0] sm:$0xff]  ;;  %v20883_v50 = vld [vmem:[#allocation25_spill] sm:$0xff] }
 0x30d   : > { %v3836_v40 = vsel %vm20877_vm0, %v3790_v19, %v3791_v0  ;;  %4597 = vst.msk [vmem:[#allocation6 + $0xcc] sm:$0xf] %vm20878_vm5, %v13840_v32  ;;  %vm20879_vm3 = vmmov %vm20871_vm2  ;;  %v13811_v55 = vpack.c.bf16 %v17688_v12, %v17688_v12  ;;  %v13841_v43 = vpack.c.bf16 %v3930_v45, %v3930_v45  ;;  %vm20881_vm7 = vnez %v20880_v17 }
 0x30e   : > { %v3929_v21 = vsel %vm20879_vm3, %v3913_v54, %v3914_v26  ;;  %4339 = vrot.lane.b32.xlu0 %v13807_v31, %s15393_s20  ;;  %vm20882_vm5 = vmmov %vm20874_vm4  ;;  %vm20884_vm4 = vnez %v20883_v50  ;;  %v13756_v48 = vpack.c.bf16 %v3836_v40, %v3836_v40  ;;  %v3916_v32 = vrot.slane %v17712_v59, 1 }
 0x30f   : > { %v3985_v7 = vsel %vm20881_vm7, 0.0, %v3929_v21  ;;  %4600 = vst.msk [vmem:[#allocation6 + $0xe4] sm:$0xf] %vm20882_vm5, %v13843_v25  ;;  %v3862_v26 = vsel %vm20884_vm4, 0.0, %v3837_v33  ;;  %v13809_v54 = vpack.c.bf16 %v17712_v59, %v17712_v59  ;;  %vm20885_vm3 = vmmov %vm20882_vm5  ;;  %vm20887_vm2 = vcmp.lt.s32.totalorder %v20798_v1, 1 }
 0x310   : > { %v13842_v19 = vpack.c.bf16 %v3985_v7, %v3985_v7  ;;  %v13755_v15 = vpack.c.bf16 %v3862_v26, %v3862_v26  ;;  %4598 = vst.msk [vmem:[#allocation6 + $0xd4] sm:$0xf] %vm20885_vm3, %v13841_v43  ;;  %v17720_v9 = vld [vmem:[#allocation3 + $0x108] sm:$0xff]  ;;  %vm20886_vm0 = vmmov %vm20885_vm3  ;;  %v3835_v31 = vsel %vm20887_vm2, %v3791_v0, %v3792_v41  ;;  %v3793_v25 = vrot.slane %v17476_v46, 7  ;;  %v20891_v7 = vld [vmem:[#allocation28_spill] sm:$0xff]  ;;  %4341 = vrot.lane.b32.xlu1 %v13808_v47, %s15393_s20 }
 0x311   : > { %4152 = vst.msk [vmem:[#allocation6 + $0x68] sm:$0xf] %vm20886_vm0, %v13756_v48  ;;  %v3794_v33 = vrot.slane %v17429_v35, 7  ;;  %v3795_v40 = vrot.slane %v17461_v34, 7  ;;  %vm20888_vm5 = vmmov %vm20886_vm0  ;;  %vm20889_vm7 = vcmp.lt.s32.totalorder %v20798_v1, 7  ;;  %v3919_v21 = vrot.slane %v17720_v9, 1 }
 0x312   : > { %4599 = vst.msk [vmem:[#allocation6 + $0xdc] sm:$0xf] %vm20888_vm5, %v13842_v19  ;;  %v3927_v45 = vsel %vm20889_vm7, %v3915_v3, %v3916_v32  ;;  %v13812_v43 = vpack.c.bf16 %v17720_v9, %v17720_v9  ;;  %vm20890_vm3 = vmmov %vm20886_vm0  ;;  %vm20892_vm0 = vnez %v20891_v7  ;;  %v20893_v35 = vld [vmem:[#allocation43_spill] sm:$0xff]  ;;  %4343 = vrot.lane.b32.xlu0 %v13809_v54, %s15393_s20  ;;  %vm20895_vm7 = vcmp.lt.s32.totalorder %v20798_v1, 1 }
 0x313   : > { %4151 = vst.msk [vmem:[#allocation6 + $0x60] sm:$0xf] %vm20890_vm3, %v13755_v15  ;;  %v3864_v0 = vsel %vm20892_vm0, 0.0, %v3835_v31  ;;  %vm20894_vm2 = vnez %v20893_v35  ;;  %v17741_v46 = vld [vmem:[#allocation3 + $0xf8] sm:$0xff]  ;;  %v3834_v26 = vsel %vm20895_vm7, %v3792_v41, %v3793_v25  ;;  %vm20896_vm5 = vmmov %vm20895_vm7  ;;  %v20897_v31 = vrot.slane %v16799_v10, 1 }
 0x314   : > { %v3987_v34 = vsel %vm20894_vm2, 0.0, %v3927_v45  ;;  %v13757_v3 = vpack.c.bf16 %v3864_v0, %v3864_v0  ;;  %v3833_v48 = vsel %vm20896_vm5, %v3793_v25, %v3794_v33  ;;  %v3917_v15 = vrot.slane %v17741_v46, 1  ;;  %v15031_v45 = vld [vmem:[%s20286_s5 + $0xc8] sm:$0xff]  }
 0x315   : > { %v13844_v19 = vpack.c.bf16 %v3987_v34, %v3987_v34  ;;  %v13810_v47 = vpack.c.bf16 %v17741_v46, %v17741_v46  ;;  %vm20898_vm3 = vcmp.lt.s32.totalorder %v20798_v1, 7  ;;  %v20900_v0 = vld [vmem:[#allocation45_spill] sm:$0xff]  ;;  %vm20902_vm2 = vcmask 519168   ;;  %5944 = vmatpush1.bf16.msra.mxu0 %v15031_v45 }
 0x316   : > { %v3923_v54 = vsel %vm20898_vm3, %v3919_v21, %v20897_v31  ;;  %vm20899_vm7 = vmmov %vm20898_vm3  ;;  %vm20901_vm5 = vnez %v20900_v0  ;;  %4153 = vst.msk [vmem:[#allocation6 + $0x70] sm:$0xf] %vm20902_vm2, %v13757_v3  ;;  %v13758_v34 = vpack.c.bf16 %v3834_v26, %v3834_v26  ;;  %vm20904_vm0 = vnez %v20903_v28  ;;  %4347 = vrot.lane.b32.xlu0 %v13811_v55, %s15393_s20  ;;  %v20923_v45 = vld [vmem:[#allocation29_spill] sm:$0xff] }
 0x317   : > { %v3924_v41 = vsel %vm20899_vm7, %v3918_v30, %v3919_v21  ;;  %v3991_v25 = vsel %vm20901_vm5, 0.0, %v3923_v54  ;;  %v3866_v24 = vsel %vm20904_vm0, 0.0, %v3833_v48  ;;  %vm20905_vm4 = vmmov %vm20902_vm2  ;;  %v3926_v31 = vsel %vm20898_vm3, %v3916_v32, %v3917_v15  ;;  %4345 = vrot.lane.b32.xlu1 %v13810_v47, %s15393_s20  ;;  %v20907_v54 = vld [vmem:[#allocation44_spill] sm:$0xff]  ;;  %5945 = vmatprep.subr.bf16.mxu0 %v20792_v5 }
 0x318   : > { %4601 = vst.msk [vmem:[#allocation6 + $0xec] sm:$0xf] %vm20905_vm4, %v13844_v19  ;;  %vm20906_vm12 = vmmov %vm20898_vm3  ;;  %v13847_v35 = vpack.c.bf16 %v3924_v41, %v3924_v41  ;;  %v13848_v17 = vpack.c.bf16 %v3991_v25, %v3991_v25  ;;  %v13845_v21 = vpack.c.bf16 %v3926_v31, %v3926_v31  ;;  %vm20908_vm2 = vnez %v20907_v54 }
 0x319   : > { %v3925_v6 = vsel %vm20906_vm12, %v3917_v15, %v3918_v30  ;;  %vm20909_vm7 = vmmov %vm20905_vm4  ;;  %v13759_v26 = vpack.c.bf16 %v3866_v24, %v3866_v24  ;;  %vm20910_vm4 = vcmp.lt.s32.totalorder %v20798_v1, 1  ;;  %v3796_v19 = vrot.slane %v17520_v36, 7 }
 0x31a   : > { %v3989_v3 = vsel %vm20908_vm2, 0.0, %v3925_v6  ;;  %4154 = vst.msk [vmem:[#allocation6 + $0x78] sm:$0xf] %vm20909_vm7, %v13758_v34  ;;  %v3832_v32 = vsel %vm20910_vm4, %v3794_v33, %v3795_v40  ;;  %vm20911_vm3 = vmmov %vm20909_vm7  ;;  %v3797_v15 = vrot.slane %v17547_v60, 7  ;;  %v3798_v24 = vrot.slane %v17501_v2, 7 }
 0x31b   : > { %v13846_v48 = vpack.c.bf16 %v3989_v3, %v3989_v3  ;;  %4604 = vst.msk [vmem:[#allocation6 + $0x104] sm:$0xf] %vm20911_vm3, %v13847_v35  ;;  %vm20912_vm12 = vmmov %vm20911_vm3  ;;  %v13760_v30 = vpack.c.bf16 %v3832_v32, %v3832_v32  ;;  %v3799_v6 = vrot.slane %v17533_v27, 7  ;;  %v3800_v55 = vrot.slane %v17586_v22, 7  ;;  %4349 = vrot.lane.b32.xlu1 %v13812_v43, %s15393_s20  ;;  %v20919_v27 = vld [vmem:[#allocation30_spill] sm:$0xff]  ;;  %v20927_v43 = vld [vmem:[#allocation32_spill] sm:$0xff] }
 0x31c   : > { %4605 = vst.msk [vmem:[#allocation6 + $0x10c] sm:$0xf] %vm20912_vm12, %v13848_v17  ;;  %vm20913_vm5 = vmmov %vm20911_vm3  ;;  %v3801_v33 = vrot.slane %v17611_v11, 7  ;;  %v3802_v17 = vrot.slane %v17564_v52, 7  ;;  %v3803_v2 = vrot.slane %v17598_v51, 7  ;;  %v15037_v3 = vld [vmem:[%s20286_s5 + $0xc0] sm:$0xff]  }
 0x31d   : > { %4602 = vst.msk [vmem:[#allocation6 + $0xf4] sm:$0xf] %vm20913_vm5, %v13845_v21  ;;  %vm20914_vm2 = vmmov %vm20911_vm3  ;;  %vm20917_vm3 = vcmp.lt.s32.totalorder %v20798_v1, 1  ;;  %vm20920_vm5 = vnez %v20919_v27  ;;  %5946 = vmatpush1.bf16.msra.mxu0 %v15037_v3  ;;  %v20956_v3 = vld [vmem:[#allocation38_spill] sm:$0xff]  ;;  %v21023_v0 = vrot.slane %v16799_v10, 7 }
 0x31e   : > { %4155 = vst.msk [vmem:[#allocation6 + $0x80] sm:$0xf] %vm20914_vm2, %v13759_v26  ;;  %vm20915_vm7 = vmmov %vm20914_vm2  ;;  %v3831_v36 = vsel %vm20917_vm3, %v3795_v40, %v3796_v19  ;;  %5955 = vmatprep.subr.bf16.mxu0 %v20792_v5 }
 0x31f   : > { %4603 = vst.msk [vmem:[#allocation6 + $0xfc] sm:$0xf] %vm20915_vm7, %v13846_v48  ;;  %vm20916_vm4 = vmmov %vm20914_vm2  ;;  %v3868_v22 = vsel %vm20920_vm5, 0.0, %v3831_v36  ;;  %vm20928_vm5 = vnez %v20927_v43  ;;  %v20933_v48 = vld [vmem:[#allocation31_spill] sm:$0xff]  ;;  %v3807_v36 = vrot.slane %v17659_v44, 7  ;;  %v3811_v44 = vrot.slane %v17720_v9, 7 }
 0x320   : > { %4156 = vst.msk [vmem:[#allocation6 + $0x88] sm:$0xf] %vm20916_vm4, %v13760_v30  ;;  %vm20918_vm12 = vmmov %vm20917_vm3  ;;  %v13761_v40 = vpack.c.bf16 %v3868_v22, %v3868_v22  ;;  %vm20924_vm4 = vnez %v20923_v45  ;;  %v20943_v22 = vld [vmem:[#allocation33_spill] sm:$0xff] }
 0x321   : > { %v3830_v60 = vsel %vm20918_vm12, %v3796_v19, %v3797_v15  ;;  %vm20921_vm2 = vmmov %vm20917_vm3  ;;  %vm20926_vm12 = vcmask 519168  }
 0x322   : > { %v13762_v11 = vpack.c.bf16 %v3830_v60, %v3830_v60  ;;  %v3829_v35 = vsel %vm20921_vm2, %v3797_v15, %v3798_v24  ;;  %vm20922_vm7 = vmmov %vm20921_vm2  ;;  %v3808_v60 = vrot.slane %v17712_v59, 7 }
 0x323   : > { %v3828_v47 = vsel %vm20922_vm7, %v3798_v24, %v3799_v6  ;;  %v3870_v41 = vsel %vm20924_vm4, 0.0, %v3829_v35  ;;  %vm20925_vm3 = vmmov %vm20921_vm2  ;;  %v18115_v23 = vld [vmem:[#allocation6 + $0x104] ss:$8 sps:$4 sm:$0xff]  }
 0x324   : > { %v13764_v25 = vpack.c.bf16 %v3828_v47, %v3828_v47  ;;  %v3827_v52 = vsel %vm20925_vm3, %v3799_v6, %v3800_v55  ;;  %4158 = vst.msk [vmem:[#allocation6 + $0x98] sm:$0xf] %vm20926_vm12, %v13762_v11  ;;  %v13763_v51 = vpack.c.bf16 %v3870_v41, %v3870_v41  ;;  %vm20929_vm0 = vmmov %vm20921_vm2  ;;  %vm20934_vm3 = vnez %v20933_v48 }
 0x325   : > { %v3872_v34 = vsel %vm20928_vm5, 0.0, %v3827_v52  ;;  %v3826_v31 = vsel %vm20929_vm0, %v3800_v55, %v3801_v33  ;;  %vm20930_vm2 = vmmov %vm20929_vm0  ;;  %v3804_v6 = vrot.slane %v17647_v42, 7  ;;  %v3805_v55 = vrot.slane %v17677_v63, 7 }
 0x326   : > { %v3825_v21 = vsel %vm20930_vm2, %v3801_v33, %v3802_v17  ;;  %vm20931_vm7 = vmmov %vm20926_vm12  ;;  %v13765_v26 = vpack.c.bf16 %v3872_v34, %v3872_v34  ;;  %v13766_v32 = vpack.c.bf16 %v3826_v31, %v3826_v31  ;;  %v3806_v33 = vrot.slane %v17626_v57, 7 }
 0x327   : > { %4157 = vst.msk [vmem:[#allocation6 + $0x90] sm:$0xf] %vm20931_vm7, %v13761_v40  ;;  %vm20932_vm4 = vmmov %vm20931_vm7  ;;  %v3874_v30 = vsel %vm20934_vm3, 0.0, %v3825_v21  ;;  %v3810_v57 = vrot.slane %v17688_v12, 7  ;;  %v20947_v40 = vld [vmem:[#allocation36_spill] sm:$0xff] }
 0x328   : > { %4160 = vst.msk [vmem:[#allocation6 + $0xa8] sm:$0xf] %vm20932_vm4, %v13764_v25  ;;  %vm20935_vm12 = vmmov %vm20929_vm0  ;;  %v13767_v15 = vpack.c.bf16 %v3874_v30, %v3874_v30  ;;  %v20950_v25 = vld [vmem:[#allocation37_spill] sm:$0xff] }
 0x329   : > { %v3824_v19 = vsel %vm20935_vm12, %v3802_v17, %v3803_v2  ;;  %vm20936_vm0 = vmmov %vm20932_vm4  ;;  %v3809_v17 = vrot.slane %v17741_v46, 7 }
 0x32a   : > { %4159 = vst.msk [vmem:[#allocation6 + $0xa0] sm:$0xf] %vm20936_vm0, %v13763_v51  ;;  %v13768_v24 = vpack.c.bf16 %v3824_v19, %v3824_v19  ;;  %vm20937_vm2 = vmmov %vm20936_vm0 }
 0x32b   : > { %4161 = vst.msk [vmem:[#allocation6 + $0xb0] sm:$0xf] %vm20937_vm2, %v13765_v26  ;;  %vm20938_vm4 = vmmov %vm20936_vm0 }
 0x32c   : > { %4162 = vst.msk [vmem:[#allocation6 + $0xb8] sm:$0xf] %vm20938_vm4, %v13766_v32  ;;  %vm20939_vm7 = vmmov %vm20936_vm0  ;;  %vm20944_vm4 = vnez %v20943_v22 }
 0x32d   : > { %4163 = vst.msk [vmem:[#allocation6 + $0xc0] sm:$0xf] %vm20939_vm7, %v13767_v15  ;;  %vm20940_vm12 = vmmov %vm20936_vm0  ;;  %vm20941_vm0 = vcmp.lt.s32.totalorder %v20798_v1, 1  ;;  %v20960_v15 = vrot.slane %v16799_v10, 7  ;;  %v18082_v10 = vld [vmem:[#allocation6 + $0xf4] ss:$8 sps:$4 sm:$0xff]  }
 0x32e   : > { %4164 = vst.msk [vmem:[#allocation6 + $0xc8] sm:$0xf] %vm20940_vm12, %v13768_v24  ;;  %v3823_v42 = vsel %vm20941_vm0, %v3803_v2, %v3804_v6  ;;  %vm20942_vm2 = vmmov %vm20941_vm0  ;;  %vm20948_vm12 = vnez %v20947_v40  ;;  %v3819_v12 = vsel %vm20941_vm0, %v3807_v36, %v3808_v60 }
 0x32f   : > { %v3822_v63 = vsel %vm20942_vm2, %v3804_v6, %v3805_v55  ;;  %v3876_v59 = vsel %vm20944_vm4, 0.0, %v3823_v42  ;;  %vm20945_vm3 = vmmov %vm20941_vm0  ;;  %vm20949_vm2 = vcmask 519168   ;;  %vm20951_vm4 = vnez %v20950_v25  ;;  %v20964_v6 = vld [vmem:[#allocation39_spill] sm:$0xff]  ;;  %v15056_v42 = vld [vmem:[%s20286_s5 + $0x100] sm:$0xff]  }
 0x330   : > { %v13770_v46 = vpack.c.bf16 %v3822_v63, %v3822_v63  ;;  %v3821_v11 = vsel %vm20945_vm3, %v3805_v55, %v3806_v33  ;;  %vm20946_vm7 = vmmov %vm20941_vm0  ;;  %v13769_v47 = vpack.c.bf16 %v3876_v59, %v3876_v59  ;;  %v3880_v52 = vsel %vm20951_vm4, 0.0, %v3819_v12  ;;  %v15373_v59 = vld [vmem:[#allocation3 + $0x110] sm:$0xff] }
 0x331   : > { %v3820_v35 = vsel %vm20946_vm7, %v3806_v33, %v3807_v36  ;;  %v3878_v2 = vsel %vm20948_vm12, 0.0, %v3821_v11  ;;  %vm20952_vm5 = vmmov %vm20941_vm0  ;;  %v13773_v31 = vpack.c.bf16 %v3880_v52, %v3880_v52  ;;  %v15041_v36 = vld [vmem:[%s20286_s5 + $0x118] sm:$0xff]  }
 0x332   : > { %v13772_v41 = vpack.c.bf16 %v3820_v35, %v3820_v35  ;;  %4166 = vst.msk [vmem:[#allocation6 + $0xd8] sm:$0xf] %vm20949_vm2, %v13770_v46  ;;  %v13771_v9 = vpack.c.bf16 %v3878_v2, %v3878_v2  ;;  %v3818_v51 = vsel %vm20952_vm5, %v3808_v60, %v3809_v17  ;;  %vm20953_vm3 = vmmov %vm20941_vm0  ;;  %vm20957_vm0 = vnez %v20956_v3  ;;  %v15046_v60 = vld [vmem:[%s20286_s5 + $0x110] sm:$0xff]  }
 0x333   : > { %v3817_v34 = vsel %vm20953_vm3, %v3809_v17, %v3810_v57  ;;  %vm20954_vm7 = vmmov %vm20949_vm2  ;;  %v13774_v21 = vpack.c.bf16 %v3818_v51, %v3818_v51  ;;  %5956 = vmatpush2.bf16.msra.mxu0 %v15041_v36  ;;  %v15052_v17 = vld [vmem:[%s20286_s5 + $0x108] sm:$0xff]   ;;  %v13813_v46 = vpack.c.bf16 %v15373_v59, %v15373_v59 }
 0x334   : > { %4165 = vst.msk [vmem:[#allocation6 + $0xd0] sm:$0xf] %vm20954_vm7, %v13769_v47  ;;  %vm20955_vm8 = vmmov %vm20949_vm2  ;;  %v3882_v26 = vsel %vm20957_vm0, 0.0, %v3817_v34  ;;  %5957 = vmatprep.subr.bf16.mxu0 %v20792_v5  ;;  %v15009_v51 = vld [vmem:[#allocation6 + $0x14] ss:$8 sps:$4 sm:$0xff]  }
 0x335   : > { %4168 = vst.msk [vmem:[#allocation6 + $0xe8] sm:$0xf] %vm20955_vm8, %v13772_v41  ;;  %vm20958_vm2 = vmmov %vm20953_vm3  ;;  %v13775_v30 = vpack.c.bf16 %v3882_v26, %v3882_v26  ;;  %4351 = vrot.lane.b32.xlu0 %v13813_v46, %s15393_s20  ;;  %v17901_v26 = vld [vmem:[#allocation6 + $0x24] ss:$8 sps:$4 sm:$0xff]  }
 0x336   : > { %v3816_v32 = vsel %vm20958_vm2, %v3810_v57, %v3811_v44  ;;  %vm20959_vm12 = vmmov %vm20954_vm7  ;;  %v15372_v57 = vld [vmem:[#allocation3 + $0x118] sm:$0xff] }
 0x337   : > { %4167 = vst.msk [vmem:[#allocation6 + $0xe0] sm:$0xf] %vm20959_vm12, %v13771_v9  ;;  %v13776_v19 = vpack.c.bf16 %v3816_v32, %v3816_v32  ;;  %vm20961_vm5 = vmmov %vm20958_vm2  ;;  %5958 = vmatpush2.bf16.msra.mxu0 %v15046_v60 }
 0x338   : > { %v3815_v24 = vsel %vm20961_vm5, %v3811_v44, %v20960_v15  ;;  %vm20962_vm3 = vmmov %vm20954_vm7  ;;  %vm20965_vm7 = vnez %v20964_v6  ;;  %5959 = vmatprep.subr.bf16.mxu0 %v20792_v5  ;;  %v13814_v44 = vpack.c.bf16 %v15372_v57, %v15372_v57 }
 0x339   : > { %4169 = vst.msk [vmem:[#allocation6 + $0xf0] sm:$0xf] %vm20962_vm3, %v13773_v31  ;;  %vm20963_vm8 = vmmov %vm20962_vm3  ;;  %v3884_v55 = vsel %vm20965_vm7, 0.0, %v3815_v24 }
 0x33a   : > { %4170 = vst.msk [vmem:[#allocation6 + $0xf8] sm:$0xf] %vm20963_vm8, %v13774_v21  ;;  %vm20966_vm0 = vmmov %vm20962_vm3  ;;  %v13777_v33 = vpack.c.bf16 %v3884_v55, %v3884_v55  ;;  %4353 = vrot.lane.b32.xlu1 %v13814_v44, %s15393_s20  ;;  %v17913_v55 = vld [vmem:[#allocation6 + $0x34] ss:$8 sps:$4 sm:$0xff]   ;;  %v17927_v44 = vld [vmem:[#allocation6 + $0x44] ss:$8 sps:$4 sm:$0xff]  }
 0x33b   : > { %4171 = vst.msk [vmem:[#allocation6 + $0x100] sm:$0xf] %vm20966_vm0, %v13775_v30  ;;  %vm20967_vm4 = vmmov %vm20966_vm0  ;;  %5960 = vmatpush2.bf16.msra.mxu0 %v15052_v17 }
 0x33c   : > { %4172 = vst.msk [vmem:[#allocation6 + $0x108] sm:$0xf] %vm20967_vm4, %v13776_v19  ;;  %vm20968_vm12 = vmmov %vm20966_vm0  ;;  %5961 = vmatprep.subr.bf16.mxu0 %v20792_v5  ;;  %vm20969_vm4 = vcmask 1043968   ;;  %v21022_v5 = vld [vmem:[#allocation51_spill] sm:$0xff] }
 0x33d   : > { %4173 = vst.msk [vmem:[#allocation6 + $0x110] sm:$0xf] %vm20968_vm12, %v13777_v33  ;;  %vm20970_vm0 = vmmov %vm20969_vm4 }
 0x33e   : > { %vm20971_vm2 = vmmov %vm20970_vm0 }
 0x33f   : > { %5962 = vmatpush2.bf16.msra.mxu0 %v15056_v42  ;;  %vm20972_vm5 = vmmov %vm20970_vm0 }
 0x340   : > { %vm20973_vm3 = vmmov %vm20970_vm0 }
 0x341   : > { %vm20974_vm8 = vmmov %vm20970_vm0 }
 0x342   : > { %vm20975_vm12 = vmmov %vm20970_vm0 }
 0x343   : > { %v4288_v63 = vpop.permute.xlu0 %4287 }
 0x344   : > { %4394 = vst.msk [vmem:[#allocation6 + $0x10] sm:$0xf] %vm20969_vm4, %v4288_v63  ;;  %vm20976_vm4 = vcmask 523264  }
 0x345   : > { %12689 = vmatprep.mubr.msk.bf16.mxu0 %vm20976_vm4, %v15009_v51 }
 0x347   : > { %v4292_v11 = vpop.permute.xlu0 %4291 }
 0x348   : > { %v4290_v35 = vpop.permute.xlu1 %4289  ;;  %4396 = vst.msk [vmem:[#allocation6 + $0x20] sm:$0xf] %vm20970_vm0, %v4292_v11  ;;  %vm20977_vm0 = vmmov %vm20976_vm4 }
 0x349   : > { %4395 = vst.msk [vmem:[#allocation6 + $0x18] sm:$0xf] %vm20971_vm2, %v4290_v35  ;;  %12772 = vmatprep.mubr.msk.bf16.mxu1 %vm20977_vm0, %v15009_v51  ;;  %vm20982_vm4 = vmmov %vm20971_vm2 }
 0x34b   : > { %v4610_v9 = vld [vmem:[#allocation6 + $0x10] sm:$0xff] }
 0x34c   : > { %v4294_v47 = vpop.permute.xlu1 %4293  ;;  %v4296_v2 = vpop.permute.xlu0 %4295 }
 0x34d   : > { %4397 = vst.msk [vmem:[#allocation6 + $0x28] sm:$0xf] %vm20972_vm5, %v4294_v47  ;;  %vm20978_vm5 = vmmov %vm20971_vm2 }
 0x34e   : > { %4398 = vst.msk [vmem:[#allocation6 + $0x30] sm:$0xf] %vm20973_vm3, %v4296_v2  ;;  %vm20979_vm3 = vmmov %vm20977_vm0 }
 0x34f   : > { %v4612_v30 = vld [vmem:[#allocation6 + $0x20] sm:$0xff] }
 0x350   : > { %v4298_v41 = vpop.permute.xlu1 %4297  ;;  %v4300_v12 = vpop.permute.xlu0 %4299  ;;  %v4611_v52 = vld [vmem:[#allocation6 + $0x18] sm:$0xff] }
 0x351   : > { %4399 = vst.msk [vmem:[#allocation6 + $0x38] sm:$0xf] %vm20974_vm8, %v4298_v41  ;;  %v12646_v34 = vcombine.low %v4610_v9, %v4611_v52  ;;  %vm20980_vm8 = vmmov %vm20977_vm0 }
 0x352   : > { %4400 = vst.msk [vmem:[#allocation6 + $0x40] sm:$0xf] %vm20975_vm12, %v4300_v12  ;;  %vm20981_vm12 = vmmov %vm20971_vm2  ;;  %v17941_v12 = vld [vmem:[#allocation6 + $0x54] ss:$8 sps:$4 sm:$0xff]  }
 0x353   : > { %4976 = vmatmul.mubr.bf16.gmra.mxu0 %v12646_v34  ;;  %5450 = vmatmul.mubr.bf16.vlgmr.msra.gmra.mxu1 %v12646_v34 }
 0x354   : > { %v4302_v31 = vpop.permute.xlu1 %4301  ;;  %v4613_v32 = vld [vmem:[#allocation6 + $0x28] sm:$0xff]  ;;  %12690 = vmatprep.mubr.msk.bf16.mxu0 %vm20979_vm3, %v17901_v26  ;;  %12773 = vmatprep.mubr.msk.bf16.mxu1 %vm20980_vm8, %v17901_v26  ;;  %vm20985_vm3 = vmmov %vm20982_vm4 }
 0x355   : > { %v4304_v21 = vpop.permute.xlu0 %4303  ;;  %4401 = vst.msk [vmem:[#allocation6 + $0x48] sm:$0xf] %vm20971_vm2, %v4302_v31  ;;  %v17911_v24 = vcombine.low %v4612_v30, %v4613_v32  ;;  %vm20983_vm2 = vmmov %vm20977_vm0  ;;  %v4614_v17 = vld [vmem:[#allocation6 + $0x30] sm:$0xff]  ;;  %v17955_v30 = vld [vmem:[#allocation6 + $0x64] ss:$8 sps:$4 sm:$0xff]  }
 0x356   : > { %4402 = vst.msk [vmem:[#allocation6 + $0x50] sm:$0xf] %vm20978_vm5, %v4304_v21  ;;  %vm20984_vm5 = vmmov %vm20982_vm4 }
 0x357   : > { %vm20986_vm8 = vmmov %vm20985_vm3 }
 0x358   : > { %v4615_v60 = vld [vmem:[#allocation6 + $0x38] sm:$0xff] }
 0x359   : > { %v4306_v19 = vpop.permute.xlu1 %4305  ;;  %v4308_v15 = vpop.permute.xlu0 %4307  ;;  %v17925_v57 = vcombine.low %v4614_v17, %v4615_v60  ;;  %v4616_v35 = vld [vmem:[#allocation6 + $0x40] sm:$0xff] }
 0x35a   : > { %4403 = vst.msk [vmem:[#allocation6 + $0x58] sm:$0xf] %vm20981_vm12, %v4306_v19  ;;  %vm20987_vm12 = vmmov %vm20985_vm3 }
 0x35b   : > { %4404 = vst.msk [vmem:[#allocation6 + $0x60] sm:$0xf] %vm20982_vm4, %v4308_v15  ;;  %4984 = vmatmul.mubr.bf16.gmra.mxu0 %v17911_v24  ;;  %5458 = vmatmul.mubr.bf16.gmra.mxu1 %v17911_v24  ;;  %vm20988_vm4 = vmmov %vm20977_vm0 }
 0x35c   : > { %12691 = vmatprep.mubr.msk.bf16.mxu0 %vm20977_vm0, %v17913_v55  ;;  %12774 = vmatprep.mubr.msk.bf16.mxu1 %vm20983_vm2, %v17913_v55  ;;  %vm20989_vm2 = vmmov %vm20985_vm3  ;;  %v4617_v11 = vld [vmem:[#allocation6 + $0x48] sm:$0xff] }
 0x35d   : > { %v4310_v33 = vpop.permute.xlu1 %4309  ;;  %v17939_v41 = vcombine.low %v4616_v35, %v4617_v11  ;;  %v4618_v34 = vld [vmem:[#allocation6 + $0x50] sm:$0xff] }
 0x35e   : > { %v4312_v36 = vpop.permute.xlu0 %4311  ;;  %4405 = vst.msk [vmem:[#allocation6 + $0x68] sm:$0xf] %vm20984_vm5, %v4310_v33  ;;  %vm20990_vm5 = vmmov %vm20989_vm2 }
 0x35f   : > { %4406 = vst.msk [vmem:[#allocation6 + $0x70] sm:$0xf] %vm20985_vm3, %v4312_v36  ;;  %vm20991_vm3 = vmmov %vm20989_vm2 }
 0x361   : > { %v4619_v51 = vld [vmem:[#allocation6 + $0x58] sm:$0xff] }
 0x362   : > { %v4314_v42 = vpop.permute.xlu1 %4313  ;;  %v4316_v63 = vpop.permute.xlu0 %4315  ;;  %v17953_v32 = vcombine.low %v4618_v34, %v4619_v51  ;;  %v4620_v36 = vld [vmem:[#allocation6 + $0x60] sm:$0xff] }
 0x363   : > { %4407 = vst.msk [vmem:[#allocation6 + $0x78] sm:$0xf] %vm20986_vm8, %v4314_v42  ;;  %4992 = vmatmul.mubr.bf16.gmra.mxu0 %v17925_v57  ;;  %5466 = vmatmul.mubr.bf16.gmra.mxu1 %v17925_v57  ;;  %vm20992_vm8 = vmmov %vm20989_vm2 }
 0x364   : > { %4408 = vst.msk [vmem:[#allocation6 + $0x80] sm:$0xf] %vm20987_vm12, %v4316_v63  ;;  %12692 = vmatprep.mubr.msk.bf16.mxu0 %vm20988_vm4, %v17927_v44  ;;  %12775 = vmatprep.mubr.msk.bf16.mxu1 %vm20977_vm0, %v17927_v44  ;;  %vm20993_vm12 = vmmov %vm20977_vm0  ;;  %v17969_v63 = vld [vmem:[#allocation6 + $0x74] ss:$8 sps:$4 sm:$0xff]  }
 0x365   : > { %vm20994_vm4 = vmmov %vm20977_vm0  ;;  %v4621_v33 = vld [vmem:[#allocation6 + $0x68] sm:$0xff] }
 0x366   : > { %v4318_v59 = vpop.permute.xlu1 %4317  ;;  %vm20995_vm0 = vmmov %vm20989_vm2  ;;  %v17967_v42 = vcombine.low %v4620_v36, %v4621_v33  ;;  %v4622_v35 = vld [vmem:[#allocation6 + $0x70] sm:$0xff]  ;;  %v15061_v36 = vld [vmem:[%s20288_s7 + $0x78] sm:$0xff]  }
 0x367   : > { %v4320_v46 = vpop.permute.xlu0 %4319  ;;  %4409 = vst.msk [vmem:[#allocation6 + $0x88] sm:$0xf] %vm20989_vm2, %v4318_v59  ;;  %vm20996_vm2 = vmmov %vm20995_vm0  ;;  %v18014_v33 = vld [vmem:[#allocation6 + $0xb4] ss:$8 sps:$4 sm:$0xff]   ;;  %14151 = vmatprep.subr.bf16.mxu1 %v15061_v36  ;;  %v15063_v36 = vld [vmem:[%s20288_s7 + $0x70] sm:$0xff]  }
 0x368   : > { %4410 = vst.msk [vmem:[#allocation6 + $0x90] sm:$0xf] %vm20990_vm5, %v4320_v46  ;;  %vm20997_vm5 = vmmov %vm20995_vm0 }
 0x36a   : > { %v4623_v11 = vld [vmem:[#allocation6 + $0x78] sm:$0xff] }
 0x36b   : > { %v4322_v47 = vpop.permute.xlu1 %4321  ;;  %v4324_v2 = vpop.permute.xlu0 %4323  ;;  %5000 = vmatmul.mubr.bf16.gmra.mxu0 %v17939_v41  ;;  %5474 = vmatmul.mubr.bf16.gmra.mxu1 %v17939_v41 }
 0x36c   : > { %4411 = vst.msk [vmem:[#allocation6 + $0x98] sm:$0xf] %vm20991_vm3, %v4322_v47  ;;  %12693 = vmatprep.mubr.msk.bf16.mxu0 %vm20993_vm12, %v17941_v12  ;;  %12776 = vmatprep.mubr.msk.bf16.mxu1 %vm20994_vm4, %v17941_v12  ;;  %vm20998_vm3 = vmmov %vm20995_vm0 }
 0x36d   : > { %4412 = vst.msk [vmem:[#allocation6 + $0xa0] sm:$0xf] %vm20992_vm8, %v4324_v2  ;;  %vm20999_vm8 = vmmov %vm20994_vm4 }
 0x36e   : > { %vm21000_vm12 = vmmov %vm20994_vm4  ;;  %v17992_v34 = vld [vmem:[#allocation6 + $0x80] ss:$8 sps:$4 sm:$0xff]  }
 0x36f   : > { %v4326_v9 = vpop.permute.xlu1 %4325  ;;  %vm21001_vm4 = vmmov %vm20995_vm0 }
 0x370   : > { %v4328_v52 = vpop.permute.xlu0 %4327  ;;  %4413 = vst.msk [vmem:[#allocation6 + $0xa8] sm:$0xf] %vm20995_vm0, %v4326_v9  ;;  %v17981_v9 = vcombine.low %v4622_v35, %v4623_v11 }
 0x371   : > { %4414 = vst.msk [vmem:[#allocation6 + $0xb0] sm:$0xf] %vm20996_vm2, %v4328_v52  ;;  %vm21002_vm2 = vmmov %vm20995_vm0  ;;  %v17983_v52 = vld [vmem:[#allocation6 + $0x84] ss:$8 sps:$4 sm:$0xff]  }
 0x373   : > { %5008 = vmatmul.mubr.bf16.gmra.mxu0 %v17953_v32  ;;  %5482 = vmatmul.mubr.bf16.gmra.mxu1 %v17953_v32 }
 0x374   : > { %v4332_v21 = vpop.permute.xlu0 %4331  ;;  %12694 = vmatprep.mubr.msk.bf16.mxu0 %vm20999_vm8, %v17955_v30  ;;  %12777 = vmatprep.mubr.msk.bf16.mxu1 %vm21000_vm12, %v17955_v30  ;;  %vm21006_vm12 = vmmov %vm20995_vm0 }
 0x375   : > { %v4330_v31 = vpop.permute.xlu1 %4329  ;;  %4416 = vst.msk [vmem:[#allocation6 + $0xc0] sm:$0xf] %vm20998_vm3, %v4332_v21  ;;  %vm21004_vm3 = vmmov %vm20999_vm8  ;;  %v18002_v21 = vld [vmem:[#allocation6 + $0x90] ss:$8 sps:$4 sm:$0xff]  }
 0x376   : > { %4415 = vst.msk [vmem:[#allocation6 + $0xb8] sm:$0xf] %vm20997_vm5, %v4330_v31  ;;  %vm21003_vm5 = vmmov %vm20995_vm0  ;;  %v17994_v31 = vld [vmem:[#allocation6 + $0x94] ss:$8 sps:$4 sm:$0xff]  }
 0x377   : > { %vm21005_vm8 = vmmov %vm21004_vm3 }
 0x379   : > { %v4334_v19 = vpop.permute.xlu1 %4333 }
 0x37a   : > { %v4336_v15 = vpop.permute.xlu0 %4335  ;;  %4417 = vst.msk [vmem:[#allocation6 + $0xc8] sm:$0xf] %vm21001_vm4, %v4334_v19  ;;  %vm21007_vm4 = vmmov %vm20995_vm0  ;;  %v18004_v19 = vld [vmem:[#allocation6 + $0xa4] ss:$8 sps:$4 sm:$0xff]  }
 0x37b   : > { %4418 = vst.msk [vmem:[#allocation6 + $0xd0] sm:$0xf] %vm20995_vm0, %v4336_v15  ;;  %5016 = vmatmul.mubr.bf16.gmra.mxu0 %v17967_v42  ;;  %5490 = vmatmul.mubr.bf16.gmra.mxu1 %v17967_v42  ;;  %v18012_v15 = vld [vmem:[#allocation6 + $0xa0] ss:$8 sps:$4 sm:$0xff]  }
 0x37c   : > { %12695 = vmatprep.mubr.msk.bf16.mxu0 %vm21004_vm3, %v17969_v63  ;;  %12778 = vmatprep.mubr.msk.bf16.mxu1 %vm21005_vm8, %v17969_v63  ;;  %vm21010_vm8 = vmmov %vm20995_vm0 }
 0x37e   : > { %v4338_v60 = vpop.permute.xlu1 %4337 }
 0x37f   : > { %4419 = vst.msk [vmem:[#allocation6 + $0xd8] sm:$0xf] %vm21002_vm2, %v4338_v60  ;;  %vm21008_vm2 = vmmov %vm20995_vm0  ;;  %v15062_v60 = vld [vmem:[%s20288_s7 + $0x38] sm:$0xff]  }
 0x380   : > { %v4340_v17 = vpop.permute.xlu0 %4339  ;;  %14152 = vmatpush3.bf16.msra.mxu1 %v15062_v60  ;;  %v15064_v60 = vld [vmem:[%s20288_s7 + $0x30] sm:$0xff]  }
 0x381   : > { %4420 = vst.msk [vmem:[#allocation6 + $0xe0] sm:$0xf] %vm21003_vm5, %v4340_v17  ;;  %vm21009_vm5 = vmmov %vm21004_vm3  ;;  %14153 = vmatprep.subr.bf16.mxu1 %v15063_v36 }
 0x382   : > { %v4342_v59 = vpop.permute.xlu1 %4341 }
 0x383   : > { %4421 = vst.msk [vmem:[#allocation6 + $0xe8] sm:$0xf] %vm21006_vm12, %v4342_v59  ;;  %5024 = vmatmul.mubr.bf16.gmra.mxu0 %v17981_v9  ;;  %5498 = vmatmul.mubr.bf16.gmra.mxu1 %v17981_v9  ;;  %vm21011_vm12 = vmmov %vm21004_vm3  ;;  %v18030_v59 = vld [vmem:[#allocation6 + $0xb0] ss:$8 sps:$4 sm:$0xff]  }
 0x384   : > { %v4344_v46 = vpop.permute.xlu0 %4343  ;;  %12696 = vmatprep.mubr.msk.bf16.mxu0 %vm21009_vm5, %v17983_v52  ;;  %12779 = vmatprep.mubr.msk.bf16.mxu1 %vm21004_vm3, %v17983_v52 }
 0x385   : > { %4422 = vst.msk [vmem:[#allocation6 + $0xf0] sm:$0xf] %vm21007_vm4, %v4344_v46  ;;  %vm21012_vm4 = vmmov %vm21004_vm3  ;;  %v18032_v46 = vld [vmem:[#allocation6 + $0xc4] ss:$8 sps:$4 sm:$0xff]   ;;  %14154 = vmatpush3.bf16.msra.mxu1 %v15064_v60 }
 0x386   : > { %v18073_v60 = vld [vmem:[#allocation3 + $0x110] sm:$0xff] }
 0x387   : > { %21025 = vst [vmem:[#allocation53_spill] sm:$0xff] %v18073_v60  ;;  %v20459_v54 = vrot.slane %v18073_v60, 7  ;;  %v20462_v58 = vrot.slane %v18073_v60, 1 }
 0x388   : > { %v4348_v2 = vpop.permute.xlu0 %4347 }
 0x389   : > { %v4346_v47 = vpop.permute.xlu1 %4345  ;;  %4424 = vst.msk [vmem:[#allocation6 + $0x100] sm:$0xf] %vm21008_vm2, %v4348_v2  ;;  %v18042_v2 = vld [vmem:[#allocation6 + $0xc0] ss:$8 sps:$4 sm:$0xff]  }
 0x38a   : > { %4423 = vst.msk [vmem:[#allocation6 + $0xf8] sm:$0xf] %vm20995_vm0, %v4346_v47  ;;  %vm21013_vm0 = vmmov %vm21004_vm3  ;;  %v18077_v40 = vld [vmem:[#allocation6 + $0xe0] ss:$8 sps:$4 sm:$0xff]  }
 0x38b   : > { %5032 = vmatmul.mubr.bf16.gmra.mxu0 %v17992_v34  ;;  %5506 = vmatmul.mubr.bf16.gmra.mxu1 %v17992_v34  ;;  %vm21014_vm2 = vmmov %vm21013_vm0 }
 0x38c   : > { %12697 = vmatprep.mubr.msk.bf16.mxu0 %vm21011_vm12, %v17994_v31  ;;  %12780 = vmatprep.mubr.msk.bf16.mxu1 %vm21012_vm4, %v17994_v31  ;;  %vm21015_vm5 = vmmov %vm21013_vm0 }
 0x38d   : > { %v4350_v51 = vpop.permute.xlu1 %4349  ;;  %vm21016_vm3 = vmmov %vm21013_vm0 }
 0x38e   : > { %4425 = vst.msk [vmem:[#allocation6 + $0x108] sm:$0xf] %vm21010_vm8, %v4350_v51  ;;  %vm21017_vm8 = vmmov %vm21013_vm0  ;;  %v18044_v51 = vld [vmem:[#allocation6 + $0xd4] ss:$8 sps:$4 sm:$0xff]  }
 0x38f   : > { %vm21018_vm12 = vmmov %vm21013_vm0 }
 0x390   : > { %vm21019_vm4 = vmmov %vm21013_vm0 }
 0x393   : > { %5040 = vmatmul.mubr.bf16.gmra.mxu0 %v18002_v21  ;;  %5514 = vmatmul.mubr.bf16.gmra.mxu1 %v18002_v21 }
 0x394   : > { %12698 = vmatprep.mubr.msk.bf16.mxu0 %vm21013_vm0, %v18004_v19  ;;  %12781 = vmatprep.mubr.msk.bf16.mxu1 %vm21014_vm2, %v18004_v19  ;;  %vm21020_vm2 = vmmov %vm21013_vm0 }
 0x39b   : > { %5048 = vmatmul.mubr.bf16.gmra.mxu0 %v18012_v15  ;;  %5522 = vmatmul.mubr.bf16.gmra.mxu1 %v18012_v15 }
 0x39c   : > { %12699 = vmatprep.mubr.msk.bf16.mxu0 %vm21015_vm5, %v18014_v33  ;;  %12782 = vmatprep.mubr.msk.bf16.mxu1 %vm21016_vm3, %v18014_v33  ;;  %vm21021_vm5 = vmmov %vm21013_vm0  ;;  %vm21024_vm3 = vcmp.lt.s32.totalorder %v20798_v1, 1 }
 0x39d   : > { %v3814_v36 = vsel %vm21024_vm3, %v21023_v0, %v21022_v5 }
 0x39e   : > { %v13778_v6 = vpack.c.bf16 %v3814_v36, %v3814_v36 }
 0x3a2   : > { %v18028_v17 = vpop.f32.mrf.mxu0 }
 0x3a3   : > { %5056 = vmatmul.mubr.bf16.gmra.mxu0 %v18030_v59  ;;  %5530 = vmatmul.mubr.bf16.gmra.mxu1 %v18030_v59 }
 0x3a4   : > { %v4971_v11 = vpop.f32.mrf.mxu0  ;;  %12700 = vmatprep.mubr.msk.bf16.mxu0 %vm21017_vm8, %v18032_v46  ;;  %12783 = vmatprep.mubr.msk.bf16.mxu1 %vm21018_vm12, %v18032_v46  ;;  %vm21026_vm8 = vcmask 519168   ;;  %vm21027_vm12 = vcmask 1043968  }
 0x3a5   : > { %v18058_v11 = vld [vmem:[#allocation6 + $0xd0] ss:$8 sps:$4 sm:$0xff]   ;;  %4174 = vst.msk [vmem:[#allocation6 + $0x118] sm:$0xf] %vm21026_vm8, %v13778_v6  ;;  %v21030_v6 = vld [vmem:[#allocation47_spill] sm:$0xff] }
 0x3a6   : > { %v18040_v35 = vpop.f32.mrf.mxu0 }
 0x3a7   : > { %v4352_v25 = vpop.permute.xlu0 %4351 }
 0x3a8   : > { %v4974_v47 = vpop.f32.mrf.mxu0 }
 0x3a9   : > { %v18060_v47 = vld [vmem:[#allocation6 + $0xe4] ss:$8 sps:$4 sm:$0xff]  }
 0x3ab   : > { %5064 = vmatmul.mubr.bf16.gmra.mxu0 %v18042_v2  ;;  %5538 = vmatmul.mubr.bf16.gmra.mxu1 %v18042_v2 }
 0x3ac   : > { %12701 = vmatprep.mubr.msk.bf16.mxu0 %vm21019_vm4, %v18044_v51  ;;  %12784 = vmatprep.mubr.msk.bf16.mxu1 %vm21013_vm0, %v18044_v51  ;;  %v4354_v3 = vpop.permute.xlu1 %4353  ;;  %vm21028_vm4 = vmmov %vm21027_vm12 }
 0x3ad   : > { %4427 = vst.msk [vmem:[#allocation6 + $0x118] sm:$0xf] %vm21027_vm12, %v4354_v3  ;;  %vm21029_vm0 = vmmov %vm21024_vm3 }
 0x3ae   : > { %4426 = vst.msk [vmem:[#allocation6 + $0x110] sm:$0xf] %vm21028_vm4, %v4352_v25  ;;  %v9691_v0 = vsel %vm21029_vm0, %v20459_v54, %v21022_v5  ;;  %vm21032_vm3 = vmmov %vm21021_vm5  ;;  %v15065_v5 = vld [vmem:[%s20288_s7 + $0x68] sm:$0xff]  }
 0x3af   : > { %v15066_v25 = vld [vmem:[%s20288_s7 + $0x28] sm:$0xff]   ;;  %v13994_v36 = vpack.c.bf16 %v9691_v0, %v9691_v0  ;;  %14155 = vmatprep.subr.bf16.mxu1 %v15065_v5  ;;  %vm21034_vm12 = vmmov %vm21026_vm8  ;;  %v18124_v0 = vld [vmem:[#allocation6 + $0x100] ss:$8 sps:$4 sm:$0xff]  }
 0x3b0   : > { %14156 = vmatpush3.bf16.msra.mxu1 %v15066_v25  ;;  %vm21035_vm4 = vmmov %vm21026_vm8  ;;  %v15079_v5 = vld [vmem:[%s20288_s7 + $0xa8] sm:$0xff]  }
 0x3b1   : > { %vm21036_vm0 = vmmov %vm21032_vm3 }
 0x3b3   : > { %5072 = vmatmul.mubr.bf16.gmra.mxu0 %v18058_v11  ;;  %5546 = vmatmul.mubr.bf16.gmra.mxu1 %v18058_v11 }
 0x3b4   : > { %12702 = vmatprep.mubr.msk.bf16.mxu0 %vm21020_vm2, %v18060_v47  ;;  %12785 = vmatprep.mubr.msk.bf16.mxu1 %vm21021_vm5, %v18060_v47  ;;  %vm21031_vm2 = vcmp.lt.s32.totalorder %v20798_v1, 7  ;;  %v18106_v60 = vld [vmem:[#allocation6 + $0x118] sm:$0xff] }
 0x3b5   : > { %v9799_v3 = vsel %vm21031_vm2, %v20462_v58, %v21030_v6  ;;  %v18108_v6 = vld [vmem:[#allocation6 + $0xf0] ss:$8 sps:$4 sm:$0xff]   ;;  %10050 = vst.msk [vmem:[#allocation6 + $0x118] sm:$0xf] %vm21026_vm8, %v13994_v36  ;;  %vm21037_vm2 = vmmov %vm21036_vm0 }
 0x3b6   : > { %v14065_v54 = vpack.c.bf16 %v9799_v3, %v9799_v3  ;;  %v21033_v58 = vld [vmem:[#allocation48_spill] sm:$0xff]  ;;  %vm21040_vm8 = vmmov %vm21036_vm0 }
 0x3b7   : > { %10482 = vst.msk [vmem:[#allocation6 + $0x11c] sm:$0xf] %vm21034_vm12, %v21033_v58  ;;  %v18113_v22 = vld [vmem:[#allocation6 + $0x110] sm:$0xff]  ;;  %vm21041_vm12 = vmmov %vm21036_vm0 }
 0x3b8   : > { %10481 = vst.msk [vmem:[#allocation6 + $0x114] sm:$0xf] %vm21035_vm4, %v14065_v54  ;;  %v15067_v58 = vld [vmem:[%s20288_s7 + $0x60] sm:$0xff]   ;;  %vm21042_vm4 = vmmov %vm21036_vm0 }
 0x3b9   : > { %v15068_v54 = vld [vmem:[%s20288_s7 + $0x20] sm:$0xff]   ;;  %14157 = vmatprep.subr.bf16.mxu1 %v15067_v58 }
 0x3ba   : > { %14158 = vmatpush3.bf16.msra.mxu1 %v15068_v54 }
 0x3bb   : > { %5080 = vmatmul.mubr.bf16.gmra.mxu0 %v18077_v40  ;;  %5554 = vmatmul.mubr.bf16.gmra.mxu1 %v18077_v40 }
 0x3bc   : > { %12703 = vmatprep.mubr.msk.bf16.mxu0 %vm21021_vm5, %v18082_v10  ;;  %12786 = vmatprep.mubr.msk.bf16.mxu1 %vm21032_vm3, %v18082_v10  ;;  %vm21038_vm5 = vmmov %vm21036_vm0 }
 0x3bd   : > { %vm21039_vm3 = vmmov %vm21036_vm0 }
 0x3c3   : > { %5088 = vmatmul.mubr.bf16.gmra.mxu0 %v18108_v6  ;;  %5562 = vmatmul.mubr.bf16.gmra.mxu1 %v18108_v6 }
 0x3c4   : > { %12787 = vmatprep.mubr.msk.bf16.mxu1 %vm21036_vm0, %v18115_v23  ;;  %12856 = vmatprep.mubr.msk.bf16.mxu0 %vm21037_vm2, %v17901_v26  ;;  %v15069_v26 = vld [vmem:[%s20288_s7 + $0x58] sm:$0xff]   ;;  %vm21043_vm2 = vmmov %vm21036_vm0 }
 0x3c5   : > { %14159 = vmatprep.subr.bf16.mxu1 %v15069_v26 }
 0x3cb   : > { %5570 = vmatmul.mubr.bf16.gmra.mxu1 %v18124_v0  ;;  %5964 = vmatmul.mubr.bf16.vlgmr.msra.gmra.mxu0 %v17911_v24  ;;  %v15070_v24 = vld [vmem:[%s20288_s7 + $0x18] sm:$0xff]  }
 0x3cc   : > { %12857 = vmatprep.mubr.msk.bf16.mxu0 %vm21038_vm5, %v17913_v55  ;;  %14160 = vmatpush3.bf16.msra.mxu1 %v15070_v24  ;;  %v15071_v55 = vld [vmem:[%s20288_s7 + $0x50] sm:$0xff]   ;;  %vm21044_vm5 = vmmov %vm21036_vm0 }
 0x3cd   : > { %14161 = vmatprep.subr.bf16.mxu1 %v15071_v55  ;;  %v15080_v55 = vld [vmem:[%s20288_s7 + $0xa0] sm:$0xff]  }
 0x3d3   : > { %5972 = vmatmul.mubr.bf16.gmra.mxu0 %v17925_v57  ;;  %v15072_v57 = vld [vmem:[%s20288_s7 + $0x10] sm:$0xff]  }
 0x3d4   : > { %12858 = vmatprep.mubr.msk.bf16.mxu0 %vm21039_vm3, %v17927_v44  ;;  %14162 = vmatpush3.bf16.msra.mxu1 %v15072_v57  ;;  %v15073_v44 = vld [vmem:[%s20288_s7 + $0x48] sm:$0xff]   ;;  %vm21045_vm3 = vmmov %vm21036_vm0 }
 0x3d5   : > { %14163 = vmatprep.subr.bf16.mxu1 %v15073_v44 }
 0x3db   : > { %5980 = vmatmul.mubr.bf16.gmra.mxu0 %v17939_v41  ;;  %v15074_v41 = vld [vmem:[%s20288_s7 + $0x8] sm:$0xff]  }
 0x3dc   : > { %12859 = vmatprep.mubr.msk.bf16.mxu0 %vm21040_vm8, %v17941_v12  ;;  %14164 = vmatpush3.bf16.msra.mxu1 %v15074_v41  ;;  %v15075_v12 = vld [vmem:[%s20288_s7 + $0xb8] sm:$0xff]   ;;  %vm21046_vm8 = vmmov %vm21036_vm0  ;;  %v15395_v41 = vmov 0.0|0.0  }
 0x3dd   : > { %14727 = vmatprep.subr.bf16.mxu0 %v15075_v12  ;;  %6764 = vst [vmem:[#allocation7 + $0x4] sm:$0xf] %v15395_v41  ;;  %6765 = vst [vmem:[#allocation7 + $0x10] sm:$0xf] %v15395_v41 }
 0x3de   : > { %14728 = vmatpush3.bf16.msra.mxu0 %v15075_v12  ;;  %6798 = vst [vmem:[#allocation7 + $0x19c] sm:$0xf] %v15395_v41  ;;  %6799 = vst [vmem:[#allocation7 + $0x1a8] sm:$0xf] %v15395_v41 }
 0x3e3   : > { %5988 = vmatmul.mubr.bf16.gmra.mxu0 %v17953_v32  ;;  %v18184_v32 = vld [vmem:[%s20287_s6] ss:$0 sm:$0xff] }
 0x3e4   : > { %12860 = vmatprep.mubr.msk.bf16.mxu0 %vm21041_vm12, %v17955_v30  ;;  %v4970_v30 = vadd.f32 %v18184_v32, %v18028_v17  ;;  %vm21047_vm12 = vmmov %vm21036_vm0 }
 0x3eb   : > { %5996 = vmatmul.mubr.bf16.gmra.mxu0 %v17967_v42 }
 0x3ec   : > { %12861 = vmatprep.mubr.msk.bf16.mxu0 %vm21042_vm4, %v17969_v63  ;;  %vm21048_vm4 = vmmov %vm21036_vm0 }
 0x3f3   : > { %6004 = vmatmul.mubr.bf16.gmra.mxu0 %v17981_v9 }
 0x3f4   : > { %12862 = vmatprep.mubr.msk.bf16.mxu0 %vm21036_vm0, %v17983_v52 }
 0x3fb   : > { %6012 = vmatmul.mubr.bf16.gmra.mxu0 %v17992_v34 }
 0x3fc   : > { %12863 = vmatprep.mubr.msk.bf16.mxu0 %vm21043_vm2, %v17994_v31  ;;  %v4973_v31 = vadd.f32 %v18184_v32, %v18040_v35  ;;  %vm21049_vm2 = vmmov %vm21036_vm0 }
 0x403   : > { %6020 = vmatmul.mubr.bf16.gmra.mxu0 %v18002_v21  ;;  %v15076_v21 = vld [vmem:[%s20288_s7 + $0x40] sm:$0xff]  }
 0x404   : > { %12864 = vmatprep.mubr.msk.bf16.mxu0 %vm21044_vm5, %v18004_v19  ;;  %v15077_v19 = vld [vmem:[%s20288_s7] sm:$0xff]   ;;  %14165 = vmatprep.subr.bf16.mxu1 %v15076_v21  ;;  %vm21050_vm5 = vmmov %vm21036_vm0 }
 0x405   : > { %14166 = vmatpush3.bf16.msra.mxu1 %v15077_v19 }
 0x40b   : > { %6028 = vmatmul.mubr.bf16.gmra.mxu0 %v18012_v15  ;;  %v15078_v15 = vld [vmem:[%s20288_s7 + $0xb0] sm:$0xff]  }
 0x40c   : > { %12865 = vmatprep.mubr.msk.bf16.mxu0 %vm21045_vm3, %v18014_v33  ;;  %14729 = vmatprep.subr.bf16.mxu0 %v15078_v15  ;;  %vm21060_vm3 = vcmp.lt.s32.totalorder %v20798_v1, 1 }
 0x40d   : > { %14730 = vmatpush3.bf16.msra.mxu0 %v15078_v15  ;;  %v15081_v15 = vld [vmem:[#allocation7] ss:$12 sps:$4 sm:$0xff]  }
 0x40e   : > { %14731 = vmatprep.subr.bf16.mxu0 %v15079_v5 }
 0x411   : > { %14732 = vmatpush3.bf16.msra.mxu0 %v15079_v5 }
 0x412   : > { %14733 = vmatprep.subr.bf16.mxu0 %v15080_v55 }
 0x413   : > { %v4977_v42 = vpop.f32.mrf.mxu0  ;;  %v5451_v63 = vpop.f32.mrf.mxu1  ;;  %6036 = vmatmul.mubr.bf16.gmra.mxu0 %v18030_v59 }
 0x414   : > { %v18189_v9 = vadd.f32 %v5451_v63, %v4970_v30  ;;  %12866 = vmatprep.mubr.msk.bf16.mxu0 %vm21046_vm8, %v18032_v46  ;;  %v4978_v3 = vadd.f32 %v18184_v32, %v4977_v42  ;;  %v15084_v42 = vld [vmem:[%s20288_s7 + $0x98] sm:$0xff]   ;;  %vm21062_vm8 = vcmp.lt.s32.totalorder %v20798_v1, 7 }
 0x415   : > { %v4979_v52 = vpop.f32.mrf.mxu0  ;;  %v5453_v34 = vpop.f32.mrf.mxu1  ;;  %14734 = vmatpush3.bf16.msra.mxu0 %v15080_v55 }
 0x416   : > { %14735 = vmatprep.subr.bf16.mxu0 %v15084_v42 }
 0x417   : > { %v4980_v33 = vpop.f32.mrf.mxu0  ;;  %v5454_v17 = vpop.f32.mrf.mxu1 }
 0x418   : > { %v18204_v59 = vadd.f32 %v5454_v17, %v4973_v31  ;;  %v4981_v24 = vadd.f32 %v18184_v32, %v4980_v33 }
 0x419   : > { %v4982_v46 = vpop.f32.mrf.mxu0  ;;  %v5456_v35 = vpop.f32.mrf.mxu1  ;;  %14736 = vmatpush3.bf16.msra.mxu0 %v15084_v42 }
 0x41a   : > { %v15083_v46 = vld [vmem:[#allocation7 + $0x4] ss:$12 sps:$4 sm:$0xff]   ;;  %v15085_v35 = vld [vmem:[%s20288_s7 + $0x138] sm:$0xff]  }
 0x41b   : > { %v4985_v25 = vpop.f32.mrf.mxu0  ;;  %v5459_v36 = vpop.f32.mrf.mxu1  ;;  %6044 = vmatmul.mubr.bf16.gmra.mxu0 %v18042_v2  ;;  %7531 = vmatprep.mubr.bf16.mxu1 %v15083_v46  ;;  %v15099_v46 = vld [vmem:[%s20288_s7 + $0xf0] sm:$0xff]  }
 0x41c   : > { %v18211_v58 = vadd.f32 %v5459_v36, %v4978_v3  ;;  %12867 = vmatprep.mubr.msk.bf16.mxu0 %vm21047_vm12, %v18044_v51  ;;  %v4986_v30 = vadd.f32 %v18184_v32, %v4985_v25  ;;  %14287 = vmatprep.subr.bf16.mxu1 %v15085_v35  ;;  %vm21063_vm12 = vmmov %vm21060_vm3 }
 0x41d   : > { %v4987_v54 = vpop.f32.mrf.mxu0  ;;  %v5461_v26 = vpop.f32.mrf.mxu1  ;;  %7532 = vmatmul.mubr.bf16.vlgmr.msra.gmra.mxu1 %v15081_v15 }
 0x41e   : > { %v15088_v54 = vld [vmem:[%s20288_s7 + $0x88] sm:$0xff]  }
 0x41f   : > { %v4988_v57 = vpop.f32.mrf.mxu0  ;;  %v5462_v44 = vpop.f32.mrf.mxu1 }
 0x420   : > { %v18219_v2 = vadd.f32 %v5462_v44, %v4981_v24  ;;  %v4989_v19 = vadd.f32 %v18184_v32, %v4988_v57 }
 0x421   : > { %v4990_v51 = vpop.f32.mrf.mxu0  ;;  %v5464_v12 = vpop.f32.mrf.mxu1 }
 0x422   : > { %v15093_v51 = vld [vmem:[%s20288_s7 + $0x80] sm:$0xff]  }
 0x423   : > { %v4993_v63 = vpop.f32.mrf.mxu0  ;;  %v5467_v52 = vpop.f32.mrf.mxu1  ;;  %6052 = vmatmul.mubr.bf16.gmra.mxu0 %v18058_v11  ;;  %v15086_v11 = vld [vmem:[%s20288_s7 + $0x90] sm:$0xff]  }
 0x424   : > { %v18226_v34 = vadd.f32 %v5467_v52, %v4986_v30  ;;  %12868 = vmatprep.mubr.msk.bf16.mxu0 %vm21048_vm4, %v18060_v47  ;;  %v15087_v47 = vld [vmem:[%s20288_s7 + $0xf8] sm:$0xff]   ;;  %v4994_v36 = vadd.f32 %v18184_v32, %v4993_v63  ;;  %14737 = vmatprep.subr.bf16.mxu0 %v15086_v11  ;;  %vm21064_vm4 = vmmov %vm21062_vm8 }
 0x425   : > { %v4995_v31 = vpop.f32.mrf.mxu0  ;;  %v5469_v21 = vpop.f32.mrf.mxu1  ;;  %14288 = vmatpush3.bf16.msra.mxu1 %v15087_v47  ;;  %14738 = vmatpush3.bf16.msra.mxu0 %v15086_v11 }
 0x426   : > { %14739 = vmatprep.subr.bf16.mxu0 %v15088_v54 }
 0x427   : > { %v4996_v33 = vpop.f32.mrf.mxu0  ;;  %v5470_v17 = vpop.f32.mrf.mxu1 }
 0x428   : > { %v18237_v3 = vadd.f32 %v5470_v17, %v4989_v19  ;;  %v4997_v41 = vadd.f32 %v18184_v32, %v4996_v33  ;;  %v15098_v17 = vld [vmem:[%s20288_s7 + $0x130] sm:$0xff]  }
 0x429   : > { %v4998_v5 = vpop.f32.mrf.mxu0  ;;  %v5472_v25 = vpop.f32.mrf.mxu1  ;;  %14740 = vmatpush3.bf16.msra.mxu0 %v15088_v54  ;;  %14289 = vmatprep.subr.bf16.mxu1 %v15098_v17  ;;  %v15108_v17 = vld [vmem:[%s20288_s7 + $0x128] sm:$0xff]  }
 0x42a   : > { %14741 = vmatprep.subr.bf16.mxu0 %v15093_v51  ;;  %14290 = vmatpush3.bf16.msra.mxu1 %v15099_v46 }
 0x42b   : > { %v5001_v26 = vpop.f32.mrf.mxu0  ;;  %v5475_v24 = vpop.f32.mrf.mxu1  ;;  %6060 = vmatmul.mubr.bf16.gmra.mxu0 %v18077_v40  ;;  %14291 = vmatprep.subr.bf16.mxu1 %v15108_v17  ;;  %v15118_v17 = vld [vmem:[%s20288_s7 + $0x120] sm:$0xff]  }
 0x42c   : > { %v18247_v55 = vadd.f32 %v5475_v24, %v4994_v36  ;;  %12869 = vmatprep.mubr.msk.bf16.mxu0 %vm21036_vm0, %v18082_v10  ;;  %v5002_v10 = vadd.f32 %v18184_v32, %v5001_v26  ;;  %vm21065_vm0 = vmmov %vm21060_vm3 }
 0x42d   : > { %v5003_v57 = vpop.f32.mrf.mxu0  ;;  %v5477_v44 = vpop.f32.mrf.mxu1  ;;  %14742 = vmatpush3.bf16.msra.mxu0 %v15093_v51 }
 0x42f   : > { %v5004_v12 = vpop.f32.mrf.mxu0  ;;  %v5478_v30 = vpop.f32.mrf.mxu1 }
 0x430   : > { %v18255_v42 = vadd.f32 %v5478_v30, %v4997_v41  ;;  %v5005_v33 = vadd.f32 %v18184_v32, %v5004_v12  ;;  %v12842_v12 = vcombine.low %v18113_v22, %v18106_v60 }
 0x431   : > { %v5006_v40 = vpop.f32.mrf.mxu0  ;;  %v5480_v63 = vpop.f32.mrf.mxu1 }
 0x433   : > { %v5009_v52 = vpop.f32.mrf.mxu0  ;;  %v5483_v31 = vpop.f32.mrf.mxu1  ;;  %6068 = vmatmul.mubr.bf16.gmra.mxu0 %v18108_v6 }
 0x434   : > { %v18259_v21 = vadd.f32 %v5483_v31, %v5002_v10  ;;  %12870 = vmatprep.mubr.msk.bf16.mxu0 %vm21049_vm2, %v18115_v23  ;;  %v12843_v23 = vcombine.high %v18113_v22, %v18106_v60  ;;  %v5010_v25 = vadd.f32 %v18184_v32, %v5009_v52  ;;  %v15109_v22 = vld [vmem:[%s20288_s7 + $0xe8] sm:$0xff]   ;;  %vm21066_vm2 = vmmov %vm21064_vm4 }
 0x435   : > { %v5011_v19 = vpop.f32.mrf.mxu0  ;;  %v5485_v15 = vpop.f32.mrf.mxu1  ;;  %14292 = vmatpush3.bf16.msra.mxu1 %v15109_v22  ;;  %v15119_v22 = vld [vmem:[%s20288_s7 + $0xe0] sm:$0xff]  }
 0x436   : > { %14293 = vmatprep.subr.bf16.mxu1 %v15118_v17 }
 0x437   : > { %v5012_v35 = vpop.f32.mrf.mxu0  ;;  %v5486_v6 = vpop.f32.mrf.mxu1 }
 0x438   : > { %v18270_v11 = vadd.f32 %v5486_v6, %v5005_v33  ;;  %v5013_v44 = vadd.f32 %v18184_v32, %v5012_v35 }
 0x439   : > { %v5014_v47 = vpop.f32.mrf.mxu0  ;;  %v5488_v5 = vpop.f32.mrf.mxu1  ;;  %14294 = vmatpush3.bf16.msra.mxu1 %v15119_v22 }
 0x43b   : > { %v5017_v36 = vpop.f32.mrf.mxu0  ;;  %v5491_v54 = vpop.f32.mrf.mxu1  ;;  %6076 = vmatmul.mubr.bf16.gmra.mxu0 %v18124_v0 }
 0x43c   : > { %v18276_v26 = vadd.f32 %v5491_v54, %v5010_v25  ;;  %12871 = vmatprep.mubr.msk.bf16.mxu0 %vm21050_vm5, %v12843_v23  ;;  %v5018_v10 = vadd.f32 %v18184_v32, %v5017_v36  ;;  %vm21067_vm5 = vmmov %vm21065_vm0 }
 0x43d   : > { %v5019_v24 = vpop.f32.mrf.mxu0  ;;  %v5493_v57 = vpop.f32.mrf.mxu1 }
 0x43f   : > { %v5020_v41 = vpop.f32.mrf.mxu0  ;;  %v5494_v51 = vpop.f32.mrf.mxu1 }
 0x440   : > { %v18282_v30 = vadd.f32 %v5494_v51, %v5013_v44  ;;  %v5021_v33 = vadd.f32 %v18184_v32, %v5020_v41 }
 0x441   : > { %v5022_v40 = vpop.f32.mrf.mxu0  ;;  %v5496_v63 = vpop.f32.mrf.mxu1 }
 0x443   : > { %v5025_v0 = vpop.f32.mrf.mxu0  ;;  %v5499_v52 = vpop.f32.mrf.mxu1  ;;  %6084 = vmatmul.mubr.bf16.gmra.mxu0 %v12842_v12 }
 0x444   : > { %v18285_v31 = vadd.f32 %v5499_v52, %v5018_v10  ;;  %v5026_v47 = vadd.f32 %v18184_v32, %v5025_v0 }
 0x445   : > { %v5027_v19 = vpop.f32.mrf.mxu0  ;;  %v5501_v15 = vpop.f32.mrf.mxu1 }
 0x447   : > { %v5028_v60 = vpop.f32.mrf.mxu0  ;;  %v5502_v46 = vpop.f32.mrf.mxu1 }
 0x448   : > { %v18294_v35 = vadd.f32 %v5502_v46, %v5021_v33  ;;  %v5029_v57 = vadd.f32 %v18184_v32, %v5028_v60 }
 0x449   : > { %v5030_v6 = vpop.f32.mrf.mxu0  ;;  %v5504_v23 = vpop.f32.mrf.mxu1 }
 0x44b   : > { %v5033_v5 = vpop.f32.mrf.mxu0  ;;  %v5507_v25 = vpop.f32.mrf.mxu1 }
 0x44c   : > { %v18297_v36 = vadd.f32 %v5507_v25, %v5026_v47  ;;  %v5034_v63 = vadd.f32 %v18184_v32, %v5033_v5 }
 0x44d   : > { %v5035_v54 = vpop.f32.mrf.mxu0  ;;  %v5509_v24 = vpop.f32.mrf.mxu1 }
 0x44f   : > { %v5036_v44 = vpop.f32.mrf.mxu0  ;;  %v5510_v41 = vpop.f32.mrf.mxu1 }
 0x450   : > { %v18300_v51 = vadd.f32 %v5510_v41, %v5029_v57  ;;  %v5037_v33 = vadd.f32 %v18184_v32, %v5036_v44 }
 0x451   : > { %v5038_v12 = vpop.f32.mrf.mxu0  ;;  %v5512_v40 = vpop.f32.mrf.mxu1 }
 0x453   : > { %v5041_v10 = vpop.f32.mrf.mxu0  ;;  %v5515_v52 = vpop.f32.mrf.mxu1 }
 0x454   : > { %v18303_v19 = vadd.f32 %v5515_v52, %v5034_v63  ;;  %v5042_v5 = vadd.f32 %v18184_v32, %v5041_v10 }
 0x455   : > { %v5043_v0 = vpop.f32.mrf.mxu0  ;;  %v5517_v15 = vpop.f32.mrf.mxu1 }
 0x457   : > { %v5044_v60 = vpop.f32.mrf.mxu0  ;;  %v5518_v46 = vpop.f32.mrf.mxu1 }
 0x458   : > { %v18312_v6 = vadd.f32 %v5518_v46, %v5037_v33  ;;  %v5045_v41 = vadd.f32 %v18184_v32, %v5044_v60  ;;  %v15128_v60 = vld [vmem:[%s20288_s7 + $0x118] sm:$0xff]  }
 0x459   : > { %v5046_v23 = vpop.f32.mrf.mxu0  ;;  %v5520_v47 = vpop.f32.mrf.mxu1  ;;  %14295 = vmatprep.subr.bf16.mxu1 %v15128_v60 }
 0x45a   : > { %v15129_v47 = vld [vmem:[%s20288_s7 + $0xd8] sm:$0xff]  }
 0x45b   : > { %v5049_v25 = vpop.f32.mrf.mxu0  ;;  %v5523_v54 = vpop.f32.mrf.mxu1  ;;  %14296 = vmatpush3.bf16.msra.mxu1 %v15129_v47 }
 0x45c   : > { %v18315_v24 = vadd.f32 %v5523_v54, %v5042_v5  ;;  %v5050_v15 = vadd.f32 %v18184_v32, %v5049_v25 }
 0x45d   : > { %v5051_v57 = vpop.f32.mrf.mxu0  ;;  %v5525_v44 = vpop.f32.mrf.mxu1 }
 0x45f   : > { %v5052_v12 = vpop.f32.mrf.mxu0  ;;  %v5526_v40 = vpop.f32.mrf.mxu1 }
 0x460   : > { %v18318_v63 = vadd.f32 %v5526_v40, %v5045_v41  ;;  %v5053_v23 = vadd.f32 %v18184_v32, %v5052_v12 }
 0x461   : > { %v5054_v52 = vpop.f32.mrf.mxu0  ;;  %v5528_v0 = vpop.f32.mrf.mxu1 }
 0x463   : > { %v5057_v33 = vpop.f32.mrf.mxu0  ;;  %v5531_v17 = vpop.f32.mrf.mxu1 }
 0x464   : > { %v18321_v22 = vadd.f32 %v5531_v17, %v5050_v15  ;;  %v5058_v41 = vadd.f32 %v18184_v32, %v5057_v33 }
 0x465   : > { %v5059_v10 = vpop.f32.mrf.mxu0  ;;  %v5533_v46 = vpop.f32.mrf.mxu1 }
 0x467   : > { %v5060_v5 = vpop.f32.mrf.mxu0  ;;  %v5534_v54 = vpop.f32.mrf.mxu1 }
 0x468   : > { %v18330_v57 = vadd.f32 %v5534_v54, %v5053_v23  ;;  %v5061_v17 = vadd.f32 %v18184_v32, %v5060_v5  ;;  %v15138_v5 = vld [vmem:[%s20288_s7 + $0x110] sm:$0xff]  }
 0x469   : > { %v5062_v25 = vpop.f32.mrf.mxu0  ;;  %v5536_v44 = vpop.f32.mrf.mxu1  ;;  %14297 = vmatprep.subr.bf16.mxu1 %v15138_v5 }
 0x46b   : > { %v5065_v40 = vpop.f32.mrf.mxu0  ;;  %v5539_v12 = vpop.f32.mrf.mxu1 }
 0x46c   : > { %v18333_v52 = vadd.f32 %v5539_v12, %v5058_v41  ;;  %v5066_v60 = vadd.f32 %v18184_v32, %v5065_v40  ;;  %v15139_v12 = vld [vmem:[%s20288_s7 + $0xd0] sm:$0xff]  }
 0x46d   : > { %v5067_v0 = vpop.f32.mrf.mxu0  ;;  %v5541_v15 = vpop.f32.mrf.mxu1  ;;  %14298 = vmatpush3.bf16.msra.mxu1 %v15139_v12 }
 0x46e   : > { %21051 = vst [vmem:[#allocation54_spill] sm:$0xff] %v18333_v52 }
 0x46f   : > { %v5068_v10 = vpop.f32.mrf.mxu0  ;;  %v5542_v46 = vpop.f32.mrf.mxu1 }
 0x470   : > { %v18336_v48 = vadd.f32 %v5542_v46, %v5061_v17  ;;  %v5069_v41 = vadd.f32 %v18184_v32, %v5068_v10 }
 0x471   : > { %v5070_v23 = vpop.f32.mrf.mxu0  ;;  %v5544_v54 = vpop.f32.mrf.mxu1 }
 0x472   : > { %21052 = vst [vmem:[#allocation55_spill] sm:$0xff] %v18336_v48 }
 0x473   : > { %v5073_v25 = vpop.f32.mrf.mxu0  ;;  %v5547_v47 = vpop.f32.mrf.mxu1 }
 0x474   : > { %v18339_v44 = vadd.f32 %v5547_v47, %v5066_v60 }
 0x475   : > { %v5075_v33 = vpop.f32.mrf.mxu0  ;;  %v5549_v4 = vpop.f32.mrf.mxu1 }
 0x476   : > { %21053 = vst [vmem:[#allocation56_spill] sm:$0xff] %v18339_v44  ;;  %v5074_v4 = vadd.f32 %v18184_v32, %v5073_v25 }
 0x477   : > { %v5076_v0 = vpop.f32.mrf.mxu0  ;;  %v5550_v15 = vpop.f32.mrf.mxu1 }
 0x478   : > { %v18348_v17 = vadd.f32 %v5550_v15, %v5069_v41  ;;  %v5077_v33 = vadd.f32 %v18184_v32, %v5076_v0  ;;  %v15148_v0 = vld [vmem:[%s20288_s7 + $0x108] sm:$0xff]  }
 0x479   : > { %v5078_v40 = vpop.f32.mrf.mxu0  ;;  %v5552_v46 = vpop.f32.mrf.mxu1  ;;  %14299 = vmatprep.subr.bf16.mxu1 %v15148_v0 }
 0x47a   : > { %21054 = vst [vmem:[#allocation50_spill] sm:$0xff] %v18348_v17 }
 0x47b   : > { %v5081_v23 = vpop.f32.mrf.mxu0  ;;  %v5555_v10 = vpop.f32.mrf.mxu1 }
 0x47c   : > { %v18351_v54 = vadd.f32 %v5555_v10, %v5074_v4  ;;  %v5082_v5 = vadd.f32 %v18184_v32, %v5081_v23 }
 0x47d   : > { %v5083_v60 = vpop.f32.mrf.mxu0  ;;  %v5557_v47 = vpop.f32.mrf.mxu1 }
 0x47f   : > { %v5084_v44 = vpop.f32.mrf.mxu0  ;;  %v5558_v48 = vpop.f32.mrf.mxu1 }
 0x480   : > { %v18354_v52 = vadd.f32 %v5558_v48, %v5077_v33  ;;  %v5085_v4 = vadd.f32 %v18184_v32, %v5084_v44  ;;  %v15149_v48 = vld [vmem:[%s20288_s7 + $0xc8] sm:$0xff]   ;;  %v18372_v44 = vld [vmem:[%s20288_s7 + $0x178] sm:$0xff]  }
 0x481   : > { %v5086_v41 = vpop.f32.mrf.mxu0  ;;  %v5560_v15 = vpop.f32.mrf.mxu1  ;;  %14300 = vmatpush3.bf16.msra.mxu1 %v15149_v48  ;;  %14775 = vmatprep.subr.bf16.mxu0 %v18372_v44 }
 0x482   : > { %21055 = vst [vmem:[#allocation52_spill] sm:$0xff] %v18354_v52 }
 0x483   : > { %v5089_v40 = vpop.f32.mrf.mxu0  ;;  %v5563_v12 = vpop.f32.mrf.mxu1 }
 0x484   : > { %v18357_v46 = vadd.f32 %v5563_v12, %v5082_v5 }
 0x485   : > { %v5091_v25 = vpop.f32.mrf.mxu0  ;;  %v5565_v17 = vpop.f32.mrf.mxu1 }
 0x486   : > { %21056 = vst [vmem:[#allocation51_spill] sm:$0xff] %v18357_v46  ;;  %v5090_v17 = vadd.f32 %v18184_v32, %v5089_v40 }
 0x487   : > { %v5092_v10 = vpop.f32.mrf.mxu0  ;;  %v5566_v60 = vpop.f32.mrf.mxu1 }
 0x488   : > { %v18366_v47 = vadd.f32 %v5566_v60, %v5085_v4  ;;  %v5093_v0 = vadd.f32 %v18184_v32, %v5092_v10 }
 0x489   : > { %v5094_v23 = vpop.f32.mrf.mxu0  ;;  %v5568_v33 = vpop.f32.mrf.mxu1 }
 0x48a   : > { %21057 = vst [vmem:[#allocation47_spill] sm:$0xff] %v18366_v47 }
 0x48b   : > { %v5571_v41 = vpop.f32.mrf.mxu1  ;;  %v5965_v15 = vpop.f32.mrf.mxu0 }
 0x48c   : > { %v18374_v5 = vadd.f32 %v5571_v41, %v5090_v17  ;;  %v6092_v12 = vadd.f32 %v5965_v15, %v18189_v9  ;;  %v21061_v15 = vld [vmem:[#allocation34_spill] sm:$0xff] }
 0x48d   : > { %v5573_v25 = vpop.f32.mrf.mxu1  ;;  %v5967_v4 = vpop.f32.mrf.mxu0 }
 0x48e   : > { %21058 = vst [vmem:[#allocation48_spill] sm:$0xff] %v18374_v5  ;;  %v6124_v48 = vmax.f32 %v6092_v12, 0.0  ;;  %v21059_v5 = vld [vmem:[#allocation10_spill] sm:$0xff] }
 0x48f   : > { %v5574_v60 = vpop.f32.mrf.mxu1  ;;  %v5968_v40 = vpop.f32.mrf.mxu0 }
 0x490   : > { %v6226_v23 = vrot.slane %v6124_v48, 7  ;;  %v6334_v33 = vrot.slane %v6124_v48, 1  ;;  %v13889_v47 = vpack.c.bf16 %v6124_v48, %v6124_v48  ;;  %v18379_v46 = vadd.f32 %v5574_v60, %v5093_v0  ;;  %v15162_v0 = vld [vmem:[%s20288_s7 + $0xc0] sm:$0xff]  }
 0x491   : > { %v6093_v52 = vadd.f32 %v5968_v40, %v18204_v59  ;;  %v5576_v17 = vpop.f32.mrf.mxu1  ;;  %v5970_v41 = vpop.f32.mrf.mxu0  ;;  %v15161_v59 = vld [vmem:[%s20288_s7 + $0x100] sm:$0xff]  }
 0x492   : > { %v6293_v9 = vsel %vm21060_vm3, %v21059_v5, %v6226_v23  ;;  %v6401_v32 = vsel %vm21062_vm8, %v21061_v15, %v6334_v33  ;;  %6766 = vst [vmem:[#allocation7 + $0x1c] sm:$0xf] %v13889_v47  ;;  %14301 = vmatprep.subr.bf16.mxu1 %v15161_v59  ;;  %vm21068_vm3 = vmmov %vm21066_vm2 }
 0x493   : > { %v6298_v10 = vsel %vm15702_vm13, 0.0, %v6293_v9  ;;  %v6405_v12 = vsel %vm15656_vm10, 0.0, %v6401_v32  ;;  %v6125_v25 = vmax.f32 %v6093_v52, 0.0  ;;  %v5973_v4 = vpop.f32.mrf.mxu0  ;;  %14302 = vmatpush3.bf16.msra.mxu1 %v15162_v0  ;;  %vm21069_vm8 = vmmov %vm21065_vm0 }
 0x494   : > { %v13853_v48 = vpack.c.bf16 %v6298_v10, %v6298_v10  ;;  %v13924_v60 = vpack.c.bf16 %v6405_v12, %v6405_v12  ;;  %v6094_v47 = vadd.f32 %v5973_v4, %v18211_v58 }
 0x495   : > { %v6227_v40 = vrot.slane %v6125_v25, 7  ;;  %v6335_v17 = vrot.slane %v6125_v25, 1  ;;  %v13890_v41 = vpack.c.bf16 %v6125_v25, %v6125_v25  ;;  %v5975_v9 = vpop.f32.mrf.mxu0  ;;  %v15176_v25 = vld [vmem:[%s20288_s7 + $0x238] sm:$0xff]  }
 0x496   : > { %6586 = vst [vmem:[#allocation7 + $0x18] sm:$0xf] %v13853_v48  ;;  %6945 = vst [vmem:[#allocation7 + $0x14] sm:$0xf] %v13924_v60  ;;  %v6126_v52 = vmax.f32 %v6094_v47, 0.0  ;;  %14823 = vmatprep.subr.bf16.mxu1 %v15176_v25 }
 0x497   : > { %v6292_v32 = vsel %vm21063_vm12, %v6226_v23, %v6227_v40  ;;  %v6400_v56 = vsel %vm21064_vm4, %v6334_v33, %v6335_v17  ;;  %6767 = vst [vmem:[#allocation7 + $0x28] sm:$0xf] %v13890_v41  ;;  %v5976_v10 = vpop.f32.mrf.mxu0  ;;  %vm21070_vm12 = vmmov %vm21066_vm2 }
 0x498   : > { %v13854_v12 = vpack.c.bf16 %v6292_v32, %v6292_v32  ;;  %v13925_v39 = vpack.c.bf16 %v6400_v56, %v6400_v56  ;;  %v6228_v58 = vrot.slane %v6126_v52, 7  ;;  %v6336_v4 = vrot.slane %v6126_v52, 1  ;;  %vm21071_vm4 = vmmov %vm21065_vm0 }
 0x499   : > { %v13891_v59 = vpack.c.bf16 %v6126_v52, %v6126_v52  ;;  %v6095_v48 = vadd.f32 %v5976_v10, %v18219_v2  ;;  %v5978_v0 = vpop.f32.mrf.mxu0 }
 0x49a   : > { %6587 = vst [vmem:[#allocation7 + $0x24] sm:$0xf] %v13854_v12  ;;  %6946 = vst [vmem:[#allocation7 + $0x20] sm:$0xf] %v13925_v39  ;;  %v6291_v23 = vsel %vm21065_vm0, %v6227_v40, %v6228_v58  ;;  %v6399_v33 = vsel %vm21066_vm2, %v6335_v17, %v6336_v4 }
 0x49b   : > { %v6300_v56 = vsel %vm20822_vm9, 0.0, %v6291_v23  ;;  %v6407_v60 = vsel %vm15678_vm11, 0.0, %v6399_v33  ;;  %6768 = vst [vmem:[#allocation7 + $0x34] sm:$0xf] %v13891_v59  ;;  %v6127_v47 = vmax.f32 %v6095_v48, 0.0  ;;  %v5981_v41 = vpop.f32.mrf.mxu0  ;;  %vm21072_vm0 = vmmov %vm21066_vm2 }
 0x49c   : > { %v13855_v2 = vpack.c.bf16 %v6300_v56, %v6300_v56  ;;  %v13926_v9 = vpack.c.bf16 %v6407_v60, %v6407_v60  ;;  %v6096_v39 = vadd.f32 %v5981_v41, %v18226_v34  ;;  %vm21073_vm2 = vmmov %vm21071_vm4 }
 0x49d   : > { %v6229_v52 = vrot.slane %v6127_v47, 7  ;;  %v6337_v32 = vrot.slane %v6127_v47, 1  ;;  %v13892_v40 = vpack.c.bf16 %v6127_v47, %v6127_v47  ;;  %v5983_v10 = vpop.f32.mrf.mxu0  ;;  %v15089_v12 = vld [vmem:[#allocation7 + $0x8] ss:$12 sps:$4 sm:$0xff]  }
 0x49e   : > { %6588 = vst [vmem:[#allocation7 + $0x30] sm:$0xf] %v13855_v2  ;;  %6947 = vst [vmem:[#allocation7 + $0x2c] sm:$0xf] %v13926_v9  ;;  %v6128_v17 = vmax.f32 %v6096_v39, 0.0  ;;  %14743 = vmatprep.mubr.bf16.mxu0 %v15089_v12 }
 0x49f   : > { %v6290_v25 = vsel %vm21067_vm5, %v6228_v58, %v6229_v52  ;;  %v6398_v59 = vsel %vm21068_vm3, %v6336_v4, %v6337_v32  ;;  %6769 = vst [vmem:[#allocation7 + $0x40] sm:$0xf] %v13892_v40  ;;  %v5984_v48 = vpop.f32.mrf.mxu0  ;;  %v15092_v2 = vld [vmem:[#allocation7 + $0x1c] ss:$12 sps:$4 sm:$0xff]   ;;  %vm21074_vm5 = vmmov %vm21072_vm0 }
 0x4a0   : > { %v13856_v0 = vpack.c.bf16 %v6290_v25, %v6290_v25  ;;  %v13927_v23 = vpack.c.bf16 %v6398_v59, %v6398_v59  ;;  %v6230_v34 = vrot.slane %v6128_v17, 7  ;;  %v6338_v33 = vrot.slane %v6128_v17, 1  ;;  %7539 = vmatprep.mubr.bf16.mxu1 %v15092_v2  ;;  %vm21075_vm3 = vmmov %vm21073_vm2 }
 0x4a1   : > { %v13893_v56 = vpack.c.bf16 %v6128_v17, %v6128_v17  ;;  %v6097_v60 = vadd.f32 %v5984_v48, %v18237_v3  ;;  %v5986_v47 = vpop.f32.mrf.mxu0  ;;  %v15090_v41 = vld [vmem:[#allocation7 + $0x18] ss:$12 sps:$4 sm:$0xff]  }
 0x4a2   : > { %6589 = vst [vmem:[#allocation7 + $0x3c] sm:$0xf] %v13856_v0  ;;  %6948 = vst [vmem:[#allocation7 + $0x38] sm:$0xf] %v13927_v23  ;;  %v6289_v58 = vsel %vm21069_vm8, %v6229_v52, %v6230_v34  ;;  %v6397_v4 = vsel %vm21070_vm12, %v6337_v32, %v6338_v33  ;;  %7540 = vmatmul.mubr.bf16.gmra.mxu1 %v15090_v41  ;;  %v15155_v52 = vld [vmem:[%s20288_s7 + $0x170] sm:$0xff]  }
 0x4a3   : > { %v6302_v9 = vsel %vm20832_vm6, 0.0, %v6289_v58  ;;  %v6409_v39 = vsel %vm15755_vm14, 0.0, %v6397_v4  ;;  %6770 = vst [vmem:[#allocation7 + $0x4c] sm:$0xf] %v13893_v56  ;;  %v6129_v40 = vmax.f32 %v6097_v60, 0.0  ;;  %v5989_v3 = vpop.f32.mrf.mxu0  ;;  %v15157_v4 = vld [vmem:[%s20288_s7 + $0x168] sm:$0xff]   ;;  %vm21076_vm8 = vmmov %vm21072_vm0 }
 0x4a4   : > { %v13857_v10 = vpack.c.bf16 %v6302_v9, %v6302_v9  ;;  %v13928_v12 = vpack.c.bf16 %v6409_v39, %v6409_v39  ;;  %v6098_v17 = vadd.f32 %v5989_v3, %v18247_v55  ;;  %vm21077_vm12 = vmmov %vm21073_vm2 }
 0x4a5   : > { %v6231_v32 = vrot.slane %v6129_v40, 7  ;;  %v6339_v25 = vrot.slane %v6129_v40, 1  ;;  %v13894_v59 = vpack.c.bf16 %v6129_v40, %v6129_v40  ;;  %v5991_v48 = vpop.f32.mrf.mxu0  ;;  %v15094_v0 = vld [vmem:[#allocation7 + $0x20] ss:$12 sps:$4 sm:$0xff]  }
 0x4a6   : > { %6590 = vst [vmem:[#allocation7 + $0x48] sm:$0xf] %v13857_v10  ;;  %6949 = vst [vmem:[#allocation7 + $0x44] sm:$0xf] %v13928_v12  ;;  %v6130_v23 = vmax.f32 %v6098_v17, 0.0  ;;  %14744 = vmatmul.mubr.bf16.vlgmr.msra.gmra.mxu0 %v15094_v0 }
 0x4a7   : > { %v6288_v56 = vsel %vm21071_vm4, %v6230_v34, %v6231_v32  ;;  %v6396_v60 = vsel %vm21072_vm0, %v6338_v33, %v6339_v25  ;;  %6771 = vst [vmem:[#allocation7 + $0x58] sm:$0xf] %v13894_v59  ;;  %v5992_v55 = vpop.f32.mrf.mxu0  ;;  %14776 = vmatpush3.bf16.msra.mxu0 %v18372_v44  ;;  %v15097_v3 = vld [vmem:[#allocation7 + $0x34] ss:$12 sps:$4 sm:$0xff]   ;;  %vm21078_vm4 = vmmov %vm21072_vm0  ;;  %vm21079_vm0 = vnez %v20867_v38 }
 0x4a8   : > { %v13858_v47 = vpack.c.bf16 %v6288_v56, %v6288_v56  ;;  %v13929_v41 = vpack.c.bf16 %v6396_v60, %v6396_v60  ;;  %v6232_v2 = vrot.slane %v6130_v23, 7  ;;  %v6340_v58 = vrot.slane %v6130_v23, 1  ;;  %14777 = vmatprep.subr.bf16.mxu0 %v15155_v52  ;;  %7547 = vmatprep.mubr.bf16.mxu1 %v15097_v3  ;;  %v15165_v3 = vld [vmem:[%s20288_s7 + $0x158] sm:$0xff]  }
 0x4a9   : > { %v13895_v9 = vpack.c.bf16 %v6130_v23, %v6130_v23  ;;  %v6099_v39 = vadd.f32 %v5992_v55, %v18255_v42  ;;  %v5994_v34 = vpop.f32.mrf.mxu0  ;;  %v15095_v40 = vld [vmem:[#allocation7 + $0x30] ss:$12 sps:$4 sm:$0xff]  }
 0x4aa   : > { %6591 = vst [vmem:[#allocation7 + $0x54] sm:$0xf] %v13858_v47  ;;  %6950 = vst [vmem:[#allocation7 + $0x50] sm:$0xf] %v13929_v41  ;;  %v6287_v33 = vsel %vm21073_vm2, %v6231_v32, %v6232_v2  ;;  %v6395_v10 = vsel %vm21074_vm5, %v6339_v25, %v6340_v58  ;;  %7548 = vmatmul.mubr.bf16.gmra.mxu1 %v15095_v40  ;;  %v15163_v32 = vld [vmem:[%s20288_s7 + $0x160] sm:$0xff]   ;;  %vm21080_vm2 = vnez %v20818_v13 }
 0x4ab   : > { %v6304_v44 = vsel %vm20842_vm1, 0.0, %v6287_v33  ;;  %v6411_v12 = vsel %vm15797_vm15, 0.0, %v6395_v10  ;;  %6772 = vst [vmem:[#allocation7 + $0x64] sm:$0xf] %v13895_v9  ;;  %v6131_v42 = vmax.f32 %v6099_v39, 0.0  ;;  %v5997_v17 = vpop.f32.mrf.mxu0  ;;  %14778 = vmatpush3.bf16.msra.mxu0 %v15155_v52  ;;  %vm21081_vm5 = vmmov %vm21075_vm3 }
 0x4ac   : > { %v13859_v59 = vpack.c.bf16 %v6304_v44, %v6304_v44  ;;  %v13930_v48 = vpack.c.bf16 %v6411_v12, %v6411_v12  ;;  %v6100_v0 = vadd.f32 %v5997_v17, %v18259_v21  ;;  %14779 = vmatprep.subr.bf16.mxu0 %v15157_v4 }
 0x4ad   : > { %v6233_v25 = vrot.slane %v6131_v42, 7  ;;  %v6341_v23 = vrot.slane %v6131_v42, 1  ;;  %v13896_v56 = vpack.c.bf16 %v6131_v42, %v6131_v42  ;;  %v5999_v60 = vpop.f32.mrf.mxu0  ;;  %v15100_v55 = vld [vmem:[#allocation7 + $0x38] ss:$12 sps:$4 sm:$0xff]  }
 0x4ae   : > { %6592 = vst [vmem:[#allocation7 + $0x60] sm:$0xf] %v13859_v59  ;;  %6951 = vst [vmem:[#allocation7 + $0x5c] sm:$0xf] %v13930_v48  ;;  %v6132_v47 = vmax.f32 %v6100_v0, 0.0  ;;  %14747 = vmatprep.mubr.bf16.mxu0 %v15100_v55 }
 0x4af   : > { %v6286_v41 = vsel %vm21075_vm3, %v6232_v2, %v6233_v25  ;;  %v6394_v21 = vsel %vm21076_vm8, %v6340_v58, %v6341_v23  ;;  %6773 = vst [vmem:[#allocation7 + $0x70] sm:$0xf] %v13896_v56  ;;  %v6000_v52 = vpop.f32.mrf.mxu0  ;;  %14780 = vmatpush3.bf16.msra.mxu0 %v15157_v4  ;;  %v15103_v12 = vld [vmem:[#allocation7 + $0x4c] ss:$12 sps:$4 sm:$0xff]   ;;  %vm21082_vm3 = vmmov %vm21078_vm4 }
 0x4b0   : > { %v13860_v9 = vpack.c.bf16 %v6286_v41, %v6286_v41  ;;  %v13931_v39 = vpack.c.bf16 %v6394_v21, %v6394_v21  ;;  %v6234_v34 = vrot.slane %v6132_v47, 7  ;;  %v6342_v40 = vrot.slane %v6132_v47, 1  ;;  %14781 = vmatprep.subr.bf16.mxu0 %v15163_v32  ;;  %7555 = vmatprep.mubr.bf16.mxu1 %v15103_v12  ;;  %vm21083_vm8 = vmmov %vm21081_vm5 }
 0x4b1   : > { %v13897_v33 = vpack.c.bf16 %v6132_v47, %v6132_v47  ;;  %v6101_v10 = vadd.f32 %v6000_v52, %v18270_v11  ;;  %v6002_v44 = vpop.f32.mrf.mxu0  ;;  %v15101_v2 = vld [vmem:[#allocation7 + $0x48] ss:$12 sps:$4 sm:$0xff]  }
 0x4b2   : > { %6593 = vst [vmem:[#allocation7 + $0x6c] sm:$0xf] %v13860_v9  ;;  %6952 = vst [vmem:[#allocation7 + $0x68] sm:$0xf] %v13931_v39  ;;  %v6285_v58 = vsel %vm21077_vm12, %v6233_v25, %v6234_v34  ;;  %v6393_v42 = vsel %vm21078_vm4, %v6341_v23, %v6342_v40  ;;  %7556 = vmatmul.mubr.bf16.gmra.mxu1 %v15101_v2  ;;  %v15169_v25 = vld [vmem:[%s20288_s7 + $0x150] sm:$0xff]   ;;  %v15174_v44 = vld [vmem:[%s20288_s7 + $0x148] sm:$0xff]   ;;  %vm21085_vm4 = vnez %v20883_v50 }
 0x4b3   : > { %v6306_v4 = vsel %vm21079_vm0, 0.0, %v6285_v58  ;;  %v6413_v17 = vsel %vm21080_vm2, 0.0, %v6393_v42  ;;  %6774 = vst [vmem:[#allocation7 + $0x7c] sm:$0xf] %v13897_v33  ;;  %v6133_v11 = vmax.f32 %v6101_v10, 0.0  ;;  %v6005_v59 = vpop.f32.mrf.mxu0  ;;  %14782 = vmatpush3.bf16.msra.mxu0 %v15163_v32  ;;  %vm21084_vm12 = vmmov %vm21082_vm3 }
 0x4b4   : > { %v13861_v48 = vpack.c.bf16 %v6306_v4, %v6306_v4  ;;  %v13932_v0 = vpack.c.bf16 %v6413_v17, %v6413_v17  ;;  %v6102_v56 = vadd.f32 %v6005_v59, %v18276_v26  ;;  %14783 = vmatprep.subr.bf16.mxu0 %v15165_v3 }
 0x4b5   : > { %v6235_v23 = vrot.slane %v6133_v11, 7  ;;  %v6343_v60 = vrot.slane %v6133_v11, 1  ;;  %v13898_v55 = vpack.c.bf16 %v6133_v11, %v6133_v11  ;;  %v6007_v47 = vpop.f32.mrf.mxu0  ;;  %v15104_v41 = vld [vmem:[#allocation7 + $0x50] ss:$12 sps:$4 sm:$0xff]  }
 0x4b6   : > { %6594 = vst [vmem:[#allocation7 + $0x78] sm:$0xf] %v13861_v48  ;;  %6953 = vst [vmem:[#allocation7 + $0x74] sm:$0xf] %v13932_v0  ;;  %v6134_v21 = vmax.f32 %v6102_v56, 0.0  ;;  %14748 = vmatmul.mubr.bf16.gmra.mxu0 %v15104_v41  ;;  %v15177_v56 = vld [vmem:[%s20288_s7 + $0x140] sm:$0xff]  }
 0x4b7   : > { %v6284_v52 = vsel %vm21081_vm5, %v6234_v34, %v6235_v23  ;;  %v6392_v26 = vsel %vm21082_vm3, %v6342_v40, %v6343_v60  ;;  %6775 = vst [vmem:[#allocation7 + $0x88] sm:$0xf] %v13898_v55  ;;  %v6008_v32 = vpop.f32.mrf.mxu0  ;;  %14784 = vmatpush3.bf16.msra.mxu0 %v15165_v3  ;;  %v15107_v42 = vld [vmem:[#allocation7 + $0x64] ss:$12 sps:$4 sm:$0xff]   ;;  %vm21086_vm5 = vnez %v20824_v62  ;;  %vm21087_vm3 = vmmov %vm21083_vm8 }
 0x4b8   : > { %v13862_v9 = vpack.c.bf16 %v6284_v52, %v6284_v52  ;;  %v13933_v39 = vpack.c.bf16 %v6392_v26, %v6392_v26  ;;  %v6236_v33 = vrot.slane %v6134_v21, 7  ;;  %v6344_v10 = vrot.slane %v6134_v21, 1  ;;  %14785 = vmatprep.subr.bf16.mxu0 %v15169_v25  ;;  %7563 = vmatprep.mubr.bf16.mxu1 %v15107_v42 }
 0x4b9   : > { %v13899_v2 = vpack.c.bf16 %v6134_v21, %v6134_v21  ;;  %v6103_v12 = vadd.f32 %v6008_v32, %v18282_v30  ;;  %v6010_v58 = vpop.f32.mrf.mxu0  ;;  %v15105_v34 = vld [vmem:[#allocation7 + $0x60] ss:$12 sps:$4 sm:$0xff]  }
 0x4ba   : > { %6595 = vst [vmem:[#allocation7 + $0x84] sm:$0xf] %v13862_v9  ;;  %6954 = vst [vmem:[#allocation7 + $0x80] sm:$0xf] %v13933_v39  ;;  %v6283_v40 = vsel %vm21083_vm8, %v6235_v23, %v6236_v33  ;;  %v6391_v4 = vsel %vm21084_vm12, %v6343_v60, %v6344_v10  ;;  %7564 = vmatmul.mubr.bf16.gmra.mxu1 %v15105_v34 }
 0x4bb   : > { %v6308_v3 = vsel %vm21085_vm4, 0.0, %v6283_v40  ;;  %v6415_v17 = vsel %vm21086_vm5, 0.0, %v6391_v4  ;;  %6776 = vst [vmem:[#allocation7 + $0x94] sm:$0xf] %v13899_v2  ;;  %v6135_v30 = vmax.f32 %v6103_v12, 0.0  ;;  %v6013_v11 = vpop.f32.mrf.mxu0  ;;  %14786 = vmatpush3.bf16.msra.mxu0 %v15169_v25  ;;  %vm21088_vm8 = vmmov %vm21084_vm12  ;;  %v15201_v2 = vld [vmem:[%s20288_s7 + $0x1f8] sm:$0xff]   ;;  %vm21092_vm5 = vnez %v20827_v49 }
 0x4bc   : > { %v13863_v59 = vpack.c.bf16 %v6308_v3, %v6308_v3  ;;  %v13934_v48 = vpack.c.bf16 %v6415_v17, %v6415_v17  ;;  %v6104_v0 = vadd.f32 %v6013_v11, %v18285_v31  ;;  %14787 = vmatprep.subr.bf16.mxu0 %v15174_v44  ;;  %vm21089_vm12 = vmmov %vm21087_vm3 }
 0x4bd   : > { %v6237_v23 = vrot.slane %v6135_v30, 7  ;;  %v6345_v60 = vrot.slane %v6135_v30, 1  ;;  %v13900_v55 = vpack.c.bf16 %v6135_v30, %v6135_v30  ;;  %v6015_v47 = vpop.f32.mrf.mxu0  ;;  %v15110_v41 = vld [vmem:[#allocation7 + $0x68] ss:$12 sps:$4 sm:$0xff]  }
 0x4be   : > { %6596 = vst [vmem:[#allocation7 + $0x90] sm:$0xf] %v13863_v59  ;;  %6955 = vst [vmem:[#allocation7 + $0x8c] sm:$0xf] %v13934_v48  ;;  %v6136_v21 = vmax.f32 %v6104_v0, 0.0  ;;  %14751 = vmatprep.mubr.bf16.mxu0 %v15110_v41 }
 0x4bf   : > { %v6282_v52 = vsel %vm21087_vm3, %v6236_v33, %v6237_v23  ;;  %v6390_v31 = vsel %vm21088_vm8, %v6344_v10, %v6345_v60  ;;  %6777 = vst [vmem:[#allocation7 + $0xa0] sm:$0xf] %v13900_v55  ;;  %v6016_v25 = vpop.f32.mrf.mxu0  ;;  %14788 = vmatpush3.bf16.msra.mxu0 %v15174_v44  ;;  %v15113_v42 = vld [vmem:[#allocation7 + $0x7c] ss:$12 sps:$4 sm:$0xff]   ;;  %vm21090_vm3 = vmmov %vm21088_vm8  ;;  %vm21091_vm8 = vnez %v20891_v7 }
 0x4c0   : > { %v13864_v26 = vpack.c.bf16 %v6282_v52, %v6282_v52  ;;  %v13935_v32 = vpack.c.bf16 %v6390_v31, %v6390_v31  ;;  %v6238_v9 = vrot.slane %v6136_v21, 7  ;;  %v6346_v39 = vrot.slane %v6136_v21, 1  ;;  %14789 = vmatprep.subr.bf16.mxu0 %v15177_v56  ;;  %7571 = vmatprep.mubr.bf16.mxu1 %v15113_v42 }
 0x4c1   : > { %v13901_v12 = vpack.c.bf16 %v6136_v21, %v6136_v21  ;;  %v6105_v58 = vadd.f32 %v6016_v25, %v18294_v35  ;;  %v6018_v34 = vpop.f32.mrf.mxu0  ;;  %v15111_v33 = vld [vmem:[#allocation7 + $0x78] ss:$12 sps:$4 sm:$0xff]  }
 0x4c2   : > { %6597 = vst [vmem:[#allocation7 + $0x9c] sm:$0xf] %v13864_v26  ;;  %6956 = vst [vmem:[#allocation7 + $0x98] sm:$0xf] %v13935_v32  ;;  %v6281_v10 = vsel %vm21089_vm12, %v6237_v23, %v6238_v9  ;;  %v6389_v40 = vsel %vm21090_vm3, %v6345_v60, %v6346_v39  ;;  %7572 = vmatmul.mubr.bf16.gmra.mxu1 %v15111_v33 }
 0x4c3   : > { %v6310_v44 = vsel %vm21091_vm8, 0.0, %v6281_v10  ;;  %v6417_v4 = vsel %vm21092_vm5, 0.0, %v6389_v40  ;;  %6778 = vst [vmem:[#allocation7 + $0xac] sm:$0xf] %v13901_v12  ;;  %v6137_v35 = vmax.f32 %v6105_v58, 0.0  ;;  %v6021_v3 = vpop.f32.mrf.mxu0  ;;  %14790 = vmatpush3.bf16.msra.mxu0 %v15177_v56  ;;  %vm21093_vm5 = vnez %v20903_v28 }
 0x4c4   : > { %v13865_v17 = vpack.c.bf16 %v6310_v44, %v6310_v44  ;;  %v13936_v30 = vpack.c.bf16 %v6417_v4, %v6417_v4  ;;  %v6106_v11 = vadd.f32 %v6021_v3, %v18297_v36  ;;  %14423 = vmatprep.subr.bf16.mxu0 %v15201_v2  ;;  %vm21094_vm8 = vnez %v20835_v14 }
 0x4c5   : > { %v6239_v59 = vrot.slane %v6137_v35, 7  ;;  %v6347_v48 = vrot.slane %v6137_v35, 1  ;;  %v13902_v0 = vpack.c.bf16 %v6137_v35, %v6137_v35  ;;  %v6023_v23 = vpop.f32.mrf.mxu0  ;;  %v15114_v60 = vld [vmem:[#allocation7 + $0x80] ss:$12 sps:$4 sm:$0xff]  }
 0x4c6   : > { %6598 = vst [vmem:[#allocation7 + $0xa8] sm:$0xf] %v13865_v17  ;;  %6957 = vst [vmem:[#allocation7 + $0xa4] sm:$0xf] %v13936_v30  ;;  %v6138_v55 = vmax.f32 %v6106_v11, 0.0  ;;  %14752 = vmatmul.mubr.bf16.gmra.mxu0 %v15114_v60 }
 0x4c7   : > { %v6280_v47 = vsel %vm21089_vm12, %v6238_v9, %v6239_v59  ;;  %v6388_v41 = vsel %vm21090_vm3, %v6346_v39, %v6347_v48  ;;  %6779 = vst [vmem:[#allocation7 + $0xb8] sm:$0xf] %v13902_v0  ;;  %v6024_v21 = vpop.f32.mrf.mxu0  ;;  %v15117_v12 = vld [vmem:[#allocation7 + $0x94] ss:$12 sps:$4 sm:$0xff]  }
 0x4c8   : > { %v13866_v36 = vpack.c.bf16 %v6280_v47, %v6280_v47  ;;  %v13937_v56 = vpack.c.bf16 %v6388_v41, %v6388_v41  ;;  %v6240_v52 = vrot.slane %v6138_v55, 7  ;;  %v6348_v31 = vrot.slane %v6138_v55, 1  ;;  %7579 = vmatprep.mubr.bf16.mxu1 %v15117_v12 }
 0x4c9   : > { %v13903_v25 = vpack.c.bf16 %v6138_v55, %v6138_v55  ;;  %v6107_v26 = vadd.f32 %v6024_v21, %v18300_v51  ;;  %v6026_v32 = vpop.f32.mrf.mxu0  ;;  %v15115_v2 = vld [vmem:[#allocation7 + $0x90] ss:$12 sps:$4 sm:$0xff]  }
 0x4ca   : > { %6599 = vst [vmem:[#allocation7 + $0xb4] sm:$0xf] %v13866_v36  ;;  %6958 = vst [vmem:[#allocation7 + $0xb0] sm:$0xf] %v13937_v56  ;;  %v6279_v9 = vsel %vm21089_vm12, %v6239_v59, %v6240_v52  ;;  %v6387_v39 = vsel %vm21090_vm3, %v6347_v48, %v6348_v31  ;;  %7580 = vmatmul.mubr.bf16.gmra.mxu1 %v15115_v2 }
 0x4cb   : > { %v6312_v58 = vsel %vm21093_vm5, 0.0, %v6279_v9  ;;  %v6419_v34 = vsel %vm21094_vm8, 0.0, %v6387_v39  ;;  %6780 = vst [vmem:[#allocation7 + $0xc4] sm:$0xf] %v13903_v25  ;;  %v6139_v33 = vmax.f32 %v6107_v26, 0.0  ;;  %v6029_v51 = vpop.f32.mrf.mxu0  ;;  %vm21095_vm8 = vnez %v20919_v27 }
 0x4cc   : > { %v13867_v42 = vpack.c.bf16 %v6312_v58, %v6312_v58  ;;  %v13938_v10 = vpack.c.bf16 %v6419_v34, %v6419_v34  ;;  %v6108_v40 = vadd.f32 %v6029_v51, %v18303_v19  ;;  %vm21096_vm5 = vnez %v20837_v8 }
 0x4cd   : > { %v6241_v44 = vrot.slane %v6139_v33, 7  ;;  %v6349_v4 = vrot.slane %v6139_v33, 1  ;;  %v13904_v35 = vpack.c.bf16 %v6139_v33, %v6139_v33  ;;  %v6031_v3 = vpop.f32.mrf.mxu0  ;;  %v15120_v17 = vld [vmem:[#allocation7 + $0x98] ss:$12 sps:$4 sm:$0xff]  }
 0x4ce   : > { %6600 = vst [vmem:[#allocation7 + $0xc0] sm:$0xf] %v13867_v42  ;;  %6959 = vst [vmem:[#allocation7 + $0xbc] sm:$0xf] %v13938_v10  ;;  %v6140_v30 = vmax.f32 %v6108_v40, 0.0  ;;  %14755 = vmatprep.mubr.bf16.mxu0 %v15120_v17 }
 0x4cf   : > { %v6278_v11 = vsel %vm21089_vm12, %v6240_v52, %v6241_v44  ;;  %v6386_v59 = vsel %vm21090_vm3, %v6348_v31, %v6349_v4  ;;  %6781 = vst [vmem:[#allocation7 + $0xd0] sm:$0xf] %v13904_v35  ;;  %v6032_v48 = vpop.f32.mrf.mxu0  ;;  %v18532_v36 = vld [vmem:[#allocation7 + $0xac] ss:$12 sps:$4 sm:$0xff]  }
 0x4d0   : > { %v13868_v0 = vpack.c.bf16 %v6278_v11, %v6278_v11  ;;  %v13939_v19 = vpack.c.bf16 %v6386_v59, %v6386_v59  ;;  %v6242_v23 = vrot.slane %v6140_v30, 7  ;;  %v6350_v60 = vrot.slane %v6140_v30, 1  ;;  %7587 = vmatprep.mubr.bf16.mxu1 %v18532_v36 }
 0x4d1   : > { %v13905_v55 = vpack.c.bf16 %v6140_v30, %v6140_v30  ;;  %v6109_v47 = vadd.f32 %v6032_v48, %v18312_v6  ;;  %v6034_v41 = vpop.f32.mrf.mxu0  ;;  %v18530_v21 = vld [vmem:[#allocation7 + $0xa8] ss:$12 sps:$4 sm:$0xff]  }
 0x4d2   : > { %6601 = vst [vmem:[#allocation7 + $0xcc] sm:$0xf] %v13868_v0  ;;  %6960 = vst [vmem:[#allocation7 + $0xc8] sm:$0xf] %v13939_v19  ;;  %v6277_v56 = vsel %vm21089_vm12, %v6241_v44, %v6242_v23  ;;  %v6385_v52 = vsel %vm21090_vm3, %v6349_v4, %v6350_v60  ;;  %7588 = vmatmul.mubr.bf16.gmra.mxu1 %v18530_v21 }
 0x4d3   : > { %v6314_v31 = vsel %vm21095_vm8, 0.0, %v6277_v56  ;;  %v6421_v25 = vsel %vm21096_vm5, 0.0, %v6385_v52  ;;  %6782 = vst [vmem:[#allocation7 + $0xdc] sm:$0xf] %v13905_v55  ;;  %v6141_v6 = vmax.f32 %v6109_v47, 0.0  ;;  %v6037_v26 = vpop.f32.mrf.mxu0  ;;  %vm21097_vm5 = vnez %v20923_v45 }
 0x4d4   : > { %v13869_v32 = vpack.c.bf16 %v6314_v31, %v6314_v31  ;;  %v13940_v2 = vpack.c.bf16 %v6421_v25, %v6421_v25  ;;  %v6110_v12 = vadd.f32 %v6037_v26, %v18315_v24  ;;  %vm21098_vm8 = vnez %v20848_v18 }
 0x4d5   : > { %v6243_v9 = vrot.slane %v6141_v6, 7  ;;  %v6351_v39 = vrot.slane %v6141_v6, 1  ;;  %v13906_v58 = vpack.c.bf16 %v6141_v6, %v6141_v6  ;;  %v6039_v34 = vpop.f32.mrf.mxu0  ;;  %v15124_v33 = vld [vmem:[#allocation7 + $0xb0] ss:$12 sps:$4 sm:$0xff]  }
 0x4d6   : > { %6602 = vst [vmem:[#allocation7 + $0xd8] sm:$0xf] %v13869_v32  ;;  %6961 = vst [vmem:[#allocation7 + $0xd4] sm:$0xf] %v13940_v2  ;;  %v6142_v51 = vmax.f32 %v6110_v12, 0.0  ;;  %14756 = vmatmul.mubr.bf16.gmra.mxu0 %v15124_v33 }
 0x4d7   : > { %v6276_v42 = vsel %vm21089_vm12, %v6242_v23, %v6243_v9  ;;  %v6384_v10 = vsel %vm21090_vm3, %v6350_v60, %v6351_v39  ;;  %6783 = vst [vmem:[#allocation7 + $0xe8] sm:$0xf] %v13906_v58  ;;  %v6040_v40 = vpop.f32.mrf.mxu0  ;;  %v18552_v59 = vld [vmem:[#allocation7 + $0xc4] ss:$12 sps:$4 sm:$0xff]  }
 0x4d8   : > { %v13870_v24 = vpack.c.bf16 %v6276_v42, %v6276_v42  ;;  %v13941_v44 = vpack.c.bf16 %v6384_v10, %v6384_v10  ;;  %v6244_v4 = vrot.slane %v6142_v51, 7  ;;  %v6352_v35 = vrot.slane %v6142_v51, 1  ;;  %7595 = vmatprep.mubr.bf16.mxu1 %v18552_v59 }
 0x4d9   : > { %v13907_v3 = vpack.c.bf16 %v6142_v51, %v6142_v51  ;;  %v6111_v17 = vadd.f32 %v6040_v40, %v18318_v63  ;;  %v6042_v30 = vpop.f32.mrf.mxu0  ;;  %v18550_v11 = vld [vmem:[#allocation7 + $0xc0] ss:$12 sps:$4 sm:$0xff]  }
 0x4da   : > { %6603 = vst [vmem:[#allocation7 + $0xe4] sm:$0xf] %v13870_v24  ;;  %6962 = vst [vmem:[#allocation7 + $0xe0] sm:$0xf] %v13941_v44  ;;  %v6275_v48 = vsel %vm21089_vm12, %v6243_v9, %v6244_v4  ;;  %v6383_v0 = vsel %vm21090_vm3, %v6351_v39, %v6352_v35  ;;  %7596 = vmatmul.mubr.bf16.gmra.mxu1 %v18550_v11 }
 0x4db   : > { %v6316_v19 = vsel %vm21097_vm5, 0.0, %v6275_v48  ;;  %v6423_v23 = vsel %vm21098_vm8, 0.0, %v6383_v0  ;;  %6784 = vst [vmem:[#allocation7 + $0xf4] sm:$0xf] %v13907_v3  ;;  %v6143_v63 = vmax.f32 %v6111_v17, 0.0  ;;  %v6045_v60 = vpop.f32.mrf.mxu0  ;;  %vm21099_vm8 = vnez %v20927_v43  ;;  %v21102_v48 = vld [vmem:[#allocation54_spill] sm:$0xff] }
 0x4dc   : > { %v13871_v55 = vpack.c.bf16 %v6316_v19, %v6316_v19  ;;  %v13942_v47 = vpack.c.bf16 %v6423_v23, %v6423_v23  ;;  %v6112_v41 = vadd.f32 %v6045_v60, %v18321_v22 }
 0x4dd   : > { %v6245_v56 = vrot.slane %v6143_v63, 7  ;;  %v6353_v52 = vrot.slane %v6143_v63, 1  ;;  %v13908_v31 = vpack.c.bf16 %v6143_v63, %v6143_v63  ;;  %v6047_v25 = vpop.f32.mrf.mxu0  ;;  %v15130_v6 = vld [vmem:[#allocation7 + $0xc8] ss:$12 sps:$4 sm:$0xff]  }
 0x4de   : > { %6604 = vst [vmem:[#allocation7 + $0xf0] sm:$0xf] %v13871_v55  ;;  %6963 = vst [vmem:[#allocation7 + $0xec] sm:$0xf] %v13942_v47  ;;  %v6144_v26 = vmax.f32 %v6112_v41, 0.0  ;;  %14759 = vmatprep.mubr.bf16.mxu0 %v15130_v6 }
 0x4df   : > { %v6274_v32 = vsel %vm21089_vm12, %v6244_v4, %v6245_v56  ;;  %v6382_v2 = vsel %vm21090_vm3, %v6352_v35, %v6353_v52  ;;  %6785 = vst [vmem:[#allocation7 + $0x100] sm:$0xf] %v13908_v31  ;;  %v6048_v12 = vpop.f32.mrf.mxu0  ;;  %v18572_v10 = vld [vmem:[#allocation7 + $0xdc] ss:$12 sps:$4 sm:$0xff]  }
 0x4e0   : > { %v13872_v22 = vpack.c.bf16 %v6274_v32, %v6274_v32  ;;  %v13943_v9 = vpack.c.bf16 %v6382_v2, %v6382_v2  ;;  %v6246_v39 = vrot.slane %v6144_v26, 7  ;;  %v6354_v58 = vrot.slane %v6144_v26, 1  ;;  %v21100_v4 = vld [vmem:[#allocation35_spill] sm:$0xff]  ;;  %7603 = vmatprep.mubr.bf16.mxu1 %v18572_v10 }
 0x4e1   : > { %v13909_v34 = vpack.c.bf16 %v6144_v26, %v6144_v26  ;;  %v6113_v33 = vadd.f32 %v6048_v12, %v18330_v57  ;;  %v6050_v51 = vpop.f32.mrf.mxu0  ;;  %v18570_v42 = vld [vmem:[#allocation7 + $0xd8] ss:$12 sps:$4 sm:$0xff]   ;;  %vm21101_vm5 = vnez %v21100_v4 }
 0x4e2   : > { %6605 = vst [vmem:[#allocation7 + $0xfc] sm:$0xf] %v13872_v22  ;;  %6964 = vst [vmem:[#allocation7 + $0xf8] sm:$0xf] %v13943_v9  ;;  %v6273_v40 = vsel %vm21089_vm12, %v6245_v56, %v6246_v39  ;;  %v6381_v24 = vsel %vm21090_vm3, %v6353_v52, %v6354_v58  ;;  %7604 = vmatmul.mubr.bf16.gmra.mxu1 %v18570_v42  ;;  %v21103_v2 = vld [vmem:[#allocation55_spill] sm:$0xff] }
 0x4e3   : > { %v6318_v44 = vsel %vm21099_vm8, 0.0, %v6273_v40  ;;  %v6425_v35 = vsel %vm21101_vm5, 0.0, %v6381_v24  ;;  %6786 = vst [vmem:[#allocation7 + $0x10c] sm:$0xf] %v13909_v34  ;;  %v6145_v57 = vmax.f32 %v6113_v33, 0.0  ;;  %v6053_v3 = vpop.f32.mrf.mxu0  ;;  %v14167_v33 = vpop.f32.mrf.mxu1  ;;  %v21104_v51 = vld [vmem:[#allocation31_spill] sm:$0xff] }
 0x4e4   : > { %v13873_v17 = vpack.c.bf16 %v6318_v44, %v6318_v44  ;;  %v13944_v30 = vpack.c.bf16 %v6425_v35, %v6425_v35  ;;  %v6114_v0 = vadd.f32 %v6053_v3, %v21102_v48  ;;  %vm21105_vm5 = vnez %v21104_v51  ;;  %v21106_v24 = vld [vmem:[#allocation40_spill] sm:$0xff] }
 0x4e5   : > { %v6247_v19 = vrot.slane %v6145_v57, 7  ;;  %v6355_v23 = vrot.slane %v6145_v57, 1  ;;  %v13910_v63 = vpack.c.bf16 %v6145_v57, %v6145_v57  ;;  %v6055_v60 = vpop.f32.mrf.mxu0  ;;  %v15134_v55 = vld [vmem:[#allocation7 + $0xe0] ss:$12 sps:$4 sm:$0xff]   ;;  %vm21107_vm8 = vnez %v21106_v24 }
 0x4e6   : > { %6606 = vst [vmem:[#allocation7 + $0x108] sm:$0xf] %v13873_v17  ;;  %6965 = vst [vmem:[#allocation7 + $0x104] sm:$0xf] %v13944_v30  ;;  %v6146_v47 = vmax.f32 %v6114_v0, 0.0  ;;  %14760 = vmatmul.mubr.bf16.gmra.mxu0 %v15134_v55  ;;  %v21108_v30 = vld [vmem:[#allocation56_spill] sm:$0xff]  ;;  %v14168_v0 = vpop.f32.mrf.mxu1 }
 0x4e7   : > { %v6272_v41 = vsel %vm21089_vm12, %v6246_v39, %v6247_v19  ;;  %v6380_v56 = vsel %vm21090_vm3, %v6354_v58, %v6355_v23  ;;  %6787 = vst [vmem:[#allocation7 + $0x118] sm:$0xf] %v13910_v63  ;;  %v6056_v52 = vpop.f32.mrf.mxu0  ;;  %v18592_v34 = vld [vmem:[#allocation7 + $0xf4] ss:$12 sps:$4 sm:$0xff]  }
 0x4e8   : > { %v13874_v31 = vpack.c.bf16 %v6272_v41, %v6272_v41  ;;  %v13945_v25 = vpack.c.bf16 %v6380_v56, %v6380_v56  ;;  %v6248_v6 = vrot.slane %v6146_v47, 7  ;;  %v6356_v26 = vrot.slane %v6146_v47, 1  ;;  %7611 = vmatprep.mubr.bf16.mxu1 %v18592_v34 }
 0x4e9   : > { %v13911_v32 = vpack.c.bf16 %v6146_v47, %v6146_v47  ;;  %v6115_v12 = vadd.f32 %v6056_v52, %v21103_v2  ;;  %v6058_v22 = vpop.f32.mrf.mxu0  ;;  %v18590_v9 = vld [vmem:[#allocation7 + $0xf0] ss:$12 sps:$4 sm:$0xff]   ;;  %v18605_v47 = vadd.f32 %v14168_v0, %v14167_v33 }
 0x4ea   : > { %6607 = vst [vmem:[#allocation7 + $0x114] sm:$0xf] %v13874_v31  ;;  %6966 = vst [vmem:[#allocation7 + $0x110] sm:$0xf] %v13945_v25  ;;  %v6271_v39 = vsel %vm21089_vm12, %v6247_v19, %v6248_v6  ;;  %v6379_v58 = vsel %vm21090_vm3, %v6355_v23, %v6356_v26  ;;  %7612 = vmatmul.mubr.bf16.gmra.mxu1 %v18590_v9 }
 0x4eb   : > { %v6320_v40 = vsel %vm21105_vm5, 0.0, %v6271_v39  ;;  %v6427_v44 = vsel %vm21107_vm8, 0.0, %v6379_v58  ;;  %6788 = vst [vmem:[#allocation7 + $0x124] sm:$0xf] %v13911_v32  ;;  %v6147_v35 = vmax.f32 %v6115_v12, 0.0  ;;  %v6061_v57 = vpop.f32.mrf.mxu0  ;;  %v21109_v39 = vld [vmem:[#allocation50_spill] sm:$0xff] }
 0x4ec   : > { %v13875_v3 = vpack.c.bf16 %v6320_v40, %v6320_v40  ;;  %v13946_v17 = vpack.c.bf16 %v6427_v44, %v6427_v44  ;;  %v6116_v48 = vadd.f32 %v6061_v57, %v21108_v30 }
 0x4ed   : > { %v6249_v19 = vrot.slane %v6147_v35, 7  ;;  %v6357_v23 = vrot.slane %v6147_v35, 1  ;;  %v13912_v63 = vpack.c.bf16 %v6147_v35, %v6147_v35  ;;  %v6063_v60 = vpop.f32.mrf.mxu0  ;;  %v15140_v55 = vld [vmem:[#allocation7 + $0xf8] ss:$12 sps:$4 sm:$0xff]  }
 0x4ee   : > { %6608 = vst [vmem:[#allocation7 + $0x120] sm:$0xf] %v13875_v3  ;;  %6967 = vst [vmem:[#allocation7 + $0x11c] sm:$0xf] %v13946_v17  ;;  %v6148_v41 = vmax.f32 %v6116_v48, 0.0  ;;  %14763 = vmatprep.mubr.bf16.mxu0 %v15140_v55  ;;  %v21110_v35 = vld [vmem:[#allocation33_spill] sm:$0xff] }
 0x4ef   : > { %v6270_v56 = vsel %vm21089_vm12, %v6248_v6, %v6249_v19  ;;  %v6378_v52 = vsel %vm21090_vm3, %v6356_v26, %v6357_v23  ;;  %6789 = vst [vmem:[#allocation7 + $0x130] sm:$0xf] %v13912_v63  ;;  %v6064_v31 = vpop.f32.mrf.mxu0  ;;  %v18614_v44 = vld [vmem:[#allocation7 + $0x10c] ss:$12 sps:$4 sm:$0xff]   ;;  %vm21111_vm8 = vnez %v21110_v35 }
 0x4f0   : > { %v13876_v25 = vpack.c.bf16 %v6270_v56, %v6270_v56  ;;  %v13947_v32 = vpack.c.bf16 %v6378_v52, %v6378_v52  ;;  %v6250_v2 = vrot.slane %v6148_v41, 7  ;;  %v6358_v12 = vrot.slane %v6148_v41, 1  ;;  %v21112_v3 = vld [vmem:[#allocation41_spill] sm:$0xff]  ;;  %7619 = vmatprep.mubr.bf16.mxu1 %v18614_v44 }
 0x4f1   : > { %v13913_v22 = vpack.c.bf16 %v6148_v41, %v6148_v41  ;;  %v6117_v58 = vadd.f32 %v6064_v31, %v21109_v39  ;;  %v6066_v33 = vpop.f32.mrf.mxu0  ;;  %v18612_v40 = vld [vmem:[#allocation7 + $0x108] ss:$12 sps:$4 sm:$0xff]   ;;  %vm21113_vm5 = vnez %v21112_v3 }
 0x4f2   : > { %6609 = vst [vmem:[#allocation7 + $0x12c] sm:$0xf] %v13876_v25  ;;  %6968 = vst [vmem:[#allocation7 + $0x128] sm:$0xf] %v13947_v32  ;;  %v6269_v6 = vsel %vm21089_vm12, %v6249_v19, %v6250_v2  ;;  %v6377_v26 = vsel %vm21090_vm3, %v6357_v23, %v6358_v12  ;;  %7620 = vmatmul.mubr.bf16.gmra.mxu1 %v18612_v40 }
 0x4f3   : > { %v6322_v57 = vsel %vm21111_vm8, 0.0, %v6269_v6  ;;  %v6429_v17 = vsel %vm21113_vm5, 0.0, %v6377_v26  ;;  %6790 = vst [vmem:[#allocation7 + $0x13c] sm:$0xf] %v13913_v22  ;;  %v6149_v30 = vmax.f32 %v6117_v58, 0.0  ;;  %v6069_v48 = vpop.f32.mrf.mxu0  ;;  %v21114_v6 = vld [vmem:[#allocation52_spill] sm:$0xff] }
 0x4f4   : > { %v13877_v0 = vpack.c.bf16 %v6322_v57, %v6322_v57  ;;  %v13948_v63 = vpack.c.bf16 %v6429_v17, %v6429_v17  ;;  %v6118_v60 = vadd.f32 %v6069_v48, %v18351_v54  ;;  %v21115_v48 = vld [vmem:[#allocation36_spill] sm:$0xff] }
 0x4f5   : > { %v6251_v19 = vrot.slane %v6149_v30, 7  ;;  %v6359_v55 = vrot.slane %v6149_v30, 1  ;;  %v13914_v23 = vpack.c.bf16 %v6149_v30, %v6149_v30  ;;  %v6071_v41 = vpop.f32.mrf.mxu0  ;;  %v15144_v56 = vld [vmem:[#allocation7 + $0x110] ss:$12 sps:$4 sm:$0xff]   ;;  %vm21116_vm5 = vnez %v21115_v48  ;;  %v15248_v48 = vld [vmem:[#allocation7 + $0x68] ss:$12 sps:$4 sm:$0xff]  }
 0x4f6   : > { %6610 = vst [vmem:[#allocation7 + $0x138] sm:$0xf] %v13877_v0  ;;  %6969 = vst [vmem:[#allocation7 + $0x134] sm:$0xf] %v13948_v63  ;;  %v6150_v52 = vmax.f32 %v6118_v60, 0.0  ;;  %14764 = vmatmul.mubr.bf16.gmra.mxu0 %v15144_v56  ;;  %v21117_v63 = vld [vmem:[#allocation42_spill] sm:$0xff] }
 0x4f7   : > { %v6268_v31 = vsel %vm21089_vm12, %v6250_v2, %v6251_v19  ;;  %v6376_v25 = vsel %vm21090_vm3, %v6358_v12, %v6359_v55  ;;  %6791 = vst [vmem:[#allocation7 + $0x148] sm:$0xf] %v13914_v23  ;;  %v6072_v32 = vpop.f32.mrf.mxu0  ;;  %v18634_v30 = vld [vmem:[#allocation7 + $0x124] ss:$12 sps:$4 sm:$0xff]   ;;  %vm21118_vm8 = vnez %v21117_v63 }
 0x4f8   : > { %v13878_v54 = vpack.c.bf16 %v6268_v31, %v6268_v31  ;;  %v13949_v22 = vpack.c.bf16 %v6376_v25, %v6376_v25  ;;  %v6252_v39 = vrot.slane %v6150_v52, 7  ;;  %v6360_v58 = vrot.slane %v6150_v52, 1  ;;  %7627 = vmatprep.mubr.bf16.mxu1 %v18634_v30  ;;  %v21119_v31 = vld [vmem:[#allocation51_spill] sm:$0xff] }
 0x4f9   : > { %v13915_v33 = vpack.c.bf16 %v6150_v52, %v6150_v52  ;;  %v6119_v26 = vadd.f32 %v6072_v32, %v21114_v6  ;;  %v6074_v57 = vpop.f32.mrf.mxu0  ;;  %v18632_v17 = vld [vmem:[#allocation7 + $0x120] ss:$12 sps:$4 sm:$0xff]   ;;  %v15256_v24 = vld [vmem:[#allocation7 + $0x124] ss:$12 sps:$4 sm:$0xff]  }
 0x4fa   : > { %6611 = vst [vmem:[#allocation7 + $0x144] sm:$0xf] %v13878_v54  ;;  %6970 = vst [vmem:[#allocation7 + $0x140] sm:$0xf] %v13949_v22  ;;  %v6267_v2 = vsel %vm21089_vm12, %v6251_v19, %v6252_v39  ;;  %v6375_v12 = vsel %vm21090_vm3, %v6359_v55, %v6360_v58  ;;  %7628 = vmatmul.mubr.bf16.gmra.mxu1 %v18632_v17 }
 0x4fb   : > { %v6324_v0 = vsel %vm21116_vm5, 0.0, %v6267_v2  ;;  %v6431_v60 = vsel %vm21118_vm8, 0.0, %v6375_v12  ;;  %6792 = vst [vmem:[#allocation7 + $0x154] sm:$0xf] %v13915_v33  ;;  %v6151_v23 = vmax.f32 %v6119_v26, 0.0  ;;  %v6077_v41 = vpop.f32.mrf.mxu0 }
 0x4fc   : > { %v13879_v56 = vpack.c.bf16 %v6324_v0, %v6324_v0  ;;  %v13950_v52 = vpack.c.bf16 %v6431_v60, %v6431_v60  ;;  %v6120_v25 = vadd.f32 %v6077_v41, %v21119_v31 }
 0x4fd   : > { %v6253_v19 = vrot.slane %v6151_v23, 7  ;;  %v6361_v32 = vrot.slane %v6151_v23, 1  ;;  %v13916_v55 = vpack.c.bf16 %v6151_v23, %v6151_v23  ;;  %v6079_v54 = vpop.f32.mrf.mxu0  ;;  %v15150_v22 = vld [vmem:[#allocation7 + $0x128] ss:$12 sps:$4 sm:$0xff]  }
 0x4fe   : > { %6612 = vst [vmem:[#allocation7 + $0x150] sm:$0xf] %v13879_v56  ;;  %6971 = vst [vmem:[#allocation7 + $0x14c] sm:$0xf] %v13950_v52  ;;  %v6152_v6 = vmax.f32 %v6120_v25, 0.0  ;;  %14767 = vmatprep.mubr.bf16.mxu0 %v15150_v22  ;;  %v21120_v23 = vld [vmem:[#allocation47_spill] sm:$0xff] }
 0x4ff   : > { %v6266_v33 = vsel %vm21089_vm12, %v6252_v39, %v6253_v19  ;;  %v6374_v26 = vsel %vm21090_vm3, %v6360_v58, %v6361_v32  ;;  %6793 = vst [vmem:[#allocation7 + $0x160] sm:$0xf] %v13916_v55  ;;  %v6080_v57 = vpop.f32.mrf.mxu0  ;;  %v18654_v52 = vld [vmem:[#allocation7 + $0x13c] ss:$12 sps:$4 sm:$0xff]   ;;  %v21121_v25 = vld [vmem:[#allocation37_spill] sm:$0xff] }
 0x500   : > { %v13880_v2 = vpack.c.bf16 %v6266_v33, %v6266_v33  ;;  %v13951_v12 = vpack.c.bf16 %v6374_v26, %v6374_v26  ;;  %v6254_v0 = vrot.slane %v6152_v6, 7  ;;  %v6362_v60 = vrot.slane %v6152_v6, 1  ;;  %v21123_v22 = vld [vmem:[#allocation43_spill] sm:$0xff]  ;;  %7635 = vmatprep.mubr.bf16.mxu1 %v18654_v52 }
 0x501   : > { %v13917_v41 = vpack.c.bf16 %v6152_v6, %v6152_v6  ;;  %v6121_v31 = vadd.f32 %v6080_v57, %v21120_v23  ;;  %v6082_v54 = vpop.f32.mrf.mxu0  ;;  %v18652_v56 = vld [vmem:[#allocation7 + $0x138] ss:$12 sps:$4 sm:$0xff]   ;;  %vm21122_vm8 = vnez %v21121_v25  ;;  %vm21124_vm5 = vnez %v21123_v22 }
 0x502   : > { %6613 = vst [vmem:[#allocation7 + $0x15c] sm:$0xf] %v13880_v2  ;;  %6972 = vst [vmem:[#allocation7 + $0x158] sm:$0xf] %v13951_v12  ;;  %v6265_v39 = vsel %vm21089_vm12, %v6253_v19, %v6254_v0  ;;  %v6373_v58 = vsel %vm21090_vm3, %v6361_v32, %v6362_v60  ;;  %v21125_v12 = vld [vmem:[#allocation48_spill] sm:$0xff]  ;;  %7636 = vmatmul.mubr.bf16.gmra.mxu1 %v18652_v56 }
 0x503   : > { %v6326_v55 = vsel %vm21122_vm8, 0.0, %v6265_v39  ;;  %v6433_v6 = vsel %vm21124_vm5, 0.0, %v6373_v58  ;;  %6794 = vst [vmem:[#allocation7 + $0x16c] sm:$0xf] %v13917_v41  ;;  %v6153_v33 = vmax.f32 %v6121_v31, 0.0  ;;  %v6085_v26 = vpop.f32.mrf.mxu0 }
 0x504   : > { %v13881_v57 = vpack.c.bf16 %v6326_v55, %v6326_v55  ;;  %v13952_v2 = vpack.c.bf16 %v6433_v6, %v6433_v6  ;;  %v6122_v23 = vadd.f32 %v6085_v26, %v21125_v12 }
 0x505   : > { %v6255_v19 = vrot.slane %v6153_v33, 7  ;;  %v6363_v54 = vrot.slane %v6153_v33, 1  ;;  %v13918_v32 = vpack.c.bf16 %v6153_v33, %v6153_v33  ;;  %v6087_v63 = vpop.f32.mrf.mxu0  ;;  %v15156_v25 = vld [vmem:[#allocation7 + $0x140] ss:$12 sps:$4 sm:$0xff]  }
 0x506   : > { %6614 = vst [vmem:[#allocation7 + $0x168] sm:$0xf] %v13881_v57  ;;  %6973 = vst [vmem:[#allocation7 + $0x164] sm:$0xf] %v13952_v2  ;;  %v6154_v39 = vmax.f32 %v6122_v23, 0.0  ;;  %14768 = vmatmul.mubr.bf16.gmra.mxu0 %v15156_v25  ;;  %v21126_v25 = vld [vmem:[#allocation38_spill] sm:$0xff] }
 0x507   : > { %v6264_v41 = vsel %vm21089_vm12, %v6254_v0, %v6255_v19  ;;  %v6372_v31 = vsel %vm21090_vm3, %v6362_v60, %v6363_v54  ;;  %6795 = vst [vmem:[#allocation7 + $0x178] sm:$0xf] %v13918_v32  ;;  %v6088_v58 = vpop.f32.mrf.mxu0  ;;  %v18674_v57 = vld [vmem:[#allocation7 + $0x154] ss:$12 sps:$4 sm:$0xff]   ;;  %vm21127_vm5 = vnez %v21126_v25  ;;  %v21128_v32 = vld [vmem:[#allocation44_spill] sm:$0xff] }
 0x508   : > { %v13882_v55 = vpack.c.bf16 %v6264_v41, %v6264_v41  ;;  %v13953_v6 = vpack.c.bf16 %v6372_v31, %v6372_v31  ;;  %v6256_v26 = vrot.slane %v6154_v39, 7  ;;  %v6364_v12 = vrot.slane %v6154_v39, 1  ;;  %7643 = vmatprep.mubr.bf16.mxu1 %v18674_v57  ;;  %v15266_v43 = vld [vmem:[#allocation7 + $0x154] ss:$12 sps:$4 sm:$0xff]  }
 0x509   : > { %v13919_v22 = vpack.c.bf16 %v6154_v39, %v6154_v39  ;;  %v6123_v63 = vadd.f32 %v6088_v58, %v18379_v46  ;;  %v18672_v33 = vld [vmem:[#allocation7 + $0x150] ss:$12 sps:$4 sm:$0xff]   ;;  %v6090_v2 = vpop.f32.mrf.mxu0  ;;  %vm21129_vm8 = vnez %v21128_v32 }
 0x50a   : > { %6615 = vst [vmem:[#allocation7 + $0x174] sm:$0xf] %v13882_v55  ;;  %6974 = vst [vmem:[#allocation7 + $0x170] sm:$0xf] %v13953_v6  ;;  %v6263_v0 = vsel %vm21089_vm12, %v6255_v19, %v6256_v26  ;;  %v6371_v60 = vsel %vm21090_vm3, %v6363_v54, %v6364_v12  ;;  %7644 = vmatmul.mubr.bf16.gmra.mxu1 %v18672_v33 }
 0x50b   : > { %v6328_v23 = vsel %vm21127_vm5, 0.0, %v6263_v0  ;;  %v6435_v39 = vsel %vm21129_vm8, 0.0, %v6371_v60  ;;  %6796 = vst [vmem:[#allocation7 + $0x184] sm:$0xf] %v13919_v22  ;;  %v6155_v46 = vmax.f32 %v6123_v63, 0.0  ;;  %vm21130_vm3 = vmmov %vm21089_vm12  ;;  %vm21131_vm8 = vcmp.lt.s32.totalorder %v20798_v1, 7 }
 0x50c   : > { %v13883_v41 = vpack.c.bf16 %v6328_v23, %v6328_v23  ;;  %v13954_v31 = vpack.c.bf16 %v6435_v39, %v6435_v39  ;;  %vm21132_vm5 = vmmov %vm21131_vm8  ;;  %v21134_v23 = vld [vmem:[#allocation45_spill] sm:$0xff] }
 0x50d   : > { %v6257_v58 = vrot.slane %v6155_v46, 7  ;;  %v6365_v55 = vrot.slane %v6155_v46, 1  ;;  %v13920_v19 = vpack.c.bf16 %v6155_v46, %v6155_v46  ;;  %v15164_v6 = vld [vmem:[#allocation7 + $0x158] ss:$12 sps:$4 sm:$0xff]   ;;  %vm21135_vm4 = vnez %v21134_v23 }
 0x50e   : > { %6616 = vst [vmem:[#allocation7 + $0x180] sm:$0xf] %v13883_v41  ;;  %6975 = vst [vmem:[#allocation7 + $0x17c] sm:$0xf] %v13954_v31  ;;  %14771 = vmatprep.mubr.bf16.mxu0 %v15164_v6  ;;  %v15188_v6 = vld [vmem:[%s20288_s7 + $0x230] sm:$0xff]   ;;  %v21136_v23 = vmov 0  }
 0x50f   : > { %v6261_v54 = vsel %vm21089_vm12, %v6257_v58, %v21059_v5  ;;  %v6262_v22 = vsel %vm21130_vm3, %v6256_v26, %v6257_v58  ;;  %v6369_v63 = vsel %vm21131_vm8, %v6365_v55, %v21061_v15  ;;  %v6370_v2 = vsel %vm21132_vm5, %v6364_v12, %v6365_v55  ;;  %6797 = vst [vmem:[#allocation7 + $0x190] sm:$0xf] %v13920_v19  ;;  %v18702_v58 = vld [vmem:[#allocation7 + $0x16c] ss:$12 sps:$4 sm:$0xff]   ;;  %v15172_v15 = vld [vmem:[#allocation7 + $0x1c] ss:$12 sps:$4 sm:$0xff]  }
 0x510   : > { %v6330_v60 = vsel %vm20965_vm7, 0.0, %v6261_v54  ;;  %v6437_v39 = vsel %vm21135_vm4, 0.0, %v6369_v63  ;;  %v13884_v46 = vpack.c.bf16 %v6262_v22, %v6262_v22  ;;  %v13955_v5 = vpack.c.bf16 %v6370_v2, %v6370_v2  ;;  %7651 = vmatprep.mubr.bf16.mxu1 %v18702_v58  ;;  %v15175_v55 = vld [vmem:[#allocation7 + $0x20] ss:$12 sps:$4 sm:$0xff]   ;;  %v15170_v19 = vld [vmem:[#allocation7 + $0x18] ss:$12 sps:$4 sm:$0xff]  }
 0x511   : > { %v13885_v41 = vpack.c.bf16 %v6330_v60, %v6330_v60  ;;  %v13956_v31 = vpack.c.bf16 %v6437_v39, %v6437_v39  ;;  %v18700_v26 = vld [vmem:[#allocation7 + $0x168] ss:$12 sps:$4 sm:$0xff]   ;;  %v15181_v2 = vld [vmem:[#allocation7 + $0x38] ss:$12 sps:$4 sm:$0xff]   ;;  %v15182_v39 = vld [vmem:[#allocation7 + $0x50] ss:$12 sps:$4 sm:$0xff]  }
 0x512   : > { %6617 = vst [vmem:[#allocation7 + $0x18c] sm:$0xf] %v13884_v46  ;;  %6976 = vst [vmem:[#allocation7 + $0x188] sm:$0xf] %v13955_v5  ;;  %7652 = vmatmul.mubr.bf16.gmra.mxu1 %v18700_v26  ;;  %v18709_v54 = vld [vmem:[#allocation7 + $0x34] ss:$12 sps:$4 sm:$0xff]  }
 0x513   : > { %6618 = vst [vmem:[#allocation7 + $0x198] sm:$0xf] %v13885_v41  ;;  %6977 = vst [vmem:[#allocation7 + $0x194] sm:$0xf] %v13956_v31  ;;  %8366 = vmatprep.mubr.bf16.mxu1 %v15172_v15  ;;  %v15203_v22 = vld [vmem:[%s20288_s7 + $0x1b8] sm:$0xff]   ;;  %v15204_v60 = vld [vmem:[%s20288_s7 + $0x1f0] sm:$0xff]  }
 0x514   : > { %v15374_v63 = vld [vmem:[%s20288_s7 + $0x238] sm:$0xff]   ;;  %v15199_v46 = vld [vmem:[%s20288_s7 + $0x228] sm:$0xff]   ;;  %v15205_v5 = vld [vmem:[%s20288_s7 + $0x1b0] sm:$0xff]   ;;  %vm21138_vm5 = vcmask 1043968   ;;  %vm21153_vm12 = vcmask 523264  }
 0x515   : > { %v15173_v12 = vld [vmem:[#allocation7 + $0x170] ss:$12 sps:$4 sm:$0xff]   ;;  %v18796_v0 = vld [vmem:[#allocation7 + $0x78] ss:$12 sps:$4 sm:$0xff]   ;;  %vm21139_vm8 = vmmov %vm21138_vm5 }
 0x516   : > { %14772 = vmatmul.mubr.bf16.gmra.mxu0 %v15173_v12  ;;  %v18727_v41 = vld [vmem:[#allocation7 + $0x30] ss:$12 sps:$4 sm:$0xff]   ;;  %v18735_v12 = vld [vmem:[#allocation7 + $0x4c] ss:$12 sps:$4 sm:$0xff]   ;;  %vm21154_vm3 = vmmov %vm21153_vm12 }
 0x517   : > { %14791 = vmatprep.mubr.bf16.mxu0 %v15175_v55  ;;  %v15207_v31 = vld [vmem:[%s20288_s7 + $0x1e8] sm:$0xff]   ;;  %v15210_v15 = vld [vmem:[%s20288_s7 + $0x220] sm:$0xff]  }
 0x518   : > { %v15209_v55 = vld [vmem:[%s20288_s7 + $0x1a8] sm:$0xff]  }
 0x51a   : > { %8367 = vmatmul.mubr.bf16.vlgmr.msra.gmra.mxu1 %v15170_v19  ;;  %v15186_v19 = vld [vmem:[#allocation7 + $0x68] ss:$12 sps:$4 sm:$0xff]  }
 0x51b   : > { %14824 = vmatpush3.bf16.msra.mxu1 %v15374_v63  ;;  %8374 = vmatprep.mubr.bf16.mxu1 %v18709_v54  ;;  %v15222_v63 = vld [vmem:[%s20288_s7 + $0x218] sm:$0xff]  }
 0x51c   : > { %14825 = vmatprep.subr.bf16.mxu1 %v15188_v6 }
 0x51e   : > { %14792 = vmatmul.mubr.bf16.vlgmr.msra.gmra.mxu0 %v15181_v2  ;;  %v15212_v2 = vld [vmem:[%s20288_s7 + $0x1a0] sm:$0xff]  }
 0x51f   : > { %14795 = vmatprep.mubr.bf16.mxu0 %v15182_v39  ;;  %14424 = vmatpush3.bf16.msra.mxu0 %v15203_v22  ;;  %v15187_v22 = vld [vmem:[#allocation7 + $0x80] ss:$12 sps:$4 sm:$0xff]   ;;  %v18754_v39 = vld [vmem:[#allocation7 + $0x48] ss:$12 sps:$4 sm:$0xff]  }
 0x520   : > { %14826 = vmatpush3.bf16.msra.mxu1 %v15188_v6  ;;  %14425 = vmatprep.subr.bf16.mxu0 %v15204_v60  ;;  %v15211_v6 = vld [vmem:[%s20288_s7 + $0x1e0] sm:$0xff]   ;;  %v15214_v60 = vld [vmem:[%s20288_s7 + $0x1d8] sm:$0xff]  }
 0x521   : > { %14827 = vmatprep.subr.bf16.mxu1 %v15199_v46 }
 0x522   : > { %8375 = vmatmul.mubr.bf16.gmra.mxu1 %v18727_v41 }
 0x523   : > { %14426 = vmatpush3.bf16.msra.mxu0 %v15205_v5  ;;  %8382 = vmatprep.mubr.bf16.mxu1 %v18735_v12  ;;  %v15225_v5 = vld [vmem:[%s20288_s7 + $0x210] sm:$0xff]  }
 0x524   : > { %14828 = vmatpush3.bf16.msra.mxu1 %v15199_v46  ;;  %14427 = vmatprep.subr.bf16.mxu0 %v15207_v31  ;;  %v18756_v46 = vld [vmem:[#allocation7 + $0x64] ss:$12 sps:$4 sm:$0xff]   ;;  %v15216_v31 = vld [vmem:[%s20288_s7 + $0x198] sm:$0xff]  }
 0x525   : > { %14829 = vmatprep.subr.bf16.mxu1 %v15210_v15 }
 0x526   : > { %14796 = vmatmul.mubr.bf16.gmra.mxu0 %v15186_v19  ;;  %v15193_v19 = vld [vmem:[#allocation7 + $0xb0] ss:$12 sps:$4 sm:$0xff]  }
 0x527   : > { %14799 = vmatprep.mubr.bf16.mxu0 %v15187_v22  ;;  %14428 = vmatpush3.bf16.msra.mxu0 %v15209_v55  ;;  %v15217_v55 = vld [vmem:[%s20288_s7 + $0x1d0] sm:$0xff]  }
 0x528   : > { %14429 = vmatprep.subr.bf16.mxu0 %v15211_v6  ;;  %14830 = vmatpush3.bf16.msra.mxu1 %v15210_v15  ;;  %v15192_v15 = vld [vmem:[#allocation7 + $0x98] ss:$12 sps:$4 sm:$0xff]  }
 0x529   : > { %14831 = vmatprep.subr.bf16.mxu1 %v15222_v63  ;;  %v15229_v6 = vld [vmem:[%s20288_s7 + $0x208] sm:$0xff]   ;;  %v15218_v22 = vld [vmem:[%s20288_s7 + $0x190] sm:$0xff]  }
 0x52a   : > { %8383 = vmatmul.mubr.bf16.gmra.mxu1 %v18754_v39 }
 0x52b   : > { %14430 = vmatpush3.bf16.msra.mxu0 %v15212_v2  ;;  %8390 = vmatprep.mubr.bf16.mxu1 %v18756_v46  ;;  %v15220_v2 = vld [vmem:[%s20288_s7 + $0x1c8] sm:$0xff]  }
 0x52c   : > { %14431 = vmatprep.subr.bf16.mxu0 %v15214_v60  ;;  %14832 = vmatpush3.bf16.msra.mxu1 %v15222_v63  ;;  %v18778_v60 = vld [vmem:[#allocation7 + $0x60] ss:$12 sps:$4 sm:$0xff]   ;;  %v18780_v63 = vld [vmem:[#allocation7 + $0x7c] ss:$12 sps:$4 sm:$0xff]  }
 0x52d   : > { %14833 = vmatprep.subr.bf16.mxu1 %v15225_v5 }
 0x52e   : > { %14800 = vmatmul.mubr.bf16.gmra.mxu0 %v15192_v15  ;;  %v15236_v15 = vld [vmem:[%s20288_s7 + $0x200] sm:$0xff]  }
 0x52f   : > { %14803 = vmatprep.mubr.bf16.mxu0 %v15193_v19  ;;  %14432 = vmatpush3.bf16.msra.mxu0 %v15216_v31  ;;  %v15221_v31 = vld [vmem:[%s20288_s7 + $0x188] sm:$0xff]   ;;  %v15198_v19 = vld [vmem:[#allocation7 + $0xe0] ss:$12 sps:$4 sm:$0xff]  }
 0x530   : > { %14433 = vmatprep.subr.bf16.mxu0 %v15217_v55  ;;  %14834 = vmatpush3.bf16.msra.mxu1 %v15225_v5  ;;  %v15197_v55 = vld [vmem:[#allocation7 + $0xc8] ss:$12 sps:$4 sm:$0xff]  }
 0x531   : > { %14835 = vmatprep.subr.bf16.mxu1 %v15229_v6  ;;  %v15223_v5 = vld [vmem:[%s20288_s7 + $0x1c0] sm:$0xff]  }
 0x532   : > { %8391 = vmatmul.mubr.bf16.gmra.mxu1 %v18778_v60 }
 0x533   : > { %14434 = vmatpush3.bf16.msra.mxu0 %v15218_v22  ;;  %8398 = vmatprep.mubr.bf16.mxu1 %v18780_v63  ;;  %v15224_v22 = vld [vmem:[%s20288_s7 + $0x180] sm:$0xff]  }
 0x534   : > { %14435 = vmatprep.subr.bf16.mxu0 %v15220_v2  ;;  %14836 = vmatpush3.bf16.msra.mxu1 %v15229_v6  ;;  %v15375_v2 = vld [vmem:[#allocation7 + $0x94] ss:$12 sps:$4 sm:$0xff]   ;;  %v15200_v6 = vld [vmem:[#allocation7 + $0xf8] ss:$12 sps:$4 sm:$0xff]  }
 0x535   : > { %14837 = vmatprep.subr.bf16.mxu1 %v15236_v15 }
 0x536   : > { %14804 = vmatmul.mubr.bf16.gmra.mxu0 %v15197_v55  ;;  %v15202_v55 = vld [vmem:[#allocation7 + $0x110] ss:$12 sps:$4 sm:$0xff]  }
 0x537   : > { %14807 = vmatprep.mubr.bf16.mxu0 %v15198_v19  ;;  %14436 = vmatpush3.bf16.msra.mxu0 %v15221_v31  ;;  %v15376_v31 = vld [vmem:[#allocation7 + $0x90] ss:$12 sps:$4 sm:$0xff]   ;;  %v15208_v19 = vld [vmem:[#allocation7 + $0x140] ss:$12 sps:$4 sm:$0xff]  }
 0x538   : > { %14437 = vmatprep.subr.bf16.mxu0 %v15223_v5  ;;  %14838 = vmatpush3.bf16.msra.mxu1 %v15236_v15  ;;  %v15206_v5 = vld [vmem:[#allocation7 + $0x128] ss:$12 sps:$4 sm:$0xff]   ;;  %v15213_v15 = vld [vmem:[#allocation7 + $0x158] ss:$12 sps:$4 sm:$0xff]  }
 0x539   : > { %10810 = vmatprep.subr.bf16.mxu1 %v21136_v23 }
 0x53a   : > { %8399 = vmatmul.mubr.bf16.gmra.mxu1 %v18796_v0 }
 0x53b   : > { %14438 = vmatpush3.bf16.msra.mxu0 %v15224_v22  ;;  %8406 = vmatprep.mubr.bf16.mxu1 %v15375_v2  ;;  %v15215_v22 = vld [vmem:[#allocation7 + $0x170] ss:$12 sps:$4 sm:$0xff]   ;;  %v15219_v2 = vld [vmem:[#allocation7 + $0x188] ss:$12 sps:$4 sm:$0xff]  }
 0x53c   : > { %11292 = vmatprep.subr.bf16.mxu0 %v21136_v23 }
 0x53e   : > { %14808 = vmatmul.mubr.bf16.gmra.mxu0 %v15200_v6 }
 0x53f   : > { %14811 = vmatprep.mubr.bf16.mxu0 %v15202_v55 }
 0x542   : > { %8407 = vmatmul.mubr.bf16.gmra.mxu1 %v15376_v31 }
 0x543   : > { %8414 = vmatprep.mubr.bf16.mxu1 %v18532_v36  ;;  %v18809_v36 = vpop.f32.mrf.mxu1 }
 0x546   : > { %14812 = vmatmul.mubr.bf16.gmra.mxu0 %v15206_v5 }
 0x547   : > { %14815 = vmatprep.mubr.bf16.mxu0 %v15208_v19 }
 0x54a   : > { %8415 = vmatmul.mubr.bf16.gmra.mxu1 %v18530_v21  ;;  %v18813_v21 = vpop.f32.mrf.mxu1 }
 0x54b   : > { %8422 = vmatprep.mubr.bf16.mxu1 %v18552_v59 }
 0x54e   : > { %14816 = vmatmul.mubr.bf16.gmra.mxu0 %v15213_v15 }
 0x54f   : > { %14819 = vmatprep.mubr.bf16.mxu0 %v15215_v22 }
 0x552   : > { %8423 = vmatmul.mubr.bf16.gmra.mxu1 %v18550_v11  ;;  %v18820_v11 = vld [vmem:[%s20289_s8] ss:$0 sm:$0xff] }
 0x553   : > { %8430 = vmatprep.mubr.bf16.mxu1 %v18572_v10 }
 0x556   : > { %14820 = vmatmul.mubr.bf16.gmra.mxu0 %v15219_v2 }
 0x557   : > { %9233 = vmatprep.mubr.bf16.mxu0 %v18709_v54 }
 0x55a   : > { %8431 = vmatmul.mubr.bf16.gmra.mxu1 %v18570_v42 }
 0x55b   : > { %8438 = vmatprep.mubr.bf16.mxu1 %v18592_v34 }
 0x55e   : > { %9234 = vmatmul.mubr.bf16.vlgmr.msra.gmra.mxu0 %v18727_v41  ;;  %v7534_v41 = vadd.f32 %v18605_v47, %v18820_v11 }
 0x55f   : > { %9241 = vmatprep.mubr.bf16.mxu0 %v18735_v12 }
 0x562   : > { %v14173_v59 = vpop.f32.mrf.mxu1  ;;  %8439 = vmatmul.mubr.bf16.gmra.mxu1 %v18590_v9 }
 0x563   : > { %8446 = vmatprep.mubr.bf16.mxu1 %v18614_v44 }
 0x564   : > { %v14174_v42 = vpop.f32.mrf.mxu1 }
 0x565   : > { %v14175_v10 = vadd.f32 %v14174_v42, %v14173_v59 }
 0x566   : > { %v14745_v34 = vpop.f32.mrf.mxu0  ;;  %9242 = vmatmul.mubr.bf16.gmra.mxu0 %v18754_v39  ;;  %v14176_v54 = vpop.f32.mrf.mxu1 }
 0x567   : > { %9249 = vmatprep.mubr.bf16.mxu0 %v18756_v46  ;;  %v7542_v9 = vadd.f32 %v14175_v10, %v18820_v11  ;;  %v15228_v10 = vld [vmem:[#allocation7 + $0x94] ss:$12 sps:$4 sm:$0xff]  }
 0x568   : > { %v7694_v12 = vpop.f32.mrf.mxu0  ;;  %v14177_v44 = vpop.f32.mrf.mxu1 }
 0x569   : > { %v18827_v6 = vadd.f32 %v7694_v12, %v7534_v41  ;;  %v18829_v55 = vadd.f32 %v14745_v34, %v7542_v9  ;;  %v14178_v31 = vadd.f32 %v14177_v44, %v14176_v54 }
 0x56a   : > { %v14179_v5 = vpop.f32.mrf.mxu1  ;;  %8447 = vmatmul.mubr.bf16.gmra.mxu1 %v18612_v40  ;;  %v14746_v46 = vpop.f32.mrf.mxu0 }
 0x56b   : > { %v7545_v39 = vadd.f32 %v14178_v31, %v18820_v11  ;;  %8454 = vmatprep.mubr.bf16.mxu1 %v18634_v30 }
 0x56c   : > { %v14180_v19 = vpop.f32.mrf.mxu1  ;;  %v18841_v40 = vpop.f32.mrf.mxu0 }
 0x56d   : > { %v18834_v15 = vadd.f32 %v14746_v46, %v7545_v39  ;;  %v14181_v47 = vadd.f32 %v14180_v19, %v14179_v5  ;;  %v15226_v5 = vld [vmem:[#allocation7 + $0x90] ss:$12 sps:$4 sm:$0xff]   ;;  %v15232_v19 = vld [vmem:[#allocation7 + $0xac] ss:$12 sps:$4 sm:$0xff]  }
 0x56e   : > { %9250 = vmatmul.mubr.bf16.gmra.mxu0 %v18778_v60  ;;  %v14182_v22 = vpop.f32.mrf.mxu1 }
 0x56f   : > { %9257 = vmatprep.mubr.bf16.mxu0 %v18780_v63  ;;  %v7550_v63 = vadd.f32 %v14181_v47, %v18820_v11 }
 0x570   : > { %v14183_v2 = vpop.f32.mrf.mxu1 }
 0x571   : > { %v18838_v59 = vadd.f32 %v14183_v2, %v14182_v22 }
 0x572   : > { %v14185_v42 = vpop.f32.mrf.mxu1  ;;  %8455 = vmatmul.mubr.bf16.gmra.mxu1 %v18632_v17 }
 0x573   : > { %8462 = vmatprep.mubr.bf16.mxu1 %v18654_v52 }
 0x574   : > { %v14186_v30 = vpop.f32.mrf.mxu1 }
 0x575   : > { %v14187_v34 = vadd.f32 %v14186_v30, %v14185_v42  ;;  %v15377_v42 = vld [vmem:[#allocation3 + $0x8] sm:$0xff] }
 0x576   : > { %v14749_v54 = vpop.f32.mrf.mxu0  ;;  %9258 = vmatmul.mubr.bf16.gmra.mxu0 %v18796_v0  ;;  %v14188_v60 = vpop.f32.mrf.mxu1  ;;  %v13996_v30 = vpack.c.bf16 %v15377_v42, %v15377_v42  ;;  %v18870_v42 = vld [vmem:[#allocation7 + $0x184] ss:$12 sps:$4 sm:$0xff]  }
 0x577   : > { %9265 = vmatprep.mubr.bf16.mxu0 %v15228_v10  ;;  %v7558_v41 = vadd.f32 %v14187_v34, %v18820_v11  ;;  %v15378_v10 = vld [vmem:[#allocation3] sm:$0xff] }
 0x578   : > { %v7710_v9 = vpop.f32.mrf.mxu0  ;;  %v14189_v12 = vpop.f32.mrf.mxu1  ;;  %v13995_v34 = vpack.c.bf16 %v15378_v10, %v15378_v10  ;;  %10161 = vrot.lane.b32.xlu1 %v13996_v30, %s15393_s20  ;;  %v15233_v30 = vld [vmem:[#allocation7 + $0xc0] ss:$12 sps:$4 sm:$0xff]  }
 0x579   : > { %v18847_v44 = vadd.f32 %v7710_v9, %v7550_v63  ;;  %v18849_v17 = vadd.f32 %v14749_v54, %v7558_v41  ;;  %v14190_v31 = vadd.f32 %v14189_v12, %v14188_v60  ;;  %v15230_v63 = vld [vmem:[#allocation7 + $0xa8] ss:$12 sps:$4 sm:$0xff]   ;;  %v15235_v9 = vld [vmem:[#allocation7 + $0xc4] ss:$12 sps:$4 sm:$0xff]  }
 0x57a   : > { %v14191_v52 = vpop.f32.mrf.mxu1  ;;  %8463 = vmatmul.mubr.bf16.gmra.mxu1 %v18652_v56  ;;  %v14750_v0 = vpop.f32.mrf.mxu0  ;;  %10159 = vrot.lane.b32.xlu0 %v13995_v34, %s15393_s20 }
 0x57b   : > { %v7561_v39 = vadd.f32 %v14190_v31, %v18820_v11  ;;  %8470 = vmatprep.mubr.bf16.mxu1 %v18674_v57 }
 0x57c   : > { %v14192_v46 = vpop.f32.mrf.mxu1  ;;  %v18861_v60 = vpop.f32.mrf.mxu0 }
 0x57d   : > { %v18854_v47 = vadd.f32 %v14750_v0, %v7561_v39  ;;  %v14193_v22 = vadd.f32 %v14192_v46, %v14191_v52 }
 0x57e   : > { %9266 = vmatmul.mubr.bf16.gmra.mxu0 %v15226_v5  ;;  %v14194_v2 = vpop.f32.mrf.mxu1 }
 0x57f   : > { %9273 = vmatprep.mubr.bf16.mxu0 %v15232_v19  ;;  %v7566_v5 = vadd.f32 %v14193_v22, %v18820_v11 }
 0x580   : > { %v14195_v54 = vpop.f32.mrf.mxu1 }
 0x581   : > { %v18856_v56 = vadd.f32 %v14195_v54, %v14194_v2  ;;  %v15242_v54 = vld [vmem:[#allocation7 + $0xdc] ss:$12 sps:$4 sm:$0xff]  }
 0x582   : > { %v14197_v57 = vpop.f32.mrf.mxu1  ;;  %8471 = vmatmul.mubr.bf16.gmra.mxu1 %v18672_v33 }
 0x583   : > { %8478 = vmatprep.mubr.bf16.mxu1 %v18702_v58 }
 0x584   : > { %v14198_v41 = vpop.f32.mrf.mxu1 }
 0x585   : > { %v14199_v12 = vadd.f32 %v14198_v41, %v14197_v57 }
 0x586   : > { %v14753_v31 = vpop.f32.mrf.mxu0  ;;  %9274 = vmatmul.mubr.bf16.gmra.mxu0 %v15230_v63  ;;  %v14200_v52 = vpop.f32.mrf.mxu1 }
 0x587   : > { %9281 = vmatprep.mubr.bf16.mxu0 %v15235_v9  ;;  %v7574_v39 = vadd.f32 %v14199_v12, %v18820_v11  ;;  %v18877_v9 = vld [vmem:[#allocation7 + $0x180] ss:$12 sps:$4 sm:$0xff]  }
 0x588   : > { %v7726_v0 = vpop.f32.mrf.mxu0  ;;  %v14201_v46 = vpop.f32.mrf.mxu1 }
 0x589   : > { %v18866_v19 = vadd.f32 %v7726_v0, %v7566_v5  ;;  %v18868_v33 = vadd.f32 %v14753_v31, %v7574_v39  ;;  %v14202_v2 = vadd.f32 %v14201_v46, %v14200_v52  ;;  %v15243_v52 = vld [vmem:[#allocation7 + $0x38] ss:$12 sps:$4 sm:$0xff]   ;;  %v15246_v46 = vld [vmem:[#allocation7 + $0xf4] ss:$12 sps:$4 sm:$0xff]  }
 0x58a   : > { %v14203_v58 = vpop.f32.mrf.mxu1  ;;  %8479 = vmatmul.mubr.bf16.gmra.mxu1 %v18700_v26  ;;  %v14754_v22 = vpop.f32.mrf.mxu0  ;;  %v15240_v39 = vld [vmem:[#allocation7 + $0xd8] ss:$12 sps:$4 sm:$0xff]  }
 0x58b   : > { %v7577_v10 = vadd.f32 %v14202_v2, %v18820_v11  ;;  %8486 = vmatprep.mubr.bf16.mxu1 %v18870_v42 }
 0x58c   : > { %v14204_v34 = vpop.f32.mrf.mxu1  ;;  %v18880_v5 = vpop.f32.mrf.mxu0 }
 0x58d   : > { %v18875_v57 = vadd.f32 %v14754_v22, %v7577_v10  ;;  %v14205_v63 = vadd.f32 %v14204_v34, %v14203_v58 }
 0x58e   : > { %9282 = vmatmul.mubr.bf16.gmra.mxu0 %v15233_v30  ;;  %v14206_v41 = vpop.f32.mrf.mxu1 }
 0x58f   : > { %9289 = vmatprep.mubr.bf16.mxu0 %v15242_v54  ;;  %v7582_v30 = vadd.f32 %v14205_v63, %v18820_v11 }
 0x590   : > { %v14207_v12 = vpop.f32.mrf.mxu1 }
 0x591   : > { %v14208_v31 = vadd.f32 %v14207_v12, %v14206_v41  ;;  %v15247_v12 = vld [vmem:[#allocation7 + $0x50] ss:$12 sps:$4 sm:$0xff]  }
 0x592   : > { %v14209_v26 = vpop.f32.mrf.mxu1  ;;  %8487 = vmatmul.mubr.bf16.gmra.mxu1 %v18877_v9 }
 0x593   : > { %14839 = vmatprep.mubr.bf16.mxu1 %v15243_v52 }
 0x594   : > { %v14210_v0 = vpop.f32.mrf.mxu1 }
 0x595   : > { %v14211_v2 = vadd.f32 %v14210_v0, %v14209_v26  ;;  %v7585_v26 = vadd.f32 %v14208_v31, %v18820_v11  ;;  %v15253_v31 = vld [vmem:[#allocation7 + $0x98] ss:$12 sps:$4 sm:$0xff]  }
 0x596   : > { %v14757_v10 = vpop.f32.mrf.mxu0  ;;  %9290 = vmatmul.mubr.bf16.gmra.mxu0 %v15240_v39  ;;  %v14212_v58 = vpop.f32.mrf.mxu1  ;;  %v15244_v39 = vld [vmem:[#allocation7 + $0xf0] ss:$12 sps:$4 sm:$0xff]  }
 0x597   : > { %9297 = vmatprep.mubr.bf16.mxu0 %v15246_v46  ;;  %v7590_v22 = vadd.f32 %v14211_v2, %v18820_v11 }
 0x598   : > { %v7742_v34 = vpop.f32.mrf.mxu0  ;;  %v14213_v54 = vpop.f32.mrf.mxu1 }
 0x599   : > { %v18884_v41 = vadd.f32 %v7742_v34, %v7582_v30  ;;  %v18886_v32 = vadd.f32 %v14757_v10, %v7590_v22  ;;  %v14214_v25 = vadd.f32 %v14213_v54, %v14212_v58  ;;  %v15251_v30 = vld [vmem:[#allocation7 + $0x10c] ss:$12 sps:$4 sm:$0xff]  }
 0x59a   : > { %v14758_v52 = vpop.f32.mrf.mxu0  ;;  %v14215_v3 = vpop.f32.mrf.mxu1  ;;  %14840 = vmatmul.mubr.bf16.vlgmr.msra.gmra.mxu1 %v15247_v12  ;;  %v15252_v54 = vld [vmem:[#allocation7 + $0x80] ss:$12 sps:$4 sm:$0xff]  }
 0x59b   : > { %v7593_v0 = vadd.f32 %v14214_v25, %v18820_v11  ;;  %14843 = vmatprep.mubr.bf16.mxu1 %v15248_v48  ;;  %v15249_v25 = vld [vmem:[#allocation7 + $0x108] ss:$12 sps:$4 sm:$0xff]  }
 0x59c   : > { %v7745_v63 = vpop.f32.mrf.mxu0  ;;  %v14216_v46 = vpop.f32.mrf.mxu1 }
 0x59d   : > { %v18890_v2 = vadd.f32 %v7745_v63, %v7585_v26  ;;  %v18892_v34 = vadd.f32 %v14758_v52, %v7593_v0  ;;  %v14217_v10 = vadd.f32 %v14216_v46, %v14215_v3 }
 0x59e   : > { %9298 = vmatmul.mubr.bf16.gmra.mxu0 %v15244_v39  ;;  %v14218_v58 = vpop.f32.mrf.mxu1 }
 0x59f   : > { %9305 = vmatprep.mubr.bf16.mxu0 %v15251_v30  ;;  %v7598_v3 = vadd.f32 %v14217_v10, %v18820_v11  ;;  %v15261_v10 = vld [vmem:[#allocation7 + $0x13c] ss:$12 sps:$4 sm:$0xff]  }
 0x5a0   : > { %v14219_v22 = vpop.f32.mrf.mxu1 }
 0x5a1   : > { %v18894_v12 = vadd.f32 %v14219_v22, %v14218_v58  ;;  %v15257_v58 = vld [vmem:[#allocation7 + $0xb0] ss:$12 sps:$4 sm:$0xff]  }
 0x5a2   : > { %v14221_v35 = vpop.f32.mrf.mxu1  ;;  %14844 = vmatmul.mubr.bf16.gmra.mxu1 %v15252_v54 }
 0x5a3   : > { %14847 = vmatprep.mubr.bf16.mxu1 %v15253_v31  ;;  %v15258_v31 = vld [vmem:[#allocation7 + $0xc8] ss:$12 sps:$4 sm:$0xff]  }
 0x5a4   : > { %v14222_v48 = vpop.f32.mrf.mxu1 }
 0x5a5   : > { %v14223_v26 = vadd.f32 %v14222_v48, %v14221_v35  ;;  %v15254_v35 = vld [vmem:[#allocation7 + $0x120] ss:$12 sps:$4 sm:$0xff]  }
 0x5a6   : > { %v14761_v63 = vpop.f32.mrf.mxu0  ;;  %9306 = vmatmul.mubr.bf16.gmra.mxu0 %v15249_v25  ;;  %v14224_v52 = vpop.f32.mrf.mxu1 }
 0x5a7   : > { %9313 = vmatprep.mubr.bf16.mxu0 %v15256_v24  ;;  %v7606_v39 = vadd.f32 %v14223_v26, %v18820_v11 }
 0x5a8   : > { %v7758_v0 = vpop.f32.mrf.mxu0  ;;  %v14225_v46 = vpop.f32.mrf.mxu1 }
 0x5a9   : > { %v18898_v30 = vadd.f32 %v7758_v0, %v7598_v3  ;;  %v18900_v22 = vadd.f32 %v14761_v63, %v7606_v39  ;;  %v14226_v54 = vadd.f32 %v14225_v46, %v14224_v52  ;;  %v15262_v63 = vld [vmem:[#allocation7 + $0xe0] ss:$12 sps:$4 sm:$0xff]   ;;  %v15263_v52 = vld [vmem:[#allocation7 + $0xf8] ss:$12 sps:$4 sm:$0xff]  }
 0x5aa   : > { %v14227_v51 = vpop.f32.mrf.mxu1  ;;  %14848 = vmatmul.mubr.bf16.gmra.mxu1 %v15257_v58  ;;  %v14762_v24 = vpop.f32.mrf.mxu0 }
 0x5ab   : > { %v7609_v25 = vadd.f32 %v14226_v54, %v18820_v11  ;;  %14851 = vmatprep.mubr.bf16.mxu1 %v15258_v31  ;;  %v15259_v54 = vld [vmem:[#allocation7 + $0x138] ss:$12 sps:$4 sm:$0xff]  }
 0x5ac   : > { %v14228_v48 = vpop.f32.mrf.mxu1  ;;  %v18907_v58 = vpop.f32.mrf.mxu0 }
 0x5ad   : > { %v18903_v4 = vadd.f32 %v14762_v24, %v7609_v25  ;;  %v14229_v26 = vadd.f32 %v14228_v48, %v14227_v51 }
 0x5ae   : > { %9314 = vmatmul.mubr.bf16.gmra.mxu0 %v15254_v35  ;;  %v14230_v3 = vpop.f32.mrf.mxu1 }
 0x5af   : > { %9321 = vmatprep.mubr.bf16.mxu0 %v15261_v10  ;;  %v7614_v35 = vadd.f32 %v14229_v26, %v18820_v11  ;;  %v15271_v26 = vld [vmem:[#allocation7 + $0x16c] ss:$12 sps:$4 sm:$0xff]  }
 0x5b0   : > { %v14231_v0 = vpop.f32.mrf.mxu1 }
 0x5b1   : > { %v18905_v39 = vadd.f32 %v14231_v0, %v14230_v3  ;;  %v15267_v0 = vld [vmem:[#allocation7 + $0x110] ss:$12 sps:$4 sm:$0xff]  }
 0x5b2   : > { %v14233_v46 = vpop.f32.mrf.mxu1  ;;  %14852 = vmatmul.mubr.bf16.gmra.mxu1 %v15262_v63 }
 0x5b3   : > { %14855 = vmatprep.mubr.bf16.mxu1 %v15263_v52  ;;  %v15268_v52 = vld [vmem:[#allocation7 + $0x128] ss:$12 sps:$4 sm:$0xff]  }
 0x5b4   : > { %v14234_v31 = vpop.f32.mrf.mxu1 }
 0x5b5   : > { %v14235_v18 = vadd.f32 %v14234_v31, %v14233_v46  ;;  %v15264_v46 = vld [vmem:[#allocation7 + $0x150] ss:$12 sps:$4 sm:$0xff]  }
 0x5b6   : > { %v14765_v25 = vpop.f32.mrf.mxu0  ;;  %9322 = vmatmul.mubr.bf16.gmra.mxu0 %v15259_v54  ;;  %v14236_v51 = vpop.f32.mrf.mxu1 }
 0x5b7   : > { %9329 = vmatprep.mubr.bf16.mxu0 %v15266_v43  ;;  %v7622_v24 = vadd.f32 %v14235_v18, %v18820_v11 }
 0x5b8   : > { %v7774_v48 = vpop.f32.mrf.mxu0  ;;  %v14237_v10 = vpop.f32.mrf.mxu1 }
 0x5b9   : > { %v18911_v3 = vadd.f32 %v7774_v48, %v7614_v35  ;;  %v18913_v63 = vadd.f32 %v14765_v25, %v7622_v24  ;;  %v14238_v45 = vadd.f32 %v14237_v10, %v14236_v51  ;;  %v15272_v51 = vld [vmem:[#allocation7 + $0x140] ss:$12 sps:$4 sm:$0xff]   ;;  %v15273_v24 = vld [vmem:[#allocation7 + $0x158] ss:$12 sps:$4 sm:$0xff]  }
 0x5ba   : > { %v14239_v8 = vpop.f32.mrf.mxu1  ;;  %14856 = vmatmul.mubr.bf16.gmra.mxu1 %v15267_v0  ;;  %v14766_v43 = vpop.f32.mrf.mxu0 }
 0x5bb   : > { %v7625_v54 = vadd.f32 %v14238_v45, %v18820_v11  ;;  %14859 = vmatprep.mubr.bf16.mxu1 %v15268_v52  ;;  %v15269_v45 = vld [vmem:[#allocation7 + $0x168] ss:$12 sps:$4 sm:$0xff]  }
 0x5bc   : > { %v14240_v31 = vpop.f32.mrf.mxu1  ;;  %v18922_v10 = vpop.f32.mrf.mxu0 }
 0x5bd   : > { %v18916_v27 = vadd.f32 %v14766_v43, %v7625_v54  ;;  %v14241_v18 = vadd.f32 %v14240_v31, %v14239_v8 }
 0x5be   : > { %9330 = vmatmul.mubr.bf16.gmra.mxu0 %v15264_v46  ;;  %v18918_v35 = vpop.f32.mrf.mxu1 }
 0x5bf   : > { %9337 = vmatprep.mubr.bf16.mxu0 %v15271_v26  ;;  %v7630_v8 = vadd.f32 %v14241_v18, %v18820_v11 }
 0x5c0   : > { %v18920_v25 = vpop.f32.mrf.mxu1 }
 0x5c2   : > { %v14245_v48 = vpop.f32.mrf.mxu1  ;;  %14860 = vmatmul.mubr.bf16.gmra.mxu1 %v15272_v51  ;;  %v15274_v51 = vld [vmem:[#allocation7 + $0x170] ss:$12 sps:$4 sm:$0xff]  }
 0x5c3   : > { %14863 = vmatprep.mubr.bf16.mxu1 %v15273_v24  ;;  %v15275_v24 = vld [vmem:[#allocation7 + $0x188] ss:$12 sps:$4 sm:$0xff]  }
 0x5c4   : > { %v14246_v0 = vpop.f32.mrf.mxu1 }
 0x5c5   : > { %v14247_v52 = vadd.f32 %v14246_v0, %v14245_v48  ;;  %v15278_v0 = vld [vmem:[#allocation7 + $0x19c] ss:$12 sps:$4 sm:$0xff]  }
 0x5c6   : > { %v14769_v14 = vpop.f32.mrf.mxu0  ;;  %9338 = vmatmul.mubr.bf16.gmra.mxu0 %v15269_v45  ;;  %v14248_v54 = vpop.f32.mrf.mxu1 }
 0x5c7   : > { %9345 = vmatprep.mubr.bf16.mxu0 %v18870_v42  ;;  %v7638_v46 = vadd.f32 %v14247_v52, %v18820_v11 }
 0x5c8   : > { %v7790_v43 = vpop.f32.mrf.mxu0  ;;  %v14249_v31 = vpop.f32.mrf.mxu1 }
 0x5c9   : > { %v18927_v26 = vadd.f32 %v7790_v43, %v7630_v8  ;;  %v18929_v28 = vadd.f32 %v14769_v14, %v7638_v46  ;;  %v14250_v49 = vadd.f32 %v14249_v31, %v14248_v54  ;;  %v15279_v14 = vld [vmem:[#allocation7 + $0x1a0] ss:$12 sps:$4 sm:$0xff]  }
 0x5ca   : > { %v14251_v7 = vpop.f32.mrf.mxu1  ;;  %14864 = vmatmul.mubr.bf16.gmra.mxu1 %v15274_v51  ;;  %v14770_v45 = vpop.f32.mrf.mxu0  ;;  %v15280_v54 = vld [vmem:[%s20290_s9 + $0x38] sm:$0xff]  }
 0x5cb   : > { %v7641_v48 = vadd.f32 %v14250_v49, %v18820_v11  ;;  %14867 = vmatprep.mubr.bf16.mxu1 %v15275_v24  ;;  %10811 = vmatpush1.bf16.msra.mxu1 %v15280_v54 }
 0x5cc   : > { %v14252_v42 = vpop.f32.mrf.mxu1  ;;  %10812 = vmatprep.subr.bf16.mxu1 %v21136_v23  ;;  %v18943_v43 = vpop.f32.mrf.mxu0 }
 0x5cd   : > { %v18932_v18 = vadd.f32 %v14770_v45, %v7641_v48  ;;  %v14253_v52 = vadd.f32 %v14252_v42, %v14251_v7  ;;  %v15276_v7 = vld [vmem:[#allocation7 + $0x198] ss:$12 sps:$4 sm:$0xff]  }
 0x5ce   : > { %9346 = vmatmul.mubr.bf16.gmra.mxu0 %v18877_v9  ;;  %v18935_v8 = vpop.f32.mrf.mxu1  ;;  %v15281_v9 = vld [vmem:[%s20290_s9 + $0x30] sm:$0xff]  }
 0x5cf   : > { %9353 = vmatprep.mubr.bf16.mxu0 %v15278_v0  ;;  %10813 = vmatpush1.bf16.msra.mxu1 %v15281_v9  ;;  %v7646_v45 = vadd.f32 %v14253_v52, %v18820_v11 }
 0x5d0   : > { %v18940_v46 = vpop.f32.mrf.mxu1  ;;  %10814 = vmatprep.subr.bf16.mxu1 %v21136_v23 }
 0x5d2   : > { %v14257_v49 = vpop.f32.mrf.mxu1  ;;  %14868 = vmatmul.mubr.bf16.gmra.mxu1 %v15279_v14 }
 0x5d4   : > { %v14258_v31 = vpop.f32.mrf.mxu1 }
 0x5d5   : > { %v14259_v51 = vadd.f32 %v14258_v31, %v14257_v49  ;;  %v15282_v49 = vld [vmem:[%s20290_s9 + $0x28] sm:$0xff]  }
 0x5d6   : > { %v14773_v24 = vpop.f32.mrf.mxu0  ;;  %9354 = vmatmul.mubr.bf16.gmra.mxu0 %v15276_v7  ;;  %v14260_v48 = vpop.f32.mrf.mxu1  ;;  %10815 = vmatpush1.bf16.msra.mxu1 %v15282_v49 }
 0x5d7   : > { %v7654_v42 = vadd.f32 %v14259_v51, %v18820_v11  ;;  %10816 = vmatprep.subr.bf16.mxu1 %v21136_v23 }
 0x5d8   : > { %v7806_v0 = vpop.f32.mrf.mxu0  ;;  %v14261_v14 = vpop.f32.mrf.mxu1 }
 0x5d9   : > { %v18951_v54 = vadd.f32 %v7806_v0, %v7646_v45  ;;  %v18953_v62 = vadd.f32 %v14773_v24, %v7654_v42  ;;  %v14262_v50 = vadd.f32 %v14261_v14, %v14260_v48  ;;  %v15283_v48 = vld [vmem:[%s20290_s9 + $0x20] sm:$0xff]   ;;  %v14172_v42 = vadd.f32 %v18813_v21, %v18809_v36  ;;  %v15284_v36 = vld [vmem:[%s20290_s9 + $0x18] sm:$0xff]  }
 0x5da   : > { %v14774_v13 = vpop.f32.mrf.mxu0  ;;  %v14303_v7 = vpop.f32.mrf.mxu1  ;;  %10817 = vmatpush1.bf16.msra.mxu1 %v15283_v48 }
 0x5db   : > { %v7657_v9 = vadd.f32 %v14262_v50, %v18820_v11  ;;  %10818 = vmatprep.subr.bf16.mxu1 %v21136_v23 }
 0x5dc   : > { %v18959_v52 = vpop.f32.mrf.mxu0  ;;  %v14304_v31 = vpop.f32.mrf.mxu1 }
 0x5dd   : > { %v18962_v51 = vadd.f32 %v14774_v13, %v7657_v9  ;;  %v14305_v45 = vadd.f32 %v14304_v31, %v14303_v7  ;;  %v7537_v13 = vadd.f32 %v14172_v42, %v18820_v11 }
 0x5de   : > { %v14793_v24 = vpop.f32.mrf.mxu0  ;;  %v14306_v0 = vpop.f32.mrf.mxu1  ;;  %10819 = vmatpush1.bf16.msra.mxu1 %v15284_v36 }
 0x5df   : > { %v7698_v21 = vadd.f32 %v18841_v40, %v7537_v13  ;;  %10820 = vmatprep.subr.bf16.mxu1 %v21136_v23 }
 0x5e0   : > { %v8529_v14 = vpop.f32.mrf.mxu0  ;;  %v14307_v50 = vpop.f32.mrf.mxu1 }
 0x5e1   : > { %v8530_v38 = vadd.f32 %v14305_v45, %v8529_v14  ;;  %v14308_v9 = vadd.f32 %v14307_v50, %v14306_v0  ;;  %v15285_v0 = vld [vmem:[%s20290_s9 + $0x10] sm:$0xff]  }
 0x5e2   : > { %v14794_v49 = vpop.f32.mrf.mxu0  ;;  %v14309_v31 = vpop.f32.mrf.mxu1  ;;  %10821 = vmatpush1.bf16.msra.mxu1 %v15285_v0 }
 0x5e3   : > { %v18972_v7 = vadd.f32 %v8530_v38, %v18827_v6  ;;  %10822 = vmatprep.subr.bf16.mxu1 %v21136_v23 }
 0x5e4   : > { %v8532_v16 = vpop.f32.mrf.mxu0  ;;  %v14310_v48 = vpop.f32.mrf.mxu1 }
 0x5e5   : > { %v8533_v20 = vadd.f32 %v14308_v9, %v8532_v16  ;;  %v14311_v45 = vadd.f32 %v14310_v48, %v14309_v31 }
 0x5e6   : > { %v14797_v14 = vpop.f32.mrf.mxu0  ;;  %v14312_v42 = vpop.f32.mrf.mxu1 }
 0x5e7   : > { %v18978_v37 = vadd.f32 %v8533_v20, %v7698_v21  ;;  %v8538_v38 = vadd.f32 %v14793_v24, %v14311_v45  ;;  %v15286_v24 = vld [vmem:[%s20290_s9 + $0x8] sm:$0xff]  }
 0x5e8   : > { %v8545_v6 = vpop.f32.mrf.mxu0  ;;  %v14313_v50 = vpop.f32.mrf.mxu1  ;;  %10823 = vmatpush1.bf16.msra.mxu1 %v15286_v24  ;;  %v15288_v24 = vld [vmem:[%s20290_s9 + $0x58] sm:$0xff]  }
 0x5e9   : > { %v14314_v61 = vadd.f32 %v14313_v50, %v14312_v42  ;;  %v18985_v40 = vadd.f32 %v8538_v38, %v18829_v55  ;;  %10824 = vmatprep.subr.bf16.mxu1 %v21136_v23  ;;  %v7553_v42 = vadd.f32 %v18838_v59, %v18820_v11 }
 0x5ea   : > { %v14798_v29 = vpop.f32.mrf.mxu0  ;;  %v14315_v16 = vpop.f32.mrf.mxu1 }
 0x5eb   : > { %v8541_v20 = vadd.f32 %v14794_v49, %v14314_v61  ;;  %v15287_v61 = vld [vmem:[%s20290_s9] sm:$0xff]  }
 0x5ec   : > { %v8548_v13 = vpop.f32.mrf.mxu0  ;;  %v14316_v9 = vpop.f32.mrf.mxu1  ;;  %10825 = vmatpush1.bf16.msra.mxu1 %v15287_v61 }
 0x5ed   : > { %v14317_v31 = vadd.f32 %v14316_v9, %v14315_v16  ;;  %v18994_v21 = vadd.f32 %v8541_v20, %v18834_v15  ;;  %10834 = vmatprep.subr.bf16.mxu1 %v21136_v23 }
 0x5ee   : > { %v18991_v36 = vpop.f32.mrf.mxu0  ;;  %v14318_v55 = vpop.f32.mrf.mxu1 }
 0x5ef   : > { %v8546_v48 = vadd.f32 %v14317_v31, %v8545_v6  ;;  %v7714_v6 = vadd.f32 %v18861_v60, %v7553_v42  ;;  %v10160_v60 = vpop.permute.xlu0 %10159 }
 0x5f0   : > { %v8561_v45 = vpop.f32.mrf.mxu0  ;;  %v14319_v49 = vpop.f32.mrf.mxu1  ;;  %10835 = vmatpush2.bf16.msra.mxu1 %v15288_v24  ;;  %10267 = vst.msk [vmem:[#allocation6] sm:$0xf] %vm21139_vm8, %v10160_v60  ;;  %vm21156_vm8 = vmmov %vm21154_vm3 }
 0x5f1   : > { %v14320_v38 = vadd.f32 %v14319_v49, %v14318_v55  ;;  %v19005_v15 = vadd.f32 %v8546_v48, %v18847_v44  ;;  %v10162_v48 = vpop.permute.xlu1 %10161  ;;  %10836 = vmatprep.subr.bf16.mxu1 %v21136_v23 }
 0x5f2   : > { %v19002_v0 = vpop.f32.mrf.mxu0  ;;  %v14321_v50 = vpop.f32.mrf.mxu1  ;;  %10268 = vst.msk [vmem:[#allocation6 + $0x8] sm:$0xf] %vm21138_vm5, %v10162_v48  ;;  %vm21155_vm5 = vmmov %vm21154_vm3 }
 0x5f3   : > { %v8549_v16 = vadd.f32 %v14320_v38, %v8548_v13  ;;  %v15289_v13 = vld [vmem:[%s20290_s9 + $0x50] sm:$0xff]  }
 0x5f4   : > { %v8564_v20 = vpop.f32.mrf.mxu0  ;;  %v14322_v9 = vpop.f32.mrf.mxu1  ;;  %10837 = vmatpush2.bf16.msra.mxu1 %v15289_v13 }
 0x5f5   : > { %v14323_v59 = vadd.f32 %v14322_v9, %v14321_v50  ;;  %v19014_v55 = vadd.f32 %v8549_v16, %v7714_v6  ;;  %10838 = vmatprep.subr.bf16.mxu1 %v21136_v23 }
 0x5f6   : > { %v19012_v31 = vpop.f32.mrf.mxu0  ;;  %v14324_v44 = vpop.f32.mrf.mxu1 }
 0x5f7   : > { %21137 = vst [vmem:[#allocation10_spill] sm:$0xff] %v19014_v55  ;;  %v8554_v61 = vadd.f32 %v14797_v14, %v14323_v59  ;;  %v15290_v59 = vld [vmem:[%s20290_s9 + $0x48] sm:$0xff]  }
 0x5f8   : > { %v8577_v49 = vpop.f32.mrf.mxu0  ;;  %v14325_v42 = vpop.f32.mrf.mxu1  ;;  %10839 = vmatpush2.bf16.msra.mxu1 %v15290_v59 }
 0x5f9   : > { %v14326_v38 = vadd.f32 %v14325_v42, %v14324_v44  ;;  %v19025_v6 = vadd.f32 %v8554_v61, %v18849_v17  ;;  %10840 = vmatprep.subr.bf16.mxu1 %v21136_v23  ;;  %v7569_v42 = vadd.f32 %v18856_v56, %v18820_v11 }
 0x5fa   : > { %v19022_v50 = vpop.f32.mrf.mxu0  ;;  %v14327_v16 = vpop.f32.mrf.mxu1 }
 0x5fb   : > { %v8557_v14 = vadd.f32 %v14798_v29, %v14326_v38  ;;  %v15291_v29 = vld [vmem:[%s20290_s9 + $0x40] sm:$0xff]  }
 0x5fc   : > { %v8580_v24 = vpop.f32.mrf.mxu0  ;;  %v14328_v9 = vpop.f32.mrf.mxu1  ;;  %10841 = vmatpush2.bf16.msra.mxu1 %v15291_v29 }
 0x5fd   : > { %v14329_v48 = vadd.f32 %v14328_v9, %v14327_v16  ;;  %v19034_v44 = vadd.f32 %v8557_v14, %v18854_v47  ;;  %11806 = vmatprep.subr.bf16.mxu1 %v21136_v23 }
 0x5fe   : > { %v19031_v53 = vpop.f32.mrf.mxu0  ;;  %v14330_v60 = vpop.f32.mrf.mxu1 }
 0x5ff   : > { %21140 = vst [vmem:[#allocation34_spill] sm:$0xff] %v19034_v44  ;;  %v8562_v17 = vadd.f32 %v14329_v48, %v8561_v45  ;;  %v7730_v45 = vadd.f32 %v18880_v5, %v7569_v42 }
 0x600   : > { %v8593_v61 = vpop.f32.mrf.mxu0  ;;  %v14331_v13 = vpop.f32.mrf.mxu1 }
 0x601   : > { %v14332_v38 = vadd.f32 %v14331_v13, %v14330_v60  ;;  %v19045_v47 = vadd.f32 %v8562_v17, %v18866_v19 }
 0x602   : > { %v19042_v16 = vpop.f32.mrf.mxu0  ;;  %v14333_v14 = vpop.f32.mrf.mxu1 }
 0x603   : > { %21141 = vst [vmem:[#allocation54_spill] sm:$0xff] %v19045_v47  ;;  %v8565_v9 = vadd.f32 %v14332_v38, %v8564_v20 }
 0x604   : > { %v8596_v59 = vpop.f32.mrf.mxu0  ;;  %v14334_v48 = vpop.f32.mrf.mxu1 }
 0x605   : > { %v14335_v1 = vadd.f32 %v14334_v48, %v14333_v14  ;;  %v19051_v44 = vadd.f32 %v8565_v9, %v7730_v45 }
 0x606   : > { %v19049_v55 = vpop.f32.mrf.mxu0  ;;  %v14336_v56 = vpop.f32.mrf.mxu1 }
 0x607   : > { %21142 = vst [vmem:[#allocation55_spill] sm:$0xff] %v19051_v44  ;;  %v8570_v60 = vadd.f32 %v18991_v36, %v14335_v1 }
 0x608   : > { %v19054_v13 = vpop.f32.mrf.mxu0  ;;  %v14337_v19 = vpop.f32.mrf.mxu1 }
 0x609   : > { %v14338_v17 = vadd.f32 %v14337_v19, %v14336_v56  ;;  %v19059_v5 = vadd.f32 %v8570_v60, %v18868_v33 }
 0x60a   : > { %v19056_v29 = vpop.f32.mrf.mxu0  ;;  %v14339_v20 = vpop.f32.mrf.mxu1 }
 0x60b   : > { %21143 = vst [vmem:[#allocation56_spill] sm:$0xff] %v19059_v5  ;;  %v8573_v42 = vadd.f32 %v19002_v0, %v14338_v17 }
 0x60c   : > { %v19062_v38 = vpop.f32.mrf.mxu0  ;;  %v14340_v14 = vpop.f32.mrf.mxu1 }
 0x60d   : > { %v14341_v45 = vadd.f32 %v14340_v14, %v14339_v20  ;;  %v19067_v1 = vadd.f32 %v8573_v42, %v18875_v57 }
 0x60e   : > { %v19064_v9 = vpop.f32.mrf.mxu0  ;;  %v14342_v36 = vpop.f32.mrf.mxu1 }
 0x60f   : > { %v8578_v48 = vadd.f32 %v14341_v45, %v8577_v49 }
 0x610   : > { %v19069_v56 = vpop.f32.mrf.mxu0  ;;  %v14343_v19 = vpop.f32.mrf.mxu1 }
 0x611   : > { %v14344_v44 = vadd.f32 %v14343_v19, %v14342_v36  ;;  %v19074_v60 = vadd.f32 %v8578_v48, %v18884_v41 }
 0x612   : > { %v19071_v33 = vpop.f32.mrf.mxu0  ;;  %v14345_v0 = vpop.f32.mrf.mxu1 }
 0x613   : > { %21144 = vst [vmem:[#allocation50_spill] sm:$0xff] %v19074_v60  ;;  %v8581_v17 = vadd.f32 %v14344_v44, %v8580_v24 }
 0x614   : > { %v19076_v47 = vpop.f32.mrf.mxu0  ;;  %v14346_v20 = vpop.f32.mrf.mxu1 }
 0x615   : > { %v14347_v14 = vadd.f32 %v14346_v20, %v14345_v0  ;;  %v19081_v57 = vadd.f32 %v8581_v17, %v18890_v2 }
 0x616   : > { %v19078_v5 = vpop.f32.mrf.mxu0  ;;  %v14348_v49 = vpop.f32.mrf.mxu1 }
 0x617   : > { %21145 = vst [vmem:[#allocation52_spill] sm:$0xff] %v19081_v57  ;;  %v8586_v42 = vadd.f32 %v19012_v31, %v14347_v14 }
 0x618   : > { %v19084_v45 = vpop.f32.mrf.mxu0  ;;  %v14349_v36 = vpop.f32.mrf.mxu1 }
 0x619   : > { %v14350_v19 = vadd.f32 %v14349_v36, %v14348_v49  ;;  %v19089_v24 = vadd.f32 %v8586_v42, %v18886_v32  ;;  %v7601_v32 = vadd.f32 %v18894_v12, %v18820_v11 }
 0x61a   : > { %v19086_v41 = vpop.f32.mrf.mxu0  ;;  %v14351_v44 = vpop.f32.mrf.mxu1 }
 0x61b   : > { %21146 = vst [vmem:[#allocation51_spill] sm:$0xff] %v19089_v24  ;;  %v8589_v48 = vadd.f32 %v19022_v50, %v14350_v19 }
 0x61c   : > { %v19092_v0 = vpop.f32.mrf.mxu0  ;;  %v14352_v20 = vpop.f32.mrf.mxu1 }
 0x61d   : > { %v14353_v2 = vadd.f32 %v14352_v20, %v14351_v44  ;;  %v19097_v31 = vadd.f32 %v8589_v48, %v18892_v34  ;;  %v7762_v44 = vadd.f32 %v18907_v58, %v7601_v32 }
 0x61e   : > { %v19094_v17 = vpop.f32.mrf.mxu0  ;;  %v14354_v14 = vpop.f32.mrf.mxu1 }
 0x61f   : > { %21147 = vst [vmem:[#allocation47_spill] sm:$0xff] %v19097_v31  ;;  %v8594_v57 = vadd.f32 %v14353_v2, %v8593_v61 }
 0x620   : > { %v19099_v49 = vpop.f32.mrf.mxu0  ;;  %v14355_v36 = vpop.f32.mrf.mxu1 }
 0x621   : > { %v14356_v42 = vadd.f32 %v14355_v36, %v14354_v14  ;;  %v19106_v50 = vadd.f32 %v8594_v57, %v18898_v30 }
 0x622   : > { %v19103_v60 = vpop.f32.mrf.mxu0  ;;  %v14357_v19 = vpop.f32.mrf.mxu1 }
 0x623   : > { %v8597_v20 = vadd.f32 %v14356_v42, %v8596_v59 }
 0x624   : > { %v19109_v34 = vpop.f32.mrf.mxu0  ;;  %v14358_v48 = vpop.f32.mrf.mxu1 }
 0x625   : > { %v14359_v61 = vadd.f32 %v14358_v48, %v14357_v19  ;;  %v19113_v31 = vadd.f32 %v8597_v20, %v7762_v44 }
 0x626   : > { %v19111_v2 = vpop.f32.mrf.mxu0  ;;  %v14360_v24 = vpop.f32.mrf.mxu1 }
 0x627   : > { %21148 = vst [vmem:[#allocation48_spill] sm:$0xff] %v19113_v31  ;;  %v8602_v12 = vadd.f32 %v19031_v53, %v14359_v61 }
 0x628   : > { %v19116_v14 = vpop.f32.mrf.mxu0  ;;  %v14361_v36 = vpop.f32.mrf.mxu1 }
 0x629   : > { %v14362_v30 = vadd.f32 %v14361_v36, %v14360_v24  ;;  %v19121_v58 = vadd.f32 %v8602_v12, %v18900_v22  ;;  %v7617_v22 = vadd.f32 %v18905_v39, %v18820_v11 }
 0x62a   : > { %v19118_v57 = vpop.f32.mrf.mxu0  ;;  %v14363_v59 = vpop.f32.mrf.mxu1 }
 0x62b   : > { %v8605_v32 = vadd.f32 %v19042_v16, %v14362_v30 }
 0x62c   : > { %v19124_v42 = vpop.f32.mrf.mxu0  ;;  %v14364_v19 = vpop.f32.mrf.mxu1 }
 0x62d   : > { %v14365_v44 = vadd.f32 %v14364_v19, %v14363_v59  ;;  %v19129_v53 = vadd.f32 %v8605_v32, %v18903_v4  ;;  %v7778_v19 = vadd.f32 %v18922_v10, %v7617_v22 }
 0x62e   : > { %v19126_v20 = vpop.f32.mrf.mxu0  ;;  %v14366_v48 = vpop.f32.mrf.mxu1 }
 0x62f   : > { %21149 = vst [vmem:[#allocation57_spill] sm:$0xff] %v19129_v53  ;;  %v8610_v24 = vadd.f32 %v14365_v44, %v19054_v13 }
 0x630   : > { %v19132_v61 = vpop.f32.mrf.mxu0  ;;  %v14367_v36 = vpop.f32.mrf.mxu1 }
 0x631   : > { %v14368_v12 = vadd.f32 %v14367_v36, %v14366_v48  ;;  %v19139_v30 = vadd.f32 %v8610_v24, %v18911_v3 }
 0x632   : > { %v19136_v16 = vpop.f32.mrf.mxu0  ;;  %v14369_v59 = vpop.f32.mrf.mxu1 }
 0x633   : > { %21150 = vst [vmem:[#allocation58_spill] sm:$0xff] %v19139_v30  ;;  %v8613_v4 = vadd.f32 %v14368_v12, %v19062_v38 }
 0x634   : > { %v19143_v32 = vpop.f32.mrf.mxu0  ;;  %v14370_v13 = vpop.f32.mrf.mxu1 }
 0x635   : > { %v14371_v44 = vadd.f32 %v14370_v13, %v14369_v59  ;;  %v19147_v53 = vadd.f32 %v8613_v4, %v7778_v19  ;;  %v14244_v19 = vadd.f32 %v18920_v25, %v18918_v35 }
 0x636   : > { %v19145_v31 = vpop.f32.mrf.mxu0  ;;  %v14372_v39 = vpop.f32.mrf.mxu1 }
 0x637   : > { %21151 = vst [vmem:[#allocation59_spill] sm:$0xff] %v19147_v53  ;;  %v8618_v48 = vadd.f32 %v19049_v55, %v14371_v44 }
 0x638   : > { %v19150_v36 = vpop.f32.mrf.mxu0  ;;  %v14373_v3 = vpop.f32.mrf.mxu1 }
 0x639   : > { %v14374_v24 = vadd.f32 %v14373_v3, %v14372_v39  ;;  %v19155_v10 = vadd.f32 %v8618_v48, %v18913_v63 }
 0x63a   : > { %v19152_v30 = vpop.f32.mrf.mxu0  ;;  %v14375_v38 = vpop.f32.mrf.mxu1 }
 0x63b   : > { %v8621_v22 = vadd.f32 %v19056_v29, %v14374_v24  ;;  %v7633_v29 = vadd.f32 %v14244_v19, %v18820_v11 }
 0x63c   : > { %v19158_v12 = vpop.f32.mrf.mxu0  ;;  %v14376_v59 = vpop.f32.mrf.mxu1 }
 0x63d   : > { %v14377_v4 = vadd.f32 %v14376_v59, %v14375_v38  ;;  %v19165_v13 = vadd.f32 %v8621_v22, %v18916_v27  ;;  %v7794_v25 = vadd.f32 %v18943_v43, %v7633_v29 }
 0x63e   : > { %v19162_v55 = vpop.f32.mrf.mxu0  ;;  %v14378_v44 = vpop.f32.mrf.mxu1 }
 0x63f   : > { %v8626_v39 = vadd.f32 %v14377_v4, %v19069_v56  ;;  %v15295_v56 = vld [vmem:[%s20290_s9 + $0x98] sm:$0xff]  }
 0x640   : > { %v19168_v63 = vpop.f32.mrf.mxu0  ;;  %v14379_v48 = vpop.f32.mrf.mxu1  ;;  %11293 = vmatpush1.bf16.msra.mxu0 %v15295_v56 }
 0x641   : > { %v14380_v3 = vadd.f32 %v14379_v48, %v14378_v44  ;;  %v19174_v53 = vadd.f32 %v8626_v39, %v18927_v26  ;;  %v15296_v26 = vld [vmem:[%s20290_s9 + $0x90] sm:$0xff]   ;;  %11294 = vmatprep.subr.bf16.mxu0 %v21136_v23 }
 0x642   : > { %v19171_v24 = vpop.f32.mrf.mxu0  ;;  %v14381_v35 = vpop.f32.mrf.mxu1 }
 0x643   : > { %v8629_v27 = vadd.f32 %v14380_v3, %v19076_v47 }
 0x644   : > { %v19178_v38 = vpop.f32.mrf.mxu0  ;;  %v14382_v22 = vpop.f32.mrf.mxu1  ;;  %11295 = vmatpush1.bf16.msra.mxu0 %v15296_v26 }
 0x645   : > { %v14383_v59 = vadd.f32 %v14382_v22, %v14381_v35  ;;  %v19185_v19 = vadd.f32 %v8629_v27, %v7794_v25  ;;  %v15297_v35 = vld [vmem:[%s20290_s9 + $0x88] sm:$0xff]   ;;  %11296 = vmatprep.subr.bf16.mxu0 %v21136_v23  ;;  %v14256_v22 = vadd.f32 %v18940_v46, %v18935_v8  ;;  %v15379_v8 = vld [vmem:[%s20289_s8] ss:$0 sm:$0xff] }
 0x646   : > { %v19183_v11 = vpop.f32.mrf.mxu0  ;;  %v14384_v4 = vpop.f32.mrf.mxu1 }
 0x647   : > { %v8634_v43 = vadd.f32 %v19064_v9, %v14383_v59  ;;  %v7649_v46 = vadd.f32 %v15379_v8, %v14256_v22 }
 0x648   : > { %v19191_v47 = vpop.f32.mrf.mxu0  ;;  %v14385_v44 = vpop.f32.mrf.mxu1  ;;  %11297 = vmatpush1.bf16.msra.mxu0 %v15297_v35 }
 0x649   : > { %v14386_v39 = vadd.f32 %v14385_v44, %v14384_v4  ;;  %v19197_v29 = vadd.f32 %v8634_v43, %v18929_v28  ;;  %11298 = vmatprep.subr.bf16.mxu0 %v21136_v23 }
 0x64a   : > { %v19194_v48 = vpop.f32.mrf.mxu0  ;;  %v14387_v3 = vpop.f32.mrf.mxu1 }
 0x64b   : > { %v8637_v25 = vadd.f32 %v19071_v33, %v14386_v39  ;;  %v15298_v33 = vld [vmem:[%s20290_s9 + $0x80] sm:$0xff]  }
 0x64c   : > { %v19203_v9 = vpop.f32.mrf.mxu0  ;;  %v14388_v27 = vpop.f32.mrf.mxu1  ;;  %11299 = vmatpush1.bf16.msra.mxu0 %v15298_v33  ;;  %v15300_v33 = vld [vmem:[%s20290_s9 + $0x70] sm:$0xff]  }
 0x64d   : > { %v14389_v56 = vadd.f32 %v14388_v27, %v14387_v3  ;;  %v19211_v28 = vadd.f32 %v8637_v25, %v18932_v18  ;;  %v7810_v25 = vadd.f32 %v18959_v52, %v7649_v46  ;;  %11300 = vmatprep.subr.bf16.mxu0 %v21136_v23  ;;  %v14447_v46 = vadd.f32 %v19116_v14, %v19111_v2 }
 0x64e   : > { %v19208_v59 = vpop.f32.mrf.mxu0  ;;  %v14390_v4 = vpop.f32.mrf.mxu1  ;;  %v14450_v2 = vadd.f32 %v19124_v42, %v19118_v57 }
 0x64f   : > { %v8642_v26 = vadd.f32 %v14389_v56, %v19084_v45  ;;  %v15299_v45 = vld [vmem:[%s20290_s9 + $0x78] sm:$0xff]  }
 0x650   : > { %v19217_v43 = vpop.f32.mrf.mxu0  ;;  %v14391_v44 = vpop.f32.mrf.mxu1  ;;  %11301 = vmatpush1.bf16.msra.mxu0 %v15299_v45 }
 0x651   : > { %v14392_v18 = vadd.f32 %v14391_v44, %v14390_v4  ;;  %v19226_v3 = vadd.f32 %v8642_v26, %v18951_v54  ;;  %11302 = vmatprep.subr.bf16.mxu0 %v21136_v23 }
 0x652   : > { %v19223_v39 = vpop.f32.mrf.mxu0  ;;  %v14393_v35 = vpop.f32.mrf.mxu1 }
 0x653   : > { %v8645_v27 = vadd.f32 %v14392_v18, %v19092_v0 }
 0x654   : > { %v19233_v56 = vpop.f32.mrf.mxu0  ;;  %v14394_v22 = vpop.f32.mrf.mxu1  ;;  %11303 = vmatpush1.bf16.msra.mxu0 %v15300_v33 }
 0x655   : > { %v14395_v4 = vadd.f32 %v14394_v22, %v14393_v35  ;;  %v19238_v54 = vadd.f32 %v8645_v27, %v7810_v25  ;;  %v14441_v27 = vadd.f32 %v19099_v49, %v19094_v17  ;;  %11304 = vmatprep.subr.bf16.mxu0 %v21136_v23  ;;  %v14444_v17 = vadd.f32 %v19109_v34, %v19103_v60 }
 0x656   : > { %v19236_v44 = vpop.f32.mrf.mxu0  ;;  %v14396_v26 = vpop.f32.mrf.mxu1  ;;  %v14453_v60 = vadd.f32 %v19132_v61, %v19126_v20  ;;  %v14456_v61 = vadd.f32 %v19143_v32, %v19136_v16 }
 0x657   : > { %21152 = vst [vmem:[#allocation60_spill] sm:$0xff] %v19238_v54  ;;  %v8650_v52 = vadd.f32 %v19078_v5, %v14395_v4  ;;  %v15301_v5 = vld [vmem:[%s20290_s9 + $0x68] sm:$0xff]  }
 0x658   : > { %v19244_v8 = vpop.f32.mrf.mxu0  ;;  %v14397_v0 = vpop.f32.mrf.mxu1  ;;  %11305 = vmatpush1.bf16.msra.mxu0 %v15301_v5 }
 0x659   : > { %v19250_v18 = vadd.f32 %v8650_v52, %v18953_v62  ;;  %v14398_v35 = vadd.f32 %v14397_v0, %v14396_v26  ;;  %11306 = vmatprep.subr.bf16.mxu0 %v21136_v23 }
 0x65a   : > { %v19252_v25 = vpop.f32.mrf.mxu0  ;;  %v14841_v45 = vpop.f32.mrf.mxu1 }
 0x65b   : > { %v8653_v22 = vadd.f32 %v19086_v41, %v14398_v35  ;;  %v9405_v4 = vadd.f32 %v14841_v45, %v14447_v46  ;;  %v15302_v41 = vld [vmem:[%s20290_s9 + $0x60] sm:$0xff]  }
 0x65c   : > { %v14485_v54 = vpop.f32.mrf.mxu0  ;;  %v9396_v62 = vpop.f32.mrf.mxu1  ;;  %11307 = vmatpush1.bf16.msra.mxu0 %v15302_v41  ;;  %v19305_v41 = vadd.f32 %v19203_v9, %v19194_v48 }
 0x65d   : > { %v19264_v14 = vadd.f32 %v8653_v22, %v18962_v51  ;;  %v9525_v26 = vadd.f32 %v9405_v4, %v18985_v40  ;;  %v9397_v33 = vadd.f32 %v14441_v27, %v9396_v62  ;;  %v14459_v40 = vadd.f32 %v19150_v36, %v19145_v31  ;;  %11316 = vmatprep.subr.bf16.mxu0 %v21136_v23 }
 0x65e   : > { %v14487_v52 = vpop.f32.mrf.mxu0  ;;  %v14842_v0 = vpop.f32.mrf.mxu1  ;;  %v14462_v62 = vadd.f32 %v19158_v12, %v19152_v30  ;;  %v14471_v30 = vadd.f32 %v19191_v47, %v19183_v11  ;;  %v19320_v11 = vadd.f32 %v19244_v8, %v19236_v44  ;;  %v19323_v47 = vadd.f32 %v14485_v54, %v19252_v25 }
 0x65f   : > { %v9557_v49 = vmax.f32 %v9525_v26, 0.0  ;;  %v9523_v46 = vadd.f32 %v9397_v33, %v18972_v7  ;;  %v9408_v57 = vadd.f32 %v14842_v0, %v14450_v2  ;;  %v15303_v7 = vld [vmem:[%s20290_s9 + $0xb8] sm:$0xff]   ;;  %v19296_v0 = vadd.f32 %v19178_v38, %v19171_v24 }
 0x660   : > { %v14488_v42 = vpop.f32.mrf.mxu0  ;;  %v9399_v51 = vpop.f32.mrf.mxu1  ;;  %11317 = vmatpush2.bf16.msra.mxu0 %v15303_v7  ;;  %v19312_v24 = vadd.f32 %v19217_v43, %v19208_v59  ;;  %v19316_v38 = vadd.f32 %v19233_v56, %v19223_v39  ;;  %v21158_v43 = vld [vmem:[#allocation34_spill] sm:$0xff] }
 0x661   : > { %9589 = vst.msk [vmem:[#allocation3 + $0x20] sm:$0xff] %vm21153_vm12, %v9557_v49  ;;  %v9555_v35 = vmax.f32 %v9523_v46, 0.0  ;;  %v9526_v45 = vadd.f32 %v9408_v57, %v18994_v21  ;;  %v9400_v5 = vadd.f32 %v14444_v17, %v9399_v51  ;;  %11318 = vmatprep.subr.bf16.mxu0 %v21136_v23  ;;  %v19327_v9 = vadd.f32 %v14488_v42, %v14487_v52  ;;  %vm21157_vm12 = vmmov %vm21154_vm3  ;;  %v21159_v57 = vld [vmem:[#allocation10_spill] sm:$0xff] }
 0x662   : > { %v14490_v27 = vpop.f32.mrf.mxu0  ;;  %v14845_v22 = vpop.f32.mrf.mxu1 }
 0x663   : > { %9587 = vst.msk [vmem:[#allocation3 + $0x10] sm:$0xff] %vm21154_vm3, %v9555_v35  ;;  %v9558_v34 = vmax.f32 %v9526_v45, 0.0  ;;  %v9524_v31 = vadd.f32 %v9400_v5, %v18978_v37  ;;  %v9421_v36 = vadd.f32 %v14845_v22, %v14459_v40  ;;  %v14465_v37 = vadd.f32 %v19168_v63, %v19162_v55 }
 0x664   : > { %v14491_v4 = vpop.f32.mrf.mxu0  ;;  %v9412_v21 = vpop.f32.mrf.mxu1 }
 0x665   : > { %9590 = vst.msk [vmem:[#allocation3 + $0x28] sm:$0xff] %vm21155_vm5, %v9558_v34  ;;  %v9556_v2 = vmax.f32 %v9524_v31, 0.0  ;;  %v9529_v26 = vadd.f32 %v9421_v36, %v19025_v6  ;;  %v9413_v33 = vadd.f32 %v14453_v60, %v9412_v21  ;;  %v15304_v6 = vld [vmem:[%s20290_s9 + $0xb0] sm:$0xff]   ;;  %v19331_v56 = vadd.f32 %v14491_v4, %v14490_v27  ;;  %v15306_v34 = vld [vmem:[%s20290_s9 + $0xa8] sm:$0xff]   ;;  %vm21160_vm5 = vmmov %vm21154_vm3 }
 0x666   : > { %v14493_v20 = vpop.f32.mrf.mxu0  ;;  %v14846_v12 = vpop.f32.mrf.mxu1  ;;  %11319 = vmatpush2.bf16.msra.mxu0 %v15304_v6  ;;  %v21161_v36 = vld [vmem:[#allocation56_spill] sm:$0xff] }
 0x667   : > { %9588 = vst.msk [vmem:[#allocation3 + $0x18] sm:$0xff] %vm21156_vm8, %v9556_v2  ;;  %v9561_v16 = vmax.f32 %v9529_v26, 0.0  ;;  %v9527_v32 = vadd.f32 %v9413_v33, %v19005_v15  ;;  %v9424_v55 = vadd.f32 %v14846_v12, %v14462_v62  ;;  %11320 = vmatprep.subr.bf16.mxu0 %v21136_v23  ;;  %v21162_v26 = vld [vmem:[#allocation49_spill] sm:$0xff] }
 0x668   : > { %v14494_v63 = vpop.f32.mrf.mxu0  ;;  %v9415_v15 = vpop.f32.mrf.mxu1  ;;  %v19325_v48 = vld [vmem:[#allocation3 + $0x20] sm:$0xff] }
 0x669   : > { %9593 = vst.msk [vmem:[#allocation3 + $0x40] sm:$0xff] %vm21157_vm12, %v9561_v16  ;;  %v9559_v59 = vmax.f32 %v9527_v32, 0.0  ;;  %v9530_v17 = vadd.f32 %v9424_v55, %v21158_v43  ;;  %v9416_v49 = vadd.f32 %v14456_v61, %v9415_v15  ;;  %v19333_v46 = vadd.f32 %v14494_v63, %v14493_v20  ;;  %v21163_v33 = vld [vmem:[#allocation9_spill] sm:$0xff]  ;;  %v21165_v61 = vld [vmem:[#allocation46_spill] sm:$0xff] }
 0x66a   : > { %v14496_v39 = vpop.f32.mrf.mxu0  ;;  %v14849_v44 = vpop.f32.mrf.mxu1  ;;  %v19335_v8 = vld [vmem:[#allocation3 + $0x10] sm:$0xff]  ;;  %v9659_v54 = vrot.slane %v19325_v48, 7  ;;  %v9767_v25 = vrot.slane %v19325_v48, 1  ;;  %v13999_v7 = vpack.c.bf16 %v19325_v48, %v19325_v48  ;;  %vm21164_vm8 = vcmp.lt.s32.totalorder %v21163_v33, 1  ;;  %11321 = vmatpush2.bf16.msra.mxu0 %v15306_v34 }
 0x66b   : > { %9591 = vst.msk [vmem:[#allocation3 + $0x30] sm:$0xff] %vm21154_vm3, %v9559_v59  ;;  %v9562_v52 = vmax.f32 %v9530_v17, 0.0  ;;  %v9528_v42 = vadd.f32 %v9416_v49, %v21159_v57  ;;  %v9437_v51 = vadd.f32 %v14849_v44, %v14471_v30  ;;  %v13997_v35 = vpack.c.bf16 %v19335_v8, %v19335_v8  ;;  %v21167_v55 = vld [vmem:[#allocation54_spill] sm:$0xff]  ;;  %11322 = vmatprep.subr.bf16.mxu0 %v21136_v23 }
 0x66c   : > { %v14497_v40 = vpop.f32.mrf.mxu0  ;;  %v9428_v5 = vpop.f32.mrf.mxu1  ;;  %v9657_v27 = vrot.slane %v19335_v8, 7  ;;  %v9765_v22 = vrot.slane %v19335_v8, 1  ;;  %v19350_v60 = vld [vmem:[#allocation3 + $0x28] sm:$0xff]  ;;  %vm21166_vm12 = vcmp.lt.s32.totalorder %v21163_v33, 7 }
 0x66d   : > { %v19344_v45 = vadd.f32 %v14497_v40, %v14496_v39  ;;  %9594 = vst.msk [vmem:[#allocation3 + $0x48] sm:$0xff] %vm21160_vm5, %v9562_v52  ;;  %v9560_v31 = vmax.f32 %v9528_v42, 0.0  ;;  %v9533_v4 = vadd.f32 %v9437_v51, %v21161_v36  ;;  %v9429_v21 = vadd.f32 %v14465_v37, %v9428_v5  ;;  %10163 = vrot.lane.b32.xlu0 %v13997_v35, %s15393_s20  ;;  %vm21170_vm5 = vmmov %vm21154_vm3 }
 0x66e   : > { %v14499_v62 = vpop.f32.mrf.mxu0  ;;  %v9660_v2 = vrot.slane %v19350_v60, 7  ;;  %v9724_v20 = vsel %vm21164_vm8, %v21162_v26, %v9657_v27  ;;  %v9832_v30 = vsel %vm21166_vm12, %v21165_v61, %v9765_v22  ;;  %v14850_v12 = vpop.f32.mrf.mxu1  ;;  %v9622_v6 = vld [vmem:[#allocation3 + $0x18] sm:$0xff]  ;;  %v9768_v16 = vrot.slane %v19350_v60, 1 }
 0x66f   : > { %v14000_v37 = vpack.c.bf16 %v19350_v60, %v19350_v60  ;;  %9592 = vst.msk [vmem:[#allocation3 + $0x38] sm:$0xff] %vm21154_vm3, %v9560_v31  ;;  %v9565_v32 = vmax.f32 %v9533_v4, 0.0  ;;  %v9531_v63 = vadd.f32 %v9429_v21, %v21167_v55  ;;  %v9729_v59 = vsel %vm15702_vm13, 0.0, %v9724_v20  ;;  %v15307_v20 = vld [vmem:[%s20290_s9 + $0xa0] sm:$0xff]  }
 0x670   : > { %v9836_v17 = vsel %vm15656_vm10, 0.0, %v9832_v30  ;;  %v14500_v49 = vpop.f32.mrf.mxu0  ;;  %v13961_v39 = vpack.c.bf16 %v9729_v59, %v9729_v59  ;;  %v9440_v8 = vadd.f32 %v14850_v12, %v19305_v41  ;;  %v9431_v57 = vpop.f32.mrf.mxu1  ;;  %v13998_v40 = vpack.c.bf16 %v9622_v6, %v9622_v6  ;;  %11323 = vmatpush2.bf16.msra.mxu0 %v15307_v20 }
 0x671   : > { %v14032_v44 = vpack.c.bf16 %v9836_v17, %v9836_v17  ;;  %v19376_v52 = vadd.f32 %v14500_v49, %v14499_v62  ;;  %9597 = vst.msk [vmem:[#allocation3 + $0x60] sm:$0xff] %vm21170_vm5, %v9565_v32  ;;  %v9563_v42 = vmax.f32 %v9531_v63, 0.0  ;;  %v9432_v51 = vadd.f32 %v19296_v0, %v9431_v57  ;;  %10167 = vrot.lane.b32.xlu0 %v13999_v7, %s15393_s20  ;;  %v21173_v7 = vld [vmem:[#allocation55_spill] sm:$0xff]  ;;  %vm21174_vm5 = vmmov %vm21164_vm8 }
 0x672   : > { %v9658_v35 = vrot.slane %v9622_v6, 7  ;;  %v14502_v5 = vpop.f32.mrf.mxu0  ;;  %vm21171_vm10 = vcmask 519168   ;;  %v9534_v34 = vadd.f32 %v9440_v8, %v19067_v1  ;;  %v9766_v41 = vrot.slane %v9622_v6, 1  ;;  %v14853_v31 = vpop.f32.mrf.mxu1  ;;  %10165 = vrot.lane.b32.xlu1 %v13998_v40, %s15393_s20  ;;  %v21182_v17 = vld [vmem:[#allocation51_spill] sm:$0xff] }
 0x673   : > { %10448 = vst.msk [vmem:[#allocation6 + $0xc] sm:$0xf] %vm21171_vm10, %v14032_v44  ;;  %vm21172_vm13 = vmmov %vm21171_vm10  ;;  %v9721_v36 = vsel %vm21164_vm8, %v9659_v54, %v9660_v2  ;;  %v9829_v0 = vsel %vm21166_vm12, %v9767_v25, %v9768_v16  ;;  %v9532_v4 = vadd.f32 %v9432_v51, %v21173_v7  ;;  %v9453_v62 = vadd.f32 %v14853_v31, %v19320_v11  ;;  %v15305_v7 = vld [vmem:[%s20290_s9 + $0xf8] sm:$0xff]  }
 0x674   : > { %10017 = vst.msk [vmem:[#allocation6 + $0x10] sm:$0xf] %vm21172_vm13, %v13961_v39  ;;  %v9723_v1 = vsel %vm21174_vm5, %v9657_v27, %v9658_v35  ;;  %vm21175_vm10 = vmmov %vm21174_vm5  ;;  %v14503_v26 = vpop.f32.mrf.mxu0  ;;  %v9566_v61 = vmax.f32 %v9534_v34, 0.0  ;;  %v9444_v55 = vpop.f32.mrf.mxu1  ;;  %v19409_v27 = vld [vmem:[#allocation3 + $0x30] sm:$0xff]  ;;  %v13964_v57 = vpack.c.bf16 %v9721_v36, %v9721_v36 }
 0x675   : > { %9595 = vst.msk [vmem:[#allocation3 + $0x50] sm:$0xff] %vm21154_vm3, %v9563_v42  ;;  %v9722_v21 = vsel %vm21175_vm10, %v9658_v35, %v9659_v54  ;;  %vm21176_vm13 = vmmov %vm21166_vm12  ;;  %v13962_v12 = vpack.c.bf16 %v9723_v1, %v9723_v1  ;;  %v9564_v63 = vmax.f32 %v9532_v4, 0.0  ;;  %v9537_v49 = vadd.f32 %v9453_v62, %v21182_v17 }
 0x676   : > { %v9831_v30 = vsel %vm21176_vm13, %v9765_v22, %v9766_v41  ;;  %v9731_v32 = vsel %vm20822_vm9, 0.0, %v9722_v21  ;;  %vm21178_vm8 = vmmov %vm21166_vm12  ;;  %v14505_v59 = vpop.f32.mrf.mxu0  ;;  %v19420_v39 = vadd.f32 %v14503_v26, %v14502_v5  ;;  %v9445_v44 = vadd.f32 %v19312_v24, %v9444_v55  ;;  %v14854_v48 = vpop.f32.mrf.mxu1  ;;  %v19423_v8 = vld [vmem:[#allocation3 + $0x38] sm:$0xff]  ;;  %10169 = vrot.lane.b32.xlu1 %v14000_v37, %s15393_s20  ;;  %v21186_v24 = vld [vmem:[#allocation50_spill] sm:$0xff] }
 0x677   : > { %v14033_v54 = vpack.c.bf16 %v9831_v30, %v9831_v30  ;;  %v9830_v11 = vsel %vm21178_vm8, %v9766_v41, %v9767_v25  ;;  %v13963_v15 = vpack.c.bf16 %v9731_v32, %v9731_v32  ;;  %vm21179_vm12 = vmmov %vm21154_vm3  ;;  %vm21180_vm3 = vcmask 519168   ;;  %v15292_v21 = vld [vmem:[#allocation6] ss:$8 sps:$4 sm:$0xff]  }
 0x678   : > { %9598 = vst.msk [vmem:[#allocation3 + $0x68] sm:$0xff] %vm21179_vm12, %v9566_v61  ;;  %v9838_v43 = vsel %vm15678_vm11, 0.0, %v9830_v11  ;;  %vm21183_vm9 = vmmov %vm21179_vm12  ;;  %v14035_v42 = vpack.c.bf16 %v9829_v0, %v9829_v0  ;;  %v14001_v51 = vpack.c.bf16 %v19409_v27, %v19409_v27  ;;  %v14506_v40 = vpop.f32.mrf.mxu0  ;;  %v9569_v35 = vmax.f32 %v9537_v49, 0.0  ;;  %v9447_v31 = vpop.f32.mrf.mxu1  ;;  %v19457_v61 = vld [vmem:[#allocation3 + $0x40] sm:$0xff] }
 0x679   : > { %10018 = vst.msk [vmem:[#allocation6 + $0x18] sm:$0xf] %vm21180_vm3, %v13962_v12  ;;  %vm21184_vm5 = vmmov %vm21180_vm3  ;;  %v14034_v25 = vpack.c.bf16 %v9838_v43, %v9838_v43  ;;  %v9535_v5 = vadd.f32 %v9445_v44, %v21186_v24  ;;  %v9661_v34 = vrot.slane %v19409_v27, 7  ;;  %v9769_v41 = vrot.slane %v19409_v27, 1  ;;  %v21195_v27 = vld [vmem:[#allocation47_spill] sm:$0xff] }
 0x67a   : > { %9596 = vst.msk [vmem:[#allocation3 + $0x58] sm:$0xff] %vm21183_vm9, %v9564_v63  ;;  %vm21185_vm10 = vmmov %vm21180_vm3  ;;  %10171 = vrot.lane.b32.xlu0 %v14001_v51, %s15393_s20  ;;  %v9456_v37 = vadd.f32 %v14854_v48, %v19323_v47  ;;  %v19442_v36 = vadd.f32 %v14506_v40, %v14505_v59  ;;  %v9448_v0 = vadd.f32 %v19316_v38, %v9447_v31  ;;  %v14508_v1 = vpop.f32.mrf.mxu0  ;;  %v15294_v62 = vld [vmem:[#allocation6 + $0x4] ss:$8 sps:$4 sm:$0xff]   ;;  %v9662_v38 = vrot.slane %v19423_v8, 7  ;;  %v14857_v30 = vpop.f32.mrf.mxu1  ;;  %v19472_v48 = vld [vmem:[#allocation3 + $0x48] sm:$0xff] }
 0x67b   : > { %10449 = vst.msk [vmem:[#allocation6 + $0x14] sm:$0xf] %vm21184_vm5, %v14033_v54  ;;  %vm21187_vm11 = vmmov %vm21180_vm3  ;;  %v14002_v4 = vpack.c.bf16 %v19423_v8, %v19423_v8  ;;  %v9567_v26 = vmax.f32 %v9535_v5, 0.0  ;;  %v21196_v54 = vld [vmem:[#allocation52_spill] sm:$0xff]  ;;  %v9770_v59 = vrot.slane %v19423_v8, 1  ;;  %v9663_v44 = vrot.slane %v19457_v61, 7 }
 0x67c   : > { %10019 = vst.msk [vmem:[#allocation6 + $0x20] sm:$0xf] %vm21185_vm10, %v13963_v15  ;;  %vm21188_vm13 = vmmov %vm21180_vm3  ;;  %v9538_v63 = vadd.f32 %v9456_v37, %v21195_v27  ;;  %v14509_v60 = vpop.f32.mrf.mxu0  ;;  %v9460_v22 = vpop.f32.mrf.mxu1  ;;  %v14003_v51 = vpack.c.bf16 %v19457_v61, %v19457_v61  ;;  %v9469_v40 = vadd.f32 %v14857_v30, %v19333_v46  ;;  %v14004_v12 = vpack.c.bf16 %v19472_v48, %v19472_v48 }
 0x67d   : > { %10450 = vst.msk [vmem:[#allocation6 + $0x1c] sm:$0xf] %vm21187_vm11, %v14034_v25  ;;  %vm21189_vm8 = vmmov %vm21180_vm3  ;;  %vm21191_vm3 = vcmp.lt.s32.totalorder %v21163_v33, 1  ;;  %10173 = vrot.lane.b32.xlu1 %v14002_v4, %s15393_s20  ;;  %v9664_v4 = vrot.slane %v19472_v48, 7 }
 0x67e   : > { %10451 = vst.msk [vmem:[#allocation6 + $0x24] sm:$0xf] %vm21188_vm13, %v14035_v42  ;;  %vm21190_vm12 = vmmov %vm21183_vm9  ;;  %v9720_v20 = vsel %vm21191_vm3, %v9660_v2, %v9661_v34  ;;  %vm21192_vm9 = vcmp.lt.s32.totalorder %v21163_v33, 7  ;;  %v9536_v2 = vadd.f32 %v9448_v0, %v21196_v54  ;;  %v9570_v43 = vmax.f32 %v9538_v63, 0.0  ;;  %v14511_v25 = vpop.f32.mrf.mxu0  ;;  %10175 = vrot.lane.b32.xlu0 %v14003_v51, %s15393_s20 }
 0x67f   : > { %10020 = vst.msk [vmem:[#allocation6 + $0x28] sm:$0xf] %vm21189_vm8, %v13964_v57  ;;  %v9828_v47 = vsel %vm21192_vm9, %v9768_v16, %v9769_v41  ;;  %v9733_v6 = vsel %vm20832_vm6, 0.0, %v9720_v20  ;;  %vm21197_vm5 = vmmov %vm21190_vm12  ;;  %v15313_v57 = vld [vmem:[%s20290_s9 + $0xf0] sm:$0xff]   ;;  %v9771_v42 = vrot.slane %v19457_v61, 1  ;;  %v9541_v0 = vadd.f32 %v9469_v40, %v19121_v58 }
 0x680   : > { %9601 = vst.msk [vmem:[#allocation3 + $0x80] sm:$0xff] %vm21190_vm12, %v9569_v35  ;;  %v9840_v55 = vsel %vm15755_vm14, 0.0, %v9828_v47  ;;  %13446 = vmatprep.mubr.msk.bf16.mxu1 %vm21197_vm5, %v15294_v62  ;;  %vm21198_vm10 = vmmov %vm21197_vm5  ;;  %v13965_v16 = vpack.c.bf16 %v9733_v6, %v9733_v6  ;;  %v9568_v17 = vmax.f32 %v9536_v2, 0.0  ;;  %v14858_v35 = vpop.f32.mrf.mxu1  ;;  %v14512_v31 = vpop.f32.mrf.mxu0  ;;  %v9772_v47 = vrot.slane %v19472_v48, 1 }
 0x681   : > { %9599 = vst.msk [vmem:[#allocation3 + $0x70] sm:$0xff] %vm21198_vm10, %v9567_v26  ;;  %v14036_v11 = vpack.c.bf16 %v9840_v55, %v9840_v55  ;;  %vm21199_vm11 = vmmov %vm21191_vm3  ;;  %10843 = vmatmul.mubr.bf16.vlgmr.msra.gmra.mxu1 %v15292_v21  ;;  %v9629_v21 = vld [vmem:[#allocation3 + $0x50] sm:$0xff]  ;;  %v9573_v30 = vmax.f32 %v9541_v0, 0.0  ;;  %v19510_v6 = vld [vmem:[#allocation3 + $0x58] sm:$0xff]  ;;  %10177 = vrot.lane.b32.xlu1 %v14004_v12, %s15393_s20 }
 0x682   : > { %v9719_v15 = vsel %vm21199_vm11, %v9661_v34, %v9662_v38  ;;  %11807 = vmatpush1.bf16.msra.mxu1 %v15305_v7  ;;  %vm21200_vm14 = vmmov %vm21189_vm8  ;;  %v19491_v34 = vadd.f32 %v14509_v60, %v14508_v1  ;;  %v9463_v62 = vpop.f32.mrf.mxu1  ;;  %v9665_v63 = vrot.slane %v9629_v21, 7  ;;  %v9773_v60 = vrot.slane %v9629_v21, 1 }
 0x683   : > { %v13966_v49 = vpack.c.bf16 %v9719_v15, %v9719_v15  ;;  %10452 = vst.msk [vmem:[#allocation6 + $0x2c] sm:$0xf] %vm21200_vm14, %v14036_v11  ;;  %vm21201_vm6 = vmmov %vm21189_vm8  ;;  %11808 = vmatprep.subr.bf16.mxu1 %v21136_v23  ;;  %v9472_v11 = vadd.f32 %v14858_v35, %v19344_v45  ;;  %v14006_v1 = vpack.c.bf16 %v19510_v6, %v19510_v6 }
 0x684   : > { %10021 = vst.msk [vmem:[#allocation6 + $0x30] sm:$0xf] %vm21201_vm6, %v13965_v16  ;;  %vm21202_vm13 = vmmov %vm21192_vm9  ;;  %v14861_v32 = vpop.f32.mrf.mxu1  ;;  %v14005_v16 = vpack.c.bf16 %v9629_v21, %v9629_v21 }
 0x685   : > { %v9827_v8 = vsel %vm21202_vm13, %v9769_v41, %v9770_v59  ;;  %vm21203_vm8 = vmmov %vm21197_vm5  ;;  %v9461_v41 = vadd.f32 %v19327_v9, %v9460_v22  ;;  %v19524_v22 = vadd.f32 %v14512_v31, %v14511_v25  ;;  %v9774_v25 = vrot.slane %v19510_v6, 1  ;;  %10181 = vrot.lane.b32.xlu1 %v14006_v1, %s15393_s20 }
 0x686   : > { %9602 = vst.msk [vmem:[#allocation3 + $0x88] sm:$0xff] %vm21203_vm8, %v9570_v43  ;;  %vm21204_vm12 = vmmov %vm21197_vm5  ;;  %v14037_v24 = vpack.c.bf16 %v9827_v8, %v9827_v8  ;;  %11809 = vmatpush1.bf16.msra.mxu1 %v15313_v57  ;;  %v9476_v15 = vpop.f32.mrf.mxu1  ;;  %v9464_v43 = vadd.f32 %v19331_v56, %v9463_v62  ;;  %10179 = vrot.lane.b32.xlu0 %v14005_v16, %s15393_s20  ;;  %v21221_v57 = vld [vmem:[#allocation57_spill] sm:$0xff] }
 0x687   : > { %9600 = vst.msk [vmem:[#allocation3 + $0x78] sm:$0xff] %vm21204_vm12, %v9568_v17  ;;  %vm21205_vm3 = vmmov %vm21201_vm6  ;;  %v9539_v20 = vadd.f32 %v9461_v41, %v19106_v50  ;;  %11810 = vmatprep.subr.bf16.mxu1 %v21136_v23  ;;  %v9666_v17 = vrot.slane %v19510_v6, 7  ;;  %v9542_v8 = vadd.f32 %v9472_v11, %v21221_v57  ;;  %v15316_v6 = vld [vmem:[%s20290_s9 + $0xe8] sm:$0xff]  }
 0x688   : > { %10022 = vst.msk [vmem:[#allocation6 + $0x38] sm:$0xf] %vm21205_vm3, %v13966_v49  ;;  %vm21206_vm9 = vmmov %vm21199_vm11  ;;  %v19538_v56 = vpop.f32.mrf.mxu1  ;;  %v21235_v11 = vld [vmem:[#allocation18_spill] sm:$0xff] }
 0x689   : > { %v9718_v5 = vsel %vm21206_vm9, %v9662_v38, %v9663_v44  ;;  %vm21208_vm5 = vmmov %vm21202_vm13  ;;  %v14514_v38 = vpop.f32.mrf.mxu0  ;;  %v9571_v50 = vmax.f32 %v9539_v20, 0.0 }
 0x68a   : > { %v9735_v46 = vsel %vm20842_vm1, 0.0, %v9718_v5  ;;  %v9826_v37 = vsel %vm21208_vm5, %v9770_v59, %v9771_v42  ;;  %vm21209_vm10 = vmmov %vm21205_vm3  ;;  %v9479_v21 = vpop.f32.mrf.mxu1  ;;  %11811 = vmatpush1.bf16.msra.mxu1 %v15316_v6 }
 0x68b   : > { %10453 = vst.msk [vmem:[#allocation6 + $0x34] sm:$0xf] %vm21209_vm10, %v14037_v24  ;;  %v9842_v9 = vsel %vm15797_vm15, 0.0, %v9826_v37  ;;  %v13967_v26 = vpack.c.bf16 %v9735_v46, %v9735_v46  ;;  %vm21211_vm1 = vmmov %vm21206_vm9  ;;  %v14515_v54 = vpop.f32.mrf.mxu0  ;;  %v21223_v24 = vld [vmem:[#allocation48_spill] sm:$0xff]  ;;  %v9574_v46 = vmax.f32 %v9542_v8, 0.0  ;;  %v9823_v37 = vsel %vm21208_vm5, %v9773_v60, %v9774_v25  ;;  %11812 = vmatprep.subr.bf16.mxu1 %v21136_v23 }
 0x68c   : > { %v14038_v61 = vpack.c.bf16 %v9842_v9, %v9842_v9  ;;  %v9717_v58 = vsel %vm21211_vm1, %v9663_v44, %v9664_v4  ;;  %vm21212_vm15 = vmmov %vm21205_vm3  ;;  %v9540_v5 = vadd.f32 %v9464_v43, %v21223_v24  ;;  %v14041_v9 = vpack.c.bf16 %v9823_v37, %v9823_v37  ;;  %v19560_v12 = vpop.f32.mrf.mxu1  ;;  %v21237_v43 = vld [vmem:[#allocation58_spill] sm:$0xff] }
 0x68d   : > { %10023 = vst.msk [vmem:[#allocation6 + $0x40] sm:$0xf] %vm21212_vm15, %v13967_v26  ;;  %vm21213_vm11 = vmmov %vm21208_vm5  ;;  %v13968_v27 = vpack.c.bf16 %v9717_v58, %v9717_v58  ;;  %v19528_v49 = vpop.f32.mrf.mxu0  ;;  %v19558_v58 = vadd.f32 %v14515_v54, %v14514_v38 }
 0x68e   : > { %v9825_v55 = vsel %vm21213_vm11, %v9771_v42, %v9772_v47  ;;  %vm21214_vm14 = vmmov %vm21205_vm3  ;;  %v9631_v42 = vld [vmem:[#allocation3 + $0x60] sm:$0xff]  ;;  %v9572_v62 = vmax.f32 %v9540_v5, 0.0  ;;  %v19583_v16 = vpop.f32.mrf.mxu1  ;;  %v9488_v5 = vadd.f32 %v19538_v56, %v19491_v34 }
 0x68f   : > { %10454 = vst.msk [vmem:[#allocation6 + $0x3c] sm:$0xf] %vm21214_vm14, %v14038_v61  ;;  %vm21215_vm6 = vmmov %vm21203_vm8  ;;  %v14039_v2 = vpack.c.bf16 %v9825_v55, %v9825_v55  ;;  %v14518_v31 = vpop.f32.mrf.mxu0  ;;  %v9667_v26 = vrot.slane %v9631_v42, 7  ;;  %v14007_v61 = vpack.c.bf16 %v9631_v42, %v9631_v42  ;;  %v9477_v55 = vadd.f32 %v19376_v52, %v9476_v15  ;;  %v9633_v52 = vld [vmem:[#allocation3 + $0x70] sm:$0xff]  ;;  %v21247_v34 = vld [vmem:[#allocation28_spill] sm:$0xff] }
 0x690   : > { %9605 = vst.msk [vmem:[#allocation3 + $0xa0] sm:$0xff] %vm21215_vm6, %v9573_v30  ;;  %vm21216_vm13 = vmmov %vm21215_vm6  ;;  %v9485_v30 = vadd.f32 %v14861_v32, %v19442_v36  ;;  %v14009_v24 = vpack.c.bf16 %v9633_v52, %v9633_v52 }
 0x691   : > { %9603 = vst.msk [vmem:[#allocation3 + $0x90] sm:$0xff] %vm21216_vm13, %v9571_v50  ;;  %vm21217_vm8 = vmmov %vm21205_vm3  ;;  %v19552_v20 = vpop.f32.mrf.mxu0  ;;  %10183 = vrot.lane.b32.xlu0 %v14007_v61, %s15393_s20 }
 0x692   : > { %10024 = vst.msk [vmem:[#allocation6 + $0x48] sm:$0xf] %vm21217_vm8, %v13968_v27  ;;  %vm21218_vm12 = vmmov %vm21211_vm1  ;;  %v21232_v27 = vld [vmem:[#allocation25_spill] sm:$0xff] }
 0x693   : > { %v9716_v59 = vsel %vm21218_vm12, %v9664_v4, %v9665_v63  ;;  %10455 = vst.msk [vmem:[#allocation6 + $0x44] sm:$0xf] %vm21205_vm3, %v14039_v2  ;;  %vm21220_vm9 = vmmov %vm21208_vm5  ;;  %v19547_v4 = vld [vmem:[#allocation3 + $0x68] sm:$0xff]  ;;  %v19573_v32 = vpop.f32.mrf.mxu0  ;;  %vm21233_vm13 = vnez %v21232_v27  ;;  %v9545_v2 = vadd.f32 %v9485_v30, %v19155_v10  ;;  %vm21236_vm12 = vnez %v21235_v11 }
 0x694   : > { %v9737_v45 = vsel %vm21079_vm0, 0.0, %v9716_v59  ;;  %v9824_v48 = vsel %vm21220_vm9, %v9772_v47, %v9773_v60  ;;  %vm21224_vm0 = vmmov %vm21211_vm1  ;;  %v9775_v47 = vrot.slane %v9631_v42, 1  ;;  %v9668_v36 = vrot.slane %v19547_v4, 7 }
 0x695   : > { %v9844_v40 = vsel %vm21080_vm2, 0.0, %v9824_v48  ;;  %v13969_v35 = vpack.c.bf16 %v9737_v45, %v9737_v45  ;;  %v9715_v41 = vsel %vm21224_vm0, %v9665_v63, %v9666_v17  ;;  %vm21225_vm10 = vmmov %vm21205_vm3  ;;  %v9776_v38 = vrot.slane %v19547_v4, 1  ;;  %v19590_v45 = vpop.f32.mrf.mxu0  ;;  %10187 = vrot.lane.b32.xlu0 %v14009_v24, %s15393_s20 }
 0x696   : > { %v14040_v7 = vpack.c.bf16 %v9844_v40, %v9844_v40  ;;  %v13970_v0 = vpack.c.bf16 %v9715_v41, %v9715_v41  ;;  %vm21226_vm2 = vmmov %vm21205_vm3  ;;  %v14008_v60 = vpack.c.bf16 %v19547_v4, %v19547_v4  ;;  %v9577_v48 = vmax.f32 %v9545_v2, 0.0 }
 0x697   : > { %10025 = vst.msk [vmem:[#allocation6 + $0x50] sm:$0xf] %vm21225_vm10, %v13969_v35  ;;  %vm21227_vm1 = vmmov %vm21215_vm6  ;;  %v9669_v40 = vrot.slane %v9633_v52, 7  ;;  %v9777_v35 = vrot.slane %v9633_v52, 1  ;;  %v14519_v41 = vadd.f32 %v14518_v31, %v19528_v49  ;;  %v19612_v1 = vpop.f32.mrf.mxu0  ;;  %v9546_v31 = vadd.f32 %v9488_v5, %v19165_v13 }
 0x698   : > { %10456 = vst.msk [vmem:[#allocation6 + $0x4c] sm:$0xf] %vm21226_vm2, %v14040_v7  ;;  %vm21228_vm15 = vmmov %vm21226_vm2  ;;  %10185 = vrot.lane.b32.xlu1 %v14008_v60, %s15393_s20  ;;  %v9480_v7 = vadd.f32 %v19420_v39, %v9479_v21  ;;  %v21249_v39 = vld [vmem:[#allocation20_spill] sm:$0xff]  ;;  %v21251_v21 = vld [vmem:[#allocation59_spill] sm:$0xff] }
 0x699   : > { %9606 = vst.msk [vmem:[#allocation3 + $0xa8] sm:$0xff] %vm21227_vm1, %v9574_v46  ;;  %vm21229_vm11 = vmmov %vm21227_vm1  ;;  %v19604_v46 = vpop.f32.mrf.mxu1  ;;  %v19629_v52 = vpop.f32.mrf.mxu0  ;;  %v9501_v11 = vadd.f32 %v19560_v12, %v14519_v41 }
 0x69a   : > { %10026 = vst.msk [vmem:[#allocation6 + $0x58] sm:$0xf] %vm21228_vm15, %v13970_v0  ;;  %vm21230_vm14 = vmmov %vm21226_vm2 }
 0x69b   : > { %9604 = vst.msk [vmem:[#allocation3 + $0x98] sm:$0xff] %vm21229_vm11, %v9572_v62  ;;  %vm21231_vm6 = vmmov %vm21224_vm0  ;;  %v14527_v41 = vpop.f32.mrf.mxu0 }
 0x69c   : > { %10457 = vst.msk [vmem:[#allocation6 + $0x54] sm:$0xf] %vm21230_vm14, %v14041_v9  ;;  %v9714_v50 = vsel %vm21231_vm6, %v9666_v17, %v9667_v26  ;;  %vm21234_vm8 = vmmov %vm21208_vm5  ;;  %v9543_v17 = vadd.f32 %v9477_v55, %v21237_v43  ;;  %vm21248_vm6 = vnez %v21247_v34  ;;  %v9544_v9 = vadd.f32 %v9480_v7, %v21251_v21 }
 0x69d   : > { %v9739_v63 = vsel %vm21233_vm13, 0.0, %v9714_v50  ;;  %v9822_v54 = vsel %vm21234_vm8, %v9774_v25, %v9775_v47  ;;  %vm21238_vm3 = vmmov %vm21224_vm0  ;;  %v9634_v25 = vld [vmem:[#allocation3 + $0x78] sm:$0xff]  ;;  %vm21250_vm13 = vnez %v21249_v39  ;;  %v19625_v50 = vld [vmem:[#allocation3 + $0x88] sm:$0xff]  ;;  %v9578_v55 = vmax.f32 %v9546_v31, 0.0 }
 0x69e   : > { %v9846_v15 = vsel %vm21236_vm12, 0.0, %v9822_v54  ;;  %v13971_v59 = vpack.c.bf16 %v9739_v63, %v9739_v63  ;;  %v9713_v44 = vsel %vm21238_vm3, %v9667_v26, %v9668_v36  ;;  %vm21239_vm9 = vmmov %vm21208_vm5  ;;  %v9575_v42 = vmax.f32 %v9543_v17, 0.0  ;;  %v9635_v26 = vld [vmem:[#allocation3 + $0x80] sm:$0xff]  ;;  %v9495_v63 = vpop.f32.mrf.mxu1 }
 0x69f   : > { %v14042_v10 = vpack.c.bf16 %v9846_v15, %v9846_v15  ;;  %v9821_v57 = vsel %vm21239_vm9, %v9775_v47, %v9776_v38  ;;  %v13972_v8 = vpack.c.bf16 %v9713_v44, %v9713_v44  ;;  %vm21240_vm0 = vmmov %vm21226_vm2  ;;  %v9670_v4 = vrot.slane %v9634_v25, 7  ;;  %v15319_v17 = vld [vmem:[%s20290_s9 + $0xe0] sm:$0xff]  }
 0x6a0   : > { %10027 = vst.msk [vmem:[#allocation6 + $0x60] sm:$0xf] %vm21240_vm0, %v13971_v59  ;;  %v14043_v51 = vpack.c.bf16 %v9821_v57, %v9821_v57  ;;  %vm21241_vm5 = vmmov %vm21240_vm0  ;;  %v9778_v62 = vrot.slane %v9634_v25, 1  ;;  %v14010_v27 = vpack.c.bf16 %v9634_v25, %v9634_v25  ;;  %v9671_v54 = vrot.slane %v9635_v26, 7  ;;  %v9637_v25 = vld [vmem:[#allocation3 + $0x90] sm:$0xff]  ;;  %11813 = vmatpush1.bf16.msra.mxu1 %v15319_v17 }
 0x6a1   : > { %10458 = vst.msk [vmem:[#allocation6 + $0x5c] sm:$0xf] %vm21241_vm5, %v14042_v10  ;;  %vm21242_vm10 = vmmov %vm21227_vm1  ;;  %v9779_v2 = vrot.slane %v9635_v26, 1  ;;  %v14011_v60 = vpack.c.bf16 %v9635_v26, %v9635_v26  ;;  %v14522_v15 = vadd.f32 %v19573_v32, %v19552_v20  ;;  %v9493_v59 = vadd.f32 %v19524_v22, %v19583_v16  ;;  %v21261_v32 = vld [vmem:[#allocation27_spill] sm:$0xff]  ;;  %v21263_v10 = vld [vmem:[#allocation21_spill] sm:$0xff]  ;;  %11814 = vmatprep.subr.bf16.mxu1 %v21136_v23 }
 0x6a2   : > { %9609 = vst.msk [vmem:[#allocation3 + $0xc0] sm:$0xff] %vm21242_vm10, %v9577_v48  ;;  %vm21243_vm2 = vmmov %vm21240_vm0  ;;  %10189 = vrot.lane.b32.xlu1 %v14010_v27, %s15393_s20  ;;  %v9672_v43 = vrot.slane %v19625_v50, 7  ;;  %v9780_v20 = vrot.slane %v19625_v50, 1  ;;  %v14012_v22 = vpack.c.bf16 %v19625_v50, %v19625_v50  ;;  %v9549_v57 = vadd.f32 %v9501_v11, %v19197_v29  ;;  %v19665_v5 = vld [vmem:[#allocation3 + $0x98] sm:$0xff] }
 0x6a3   : > { %10028 = vst.msk [vmem:[#allocation6 + $0x68] sm:$0xf] %vm21243_vm2, %v13972_v8  ;;  %vm21244_vm15 = vmmov %vm21240_vm0  ;;  %10191 = vrot.lane.b32.xlu0 %v14011_v60, %s15393_s20  ;;  %v9547_v8 = vadd.f32 %v9493_v59, %v19174_v53  ;;  %v9504_v34 = vadd.f32 %v19604_v46, %v14522_v15  ;;  %v9496_v39 = vadd.f32 %v19558_v58, %v9495_v63  ;;  %v9782_v31 = vrot.slane %v19665_v5, 1  ;;  %v14529_v58 = vpop.f32.mrf.mxu0  ;;  %v9640_v63 = vld [vmem:[#allocation3 + $0xa8] sm:$0xff] }
 0x6a4   : > { %9607 = vst.msk [vmem:[#allocation3 + $0xb0] sm:$0xff] %vm21227_vm1, %v9575_v42  ;;  %vm21245_vm11 = vmmov %vm21238_vm3  ;;  %v19659_v42 = vpop.f32.mrf.mxu1  ;;  %v9581_v29 = vmax.f32 %v9549_v57, 0.0 }
 0x6a5   : > { %10459 = vst.msk [vmem:[#allocation6 + $0x64] sm:$0xf] %vm21244_vm15, %v14043_v51  ;;  %v9712_v37 = vsel %vm21245_vm11, %v9668_v36, %v9669_v40  ;;  %vm21246_vm14 = vmmov %vm21234_vm8  ;;  %v9576_v36 = vmax.f32 %v9544_v9, 0.0  ;;  %vm21262_vm11 = vnez %v21261_v32  ;;  %v9579_v7 = vmax.f32 %v9547_v8, 0.0  ;;  %v21291_v8 = vld [vmem:[#allocation24_spill] sm:$0xff] }
 0x6a6   : > { %v9820_v0 = vsel %vm21246_vm14, %v9776_v38, %v9777_v35  ;;  %v9741_v49 = vsel %vm21248_vm6, 0.0, %v9712_v37  ;;  %vm21252_vm8 = vmmov %vm21238_vm3  ;;  %vm21264_vm14 = vnez %v21263_v10  ;;  %10193 = vrot.lane.b32.xlu1 %v14012_v22, %s15393_s20  ;;  %v9508_v21 = vpop.f32.mrf.mxu1  ;;  %v9550_v26 = vadd.f32 %v9504_v34, %v19211_v28  ;;  %v15324_v34 = vld [vmem:[%s20290_s9 + $0xd8] sm:$0xff]  }
 0x6a7   : > { %v9848_v56 = vsel %vm21250_vm13, 0.0, %v9820_v0  ;;  %v13973_v47 = vpack.c.bf16 %v9741_v49, %v9741_v49  ;;  %v9711_v30 = vsel %vm21252_vm8, %v9669_v40, %v9670_v4  ;;  %vm21253_vm12 = vmmov %vm21239_vm9  ;;  %v9673_v0 = vrot.slane %v9637_v25, 7  ;;  %11815 = vmatpush1.bf16.msra.mxu1 %v15324_v34 }
 0x6a8   : > { %v14044_v61 = vpack.c.bf16 %v9848_v56, %v9848_v56  ;;  %v9819_v6 = vsel %vm21253_vm12, %v9777_v35, %v9778_v62  ;;  %v13974_v38 = vpack.c.bf16 %v9711_v30, %v9711_v30  ;;  %vm21254_vm3 = vmmov %vm21240_vm0  ;;  %v14525_v49 = vadd.f32 %v19612_v1, %v19590_v45  ;;  %v9639_v1 = vld [vmem:[#allocation3 + $0xa0] sm:$0xff]  ;;  %v21277_v30 = vld [vmem:[#allocation23_spill] sm:$0xff]  ;;  %v19699_v15 = vpop.f32.mrf.mxu1  ;;  %11816 = vmatprep.subr.bf16.mxu1 %v21136_v23 }
 0x6a9   : > { %vm21255_vm9 = vmmov %vm21240_vm0  ;;  %v14045_v13 = vpack.c.bf16 %v9819_v6, %v9819_v6  ;;  %v9674_v56 = vrot.slane %v19665_v5, 7  ;;  %v14014_v45 = vpack.c.bf16 %v19665_v5, %v19665_v5  ;;  %v9548_v50 = vadd.f32 %v9496_v39, %v19185_v19 }
 0x6aa   : > { %10460 = vst.msk [vmem:[#allocation6 + $0x6c] sm:$0xf] %vm21254_vm3, %v14044_v61  ;;  %vm21256_vm0 = vmmov %vm21227_vm1  ;;  %v9582_v27 = vmax.f32 %v9550_v26, 0.0  ;;  %v9675_v60 = vrot.slane %v9639_v1, 7  ;;  %v9783_v19 = vrot.slane %v9639_v1, 1  ;;  %v14015_v59 = vpack.c.bf16 %v9639_v1, %v9639_v1  ;;  %v9643_v1 = vld [vmem:[#allocation3 + $0xc0] sm:$0xff] }
 0x6ab   : > { %10029 = vst.msk [vmem:[#allocation6 + $0x70] sm:$0xf] %vm21255_vm9, %v13973_v47  ;;  %vm21257_vm5 = vmmov %vm21256_vm0  ;;  %v21275_v47 = vld [vmem:[#allocation30_spill] sm:$0xff]  ;;  %10197 = vrot.lane.b32.xlu1 %v14014_v45, %s15393_s20  ;;  %v9509_v17 = vadd.f32 %v14525_v49, %v9508_v21  ;;  %v9784_v22 = vrot.slane %v9640_v63, 1  ;;  %v14016_v32 = vpack.c.bf16 %v9640_v63, %v9640_v63  ;;  %v21301_v49 = vld [vmem:[#allocation32_spill] sm:$0xff] }
 0x6ac   : > { %9610 = vst.msk [vmem:[#allocation3 + $0xc8] sm:$0xff] %vm21256_vm0, %v9578_v55  ;;  %vm21258_vm10 = vmmov %vm21243_vm2  ;;  %v9641_v11 = vld [vmem:[#allocation3 + $0xb0] sm:$0xff] }
 0x6ad   : > { %9608 = vst.msk [vmem:[#allocation3 + $0xb8] sm:$0xff] %vm21257_vm5, %v9576_v36  ;;  %vm21259_vm1 = vmmov %vm21252_vm8  ;;  %v9677_v57 = vrot.slane %v9641_v11, 7 }
 0x6ae   : > { %10030 = vst.msk [vmem:[#allocation6 + $0x78] sm:$0xf] %vm21258_vm10, %v13974_v38  ;;  %v9710_v44 = vsel %vm21259_vm1, %v9670_v4, %v9671_v54  ;;  %vm21260_vm15 = vmmov %vm21253_vm12  ;;  %v9781_v4 = vrot.slane %v9637_v25, 1 }
 0x6af   : > { %10461 = vst.msk [vmem:[#allocation6 + $0x74] sm:$0xf] %vm21243_vm2, %v14045_v13  ;;  %v9818_v12 = vsel %vm21260_vm15, %v9778_v62, %v9779_v2  ;;  %v9743_v16 = vsel %vm21262_vm11, 0.0, %v9710_v44  ;;  %vm21265_vm6 = vmmov %vm21259_vm1  ;;  %v14013_v62 = vpack.c.bf16 %v9637_v25, %v9637_v25  ;;  %vm21278_vm15 = vnez %v21277_v30  ;;  %v14530_v44 = vpop.f32.mrf.mxu0  ;;  %10201 = vrot.lane.b32.xlu1 %v14016_v32, %s15393_s20  ;;  %v21319_v32 = vld [vmem:[#allocation40_spill] sm:$0xff] }
 0x6b0   : > { %v9850_v48 = vsel %vm21264_vm14, 0.0, %v9818_v12  ;;  %v13975_v51 = vpack.c.bf16 %v9743_v16, %v9743_v16  ;;  %v9709_v35 = vsel %vm21265_vm6, %v9671_v54, %v9672_v43  ;;  %vm21266_vm13 = vmmov %vm21253_vm12  ;;  %v9580_v13 = vmax.f32 %v9548_v50, 0.0  ;;  %v21288_v16 = vld [vmem:[#allocation29_spill] sm:$0xff] }
 0x6b1   : > { %v14046_v40 = vpack.c.bf16 %v9850_v48, %v9850_v48  ;;  %v9817_v24 = vsel %vm21266_vm13, %v9779_v2, %v9780_v20  ;;  %v13976_v53 = vpack.c.bf16 %v9709_v35, %v9709_v35  ;;  %vm21267_vm8 = vmmov %vm21243_vm2  ;;  %10195 = vrot.lane.b32.xlu0 %v14013_v62, %s15393_s20  ;;  %v9551_v48 = vadd.f32 %v9509_v17, %v19226_v3  ;;  %v14532_v3 = vpop.f32.mrf.mxu0 }
 0x6b2   : > { %v14047_v37 = vpack.c.bf16 %v9817_v24, %v9817_v24  ;;  %vm21268_vm12 = vmmov %vm21243_vm2  ;;  %v9511_v24 = vpop.f32.mrf.mxu1  ;;  %v14531_v62 = vadd.f32 %v14530_v44, %v14529_v58  ;;  %v21304_v58 = vld [vmem:[#allocation35_spill] sm:$0xff] }
 0x6b3   : > { %10462 = vst.msk [vmem:[#allocation6 + $0x7c] sm:$0xf] %vm21267_vm8, %v14046_v40  ;;  %vm21269_vm3 = vmmov %vm21256_vm0 }
 0x6b4   : > { %10031 = vst.msk [vmem:[#allocation6 + $0x80] sm:$0xf] %vm21268_vm12, %v13975_v51  ;;  %vm21270_vm9 = vmmov %vm21256_vm0  ;;  %v9642_v5 = vld [vmem:[#allocation3 + $0xb8] sm:$0xff]  ;;  %v9517_v26 = vadd.f32 %v19659_v42, %v14531_v62 }
 0x6b5   : > { %9613 = vst.msk [vmem:[#allocation3 + $0xe0] sm:$0xff] %vm21269_vm3, %v9581_v29  ;;  %vm21271_vm0 = vmmov %vm21243_vm2  ;;  %10199 = vrot.lane.b32.xlu0 %v14015_v59, %s15393_s20  ;;  %v9583_v29 = vmax.f32 %v9551_v48, 0.0  ;;  %v9786_v21 = vrot.slane %v9642_v5, 1  ;;  %v14018_v45 = vpack.c.bf16 %v9642_v5, %v9642_v5 }
 0x6b6   : > { %9611 = vst.msk [vmem:[#allocation3 + $0xd0] sm:$0xff] %vm21270_vm9, %v9579_v7  ;;  %vm21272_vm5 = vmmov %vm21271_vm0  ;;  %v9553_v42 = vadd.f32 %v9517_v26, %v19250_v18 }
 0x6b7   : > { %10463 = vst.msk [vmem:[#allocation6 + $0x84] sm:$0xf] %vm21271_vm0, %v14047_v37  ;;  %vm21273_vm10 = vmmov %vm21259_vm1  ;;  %vm21276_vm1 = vnez %v21275_v47  ;;  %10205 = vrot.lane.b32.xlu1 %v14018_v45, %s15393_s20 }
 0x6b8   : > { %10032 = vst.msk [vmem:[#allocation6 + $0x88] sm:$0xf] %vm21272_vm5, %v13976_v53  ;;  %v9708_v46 = vsel %vm21273_vm10, %v9672_v43, %v9673_v0  ;;  %vm21274_vm2 = vmmov %vm21266_vm13  ;;  %v14528_v43 = vadd.f32 %v14527_v41, %v19629_v52  ;;  %vm21289_vm5 = vnez %v21288_v16 }
 0x6b9   : > { %v9816_v9 = vsel %vm21274_vm2, %v9780_v20, %v9781_v4  ;;  %v9745_v61 = vsel %vm21276_vm1, 0.0, %v9708_v46  ;;  %vm21279_vm11 = vmmov %vm21265_vm6  ;;  %v9676_v20 = vrot.slane %v9640_v63, 7 }
 0x6ba   : > { %v9852_v6 = vsel %vm21278_vm15, 0.0, %v9816_v9  ;;  %v9707_v55 = vsel %vm21279_vm11, %v9673_v0, %v9674_v56  ;;  %v13977_v36 = vpack.c.bf16 %v9745_v61, %v9745_v61  ;;  %vm21280_vm14 = vmmov %vm21274_vm2  ;;  %v9785_v0 = vrot.slane %v9641_v11, 1  ;;  %v21306_v61 = vld [vmem:[#allocation60_spill] sm:$0xff] }
 0x6bb   : > { %v14048_v38 = vpack.c.bf16 %v9852_v6, %v9852_v6  ;;  %v9815_v28 = vsel %vm21280_vm14, %v9781_v4, %v9782_v31  ;;  %v13978_v54 = vpack.c.bf16 %v9707_v55, %v9707_v55  ;;  %vm21281_vm6 = vmmov %vm21271_vm0  ;;  %v14017_v4 = vpack.c.bf16 %v9641_v11, %v9641_v11  ;;  %v14533_v55 = vpop.f32.mrf.mxu0 }
 0x6bc   : > { %v14049_v2 = vpack.c.bf16 %v9815_v28, %v9815_v28  ;;  %vm21282_vm13 = vmmov %vm21271_vm0  ;;  %v9585_v11 = vmax.f32 %v9553_v42, 0.0 }
 0x6bd   : > { %10464 = vst.msk [vmem:[#allocation6 + $0x8c] sm:$0xf] %vm21281_vm6, %v14048_v38  ;;  %vm21283_vm8 = vmmov %vm21269_vm3  ;;  %10203 = vrot.lane.b32.xlu0 %v14017_v4, %s15393_s20  ;;  %v9645_v63 = vld [vmem:[#allocation3 + $0xd0] sm:$0xff] }
 0x6be   : > { %10033 = vst.msk [vmem:[#allocation6 + $0x90] sm:$0xf] %vm21282_vm13, %v13977_v36  ;;  %vm21284_vm12 = vmmov %vm21269_vm3  ;;  %v9644_v36 = vld [vmem:[#allocation3 + $0xc8] sm:$0xff] }
 0x6bf   : > { %9614 = vst.msk [vmem:[#allocation3 + $0xe8] sm:$0xff] %vm21283_vm8, %v9582_v27  ;;  %vm21285_vm3 = vmmov %vm21271_vm0  ;;  %v9680_v18 = vrot.slane %v9644_v36, 7  ;;  %v9788_v59 = vrot.slane %v9644_v36, 1  ;;  %v14020_v44 = vpack.c.bf16 %v9644_v36, %v9644_v36 }
 0x6c0   : > { %9612 = vst.msk [vmem:[#allocation3 + $0xd8] sm:$0xff] %vm21284_vm12, %v9580_v13  ;;  %vm21286_vm9 = vmmov %vm21271_vm0 }
 0x6c1   : > { %10465 = vst.msk [vmem:[#allocation6 + $0x94] sm:$0xf] %vm21285_vm3, %v14049_v2  ;;  %vm21287_vm0 = vmmov %vm21273_vm10  ;;  %v9787_v2 = vrot.slane %v9643_v1, 1  ;;  %10209 = vrot.lane.b32.xlu1 %v14020_v44, %s15393_s20 }
 0x6c2   : > { %10034 = vst.msk [vmem:[#allocation6 + $0x98] sm:$0xf] %vm21286_vm9, %v13978_v54  ;;  %v9706_v12 = vsel %vm21287_vm0, %v9674_v56, %v9675_v60  ;;  %vm21290_vm10 = vmmov %vm21274_vm2  ;;  %vm21292_vm2 = vnez %v21291_v8  ;;  %v9512_v56 = vadd.f32 %v14528_v43, %v9511_v24  ;;  %v9679_v54 = vrot.slane %v9643_v1, 7 }
 0x6c3   : > { %v9747_v10 = vsel %vm21289_vm5, 0.0, %v9706_v12  ;;  %v9814_v52 = vsel %vm21290_vm10, %v9782_v31, %v9783_v19  ;;  %vm21293_vm1 = vmmov %vm21287_vm0  ;;  %v9678_v31 = vrot.slane %v9642_v5, 7  ;;  %v9681_v12 = vrot.slane %v9645_v63, 7 }
 0x6c4   : > { %v9854_v25 = vsel %vm21292_vm2, 0.0, %v9814_v52  ;;  %v13979_v51 = vpack.c.bf16 %v9747_v10, %v9747_v10  ;;  %v9705_v40 = vsel %vm21293_vm1, %v9675_v60, %v9676_v20  ;;  %vm21294_vm15 = vmmov %vm21290_vm10  ;;  %v9552_v30 = vadd.f32 %v9512_v56, %v21306_v61 }
 0x6c5   : > { %v9813_v35 = vsel %vm21294_vm15, %v9783_v19, %v9784_v22  ;;  %v14050_v41 = vpack.c.bf16 %v9854_v25, %v9854_v25  ;;  %v13980_v7 = vpack.c.bf16 %v9705_v40, %v9705_v40  ;;  %vm21295_vm11 = vmmov %vm21285_vm3  ;;  %v14019_v60 = vpack.c.bf16 %v9643_v1, %v9643_v1  ;;  %v15327_v40 = vld [vmem:[%s20290_s9 + $0xd0] sm:$0xff]  }
 0x6c6   : > { %v14051_v53 = vpack.c.bf16 %v9813_v35, %v9813_v35  ;;  %10035 = vst.msk [vmem:[#allocation6 + $0xa0] sm:$0xf] %vm21295_vm11, %v13979_v51  ;;  %vm21296_vm14 = vmmov %vm21287_vm0  ;;  %vm21305_vm0 = vnez %v21304_v58  ;;  %v9584_v13 = vmax.f32 %v9552_v30, 0.0  ;;  %v14534_v19 = vadd.f32 %v14533_v55, %v14532_v3  ;;  %11817 = vmatpush1.bf16.msra.mxu1 %v15327_v40  ;;  %v9648_v34 = vld [vmem:[#allocation3 + $0xe8] sm:$0xff]  ;;  %v21355_v40 = vld [vmem:[#allocation43_spill] sm:$0xff] }
 0x6c7   : > { %v9704_v37 = vsel %vm21296_vm14, %v9676_v20, %v9677_v57  ;;  %vm21297_vm6 = vmmov %vm21285_vm3  ;;  %10207 = vrot.lane.b32.xlu0 %v14019_v60, %s15393_s20  ;;  %v21317_v20 = vld [vmem:[#allocation31_spill] sm:$0xff]  ;;  %v9789_v5 = vrot.slane %v9645_v63, 1  ;;  %11818 = vmatprep.subr.bf16.mxu1 %v21136_v23  ;;  %v15330_v58 = vld [vmem:[%s20290_s9 + $0xc8] sm:$0xff]   ;;  %v9684_v30 = vrot.slane %v9648_v34, 7 }
 0x6c8   : > { %10466 = vst.msk [vmem:[#allocation6 + $0x9c] sm:$0xf] %vm21297_vm6, %v14050_v41  ;;  %vm21298_vm13 = vmmov %vm21283_vm8  ;;  %v9520_v10 = vadd.f32 %v19699_v15, %v14534_v19  ;;  %v9646_v48 = vld [vmem:[#allocation3 + $0xd8] sm:$0xff]  ;;  %v9647_v41 = vld [vmem:[#allocation3 + $0xe0] sm:$0xff] }
 0x6c9   : > { %9615 = vst.msk [vmem:[#allocation3 + $0xf0] sm:$0xff] %vm21298_vm13, %v9583_v29  ;;  %vm21299_vm8 = vmmov %vm21285_vm3  ;;  %v21325_v29 = vld [vmem:[#allocation33_spill] sm:$0xff]  ;;  %v9682_v3 = vrot.slane %v9646_v48, 7  ;;  %v14022_v62 = vpack.c.bf16 %v9646_v48, %v9646_v48  ;;  %v9791_v1 = vrot.slane %v9647_v41, 1  ;;  %v14023_v61 = vpack.c.bf16 %v9647_v41, %v9647_v41 }
 0x6ca   : > { %10467 = vst.msk [vmem:[#allocation6 + $0xa4] sm:$0xf] %vm21299_vm8, %v14051_v53  ;;  %vm21300_vm12 = vmmov %vm21285_vm3  ;;  %vm21302_vm3 = vnez %v21301_v49  ;;  %v9554_v35 = vadd.f32 %v9520_v10, %v19264_v14  ;;  %v14021_v53 = vpack.c.bf16 %v9645_v63, %v9645_v63  ;;  %v21329_v49 = vld [vmem:[#allocation41_spill] sm:$0xff]  ;;  %11819 = vmatpush1.bf16.msra.mxu1 %v15330_v58  ;;  %v21342_v63 = vld [vmem:[#allocation42_spill] sm:$0xff] }
 0x6cb   : > { %10036 = vst.msk [vmem:[#allocation6 + $0xa8] sm:$0xf] %vm21300_vm12, %v13980_v7  ;;  %v9749_v39 = vsel %vm21302_vm3, 0.0, %v9704_v37  ;;  %vm21303_vm9 = vmmov %vm21290_vm10  ;;  %vm21318_vm12 = vnez %v21317_v20  ;;  %vm21320_vm3 = vnez %v21319_v32  ;;  %v9790_v37 = vrot.slane %v9646_v48, 1  ;;  %10213 = vrot.lane.b32.xlu1 %v14022_v62, %s15393_s20  ;;  %11820 = vmatprep.subr.bf16.mxu1 %v21136_v23 }
 0x6cc   : > { %v9812_v46 = vsel %vm21303_vm9, %v9784_v22, %v9785_v0  ;;  %v13981_v9 = vpack.c.bf16 %v9749_v39, %v9749_v39  ;;  %vm21307_vm5 = vmmov %vm21293_vm1  ;;  %v9586_v14 = vmax.f32 %v9554_v35, 0.0  ;;  %10211 = vrot.lane.b32.xlu0 %v14021_v53, %s15393_s20 }
 0x6cd   : > { %v9856_v47 = vsel %vm21305_vm0, 0.0, %v9812_v46  ;;  %v9703_v6 = vsel %vm21307_vm5, %v9677_v57, %v9678_v31  ;;  %vm21308_vm10 = vmmov %vm21303_vm9  ;;  %v9700_v15 = vsel %vm21307_vm5, %v9680_v18, %v9681_v12 }
 0x6ce   : > { %v9811_v50 = vsel %vm21308_vm10, %v9785_v0, %v9786_v21  ;;  %v14052_v38 = vpack.c.bf16 %v9856_v47, %v9856_v47  ;;  %vm21309_vm2 = vmmov %vm21297_vm6  ;;  %v13982_v27 = vpack.c.bf16 %v9703_v6, %v9703_v6  ;;  %v9792_v6 = vrot.slane %v9648_v34, 1 }
 0x6cf   : > { %10037 = vst.msk [vmem:[#allocation6 + $0xb0] sm:$0xf] %vm21309_vm2, %v13981_v9  ;;  %v14053_v28 = vpack.c.bf16 %v9811_v50, %v9811_v50  ;;  %vm21310_vm1 = vmmov %vm21309_vm2  ;;  %v21339_v50 = vld [vmem:[#allocation36_spill] sm:$0xff] }
 0x6d0   : > { %10468 = vst.msk [vmem:[#allocation6 + $0xac] sm:$0xf] %vm21310_vm1, %v14052_v38  ;;  %vm21311_vm15 = vmmov %vm21310_vm1  ;;  %v9649_v46 = vld [vmem:[#allocation3 + $0xf0] sm:$0xff]  ;;  %v14024_v38 = vpack.c.bf16 %v9648_v34, %v9648_v34  ;;  %10215 = vrot.lane.b32.xlu0 %v14023_v61, %s15393_s20 }
 0x6d1   : > { %10469 = vst.msk [vmem:[#allocation6 + $0xb4] sm:$0xf] %vm21311_vm15, %v14053_v28  ;;  %vm21312_vm11 = vmmov %vm21310_vm1  ;;  %vm21326_vm15 = vnez %v21325_v29  ;;  %v9685_v42 = vrot.slane %v9649_v46, 7  ;;  %v15336_v28 = vld [vmem:[%s20290_s9 + $0xc0] sm:$0xff]   ;;  %v14025_v20 = vpack.c.bf16 %v9649_v46, %v9649_v46 }
 0x6d2   : > { %10038 = vst.msk [vmem:[#allocation6 + $0xb8] sm:$0xf] %vm21312_vm11, %v13982_v27  ;;  %vm21313_vm14 = vmmov %vm21298_vm13  ;;  %v9753_v7 = vsel %vm21326_vm15, 0.0, %v9700_v15  ;;  %vm21343_vm15 = vnez %v21342_v63  ;;  %10217 = vrot.lane.b32.xlu1 %v14024_v38, %s15393_s20  ;;  %11821 = vmatpush1.bf16.msra.mxu1 %v15336_v28  ;;  %v15351_v38 = vld [vmem:[%s20290_s9 + $0x108] sm:$0xff]   ;;  %v15380_v28 = vld [vmem:[#allocation3 + $0x118] sm:$0xff] }
 0x6d3   : > { %9616 = vst.msk [vmem:[#allocation3 + $0xf8] sm:$0xff] %vm21313_vm14, %v9584_v13  ;;  %vm21314_vm6 = vmmov %vm21307_vm5  ;;  %v13985_v4 = vpack.c.bf16 %v9753_v7, %v9753_v7  ;;  %11830 = vmatprep.subr.bf16.mxu1 %v21136_v23  ;;  %v21360_v7 = vld [vmem:[#allocation38_spill] sm:$0xff]  ;;  %v14030_v63 = vpack.c.bf16 %v15380_v28, %v15380_v28 }
 0x6d4   : > { %v9702_v43 = vsel %vm21314_vm6, %v9678_v31, %v9679_v54  ;;  %vm21315_vm13 = vmmov %vm21303_vm9  ;;  %vm21330_vm6 = vnez %v21329_v49  ;;  %10219 = vrot.lane.b32.xlu0 %v14025_v20, %s15393_s20 }
 0x6d5   : > { %v9810_v17 = vsel %vm21315_vm13, %v9786_v21, %v9787_v2  ;;  %vm21316_vm8 = vmmov %vm21313_vm14  ;;  %v9751_v22 = vsel %vm21318_vm12, 0.0, %v9702_v43  ;;  %v9683_v21 = vrot.slane %v9647_v41, 7  ;;  %vm21333_vm12 = vcmask 523264  }
 0x6d6   : > { %9617 = vst.msk [vmem:[#allocation3 + $0x100] sm:$0xff] %vm21316_vm8, %v9585_v11  ;;  %v9858_v16 = vsel %vm21320_vm3, 0.0, %v9810_v17  ;;  %vm21321_vm9 = vmmov %vm21307_vm5  ;;  %v13983_v57 = vpack.c.bf16 %v9751_v22, %v9751_v22  ;;  %v21348_v17 = vld [vmem:[#allocation37_spill] sm:$0xff] }
 0x6d7   : > { %v9701_v52 = vsel %vm21321_vm9, %v9679_v54, %v9680_v18  ;;  %v14054_v8 = vpack.c.bf16 %v9858_v16, %v9858_v16  ;;  %vm21322_vm0 = vmmov %vm21308_vm10  ;;  %9618 = vst.msk [vmem:[#allocation3 + $0x108] sm:$0xff] %vm21333_vm12, %v9586_v14  ;;  %v21364_v14 = vld [vmem:[#allocation44_spill] sm:$0xff] }
 0x6d8   : > { %v9809_v25 = vsel %vm21322_vm0, %v9787_v2, %v9788_v59  ;;  %v13984_v51 = vpack.c.bf16 %v9701_v52, %v9701_v52  ;;  %vm21323_vm10 = vmmov %vm21310_vm1 }
 0x6d9   : > { %v14055_v24 = vpack.c.bf16 %v9809_v25, %v9809_v25  ;;  %10470 = vst.msk [vmem:[#allocation6 + $0xbc] sm:$0xf] %vm21323_vm10, %v14054_v8  ;;  %vm21324_vm2 = vmmov %vm21310_vm1 }
 0x6da   : > { %10039 = vst.msk [vmem:[#allocation6 + $0xc0] sm:$0xf] %vm21324_vm2, %v13983_v57  ;;  %vm21327_vm11 = vmmov %vm21310_vm1  ;;  %vm21340_vm2 = vnez %v21339_v50  ;;  %v9650_v27 = vld [vmem:[#allocation3 + $0xf8] sm:$0xff] }
 0x6db   : > { %10040 = vst.msk [vmem:[#allocation6 + $0xc8] sm:$0xf] %vm21310_vm1, %v13984_v51  ;;  %vm21328_vm14 = vmmov %vm21322_vm0  ;;  %v9686_v22 = vrot.slane %v9650_v27, 7  ;;  %v9794_v16 = vrot.slane %v9650_v27, 1  ;;  %v14026_v10 = vpack.c.bf16 %v9650_v27, %v9650_v27 }
 0x6dc   : > { %10471 = vst.msk [vmem:[#allocation6 + $0xc4] sm:$0xf] %vm21327_vm11, %v14055_v24  ;;  %v9808_v0 = vsel %vm21328_vm14, %v9788_v59, %v9789_v5  ;;  %vm21331_vm13 = vmmov %vm21307_vm5 }
 0x6dd   : > { %v9860_v39 = vsel %vm21330_vm6, 0.0, %v9808_v0  ;;  %v9699_v56 = vsel %vm21331_vm13, %v9681_v12, %v9682_v3  ;;  %vm21332_vm8 = vmmov %vm21322_vm0  ;;  %v9651_v11 = vld [vmem:[#allocation3 + $0x100] sm:$0xff]  ;;  %v9793_v12 = vrot.slane %v9649_v46, 1  ;;  %10221 = vrot.lane.b32.xlu1 %v14026_v10, %s15393_s20 }
 0x6de   : > { %v9807_v31 = vsel %vm21332_vm8, %v9789_v5, %v9790_v37  ;;  %v14056_v9 = vpack.c.bf16 %v9860_v39, %v9860_v39  ;;  %vm21334_vm3 = vmmov %vm21310_vm1  ;;  %v13986_v26 = vpack.c.bf16 %v9699_v56, %v9699_v56  ;;  %v9687_v52 = vrot.slane %v9651_v11, 7  ;;  %v9652_v51 = vld [vmem:[#allocation3 + $0x108] sm:$0xff] }
 0x6df   : > { %10041 = vst.msk [vmem:[#allocation6 + $0xd0] sm:$0xf] %vm21334_vm3, %v13985_v4  ;;  %v14057_v45 = vpack.c.bf16 %v9807_v31, %v9807_v31  ;;  %vm21335_vm9 = vmmov %vm21307_vm5  ;;  %v9795_v8 = vrot.slane %v9651_v11, 1  ;;  %v14027_v25 = vpack.c.bf16 %v9651_v11, %v9651_v11  ;;  %v9688_v62 = vrot.slane %v9652_v51, 7  ;;  %v21369_v56 = vld [vmem:[#allocation53_spill] sm:$0xff]  ;;  %v10164_v27 = vpop.permute.xlu0 %10163 }
 0x6e0   : > { %v9698_v47 = vsel %vm21335_vm9, %v9682_v3, %v9683_v21  ;;  %vm21336_vm0 = vmmov %vm21310_vm1  ;;  %v9796_v34 = vrot.slane %v9652_v51, 1  ;;  %v14028_v39 = vpack.c.bf16 %v9652_v51, %v9652_v51  ;;  %v21370_v31 = vrot.slane %v21369_v56, 7 }
 0x6e1   : > { %10472 = vst.msk [vmem:[#allocation6 + $0xcc] sm:$0xf] %vm21336_vm0, %v14056_v9  ;;  %vm21337_vm5 = vmmov %vm21336_vm0  ;;  %v9755_v55 = vsel %vm21340_vm2, 0.0, %v9698_v47  ;;  %10223 = vrot.lane.b32.xlu0 %v14027_v25, %s15393_s20  ;;  %v21373_v9 = vrot.slane %v21369_v56, 1  ;;  %v19922_v25 = vld [vmem:[#allocation6 + $0x44] ss:$8 sps:$4 sm:$0xff]  }
 0x6e2   : > { %10473 = vst.msk [vmem:[#allocation6 + $0xd4] sm:$0xf] %vm21337_vm5, %v14057_v45  ;;  %vm21338_vm10 = vmmov %vm21336_vm0  ;;  %v13987_v54 = vpack.c.bf16 %v9755_v55, %v9755_v55  ;;  %10225 = vrot.lane.b32.xlu1 %v14028_v39, %s15393_s20 }
 0x6e3   : > { %10042 = vst.msk [vmem:[#allocation6 + $0xd8] sm:$0xf] %vm21338_vm10, %v13986_v26  ;;  %vm21341_vm1 = vmmov %vm21332_vm8  ;;  %vm21349_vm8 = vnez %v21348_v17  ;;  %vm21356_vm10 = vnez %v21355_v40 }
 0x6e4   : > { %v9806_v36 = vsel %vm21341_vm1, %v9790_v37, %v9791_v1  ;;  %vm21344_vm11 = vmmov %vm21335_vm9  ;;  %v15340_v37 = vld [vmem:[%s20290_s9 + $0x118] sm:$0xff]  }
 0x6e5   : > { %v9862_v13 = vsel %vm21343_vm15, 0.0, %v9806_v36  ;;  %v9697_v2 = vsel %vm21344_vm11, %v9683_v21, %v9684_v30  ;;  %vm21345_vm14 = vmmov %vm21341_vm1  ;;  %vm21361_vm11 = vnez %v21360_v7  ;;  %11831 = vmatpush2.bf16.msra.mxu1 %v15340_v37  ;;  %v15345_v36 = vld [vmem:[%s20290_s9 + $0x110] sm:$0xff]  }
 0x6e6   : > { %v9805_v60 = vsel %vm21345_vm14, %v9791_v1, %v9792_v6  ;;  %v14058_v19 = vpack.c.bf16 %v9862_v13, %v9862_v13  ;;  %v13988_v18 = vpack.c.bf16 %v9697_v2, %v9697_v2  ;;  %vm21346_vm6 = vmmov %vm21335_vm9  ;;  %11832 = vmatprep.subr.bf16.mxu1 %v21136_v23  ;;  %v15381_v13 = vld [vmem:[#allocation3 + $0x110] sm:$0xff]  ;;  %v10168_v2 = vpop.permute.xlu0 %10167  ;;  %10229 = vrot.lane.b32.xlu1 %v14030_v63, %s15393_s20 }
 0x6e7   : > { %v14059_v59 = vpack.c.bf16 %v9805_v60, %v9805_v60  ;;  %v9696_v43 = vsel %vm21346_vm6, %v9684_v30, %v9685_v42  ;;  %vm21347_vm13 = vmmov %vm21336_vm0 }
 0x6e8   : > { %10043 = vst.msk [vmem:[#allocation6 + $0xe0] sm:$0xf] %vm21347_vm13, %v13987_v54  ;;  %v9757_v44 = vsel %vm21349_vm8, 0.0, %v9696_v43  ;;  %vm21350_vm12 = vmmov %vm21336_vm0  ;;  %vm21365_vm13 = vnez %v21364_v14  ;;  %v14029_v54 = vpack.c.bf16 %v15381_v13, %v15381_v13  ;;  %v19899_v43 = vld [vmem:[#allocation6 + $0x24] ss:$8 sps:$4 sm:$0xff]  }
 0x6e9   : > { %10474 = vst.msk [vmem:[#allocation6 + $0xdc] sm:$0xf] %vm21350_vm12, %v14058_v19  ;;  %vm21351_vm3 = vmmov %vm21336_vm0  ;;  %v13989_v32 = vpack.c.bf16 %v9757_v44, %v9757_v44  ;;  %11833 = vmatpush2.bf16.msra.mxu1 %v15345_v36  ;;  %v19987_v36 = vld [vmem:[#allocation6 + $0x94] ss:$8 sps:$4 sm:$0xff]   ;;  %v20001_v13 = vld [vmem:[#allocation6 + $0xa4] ss:$8 sps:$4 sm:$0xff]  }
 0x6ea   : > { %10475 = vst.msk [vmem:[#allocation6 + $0xe4] sm:$0xf] %vm21351_vm3, %v14059_v59  ;;  %vm21352_vm9 = vmmov %vm21336_vm0  ;;  %11834 = vmatprep.subr.bf16.mxu1 %v21136_v23  ;;  %10227 = vrot.lane.b32.xlu0 %v14029_v54, %s15393_s20 }
 0x6eb   : > { %10044 = vst.msk [vmem:[#allocation6 + $0xe8] sm:$0xf] %vm21352_vm9, %v13988_v18  ;;  %vm21353_vm0 = vmmov %vm21341_vm1  ;;  %v15308_v18 = vld [vmem:[#allocation6 + $0x14] ss:$8 sps:$4 sm:$0xff]  }
 0x6ec   : > { %v9804_v48 = vsel %vm21353_vm0, %v9792_v6, %v9793_v12  ;;  %vm21354_vm5 = vmmov %vm21346_vm6  ;;  %v10172_v11 = vpop.permute.xlu0 %10171 }
 0x6ed   : > { %v9695_v57 = vsel %vm21354_vm5, %v9685_v42, %v9686_v22  ;;  %v9864_v35 = vsel %vm21356_vm10, 0.0, %v9804_v48  ;;  %vm21357_vm2 = vmmov %vm21351_vm3  ;;  %11835 = vmatpush2.bf16.msra.mxu1 %v15351_v38  ;;  %v15355_v42 = vld [vmem:[%s20290_s9 + $0x100] sm:$0xff]  }
 0x6ee   : > { %10045 = vst.msk [vmem:[#allocation6 + $0xf0] sm:$0xf] %vm21357_vm2, %v13989_v32  ;;  %vm21358_vm1 = vmmov %vm21353_vm0  ;;  %v13990_v15 = vpack.c.bf16 %v9695_v57, %v9695_v57  ;;  %v14060_v41 = vpack.c.bf16 %v9864_v35, %v9864_v35  ;;  %11836 = vmatprep.subr.bf16.mxu1 %v21136_v23  ;;  %v10166_v23 = vpop.permute.xlu1 %10165  ;;  %v19909_v32 = vld [vmem:[#allocation6 + $0x34] ss:$8 sps:$4 sm:$0xff]  }
 0x6ef   : > { %v9803_v24 = vsel %vm21358_vm1, %v9793_v12, %v9794_v16  ;;  %vm21359_vm15 = vmmov %vm21354_vm5 }
 0x6f0   : > { %v9694_v5 = vsel %vm21359_vm15, %v9686_v22, %v9687_v52  ;;  %v14061_v29 = vpack.c.bf16 %v9803_v24, %v9803_v24  ;;  %vm21362_vm14 = vmmov %vm21353_vm0  ;;  %v10176_v17 = vpop.permute.xlu0 %10175 }
 0x6f1   : > { %v9759_v53 = vsel %vm21361_vm11, 0.0, %v9694_v5  ;;  %v9802_v3 = vsel %vm21362_vm14, %v9794_v16, %v9795_v8  ;;  %vm21363_vm6 = vmmov %vm21357_vm2  ;;  %11837 = vmatpush2.bf16.msra.mxu1 %v15355_v42  ;;  %v19934_v5 = vld [vmem:[#allocation6 + $0x54] ss:$8 sps:$4 sm:$0xff]  }
 0x6f2   : > { %10046 = vst.msk [vmem:[#allocation6 + $0xf8] sm:$0xf] %vm21363_vm6, %v13990_v15  ;;  %v9866_v0 = vsel %vm21365_vm13, 0.0, %v9802_v3  ;;  %v13991_v4 = vpack.c.bf16 %v9759_v53, %v9759_v53  ;;  %vm21366_vm8 = vmmov %vm21357_vm2  ;;  %v10170_v60 = vpop.permute.xlu1 %10169 }
 0x6f3   : > { %10476 = vst.msk [vmem:[#allocation6 + $0xec] sm:$0xf] %vm21366_vm8, %v14060_v41  ;;  %vm21367_vm12 = vmmov %vm21357_vm2  ;;  %v14062_v49 = vpack.c.bf16 %v9866_v0, %v9866_v0  ;;  %v19947_v0 = vld [vmem:[#allocation6 + $0x64] ss:$8 sps:$4 sm:$0xff]  }
 0x6f4   : > { %10477 = vst.msk [vmem:[#allocation6 + $0xf4] sm:$0xf] %vm21367_vm12, %v14061_v29  ;;  %vm21368_vm3 = vmmov %vm21357_vm2 }
 0x6f5   : > { %10047 = vst.msk [vmem:[#allocation6 + $0x100] sm:$0xf] %vm21368_vm3, %v13991_v4  ;;  %vm21371_vm9 = vmmov %vm21354_vm5  ;;  %vm21388_vm3 = vcmask 523264  }
 0x6f6   : > { %v9692_v21 = vsel %vm21371_vm9, %v9688_v62, %v21370_v31  ;;  %vm21372_vm0 = vmmov %vm21354_vm5  ;;  %10478 = vst.msk [vmem:[#allocation6 + $0xfc] sm:$0xf] %vm21357_vm2, %v14062_v49  ;;  %v10174_v19 = vpop.permute.xlu1 %10173  ;;  %13447 = vmatprep.mubr.msk.bf16.mxu1 %vm21388_vm3, %v15308_v18  ;;  %v19961_v31 = vld [vmem:[#allocation6 + $0x74] ss:$8 sps:$4 sm:$0xff]  }
 0x6f7   : > { %v9693_v46 = vsel %vm21372_vm0, %v9687_v52, %v9688_v62  ;;  %vm21374_vm5 = vmmov %vm21358_vm1  ;;  %v9761_v6 = vsel %vm20965_vm7, 0.0, %v9692_v21  ;;  %vm21382_vm7 = vcmask 1043968  }
 0x6f8   : > { %v9800_v26 = vsel %vm21374_vm5, %v9796_v34, %v21373_v9  ;;  %vm21375_vm10 = vmmov %vm21358_vm1  ;;  %v13992_v47 = vpack.c.bf16 %v9693_v46, %v9693_v46  ;;  %v13993_v55 = vpack.c.bf16 %v9761_v6, %v9761_v6  ;;  %10269 = vst.msk [vmem:[#allocation6 + $0x10] sm:$0xf] %vm21382_vm7, %v10164_v27  ;;  %v10180_v16 = vpop.permute.xlu0 %10179 }
 0x6f9   : > { %v9801_v45 = vsel %vm21375_vm10, %v9795_v8, %v9796_v34  ;;  %v9868_v58 = vsel %vm21135_vm4, 0.0, %v9800_v26  ;;  %vm21378_vm1 = vmmov %vm21357_vm2 }
 0x6fa   : > { %v14063_v61 = vpack.c.bf16 %v9801_v45, %v9801_v45  ;;  %v14064_v50 = vpack.c.bf16 %v9868_v58, %v9868_v58  ;;  %vm21379_vm15 = vmmov %vm21378_vm1  ;;  %v10178_v20 = vpop.permute.xlu1 %10177  ;;  %v19973_v58 = vld [vmem:[#allocation6 + $0x84] ss:$8 sps:$4 sm:$0xff]  }
 0x6fb   : > { %10048 = vst.msk [vmem:[#allocation6 + $0x108] sm:$0xf] %vm21379_vm15, %v13992_v47  ;;  %vm21380_vm11 = vmmov %vm21378_vm1 }
 0x6fc   : > { %10479 = vst.msk [vmem:[#allocation6 + $0x104] sm:$0xf] %vm21378_vm1, %v14063_v61  ;;  %vm21381_vm14 = vmmov %vm21378_vm1 }
 0x6fd   : > { %10480 = vst.msk [vmem:[#allocation6 + $0x10c] sm:$0xf] %vm21380_vm11, %v14064_v50  ;;  %vm21383_vm4 = vmmov %vm21382_vm7 }
 0x6fe   : > { %10049 = vst.msk [vmem:[#allocation6 + $0x110] sm:$0xf] %vm21381_vm14, %v13993_v55  ;;  %vm21384_vm6 = vmmov %vm21383_vm4  ;;  %v10182_v52 = vpop.permute.xlu1 %10181 }
 0x6ff   : > { %10271 = vst.msk [vmem:[#allocation6 + $0x20] sm:$0xf] %vm21383_vm4, %v10168_v2  ;;  %vm21385_vm13 = vmmov %vm21383_vm4 }
 0x700   : > { %10270 = vst.msk [vmem:[#allocation6 + $0x18] sm:$0xf] %vm21384_vm6, %v10166_v23  ;;  %vm21386_vm8 = vmmov %vm21383_vm4 }
 0x701   : > { %10272 = vst.msk [vmem:[#allocation6 + $0x28] sm:$0xf] %vm21385_vm13, %v10170_v60  ;;  %vm21387_vm12 = vmmov %vm21383_vm4  ;;  %v20013_v60 = vld [vmem:[#allocation6 + $0xb4] ss:$8 sps:$4 sm:$0xff]  }
 0x702   : > { %10273 = vst.msk [vmem:[#allocation6 + $0x30] sm:$0xf] %vm21386_vm8, %v10172_v11  ;;  %vm21389_vm9 = vmmov %vm21388_vm3 }
 0x703   : > { %10274 = vst.msk [vmem:[#allocation6 + $0x38] sm:$0xf] %vm21387_vm12, %v10174_v19  ;;  %13530 = vmatprep.mubr.msk.bf16.mxu0 %vm21389_vm9, %v15308_v18  ;;  %vm21390_vm0 = vmmov %vm21383_vm4  ;;  %v10184_v57 = vpop.permute.xlu0 %10183 }
 0x704   : > { %10275 = vst.msk [vmem:[#allocation6 + $0x40] sm:$0xf] %vm21390_vm0, %v10176_v17  ;;  %vm21391_vm5 = vmmov %vm21388_vm3 }
 0x705   : > { %vm21392_vm10 = vmmov %vm21388_vm3 }
 0x706   : > { %v10487_v12 = vld [vmem:[#allocation6 + $0x20] sm:$0xff]  ;;  %vm21393_vm2 = vmmov %vm21390_vm0 }
 0x707   : > { %v15310_v59 = vld [vmem:[#allocation6 + $0x10] ss:$8 sps:$4 sm:$0xff]   ;;  %10276 = vst.msk [vmem:[#allocation6 + $0x48] sm:$0xf] %vm21393_vm2, %v10178_v20  ;;  %vm21394_vm1 = vmmov %vm21390_vm0  ;;  %v10188_v35 = vpop.permute.xlu0 %10187  ;;  %v20037_v20 = vld [vmem:[#allocation6 + $0xd4] ss:$8 sps:$4 sm:$0xff]  }
 0x708   : > { %10851 = vmatmul.mubr.bf16.gmra.mxu1 %v15310_v59  ;;  %11325 = vmatmul.mubr.bf16.vlgmr.msra.gmra.mxu0 %v15310_v59  ;;  %v10488_v44 = vld [vmem:[#allocation6 + $0x28] sm:$0xff]  ;;  %10277 = vst.msk [vmem:[#allocation6 + $0x50] sm:$0xf] %vm21394_vm1, %v10180_v16  ;;  %vm21395_vm15 = vmmov %vm21388_vm3 }
 0x709   : > { %13448 = vmatprep.mubr.msk.bf16.mxu1 %vm21391_vm5, %v19899_v43  ;;  %13531 = vmatprep.mubr.msk.bf16.mxu0 %vm21392_vm10, %v19899_v43  ;;  %v19906_v22 = vcombine.low %v10487_v12, %v10488_v44  ;;  %vm21396_vm11 = vmmov %vm21388_vm3  ;;  %v10489_v48 = vld [vmem:[#allocation6 + $0x30] sm:$0xff]  ;;  %v20025_v59 = vld [vmem:[#allocation6 + $0xc4] ss:$8 sps:$4 sm:$0xff]  }
 0x70a   : > { %v10490_v10 = vld [vmem:[#allocation6 + $0x38] sm:$0xff]  ;;  %vm21397_vm14 = vmmov %vm21390_vm0  ;;  %v10186_v51 = vpop.permute.xlu1 %10185 }
 0x70b   : > { %10278 = vst.msk [vmem:[#allocation6 + $0x58] sm:$0xf] %vm21397_vm14, %v10182_v52  ;;  %v19919_v8 = vcombine.low %v10489_v48, %v10490_v10  ;;  %vm21398_vm7 = vmmov %vm21390_vm0  ;;  %v10491_v24 = vld [vmem:[#allocation6 + $0x40] sm:$0xff] }
 0x70c   : > { %10279 = vst.msk [vmem:[#allocation6 + $0x60] sm:$0xf] %vm21398_vm7, %v10184_v57  ;;  %vm21399_vm4 = vmmov %vm21388_vm3  ;;  %v20047_v10 = vld [vmem:[#allocation6 + $0xe4] ss:$8 sps:$4 sm:$0xff]  }
 0x70d   : > { %vm21400_vm6 = vmmov %vm21388_vm3 }
 0x70e   : > { %vm21401_vm13 = vmmov %vm21390_vm0  ;;  %v10492_v40 = vld [vmem:[#allocation6 + $0x48] sm:$0xff] }
 0x70f   : > { %10280 = vst.msk [vmem:[#allocation6 + $0x68] sm:$0xf] %vm21401_vm13, %v10186_v51  ;;  %vm21402_vm8 = vmmov %vm21390_vm0  ;;  %v19932_v15 = vcombine.low %v10491_v24, %v10492_v40  ;;  %v10493_v3 = vld [vmem:[#allocation6 + $0x50] sm:$0xff] }
 0x710   : > { %10859 = vmatmul.mubr.bf16.gmra.mxu1 %v19906_v22  ;;  %11333 = vmatmul.mubr.bf16.gmra.mxu0 %v19906_v22  ;;  %10281 = vst.msk [vmem:[#allocation6 + $0x70] sm:$0xf] %vm21402_vm8, %v10188_v35  ;;  %vm21403_vm12 = vmmov %vm21390_vm0  ;;  %v20059_v51 = vld [vmem:[#allocation6 + $0xf4] ss:$8 sps:$4 sm:$0xff]   ;;  %v20069_v35 = vld [vmem:[#allocation6 + $0x104] ss:$8 sps:$4 sm:$0xff]  }
 0x711   : > { %13449 = vmatprep.mubr.msk.bf16.mxu1 %vm21395_vm15, %v19909_v32  ;;  %13532 = vmatprep.mubr.msk.bf16.mxu0 %vm21396_vm11, %v19909_v32  ;;  %vm21404_vm9 = vmmov %vm21388_vm3 }
 0x712   : > { %v10494_v7 = vld [vmem:[#allocation6 + $0x58] sm:$0xff]  ;;  %vm21405_vm5 = vmmov %vm21390_vm0 }
 0x713   : > { %v19945_v37 = vcombine.low %v10493_v3, %v10494_v7  ;;  %vm21406_vm10 = vmmov %vm21390_vm0  ;;  %v10495_v49 = vld [vmem:[#allocation6 + $0x60] sm:$0xff] }
 0x714   : > { %v10190_v41 = vpop.permute.xlu1 %10189  ;;  %vm21407_vm2 = vmmov %vm21388_vm3 }
 0x715   : > { %10282 = vst.msk [vmem:[#allocation6 + $0x78] sm:$0xf] %vm21403_vm12, %v10190_v41  ;;  %v10192_v29 = vpop.permute.xlu0 %10191  ;;  %vm21408_vm1 = vmmov %vm21407_vm2 }
 0x716   : > { %10283 = vst.msk [vmem:[#allocation6 + $0x80] sm:$0xf] %vm21390_vm0, %v10192_v29  ;;  %vm21409_vm15 = vmmov %vm21390_vm0  ;;  %v10496_v62 = vld [vmem:[#allocation6 + $0x68] sm:$0xff] }
 0x717   : > { %vm21410_vm11 = vmmov %vm21390_vm0  ;;  %v19958_v56 = vcombine.low %v10495_v49, %v10496_v62  ;;  %v10497_v26 = vld [vmem:[#allocation6 + $0x70] sm:$0xff] }
 0x718   : > { %10867 = vmatmul.mubr.bf16.gmra.mxu1 %v19919_v8  ;;  %11341 = vmatmul.mubr.bf16.gmra.mxu0 %v19919_v8  ;;  %v10194_v53 = vpop.permute.xlu1 %10193  ;;  %vm21411_vm14 = vmmov %vm21390_vm0 }
 0x719   : > { %13450 = vmatprep.mubr.msk.bf16.mxu1 %vm21399_vm4, %v19922_v25  ;;  %13533 = vmatprep.mubr.msk.bf16.mxu0 %vm21400_vm6, %v19922_v25  ;;  %10284 = vst.msk [vmem:[#allocation6 + $0x88] sm:$0xf] %vm21405_vm5, %v10194_v53  ;;  %vm21412_vm7 = vmmov %vm21408_vm1  ;;  %v12096_v53 = vld [vmem:[%s20292_s11 + $0x8] sm:$0xff] }
 0x71a   : > { %vm21413_vm4 = vmmov %vm21408_vm1  ;;  %12106 = vperm.xlu1 %14899, %v12096_v53  }
 0x71b   : > { %vm21414_vm6 = vmmov %vm21390_vm0 }
 0x71c   : > { %v10498_v46 = vld [vmem:[#allocation6 + $0x78] sm:$0xff]  ;;  %vm21415_vm13 = vmmov %vm21390_vm0 }
 0x71d   : > { %v10198_v4 = vpop.permute.xlu1 %10197  ;;  %v19971_v45 = vcombine.low %v10497_v26, %v10498_v46  ;;  %vm21416_vm8 = vmmov %vm21390_vm0  ;;  %v10499_v6 = vld [vmem:[#allocation6 + $0x80] sm:$0xff] }
 0x71e   : > { %10286 = vst.msk [vmem:[#allocation6 + $0x98] sm:$0xf] %vm21409_vm15, %v10198_v4  ;;  %vm21417_vm12 = vmmov %vm21408_vm1 }
 0x71f   : > { %vm21420_vm5 = vmmov %vm21390_vm0 }
 0x720   : > { %10875 = vmatmul.mubr.bf16.gmra.mxu1 %v19932_v15  ;;  %11349 = vmatmul.mubr.bf16.gmra.mxu0 %v19932_v15  ;;  %v10500_v61 = vld [vmem:[#allocation6 + $0x88] sm:$0xff]  ;;  %vm21424_vm15 = vmmov %vm21390_vm0 }
 0x721   : > { %13451 = vmatprep.mubr.msk.bf16.mxu1 %vm21388_vm3, %v19934_v5  ;;  %13534 = vmatprep.mubr.msk.bf16.mxu0 %vm21404_vm9, %v19934_v5  ;;  %v10202_v39 = vpop.permute.xlu1 %10201  ;;  %vm21418_vm3 = vmmov %vm21408_vm1  ;;  %v19984_v55 = vcombine.low %v10499_v6, %v10500_v61 }
 0x722   : > { %10288 = vst.msk [vmem:[#allocation6 + $0xa8] sm:$0xf] %vm21411_vm14, %v10202_v39  ;;  %vm21419_vm9 = vmmov %vm21390_vm0 }
 0x723   : > { %v10196_v14 = vpop.permute.xlu0 %10195  ;;  %vm21426_vm14 = vmmov %vm21390_vm0 }
 0x724   : > { %10285 = vst.msk [vmem:[#allocation6 + $0x90] sm:$0xf] %vm21406_vm10, %v10196_v14  ;;  %vm21421_vm10 = vmmov %vm21408_vm1 }
 0x727   : > { %v10200_v34 = vpop.permute.xlu0 %10199 }
 0x728   : > { %10883 = vmatmul.mubr.bf16.gmra.mxu1 %v19945_v37  ;;  %11357 = vmatmul.mubr.bf16.gmra.mxu0 %v19945_v37  ;;  %10287 = vst.msk [vmem:[#allocation6 + $0xa0] sm:$0xf] %vm21410_vm11, %v10200_v34  ;;  %vm21425_vm11 = vmmov %vm21390_vm0  ;;  %v12097_v34 = vld [vmem:[%s20292_s11 + $0x10] sm:$0xff] }
 0x729   : > { %13452 = vmatprep.mubr.msk.bf16.mxu1 %vm21407_vm2, %v19947_v0  ;;  %13535 = vmatprep.mubr.msk.bf16.mxu0 %vm21408_vm1, %v19947_v0  ;;  %v10206_v9 = vpop.permute.xlu1 %10205  ;;  %vm21422_vm2 = vmmov %vm21408_vm1 }
 0x72a   : > { %10290 = vst.msk [vmem:[#allocation6 + $0xb8] sm:$0xf] %vm21415_vm13, %v10206_v9  ;;  %vm21423_vm1 = vmmov %vm21390_vm0  ;;  %12111 = vperm.xlu1 %14899, %v12097_v34   ;;  %v12145_v9 = vld [vmem:[#allocation8] sm:$0x1] }
 0x72b   : > { %v19998_v63 = vld [vmem:[#allocation6 + $0x90] ss:$8 sps:$4 sm:$0xff]   ;;  %vm21430_vm13 = vmmov %vm21390_vm0 }
 0x72e   : > { %12148 = vperm.xlu1 %14899, %v12145_v9  }
 0x72f   : > { %v10204_v21 = vpop.permute.xlu0 %10203  ;;  %v20011_v23 = vld [vmem:[#allocation6 + $0xa0] ss:$8 sps:$4 sm:$0xff]  }
 0x730   : > { %10891 = vmatmul.mubr.bf16.gmra.mxu1 %v19958_v56  ;;  %11365 = vmatmul.mubr.bf16.gmra.mxu0 %v19958_v56  ;;  %10289 = vst.msk [vmem:[#allocation6 + $0xb0] sm:$0xf] %vm21414_vm6, %v10204_v21  ;;  %vm21429_vm6 = vmmov %vm21390_vm0 }
 0x731   : > { %13453 = vmatprep.mubr.msk.bf16.mxu1 %vm21412_vm7, %v19961_v31  ;;  %13536 = vmatprep.mubr.msk.bf16.mxu0 %vm21413_vm4, %v19961_v31  ;;  %vm21427_vm7 = vmmov %vm21422_vm2 }
 0x732   : > { %vm21428_vm4 = vmmov %vm21422_vm2 }
 0x733   : > { %v10210_v47 = vpop.permute.xlu1 %10209 }
 0x734   : > { %10292 = vst.msk [vmem:[#allocation6 + $0xc8] sm:$0xf] %vm21419_vm9, %v10210_v47  ;;  %vm21434_vm9 = vmmov %vm21422_vm2 }
 0x737   : > { %v20023_v18 = vld [vmem:[#allocation6 + $0xb0] ss:$8 sps:$4 sm:$0xff]  }
 0x738   : > { %10899 = vmatmul.mubr.bf16.gmra.mxu1 %v19971_v45  ;;  %11373 = vmatmul.mubr.bf16.gmra.mxu0 %v19971_v45 }
 0x739   : > { %v10208_v1 = vpop.permute.xlu0 %10207  ;;  %13454 = vmatprep.mubr.msk.bf16.mxu1 %vm21417_vm12, %v19973_v58  ;;  %13537 = vmatprep.mubr.msk.bf16.mxu0 %vm21418_vm3, %v19973_v58  ;;  %vm21432_vm12 = vmmov %vm21422_vm2 }
 0x73a   : > { %10291 = vst.msk [vmem:[#allocation6 + $0xc0] sm:$0xf] %vm21416_vm8, %v10208_v1  ;;  %vm21431_vm8 = vmmov %vm21422_vm2 }
 0x73b   : > { %vm21433_vm3 = vmmov %vm21422_vm2 }
 0x73d   : > { %v10214_v50 = vpop.permute.xlu1 %10213 }
 0x73e   : > { %v10212_v30 = vpop.permute.xlu0 %10211  ;;  %10294 = vst.msk [vmem:[#allocation6 + $0xd8] sm:$0xf] %vm21420_vm5, %v10214_v50 }
 0x73f   : > { %10293 = vst.msk [vmem:[#allocation6 + $0xd0] sm:$0xf] %vm21390_vm0, %v10212_v30  ;;  %vm21435_vm0 = vmmov %vm21422_vm2 }
 0x740   : > { %10907 = vmatmul.mubr.bf16.gmra.mxu1 %v19984_v55  ;;  %11381 = vmatmul.mubr.bf16.gmra.mxu0 %v19984_v55  ;;  %vm21436_vm5 = vmmov %vm21435_vm0 }
 0x741   : > { %13455 = vmatprep.mubr.msk.bf16.mxu1 %vm21421_vm10, %v19987_v36  ;;  %13538 = vmatprep.mubr.msk.bf16.mxu0 %vm21422_vm2, %v19987_v36  ;;  %v20021_v11 = vpop.f32.mrf.mxu1  ;;  %v20035_v12 = vld [vmem:[#allocation6 + $0xc0] ss:$8 sps:$4 sm:$0xff]   ;;  %vm21437_vm10 = vmmov %vm21435_vm0 }
 0x742   : > { %v10216_v38 = vpop.permute.xlu0 %10215  ;;  %vm21438_vm2 = vmmov %vm21435_vm0 }
 0x743   : > { %10295 = vst.msk [vmem:[#allocation6 + $0xe0] sm:$0xf] %vm21423_vm1, %v10216_v38  ;;  %v10846_v19 = vpop.f32.mrf.mxu1 }
 0x744   : > { %v10218_v42 = vpop.permute.xlu1 %10217 }
 0x745   : > { %10296 = vst.msk [vmem:[#allocation6 + $0xe8] sm:$0xf] %vm21424_vm15, %v10218_v42  ;;  %v20029_v17 = vpop.f32.mrf.mxu1  ;;  %vm21439_vm15 = vmmov %vm21423_vm1 }
 0x746   : > { %v10220_v27 = vpop.permute.xlu0 %10219  ;;  %v20045_v16 = vld [vmem:[#allocation6 + $0xd0] ss:$8 sps:$4 sm:$0xff]  }
 0x747   : > { %10297 = vst.msk [vmem:[#allocation6 + $0xf0] sm:$0xf] %vm21425_vm11, %v10220_v27  ;;  %v10849_v44 = vpop.f32.mrf.mxu1  ;;  %vm21440_vm11 = vmmov %vm21435_vm0 }
 0x748   : > { %10915 = vmatmul.mubr.bf16.gmra.mxu1 %v19998_v63  ;;  %11389 = vmatmul.mubr.bf16.gmra.mxu0 %v19998_v63 }
 0x749   : > { %13456 = vmatprep.mubr.msk.bf16.mxu1 %vm21427_vm7, %v20001_v13  ;;  %13539 = vmatprep.mubr.msk.bf16.mxu0 %vm21428_vm4, %v20001_v13  ;;  %vm21442_vm7 = vmmov %vm21435_vm0 }
 0x74a   : > { %vm21443_vm4 = vmmov %vm21435_vm0 }
 0x74c   : > { %v20055_v57 = vld [vmem:[#allocation6 + $0xe0] ss:$8 sps:$4 sm:$0xff]  }
 0x74f   : > { %v10222_v28 = vpop.permute.xlu1 %10221 }
 0x750   : > { %10298 = vst.msk [vmem:[#allocation6 + $0xf8] sm:$0xf] %vm21426_vm14, %v10222_v28  ;;  %10923 = vmatmul.mubr.bf16.gmra.mxu1 %v20011_v23  ;;  %11397 = vmatmul.mubr.bf16.gmra.mxu0 %v20011_v23  ;;  %vm21441_vm14 = vmmov %vm21435_vm0 }
 0x751   : > { %13457 = vmatprep.mubr.msk.bf16.mxu1 %vm21431_vm8, %v20013_v60  ;;  %13540 = vmatprep.mubr.msk.bf16.mxu0 %vm21432_vm12, %v20013_v60  ;;  %vm21446_vm8 = vmmov %vm21435_vm0 }
 0x752   : > { %vm21447_vm12 = vmmov %vm21435_vm0 }
 0x753   : > { %v10224_v54 = vpop.permute.xlu0 %10223 }
 0x754   : > { %10299 = vst.msk [vmem:[#allocation6 + $0x100] sm:$0xf] %vm21429_vm6, %v10224_v54  ;;  %v10226_v2 = vpop.permute.xlu1 %10225  ;;  %vm21444_vm6 = vmmov %vm21435_vm0 }
 0x755   : > { %10300 = vst.msk [vmem:[#allocation6 + $0x108] sm:$0xf] %vm21430_vm13, %v10226_v2  ;;  %vm21445_vm13 = vmmov %vm21435_vm0 }
 0x757   : > { %v20067_v40 = vld [vmem:[#allocation6 + $0xf0] ss:$8 sps:$4 sm:$0xff]  }
 0x758   : > { %10931 = vmatmul.mubr.bf16.gmra.mxu1 %v20023_v18  ;;  %11405 = vmatmul.mubr.bf16.gmra.mxu0 %v20023_v18  ;;  %v10230_v52 = vpop.permute.xlu1 %10229 }
 0x759   : > { %13458 = vmatprep.mubr.msk.bf16.mxu1 %vm21433_vm3, %v20025_v59  ;;  %13541 = vmatprep.mubr.msk.bf16.mxu0 %vm21434_vm9, %v20025_v59  ;;  %10302 = vst.msk [vmem:[#allocation6 + $0x118] sm:$0xf] %vm21423_vm1, %v10230_v52  ;;  %vm21448_vm3 = vmmov %vm21435_vm0 }
 0x75a   : > { %vm21449_vm9 = vmmov %vm21435_vm0 }
 0x75b   : > { %vm21453_vm1 = vmmov %vm21435_vm0 }
 0x75c   : > { %v10228_v48 = vpop.permute.xlu0 %10227  ;;  %v20077_v24 = vld [vmem:[#allocation6 + $0x100] ss:$8 sps:$4 sm:$0xff]  }
 0x75d   : > { %10301 = vst.msk [vmem:[#allocation6 + $0x110] sm:$0xf] %vm21439_vm15, %v10228_v48  ;;  %vm21454_vm15 = vmmov %vm21435_vm0 }
 0x760   : > { %10939 = vmatmul.mubr.bf16.gmra.mxu1 %v20035_v12  ;;  %11413 = vmatmul.mubr.bf16.gmra.mxu0 %v20035_v12 }
 0x761   : > { %13459 = vmatprep.mubr.msk.bf16.mxu1 %vm21435_vm0, %v20037_v20  ;;  %13542 = vmatprep.mubr.msk.bf16.mxu0 %vm21436_vm5, %v20037_v20  ;;  %vm21450_vm5 = vmmov %vm21435_vm0 }
 0x764   : > { %v15362_v34 = vld [vmem:[#allocation6 + $0x110] ss:$8 sps:$4 sm:$0xff]  }
 0x768   : > { %10947 = vmatmul.mubr.bf16.gmra.mxu1 %v20045_v16  ;;  %11421 = vmatmul.mubr.bf16.gmra.mxu0 %v20045_v16 }
 0x769   : > { %13460 = vmatprep.mubr.msk.bf16.mxu1 %vm21437_vm10, %v20047_v10  ;;  %13543 = vmatprep.mubr.msk.bf16.mxu0 %vm21438_vm2, %v20047_v10  ;;  %vm21451_vm10 = vmmov %vm21435_vm0 }
 0x76a   : > { %vm21452_vm2 = vmmov %vm21435_vm0 }
 0x770   : > { %10955 = vmatmul.mubr.bf16.gmra.mxu1 %v20055_v57  ;;  %11429 = vmatmul.mubr.bf16.gmra.mxu0 %v20055_v57 }
 0x771   : > { %13461 = vmatprep.mubr.msk.bf16.mxu1 %vm21440_vm11, %v20059_v51  ;;  %13544 = vmatprep.mubr.msk.bf16.mxu0 %vm21441_vm14, %v20059_v51  ;;  %vm21455_vm11 = vmmov %vm21435_vm0 }
 0x772   : > { %vm21456_vm14 = vmmov %vm21435_vm0 }
 0x778   : > { %10963 = vmatmul.mubr.bf16.gmra.mxu1 %v20067_v40  ;;  %11437 = vmatmul.mubr.bf16.gmra.mxu0 %v20067_v40 }
 0x779   : > { %13545 = vmatprep.mubr.msk.bf16.mxu0 %vm21442_vm7, %v20069_v35  ;;  %13614 = vmatprep.mubr.msk.bf16.mxu1 %vm21443_vm4, %v19899_v43  ;;  %v12095_v43 = vld [vmem:[%s20292_s11] sm:$0xff]  ;;  %vm21457_vm7 = vmmov %vm21435_vm0 }
 0x77a   : > { %12101 = vperm.xlu0 %14898, %v12095_v43  }
 0x780   : > { %11445 = vmatmul.mubr.bf16.gmra.mxu0 %v20077_v24  ;;  %11839 = vmatmul.mubr.bf16.vlgmr.msra.gmra.mxu1 %v19906_v22  ;;  %v12098_v22 = vld [vmem:[%s20292_s11 + $0x18] sm:$0xff] }
 0x781   : > { %13615 = vmatprep.mubr.msk.bf16.mxu1 %vm21444_vm6, %v19909_v32  ;;  %12116 = vperm.xlu0 %14898, %v12098_v22   ;;  %v20116_v32 = vld [vmem:[%s20291_s10] ss:$0 sm:$0xff] }
 0x782   : > { %v10848_v7 = vadd.f32 %v20116_v32, %v20029_v17 }
 0x788   : > { %11847 = vmatmul.mubr.bf16.gmra.mxu1 %v19919_v8  ;;  %v10845_v8 = vadd.f32 %v20116_v32, %v20021_v11 }
 0x789   : > { %13616 = vmatprep.mubr.msk.bf16.mxu1 %vm21445_vm13, %v19922_v25 }
 0x790   : > { %11855 = vmatmul.mubr.bf16.gmra.mxu1 %v19932_v15 }
 0x791   : > { %13617 = vmatprep.mubr.msk.bf16.mxu1 %vm21446_vm8, %v19934_v5 }
 0x798   : > { %11863 = vmatmul.mubr.bf16.gmra.mxu1 %v19945_v37 }
 0x799   : > { %13618 = vmatprep.mubr.msk.bf16.mxu1 %vm21447_vm12, %v19947_v0 }
 0x7a0   : > { %11871 = vmatmul.mubr.bf16.gmra.mxu1 %v19958_v56 }
 0x7a1   : > { %13619 = vmatprep.mubr.msk.bf16.mxu1 %vm21448_vm3, %v19961_v31 }
 0x7a8   : > { %11879 = vmatmul.mubr.bf16.gmra.mxu1 %v19971_v45 }
 0x7a9   : > { %13620 = vmatprep.mubr.msk.bf16.mxu1 %vm21449_vm9, %v19973_v58 }
 0x7b0   : > { %11887 = vmatmul.mubr.bf16.gmra.mxu1 %v19984_v55 }
 0x7b1   : > { %13621 = vmatprep.mubr.msk.bf16.mxu1 %vm21435_vm0, %v19987_v36 }
 0x7b8   : > { %11895 = vmatmul.mubr.bf16.gmra.mxu1 %v19998_v63 }
 0x7b9   : > { %13622 = vmatprep.mubr.msk.bf16.mxu1 %vm21450_vm5, %v20001_v13 }
 0x7c0   : > { %11903 = vmatmul.mubr.bf16.gmra.mxu1 %v20011_v23 }
 0x7c1   : > { %13623 = vmatprep.mubr.msk.bf16.mxu1 %vm21451_vm10, %v20013_v60 }
 0x7c8   : > { %v10852_v25 = vpop.f32.mrf.mxu1  ;;  %v11326_v15 = vpop.f32.mrf.mxu0  ;;  %11911 = vmatmul.mubr.bf16.gmra.mxu1 %v20023_v18 }
 0x7c9   : > { %v20121_v5 = vadd.f32 %v11326_v15, %v10845_v8  ;;  %13624 = vmatprep.mubr.msk.bf16.mxu1 %vm21452_vm2, %v20025_v59  ;;  %v10853_v62 = vadd.f32 %v20116_v32, %v10852_v25  ;;  %v15360_v15 = vld [vmem:[#allocation6 + $0x114] ss:$8 sps:$4 sm:$0xff]  }
 0x7ca   : > { %v10854_v41 = vpop.f32.mrf.mxu1  ;;  %v11328_v29 = vpop.f32.mrf.mxu0 }
 0x7cc   : > { %v10855_v3 = vpop.f32.mrf.mxu1  ;;  %v11329_v37 = vpop.f32.mrf.mxu0 }
 0x7cd   : > { %v20130_v14 = vadd.f32 %v11329_v37, %v10848_v7  ;;  %v10856_v46 = vadd.f32 %v20116_v32, %v10855_v3 }
 0x7ce   : > { %v10857_v0 = vpop.f32.mrf.mxu1  ;;  %v11331_v4 = vpop.f32.mrf.mxu0 }
 0x7d0   : > { %v10860_v49 = vpop.f32.mrf.mxu1  ;;  %v11334_v39 = vpop.f32.mrf.mxu0  ;;  %11919 = vmatmul.mubr.bf16.gmra.mxu1 %v20035_v12 }
 0x7d1   : > { %v20137_v56 = vadd.f32 %v11334_v39, %v10853_v62  ;;  %13625 = vmatprep.mubr.msk.bf16.mxu1 %vm21453_vm1, %v20037_v20  ;;  %v10861_v61 = vadd.f32 %v20116_v32, %v10860_v49 }
 0x7d2   : > { %v10862_v31 = vpop.f32.mrf.mxu1  ;;  %v11336_v21 = vpop.f32.mrf.mxu0 }
 0x7d4   : > { %v10863_v26 = vpop.f32.mrf.mxu1  ;;  %v11337_v45 = vpop.f32.mrf.mxu0 }
 0x7d5   : > { %v20142_v1 = vadd.f32 %v11337_v45, %v10856_v46  ;;  %v10864_v38 = vadd.f32 %v20116_v32, %v10863_v26 }
 0x7d6   : > { %v10865_v58 = vpop.f32.mrf.mxu1  ;;  %v11339_v47 = vpop.f32.mrf.mxu0 }
 0x7d8   : > { %v10868_v30 = vpop.f32.mrf.mxu1  ;;  %v11342_v6 = vpop.f32.mrf.mxu0  ;;  %11927 = vmatmul.mubr.bf16.gmra.mxu1 %v20045_v16 }
 0x7d9   : > { %v20146_v50 = vadd.f32 %v11342_v6, %v10861_v61  ;;  %13626 = vmatprep.mubr.msk.bf16.mxu1 %vm21454_vm15, %v20047_v10  ;;  %v10869_v54 = vadd.f32 %v20116_v32, %v10868_v30 }
 0x7da   : > { %v10870_v55 = vpop.f32.mrf.mxu1  ;;  %v11344_v36 = vpop.f32.mrf.mxu0 }
 0x7dc   : > { %v10871_v42 = vpop.f32.mrf.mxu1  ;;  %v11345_v27 = vpop.f32.mrf.mxu0 }
 0x7dd   : > { %v20151_v28 = vadd.f32 %v11345_v27, %v10864_v38  ;;  %v10872_v18 = vadd.f32 %v20116_v32, %v10871_v42 }
 0x7de   : > { %v10873_v63 = vpop.f32.mrf.mxu1  ;;  %v11347_v13 = vpop.f32.mrf.mxu0 }
 0x7e0   : > { %v10876_v2 = vpop.f32.mrf.mxu1  ;;  %v11350_v23 = vpop.f32.mrf.mxu0  ;;  %11935 = vmatmul.mubr.bf16.gmra.mxu1 %v20055_v57 }
 0x7e1   : > { %v20155_v60 = vadd.f32 %v11350_v23, %v10869_v54  ;;  %13627 = vmatprep.mubr.msk.bf16.mxu1 %vm21455_vm11, %v20059_v51  ;;  %v10877_v16 = vadd.f32 %v20116_v32, %v10876_v2 }
 0x7e2   : > { %v10878_v11 = vpop.f32.mrf.mxu1  ;;  %v11352_v19 = vpop.f32.mrf.mxu0 }
 0x7e4   : > { %v10879_v59 = vpop.f32.mrf.mxu1  ;;  %v11353_v17 = vpop.f32.mrf.mxu0 }
 0x7e5   : > { %v20160_v44 = vadd.f32 %v11353_v17, %v10872_v18  ;;  %v10880_v43 = vadd.f32 %v20116_v32, %v10879_v59 }
 0x7e6   : > { %v10881_v12 = vpop.f32.mrf.mxu1  ;;  %v11355_v20 = vpop.f32.mrf.mxu0 }
 0x7e8   : > { %v10884_v10 = vpop.f32.mrf.mxu1  ;;  %v11358_v52 = vpop.f32.mrf.mxu0  ;;  %11943 = vmatmul.mubr.bf16.gmra.mxu1 %v20067_v40 }
 0x7e9   : > { %v20164_v48 = vadd.f32 %v11358_v52, %v10877_v16  ;;  %13628 = vmatprep.mubr.msk.bf16.mxu1 %vm21456_vm14, %v20069_v35  ;;  %v10885_v7 = vadd.f32 %v20116_v32, %v10884_v10 }
 0x7ea   : > { %v10886_v57 = vpop.f32.mrf.mxu1  ;;  %v11360_v51 = vpop.f32.mrf.mxu0 }
 0x7ec   : > { %v10887_v22 = vpop.f32.mrf.mxu1  ;;  %v11361_v8 = vpop.f32.mrf.mxu0 }
 0x7ed   : > { %v20169_v25 = vadd.f32 %v11361_v8, %v10880_v43  ;;  %v10888_v0 = vadd.f32 %v20116_v32, %v10887_v22 }
 0x7ee   : > { %v10889_v41 = vpop.f32.mrf.mxu1  ;;  %v11363_v29 = vpop.f32.mrf.mxu0 }
 0x7f0   : > { %v10892_v53 = vpop.f32.mrf.mxu1  ;;  %v11366_v40 = vpop.f32.mrf.mxu0  ;;  %11951 = vmatmul.mubr.bf16.gmra.mxu1 %v20077_v24 }
 0x7f1   : > { %v20173_v3 = vadd.f32 %v11366_v40, %v10885_v7  ;;  %13629 = vmatprep.mubr.msk.bf16.mxu1 %vm21457_vm7, %v15360_v15  ;;  %v10893_v21 = vadd.f32 %v20116_v32, %v10892_v53 }
 0x7f2   : > { %v10894_v35 = vpop.f32.mrf.mxu1  ;;  %v11368_v37 = vpop.f32.mrf.mxu0 }
 0x7f4   : > { %v10895_v4 = vpop.f32.mrf.mxu1  ;;  %v11369_v62 = vpop.f32.mrf.mxu0 }
 0x7f5   : > { %v20177_v49 = vadd.f32 %v11369_v62, %v10888_v0  ;;  %v10896_v58 = vadd.f32 %v20116_v32, %v10895_v4 }
 0x7f6   : > { %v10897_v39 = vpop.f32.mrf.mxu1  ;;  %v11371_v31 = vpop.f32.mrf.mxu0 }
 0x7f8   : > { %v10900_v46 = vpop.f32.mrf.mxu1  ;;  %v11374_v9 = vpop.f32.mrf.mxu0  ;;  %11959 = vmatmul.mubr.bf16.gmra.mxu1 %v15362_v34 }
 0x7f9   : > { %v20180_v24 = vadd.f32 %v11374_v9, %v10893_v21  ;;  %v10901_v36 = vadd.f32 %v20116_v32, %v10900_v46 }
 0x7fa   : > { %v10902_v26 = vpop.f32.mrf.mxu1  ;;  %v11376_v45 = vpop.f32.mrf.mxu0 }
 0x7fc   : > { %v10903_v47 = vpop.f32.mrf.mxu1  ;;  %v11377_v61 = vpop.f32.mrf.mxu0 }
 0x7fd   : > { %v20183_v30 = vadd.f32 %v11377_v61, %v10896_v58  ;;  %v10904_v54 = vadd.f32 %v20116_v32, %v10903_v47 }
 0x7fe   : > { %v10905_v6 = vpop.f32.mrf.mxu1  ;;  %v11379_v55 = vpop.f32.mrf.mxu0 }
 0x800   : > { %v10908_v38 = vpop.f32.mrf.mxu1  ;;  %v11382_v42 = vpop.f32.mrf.mxu0 }
 0x801   : > { %v20186_v27 = vadd.f32 %v11382_v42, %v10901_v36  ;;  %v10909_v59 = vadd.f32 %v20116_v32, %v10908_v38 }
 0x802   : > { %v10910_v63 = vpop.f32.mrf.mxu1  ;;  %v11384_v13 = vpop.f32.mrf.mxu0 }
 0x804   : > { %v10911_v2 = vpop.f32.mrf.mxu1  ;;  %v11385_v23 = vpop.f32.mrf.mxu0 }
 0x805   : > { %v20189_v11 = vadd.f32 %v11385_v23, %v10904_v54  ;;  %v10912_v52 = vadd.f32 %v20116_v32, %v10911_v2 }
 0x806   : > { %v10913_v19 = vpop.f32.mrf.mxu1  ;;  %v11387_v18 = vpop.f32.mrf.mxu0 }
 0x808   : > { %v10916_v17 = vpop.f32.mrf.mxu1  ;;  %v11390_v12 = vpop.f32.mrf.mxu0 }
 0x809   : > { %v20192_v20 = vadd.f32 %v11390_v12, %v10909_v59  ;;  %v10917_v15 = vadd.f32 %v20116_v32, %v10916_v17 }
 0x80a   : > { %v10918_v16 = vpop.f32.mrf.mxu1  ;;  %v11392_v10 = vpop.f32.mrf.mxu0 }
 0x80c   : > { %v10919_v57 = vpop.f32.mrf.mxu1  ;;  %v11393_v51 = vpop.f32.mrf.mxu0 }
 0x80d   : > { %v20195_v43 = vadd.f32 %v11393_v51, %v10912_v52  ;;  %v10920_v35 = vadd.f32 %v20116_v32, %v10919_v57 }
 0x80e   : > { %v10921_v22 = vpop.f32.mrf.mxu1  ;;  %v11395_v8 = vpop.f32.mrf.mxu0 }
 0x810   : > { %v10924_v41 = vpop.f32.mrf.mxu1  ;;  %v11398_v29 = vpop.f32.mrf.mxu0 }
 0x811   : > { %v20198_v7 = vadd.f32 %v11398_v29, %v10917_v15  ;;  %v10925_v39 = vadd.f32 %v20116_v32, %v10924_v41 }
 0x812   : > { %v10926_v53 = vpop.f32.mrf.mxu1  ;;  %v11400_v40 = vpop.f32.mrf.mxu0 }
 0x814   : > { %v10927_v37 = vpop.f32.mrf.mxu1  ;;  %v11401_v0 = vpop.f32.mrf.mxu0 }
 0x815   : > { %v20201_v4 = vadd.f32 %v11401_v0, %v10920_v35  ;;  %v10928_v45 = vadd.f32 %v20116_v32, %v10927_v37 }
 0x816   : > { %v10929_v62 = vpop.f32.mrf.mxu1  ;;  %v11403_v34 = vpop.f32.mrf.mxu0 }
 0x818   : > { %v10932_v31 = vpop.f32.mrf.mxu1  ;;  %v11406_v21 = vpop.f32.mrf.mxu0 }
 0x819   : > { %v20204_v46 = vadd.f32 %v11406_v21, %v10925_v39  ;;  %v10933_v36 = vadd.f32 %v20116_v32, %v10932_v31 }
 0x81a   : > { %v10934_v9 = vpop.f32.mrf.mxu1  ;;  %v11408_v26 = vpop.f32.mrf.mxu0 }
 0x81c   : > { %v10935_v58 = vpop.f32.mrf.mxu1  ;;  %v11409_v47 = vpop.f32.mrf.mxu0 }
 0x81d   : > { %v20207_v61 = vadd.f32 %v11409_v47, %v10928_v45  ;;  %v10936_v2 = vadd.f32 %v20116_v32, %v10935_v58 }
 0x81e   : > { %v10937_v6 = vpop.f32.mrf.mxu1  ;;  %v11411_v55 = vpop.f32.mrf.mxu0 }
 0x820   : > { %v10940_v38 = vpop.f32.mrf.mxu1  ;;  %v11414_v42 = vpop.f32.mrf.mxu0 }
 0x821   : > { %v20210_v63 = vadd.f32 %v11414_v42, %v10933_v36  ;;  %v10941_v12 = vadd.f32 %v20116_v32, %v10940_v38 }
 0x822   : > { %v10942_v13 = vpop.f32.mrf.mxu1  ;;  %v11416_v54 = vpop.f32.mrf.mxu0 }
 0x824   : > { %v10943_v23 = vpop.f32.mrf.mxu1  ;;  %v11417_v19 = vpop.f32.mrf.mxu0 }
 0x825   : > { %v20213_v18 = vadd.f32 %v11417_v19, %v10936_v2  ;;  %v10944_v22 = vadd.f32 %v20116_v32, %v10943_v23 }
 0x826   : > { %v10945_v59 = vpop.f32.mrf.mxu1  ;;  %v11419_v17 = vpop.f32.mrf.mxu0 }
 0x828   : > { %v10948_v16 = vpop.f32.mrf.mxu1  ;;  %v11422_v10 = vpop.f32.mrf.mxu0 }
 0x829   : > { %v20216_v52 = vadd.f32 %v11422_v10, %v10941_v12  ;;  %v10949_v40 = vadd.f32 %v20116_v32, %v10948_v16 }
 0x82a   : > { %v10950_v57 = vpop.f32.mrf.mxu1  ;;  %v11424_v51 = vpop.f32.mrf.mxu0 }
 0x82c   : > { %v10951_v8 = vpop.f32.mrf.mxu1  ;;  %v11425_v15 = vpop.f32.mrf.mxu0 }
 0x82d   : > { %v20219_v41 = vadd.f32 %v11425_v15, %v10944_v22  ;;  %v10952_v39 = vadd.f32 %v20116_v32, %v10951_v8 }
 0x82e   : > { %v10953_v29 = vpop.f32.mrf.mxu1  ;;  %v11427_v53 = vpop.f32.mrf.mxu0 }
 0x830   : > { %v10956_v35 = vpop.f32.mrf.mxu1  ;;  %v11430_v37 = vpop.f32.mrf.mxu0 }
 0x831   : > { %v20222_v0 = vadd.f32 %v11430_v37, %v10949_v40  ;;  %v10957_v58 = vadd.f32 %v20116_v32, %v10956_v35 }
 0x832   : > { %v10958_v62 = vpop.f32.mrf.mxu1  ;;  %v11432_v34 = vpop.f32.mrf.mxu0 }
 0x834   : > { %v10959_v31 = vpop.f32.mrf.mxu1  ;;  %v11433_v21 = vpop.f32.mrf.mxu0 }
 0x835   : > { %v20225_v9 = vadd.f32 %v11433_v21, %v10952_v39  ;;  %v10960_v42 = vadd.f32 %v20116_v32, %v10959_v31 }
 0x836   : > { %v10961_v26 = vpop.f32.mrf.mxu1  ;;  %v11435_v45 = vpop.f32.mrf.mxu0 }
 0x838   : > { %v10964_v47 = vpop.f32.mrf.mxu1  ;;  %v11438_v6 = vpop.f32.mrf.mxu0 }
 0x839   : > { %v20228_v55 = vadd.f32 %v11438_v6, %v10957_v58  ;;  %v10965_v59 = vadd.f32 %v20116_v32, %v10964_v47 }
 0x83a   : > { %v10966_v36 = vpop.f32.mrf.mxu1  ;;  %v11440_v38 = vpop.f32.mrf.mxu0 }
 0x83c   : > { %v10967_v13 = vpop.f32.mrf.mxu1  ;;  %v11441_v54 = vpop.f32.mrf.mxu0 }
 0x83d   : > { %v20231_v2 = vadd.f32 %v11441_v54, %v10960_v42  ;;  %v10968_v22 = vadd.f32 %v20116_v32, %v10967_v13 }
 0x83e   : > { %v10969_v23 = vpop.f32.mrf.mxu1  ;;  %v11443_v19 = vpop.f32.mrf.mxu0 }
 0x840   : > { %v11446_v17 = vpop.f32.mrf.mxu0  ;;  %v11840_v12 = vpop.f32.mrf.mxu1 }
 0x841   : > { %v20234_v16 = vadd.f32 %v11446_v17, %v10965_v59  ;;  %v11967_v10 = vadd.f32 %v11840_v12, %v20121_v5 }
 0x842   : > { %v11448_v57 = vpop.f32.mrf.mxu0  ;;  %v11842_v51 = vpop.f32.mrf.mxu1 }
 0x843   : > { %v11999_v8 = vmax.f32 %v11967_v10, 0.0 }
 0x844   : > { %v11449_v15 = vpop.f32.mrf.mxu0  ;;  %v11843_v29 = vpop.f32.mrf.mxu1 }
 0x845   : > { %v20238_v53 = vadd.f32 %v11449_v15, %v10968_v22  ;;  %v11968_v40 = vadd.f32 %v11843_v29, %v20130_v14  ;;  %12031 = vxpose.xlu0.b32.start [1/16] (narrow) %v11999_v8, 32 }
 0x846   : > { %v11451_v35 = vpop.f32.mrf.mxu0  ;;  %v11845_v37 = vpop.f32.mrf.mxu1 }
 0x847   : > { %v12000_v62 = vmax.f32 %v11968_v40, 0.0 }
 0x848   : > { %v11848_v34 = vpop.f32.mrf.mxu1 }
 0x849   : > { %v11969_v39 = vadd.f32 %v11848_v34, %v20137_v56  ;;  %12032 = vxpose.xlu0.b32.cont [2/16] (narrow) %v12000_v62, 32 }
 0x84a   : > { %v11850_v5 = vpop.f32.mrf.mxu1 }
 0x84b   : > { %v12001_v31 = vmax.f32 %v11969_v39, 0.0 }
 0x84c   : > { %v11851_v21 = vpop.f32.mrf.mxu1 }
 0x84d   : > { %v11970_v32 = vadd.f32 %v11851_v21, %v20142_v1  ;;  %12033 = vxpose.xlu0.b32.cont [3/16] (narrow) %v12001_v31, 32 }
 0x84e   : > { %v11853_v26 = vpop.f32.mrf.mxu1 }
 0x84f   : > { %v12002_v45 = vmax.f32 %v11970_v32, 0.0 }
 0x850   : > { %v11856_v58 = vpop.f32.mrf.mxu1 }
 0x851   : > { %v11971_v47 = vadd.f32 %v11856_v58, %v20146_v50  ;;  %12034 = vxpose.xlu0.b32.cont [4/16] (narrow) %v12002_v45, 32 }
 0x852   : > { %v11858_v14 = vpop.f32.mrf.mxu1 }
 0x853   : > { %v12003_v6 = vmax.f32 %v11971_v47, 0.0 }
 0x854   : > { %v11859_v36 = vpop.f32.mrf.mxu1 }
 0x855   : > { %v11972_v38 = vadd.f32 %v11859_v36, %v20151_v28  ;;  %12035 = vxpose.xlu0.b32.cont [5/16] (narrow) %v12003_v6, 32 }
 0x856   : > { %v11861_v56 = vpop.f32.mrf.mxu1 }
 0x857   : > { %v12004_v42 = vmax.f32 %v11972_v38, 0.0 }
 0x858   : > { %v11864_v13 = vpop.f32.mrf.mxu1 }
 0x859   : > { %v11973_v54 = vadd.f32 %v11864_v13, %v20155_v60  ;;  %12036 = vxpose.xlu0.b32.cont [6/16] (narrow) %v12004_v42, 32 }
 0x85a   : > { %v11866_v1 = vpop.f32.mrf.mxu1 }
 0x85b   : > { %v12005_v23 = vmax.f32 %v11973_v54, 0.0 }
 0x85c   : > { %v11867_v19 = vpop.f32.mrf.mxu1 }
 0x85d   : > { %v11974_v59 = vadd.f32 %v11867_v19, %v20160_v44  ;;  %12037 = vxpose.xlu0.b32.cont [7/16] (narrow) %v12005_v23, 32 }
 0x85e   : > { %v11869_v50 = vpop.f32.mrf.mxu1 }
 0x85f   : > { %v12006_v17 = vmax.f32 %v11974_v59, 0.0 }
 0x860   : > { %v11872_v12 = vpop.f32.mrf.mxu1 }
 0x861   : > { %v11975_v10 = vadd.f32 %v11872_v12, %v20164_v48  ;;  %12038 = vxpose.xlu0.b32.cont [8/16] (narrow) %v12006_v17, 32 }
 0x862   : > { %v11874_v28 = vpop.f32.mrf.mxu1 }
 0x863   : > { %v12007_v57 = vmax.f32 %v11975_v10, 0.0 }
 0x864   : > { %v11875_v51 = vpop.f32.mrf.mxu1 }
 0x865   : > { %v11976_v22 = vadd.f32 %v11875_v51, %v20169_v25  ;;  %12039 = vxpose.xlu0.b32.cont [9/16] (narrow) %v12007_v57, 32 }
 0x866   : > { %v11877_v60 = vpop.f32.mrf.mxu1 }
 0x867   : > { %v12008_v8 = vmax.f32 %v11976_v22, 0.0 }
 0x868   : > { %v11880_v15 = vpop.f32.mrf.mxu1 }
 0x869   : > { %v11977_v29 = vadd.f32 %v11880_v15, %v20173_v3  ;;  %12040 = vxpose.xlu0.b32.cont [10/16] (narrow) %v12008_v8, 32 }
 0x86a   : > { %v11882_v44 = vpop.f32.mrf.mxu1 }
 0x86b   : > { %v12009_v40 = vmax.f32 %v11977_v29, 0.0 }
 0x86c   : > { %v11883_v35 = vpop.f32.mrf.mxu1 }
 0x86d   : > { %v11978_v37 = vadd.f32 %v11883_v35, %v20177_v49  ;;  %12041 = vxpose.xlu0.b32.cont [11/16] (narrow) %v12009_v40, 32 }
 0x86e   : > { %v11885_v48 = vpop.f32.mrf.mxu1 }
 0x86f   : > { %v12010_v62 = vmax.f32 %v11978_v37, 0.0 }
 0x870   : > { %v11888_v34 = vpop.f32.mrf.mxu1 }
 0x871   : > { %v11979_v39 = vadd.f32 %v11888_v34, %v20180_v24  ;;  %12042 = vxpose.xlu0.b32.cont [12/16] (narrow) %v12010_v62, 32 }
 0x872   : > { %v11890_v25 = vpop.f32.mrf.mxu1 }
 0x873   : > { %v12011_v5 = vmax.f32 %v11979_v39, 0.0 }
 0x874   : > { %v11891_v31 = vpop.f32.mrf.mxu1 }
 0x875   : > { %v11980_v21 = vadd.f32 %v11891_v31, %v20183_v30  ;;  %12043 = vxpose.xlu0.b32.cont [13/16] (narrow) %v12011_v5, 32 }
 0x876   : > { %v11893_v3 = vpop.f32.mrf.mxu1 }
 0x877   : > { %v12012_v32 = vmax.f32 %v11980_v21, 0.0 }
 0x878   : > { %v11896_v26 = vpop.f32.mrf.mxu1 }
 0x879   : > { %v11981_v45 = vadd.f32 %v11896_v26, %v20186_v27  ;;  %12044 = vxpose.xlu0.b32.cont [14/16] (narrow) %v12012_v32, 32 }
 0x87a   : > { %v11898_v49 = vpop.f32.mrf.mxu1 }
 0x87b   : > { %v12013_v58 = vmax.f32 %v11981_v45, 0.0 }
 0x87c   : > { %v11899_v47 = vpop.f32.mrf.mxu1 }
 0x87d   : > { %v11982_v14 = vadd.f32 %v11899_v47, %v20189_v11  ;;  %12045 = vxpose.xlu0.b32.cont [15/16] (narrow) %v12013_v58, 32 }
 0x87e   : > { %v11901_v24 = vpop.f32.mrf.mxu1 }
 0x87f   : > { %v12014_v6 = vmax.f32 %v11982_v14, 0.0 }
 0x880   : > { %v11904_v36 = vpop.f32.mrf.mxu1 }
 0x881   : > { %v11983_v38 = vadd.f32 %v11904_v36, %v20192_v20  ;;  %12046 = vxpose.xlu0.b32.end [16/16] (narrow) %v12014_v6, 32 }
 0x882   : > { %v11906_v30 = vpop.f32.mrf.mxu1 }
 0x883   : > { %v12015_v56 = vmax.f32 %v11983_v38, 0.0 }
 0x884   : > { %v11907_v42 = vpop.f32.mrf.mxu1 }
 0x885   : > { %v11984_v13 = vadd.f32 %v11907_v42, %v20195_v43  ;;  %12063 = vxpose.xlu1.b32.start [1/16] (narrow) %v12015_v56, 32  ;;  %v12102_v42 = vpop.permute.xlu0 %12101 }
 0x886   : > { %v11909_v27 = vpop.f32.mrf.mxu1 }
 0x887   : > { %v12016_v54 = vmax.f32 %v11984_v13, 0.0 }
 0x888   : > { %v11912_v1 = vpop.f32.mrf.mxu1 }
 0x889   : > { %v11985_v23 = vadd.f32 %v11912_v1, %v20198_v7  ;;  %12064 = vxpose.xlu1.b32.cont [2/16] (narrow) %v12016_v54, 32  ;;  %v12117_v13 = vpop.permute.xlu0 %12116  ;;  %v12107_v54 = vpop.permute.xlu1 %12106 }
 0x88a   : > { %v11914_v11 = vpop.f32.mrf.mxu1 }
 0x88b   : > { %v12017_v19 = vmax.f32 %v11985_v23, 0.0 }
 0x88c   : > { %v11915_v59 = vpop.f32.mrf.mxu1 }
 0x88d   : > { %v11986_v50 = vadd.f32 %v11915_v59, %v20201_v4  ;;  %12065 = vxpose.xlu1.b32.cont [3/16] (narrow) %v12017_v19, 32  ;;  %v12112_v19 = vpop.permute.xlu1 %12111 }
 0x88e   : > { %v11917_v20 = vpop.f32.mrf.mxu1 }
 0x88f   : > { %v12018_v17 = vmax.f32 %v11986_v50, 0.0 }
 0x890   : > { %v11920_v12 = vpop.f32.mrf.mxu1 }
 0x891   : > { %v11987_v10 = vadd.f32 %v11920_v12, %v20204_v46  ;;  %12066 = vxpose.xlu1.b32.cont [4/16] (narrow) %v12018_v17, 32 }
 0x892   : > { %v11922_v43 = vpop.f32.mrf.mxu1 }
 0x893   : > { %v12019_v28 = vmax.f32 %v11987_v10, 0.0  ;;  %v12149_v10 = vpop.permute.xlu1 %12148 }
 0x894   : > { %v11923_v57 = vpop.f32.mrf.mxu1 }
 0x895   : > { %v11988_v51 = vadd.f32 %v11923_v57, %v20207_v61  ;;  %12067 = vxpose.xlu1.b32.cont [5/16] (narrow) %v12019_v28, 32 }
 0x896   : > { %v11925_v7 = vpop.f32.mrf.mxu1 }
 0x897   : > { %v12020_v22 = vmax.f32 %v11988_v51, 0.0 }
 0x898   : > { %v11928_v60 = vpop.f32.mrf.mxu1 }
 0x899   : > { %v11989_v8 = vadd.f32 %v11928_v60, %v20210_v63  ;;  %12068 = vxpose.xlu1.b32.cont [6/16] (narrow) %v12020_v22, 32 }
 0x89a   : > { %v11930_v4 = vpop.f32.mrf.mxu1 }
 0x89b   : > { %v12021_v15 = vmax.f32 %v11989_v8, 0.0 }
 0x89c   : > { %v11931_v29 = vpop.f32.mrf.mxu1 }
 0x89d   : > { %v11990_v44 = vadd.f32 %v11931_v29, %v20213_v18  ;;  %12069 = vxpose.xlu1.b32.cont [7/16] (narrow) %v12021_v15, 32 }
 0x89e   : > { %v11933_v46 = vpop.f32.mrf.mxu1 }
 0x89f   : > { %v12022_v40 = vmax.f32 %v11990_v44, 0.0 }
 0x8a0   : > { %v11936_v35 = vpop.f32.mrf.mxu1 }
 0x8a1   : > { %v11991_v37 = vadd.f32 %v11936_v35, %v20216_v52  ;;  %12070 = vxpose.xlu1.b32.cont [8/16] (narrow) %v12022_v40, 32  ;;  %v12153_v35 = vsub.s32 0, %v21163_v33 }
 0x8a2   : > { %v11938_v61 = vpop.f32.mrf.mxu1 }
 0x8a3   : > { %v12023_v48 = vmax.f32 %v11991_v37, 0.0 }
 0x8a4   : > { %v11939_v62 = vpop.f32.mrf.mxu1 }
 0x8a5   : > { %v11992_v34 = vadd.f32 %v11939_v62, %v20219_v41  ;;  %12071 = vxpose.xlu1.b32.cont [9/16] (narrow) %v12023_v48, 32  ;;  %v12154_v62 = vrot.slane %v12149_v10, %v12153_v35 }
 0x8a6   : > { %v11941_v63 = vpop.f32.mrf.mxu1 }
 0x8a7   : > { %v12024_v39 = vmax.f32 %v11992_v34, 0.0 }
 0x8a8   : > { %v11944_v25 = vpop.f32.mrf.mxu1 }
 0x8a9   : > { %v11993_v5 = vadd.f32 %v11944_v25, %v20222_v0  ;;  %12072 = vxpose.xlu1.b32.cont [10/16] (narrow) %v12024_v39, 32 }
 0x8aa   : > { %v11946_v18 = vpop.f32.mrf.mxu1 }
 0x8ab   : > { %v12025_v31 = vmax.f32 %v11993_v5, 0.0 }
 0x8ac   : > { %v11947_v21 = vpop.f32.mrf.mxu1 }
 0x8ad   : > { %v11994_v3 = vadd.f32 %v11947_v21, %v20225_v9  ;;  %12073 = vxpose.xlu1.b32.cont [11/16] (narrow) %v12025_v31, 32 }
 0x8ae   : > { %v11949_v52 = vpop.f32.mrf.mxu1 }
 0x8af   : > { %v12026_v32 = vmax.f32 %v11994_v3, 0.0 }
 0x8b0   : > { %v11952_v26 = vpop.f32.mrf.mxu1 }
 0x8b1   : > { %v11995_v45 = vadd.f32 %v11952_v26, %v20228_v55  ;;  %12074 = vxpose.xlu1.b32.cont [12/16] (narrow) %v12026_v32, 32 }
 0x8b2   : > { %v11954_v41 = vpop.f32.mrf.mxu1 }
 0x8b3   : > { %v12027_v49 = vmax.f32 %v11995_v45, 0.0  ;;  %v15396_v41 = vmov 1966171168  }
 0x8b4   : > { %v11955_v58 = vpop.f32.mrf.mxu1 }
 0x8b5   : > { %v11996_v47 = vadd.f32 %v11955_v58, %v20231_v2  ;;  %12075 = vxpose.xlu1.b32.cont [13/16] (narrow) %v12027_v49, 32  ;;  %v12173_v49 = vunpack.c.l.s4 %v15396_v41 }
 0x8b6   : > { %v11957_v0 = vpop.f32.mrf.mxu1 }
 0x8b7   : > { %v12028_v14 = vmax.f32 %v11996_v47, 0.0  ;;  %v12174_v58 = vunpack.c.0.s8 %v12173_v49 }
 0x8b8   : > { %v11960_v24 = vpop.f32.mrf.mxu1 }
 0x8b9   : > { %v11997_v6 = vadd.f32 %v11960_v24, %v20234_v16  ;;  %12076 = vxpose.xlu1.b32.cont [14/16] (narrow) %v12028_v14, 32  ;;  %v12177_v0 = vsub.s32 %v12174_v58, %v21163_v33 }
 0x8ba   : > { %v11962_v9 = vpop.f32.mrf.mxu1 }
 0x8bb   : > { %v12029_v36 = vmax.f32 %v11997_v6, 0.0  ;;  %v21458_v9 = vlaneseq }
 0x8bc   : > { %v11963_v38 = vpop.f32.mrf.mxu1 }
 0x8bd   : > { %v11998_v30 = vadd.f32 %v11963_v38, %v20238_v53  ;;  %12077 = vxpose.xlu1.b32.cont [15/16] (narrow) %v12029_v36, 32  ;;  %vm12189_vm4 = vcmp.lt.s32.totalorder %v21458_v9, 256 }
 0x8be   : > { %v11965_v55 = vpop.f32.mrf.mxu1 }
 0x8bf   : > { %v12030_v56 = vmax.f32 %v11998_v30, 0.0 }
 0x8c1   : > { %12078 = vxpose.xlu1.b32.end [16/16] (narrow) %v12030_v56, 32  ;;  %v12047_v27 = vpop.trf.xlu0 }
 0x8c2   : > { %v12119_v23 = vmul.f32 %v12102_v42, %v12047_v27 }
 0x8c5   : > { %v12048_v2 = vpop.trf.xlu0 }
 0x8c6   : > { %v12121_v11 = vmul.f32 %v12107_v54, %v12048_v2 }
 0x8c8   : > { %v12127_v16 = vadd.f32 %v12121_v11, %v12119_v23 }
 0x8c9   : > { %v12049_v1 = vpop.trf.xlu0 }
 0x8ca   : > { %v12123_v59 = vmul.f32 %v12112_v19, %v12049_v1 }
 0x8cc   : > { %v12128_v20 = vadd.f32 %v12127_v16, %v12123_v59 }
 0x8cd   : > { %v12050_v50 = vpop.trf.xlu0 }
 0x8ce   : > { %v12125_v17 = vmul.f32 %v12117_v13, %v12050_v50 }
 0x8d0   : > { %v12129_v12 = vadd.f32 %v12128_v20, %v12125_v17 }
 0x8d2   : > { %v12130_v53 = vrot.slane %v12129_v12, 4 }
 0x8d4   : > { %v12131_v43 = vadd.f32 %v12130_v53, %v12129_v12 }
 0x8d6   : > { %v12132_v57 = vrot.slane %v12131_v43, 2 }
 0x8d8   : > { %v12133_v22 = vadd.f32 %v12132_v57, %v12131_v43 }
 0x8da   : > { %v12134_v29 = vrot.slane %v12133_v22, 1 }
 0x8dc   : > { %v12135_v61 = vadd.f32 %v12134_v29, %v12133_v22 }
 0x8de   : > { %v12155_v63 = vadd.f32 %v12154_v62, %v12135_v61 }
 0x8e0   : > { %v13630_v5 = vmul.f32 -1.442695, %v12155_v63 }
 0x8e2   : > { %15363 = vpow2.f32 %v13630_v5 }
 0x8ef   : > { %v15364_v52 = vpop.eup %15363 }
 0x8f0   : > { %v12163_v32 = vadd.f32 1.0, %v15364_v52 }
 0x901   : > { %v12079_v28 = vpop.trf.xlu1 }
 0x902   : > { %v12120_v8 = vmul.f32 %v12102_v42, %v12079_v28 }
 0x905   : > { %v12080_v51 = vpop.trf.xlu1 }
 0x906   : > { %v12122_v7 = vmul.f32 %v12107_v54, %v12080_v51 }
 0x908   : > { %v12136_v15 = vadd.f32 %v12122_v7, %v12120_v8 }
 0x909   : > { %v12081_v60 = vpop.trf.xlu1 }
 0x90a   : > { %v12124_v4 = vmul.f32 %v12112_v19, %v12081_v60 }
 0x90c   : > { %v12137_v46 = vadd.f32 %v12136_v15, %v12124_v4 }
 0x90d   : > { %v12082_v44 = vpop.trf.xlu1 }
 0x90e   : > { %v12126_v40 = vmul.f32 %v12117_v13, %v12082_v44 }
 0x910   : > { %v12138_v37 = vadd.f32 %v12137_v46, %v12126_v40 }
 0x912   : > { %v12139_v48 = vrot.slane %v12138_v37, 4 }
 0x914   : > { %v12140_v34 = vadd.f32 %v12139_v48, %v12138_v37 }
 0x916   : > { %v12141_v39 = vrot.slane %v12140_v34, 2 }
 0x918   : > { %v12142_v25 = vadd.f32 %v12141_v39, %v12140_v34 }
 0x91a   : > { %v12143_v18 = vrot.slane %v12142_v25, 1 }
 0x91c   : > { %v12144_v31 = vadd.f32 %v12143_v18, %v12142_v25 }
 0x91e   : > { %v12156_v21 = vadd.f32 %v12154_v62, %v12144_v31 }
 0x920   : > { %v13631_v3 = vmul.f32 -1.442695, %v12156_v21 }
 0x922   : > { %15365 = vpow2.f32 %v13631_v3 }
 0x923   : > { %15367 = vrcp.f32 %v12163_v32 }
 0x92f   : > { %v15366_v26 = vpop.eup %15365 }
 0x930   : > { %v12164_v45 = vadd.f32 1.0, %v15366_v26  ;;  %v15368_v47 = vpop.eup %15367 }
 0x932   : > { %15369 = vrcp.f32 %v12164_v45 }
 0x93f   : > { %v15370_v14 = vpop.eup %15369 }
 0x940   : > { %v12171_v24 = vcombine.low %v15368_v47, %v15370_v14 }
 0x942   : > { %v12178_v6 = vrot.slane %v12171_v24, %v12177_v0 }
 0x944   : > { %v12185_v36 = vrot.slane %v12178_v6, %v12177_v0 }
 0x946   : > { %12191 = vst.msk [vmem:[%s440_s25] sm:$0x3] %vm12189_vm4, %v12185_v36 }
 0x947 PF: > { %s25_s27 = sadd.s32 1, %s15388_s27  }
 0x948   : > { %p22_p4 = scmp.ge.s32.totalorder %s25_s27, 4  }
 0x94a   :  { %24 = sbr.rel (!%p22_p4) target bundleno = 3 (0x3), region = 110 }

</bundles_post_ra>
